<compile_context>
chip_gen: v6e
topology: v6e:2x2x1
jax: 0.10.0
libtpu: 0.0.40
codegen_flags: <defaults>
</compile_context>

<pallas_src>
import functools

import numpy as np

import jax
import jax.numpy as jnp
from jax.experimental import pallas as pl
from jax.experimental.pallas import tpu as pltpu


def _round_up(v, m):
    return (v + m - 1) // m * m


# ----------------------------------------------------------------------------
# Pallas kernel 1: "flattened image" convolution for one batch tile.
#
# Input per sample: the space-to-depth'd activation flattened to
# (Hq*Wq + kq-1, Cq) rows.  For kernel-tap t = (qi, qj) the lhs is the
# contiguous row span [qi*Wq + qj, qi*Wq + qj + OH*Wq); a single
# (OH*Wq, Cq) @ (Cq, Cout) matmul per tap, accumulated in f32.  Output rows
# with ow >= valid width are wrap-around garbage and are never read later.
# ----------------------------------------------------------------------------
def _conv_kernel(x_ref, w_ref, b_ref, o_ref, *, kq, wq, m, bt):
    b = b_ref[...]                                    # (1, Cout) f32
    for s in range(bt):
        acc = None
        for t in range(kq * kq):
            qi, qj = t // kq, t % kq
            start = qi * wq + qj
            lhs = x_ref[s, pl.ds(start, m), :]        # (m, Cq) bf16, static slice
            part = jnp.dot(lhs, w_ref[t],
                           preferred_element_type=jnp.float32)
            acc = part if acc is None else acc + part
        o_ref[s] = jnp.maximum(acc + b, 0.0).astype(o_ref.dtype)


def space_to_depth(x, s):
    """(N, H, W, C) -> (N, H//s, W//s, s*s*C), channel index (di*s+dj)*C + c."""
    n, h, w, c = x.shape
    x = x.reshape(n, h // s, s, w // s, s, c)
    x = jnp.transpose(x, (0, 1, 3, 2, 4, 5))
    return x.reshape(n, h // s, w // s, s * s * c)


def conv_layer(h, w_taps, b, *, stride, ksize, bt):
    """h: (Nb, H, Wphys, Cin) bf16 NHWC (extra columns beyond the valid width
    hold garbage that valid outputs never read).  Returns
    (Nb, OH, Wq, Cout) bf16 with valid width = valid_in_width//stride - kq + 1."""
    assert ksize % stride == 0
    kq = ksize // stride
    if stride > 1:
        h = space_to_depth(h, stride)
    nb, hq, wq, cq = h.shape
    oh = hq - kq + 1
    m = oh * wq
    cout = w_taps.shape[-1]

    hf = h.reshape(nb, hq * wq, cq)
    hf = jnp.pad(hf, ((0, 0), (0, kq - 1), (0, 0)))   # kq-1 rows so every tap span fits
    rows = hf.shape[1]

    out = pl.pallas_call(
        functools.partial(_conv_kernel, kq=kq, wq=wq, m=m, bt=bt),
        out_shape=jax.ShapeDtypeStruct((nb, m, cout), jnp.bfloat16),
        grid=(nb // bt,),
        in_specs=[
            pl.BlockSpec((bt, rows, cq), lambda i: (i, 0, 0)),
            pl.BlockSpec((kq * kq, cq, cout), lambda i: (0, 0, 0)),
            pl.BlockSpec((1, cout), lambda i: (0, 0)),
        ],
        out_specs=pl.BlockSpec((bt, m, cout), lambda i: (i, 0, 0)),
        compiler_params=pltpu.CompilerParams(
            dimension_semantics=("parallel",)),
    )(hf, w_taps, b.reshape(1, cout))
    return out.reshape(nb, oh, wq, cout)


# ----------------------------------------------------------------------------
# Pallas kernel 2: fused MLP head  q = relu(x @ w4 + b4) @ w5 + b5
# Weights stay resident (single-buffered); hidden activation never leaves VMEM.
# ----------------------------------------------------------------------------
def _mlp_head_kernel(x_ref, w4_ref, b4_ref, w5_ref, b5_ref, o_ref):
    h = jnp.dot(x_ref[...], w4_ref[...], preferred_element_type=jnp.float32)
    h = jnp.maximum(h + b4_ref[...], 0.0).astype(jnp.bfloat16)
    q = jnp.dot(h, w5_ref[...], preferred_element_type=jnp.float32)
    o_ref[...] = (q + b5_ref[...]).astype(o_ref.dtype)


def mlp_head(x, w4, b4, w5, b5, *, out_cols):
    """x: (M, 3136) bf16, w4: (3136, 512) bf16, w5: (512, Np) bf16, Np % 128 == 0."""
    m, k = x.shape
    hdim = w4.shape[1]
    nout = w5.shape[1]
    assert w4.shape[0] == k and w5.shape[0] == hdim and nout % 128 == 0

    m8 = _round_up(m, 8)
    tm = m8 if m8 <= 512 else 256
    mp = _round_up(m, tm)
    if mp != m:
        x = jnp.pad(x, ((0, mp - m), (0, 0)))

    resident = dict(pipeline_mode=pl.Buffered(1))     # invariant weights: 1 buffer
    out = pl.pallas_call(
        _mlp_head_kernel,
        out_shape=jax.ShapeDtypeStruct((mp, nout), jnp.float32),
        grid=(mp // tm,),
        in_specs=[
            pl.BlockSpec((tm, k), lambda i: (i, 0)),
            pl.BlockSpec((k, hdim), lambda i: (0, 0), **resident),
            pl.BlockSpec((1, hdim), lambda i: (0, 0), **resident),
            pl.BlockSpec((hdim, nout), lambda i: (0, 0), **resident),
            pl.BlockSpec((1, nout), lambda i: (0, 0), **resident),
        ],
        out_specs=pl.BlockSpec((tm, nout), lambda i: (i, 0)),
        compiler_params=pltpu.CompilerParams(
            dimension_semantics=("parallel",),
            vmem_limit_bytes=32 * 1024 * 1024),       # < v7x's 64 MiB physical VMEM
    )(x, w4, b4.reshape(1, hdim), w5, b5.reshape(1, nout))
    return out[:m, :out_cols]


# ----------------------------------------------------------------------------
# Parameter init (PyTorch layout) + one-time prep (tap relayout, bf16, padding)
# ----------------------------------------------------------------------------
def init_params(key, in_channels, output_dim):
    def uniform(key, shape, fan_in):
        bound = 1.0 / jnp.sqrt(float(fan_in))
        return jax.random.uniform(key, shape, jnp.float32, -bound, bound)

    keys = jax.random.split(key, 10)
    params = {}
    params["w1"] = uniform(keys[0], (32, in_channels, 8, 8), in_channels * 64)
    params["b1"] = uniform(keys[1], (32,), in_channels * 64)
    params["w2"] = uniform(keys[2], (64, 32, 4, 4), 32 * 16)
    params["b2"] = uniform(keys[3], (64,), 32 * 16)
    params["w3"] = uniform(keys[4], (64, 64, 3, 3), 64 * 9)
    params["b3"] = uniform(keys[5], (64,), 64 * 9)
    params["w4"] = uniform(keys[6], (512, 3136), 3136)
    params["b4"] = uniform(keys[7], (512,), 3136)
    params["w5"] = uniform(keys[8], (output_dim, 512), 512)
    params["b5"] = uniform(keys[9], (output_dim,), 512)
    return params


def prepare_params(params):
    """Conv weights -> per-tap matmul form (kq*kq, s*s*Cin, Cout) matching the
    space-to-depth channel order, fc weights pre-transposed (NHWC flatten perm
    folded into w4), everything cast to bf16; biases stay f32."""

    def conv_w_taps(w, stride):
        o, c, k, _ = w.shape
        kq = k // stride
        w = jnp.asarray(w).reshape(o, c, kq, stride, kq, stride)
        # (o, c, qi, di, qj, dj) -> (qi, qj, di, dj, c, o)
        w = jnp.transpose(w, (2, 4, 3, 5, 1, 0))
        return w.reshape(kq * kq, stride * stride * c, o).astype(jnp.bfloat16)

    prep = {}
    prep["w1t"] = conv_w_taps(params["w1"], 4)
    prep["b1"] = params["b1"]
    prep["w2t"] = conv_w_taps(params["w2"], 2)
    prep["b2"] = params["b2"]
    prep["w3t"] = conv_w_taps(params["w3"], 1)
    prep["b3"] = params["b3"]

    # PyTorch flattens NCHW (idx = c*49 + h*7 + w); our activations flatten
    # NHWC (idx = h*7*64 + w*64 + c).  Reorder w4's rows once.
    perm = np.arange(64 * 7 * 7).reshape(64, 7, 7).transpose(1, 2, 0).reshape(-1)
    prep["w4t"] = jnp.asarray(params["w4"]).T[perm].astype(jnp.bfloat16)  # (3136, 512)
    prep["b4"] = params["b4"]

    w5t = jnp.asarray(params["w5"]).T                                     # (512, out)
    npad = _round_up(w5t.shape[1], 128) - w5t.shape[1]
    prep["w5t"] = jnp.pad(w5t, ((0, 0), (0, npad))).astype(jnp.bfloat16)
    prep["b5p"] = jnp.pad(params["b5"], (0, npad))
    return prep


# ----------------------------------------------------------------------------
# Full forward pass (matches nn.Sequential in DQN.forward); requires 84x84 input
# because Linear(3136, 512) hardcodes 64*7*7.
# ----------------------------------------------------------------------------
def dqn_forward(prep, x, *, output_dim):
    n = x.shape[0]
    bt = 1 if n < 8 else 8                      # samples per conv grid step
    nb = _round_up(n, bt)
    if nb != n:
        x = jnp.pad(x, ((0, nb - n), (0, 0), (0, 0), (0, 0)))

    x = jnp.transpose(x, (0, 2, 3, 1)).astype(jnp.bfloat16)   # NCHW -> NHWC, bf16
    # Pad W 84 -> 88 so the conv1 output's physical width (88/4 = 22) is even
    # for conv2's stride-2 space-to-depth; valid outputs never read the pad.
    x = jnp.pad(x, ((0, 0), (0, 0), (0, 4), (0, 0)))

    h = conv_layer(x, prep["w1t"], prep["b1"], stride=4, ksize=8, bt=bt)  # (nb,20,22,32) valid 20x20
    h = conv_layer(h, prep["w2t"], prep["b2"], stride=2, ksize=4, bt=bt)  # (nb, 9,11,64) valid  9x9
    h = conv_layer(h, prep["w3t"], prep["b3"], stride=1, ksize=3, bt=bt)  # (nb, 7,11,64) valid  7x7

    h = h[:, :, :7, :].reshape(nb, 7 * 7 * 64)   # drop garbage cols, NHWC flatten
    q = mlp_head(h, prep["w4t"], prep["b4"], prep["w5t"], prep["b5p"],
                 out_cols=output_dim)
    return q[:n]


# ----------------------------------------------------------------------------
# Pure-JAX f32 reference for verification
# ----------------------------------------------------------------------------
def dqn_reference(params, x):
    dn = ("NCHW", "OIHW", "NCHW")

    def conv(x, w, b, s):
        y = jax.lax.conv_general_dilated(x, w, (s, s), "VALID", dimension_numbers=dn)
        return y + b.reshape(1, -1, 1, 1)

    h = jax.nn.relu(conv(x, params["w1"], params["b1"], 4))
    h = jax.nn.relu(conv(h, params["w2"], params["b2"], 2))
    h = jax.nn.relu(conv(h, params["w3"], params["b3"], 1))
    h = h.reshape(x.shape[0], -1)
    h = jax.nn.relu(h @ params["w4"].T + params["b4"])
    return h @ params["w5"].T + params["b5"]


if __name__ == "__main__":
    # Spatial size must be 84x84 because Linear(3136, 512) hardcodes 64*7*7.
    batch, in_channels, height, width = 2, 4, 84, 84
    output_dim = 6

    key = jax.random.PRNGKey(0)
    k_params, k_x = jax.random.split(key)
    params = init_params(k_params, in_channels, output_dim)
    prep = prepare_params(params)
    x = jax.random.normal(k_x, (batch, in_channels, height, width), jnp.float32)

    fwd = jax.jit(functools.partial(dqn_forward, output_dim=output_dim))
    q = jax.block_until_ready(fwd(prep, x))
    assert q.shape == (batch, output_dim), q.shape

    q_ref = jax.block_until_ready(dqn_reference(params, x))
    if not jnp.allclose(q, q_ref, rtol=5e-2, atol=5e-2):   # bf16-matmul tolerance
        raise AssertionError("Pallas DQN output mismatches JAX reference")

    print("KERNEL_OK")
</pallas_src>

<mosaic_0001>
module attributes {stable_mosaic.version = 11 : i64} {
  func.func @_conv_kernel(%arg0: i32, %arg1: memref<1x463x64xbf16, #tpu.memory_space<vmem>>, %arg2: memref<4x64x32xbf16, #tpu.memory_space<vmem>>, %arg3: memref<1x32xf32, #tpu.memory_space<vmem>>, %arg4: memref<1x440x32xbf16, #tpu.memory_space<vmem>>) attributes {dimension_semantics = [#tpu.dimension_semantics<parallel>], iteration_bounds = array<i64: 2>, scalar_prefetch = 0 : i64, scratch_operands = 0 : i64, tpu.core_type = #tpu.core_type<tc>, window_params = [{transform_indices = @transform_0, window_bounds = array<i64: 1, 463, 64>}, {pipeline_mode = #tpu.pipeline_mode<synchronous>, transform_indices = @transform_1, window_bounds = array<i64: 4, 64, 32>}, {pipeline_mode = #tpu.pipeline_mode<synchronous>, transform_indices = @transform_2, window_bounds = array<i64: 1, 32>}, {transform_indices = @transform_3, window_bounds = array<i64: 1, 440, 32>}]} {
    %c0 = arith.constant 0 : index
    %c0_0 = arith.constant 0 : index
    %0 = vector.load %arg3[%c0, %c0_0] : memref<1x32xf32, #tpu.memory_space<vmem>>, vector<1x32xf32>
    %c0_1 = arith.constant 0 : index
    %c0_2 = arith.constant 0 : index
    %c0_3 = arith.constant 0 : index
    %1 = vector.load %arg1[%c0_1, %c0_2, %c0_3] : memref<1x463x64xbf16, #tpu.memory_space<vmem>>, vector<1x440x64xbf16>
    %2 = vector.shape_cast %1 : vector<1x440x64xbf16> to vector<440x64xbf16>
    %c0_4 = arith.constant 0 : index
    %c0_5 = arith.constant 0 : index
    %c0_6 = arith.constant 0 : index
    %3 = vector.load %arg2[%c0_4, %c0_5, %c0_6] : memref<4x64x32xbf16, #tpu.memory_space<vmem>>, vector<1x64x32xbf16>
    %4 = vector.shape_cast %3 : vector<1x64x32xbf16> to vector<64x32xbf16>
    %cst = arith.constant dense<0.000000e+00> : vector<440x32xf32>
    %5 = tpu.matmul %2, %4, %cst {dimension_numbers = #tpu.dot_dimension_numbers<[1], [0], [0], [1], [0, 0, 1, 1], [], []>} : vector<440x64xbf16>, vector<64x32xbf16>, vector<440x32xf32> -> vector<440x32xf32>
    %c0_7 = arith.constant 0 : index
    %c1 = arith.constant 1 : index
    %c0_8 = arith.constant 0 : index
    %6 = vector.load %arg1[%c0_7, %c1, %c0_8] : memref<1x463x64xbf16, #tpu.memory_space<vmem>>, vector<1x440x64xbf16>
    %7 = vector.shape_cast %6 : vector<1x440x64xbf16> to vector<440x64xbf16>
    %c1_9 = arith.constant 1 : index
    %c0_10 = arith.constant 0 : index
    %c0_11 = arith.constant 0 : index
    %8 = vector.load %arg2[%c1_9, %c0_10, %c0_11] : memref<4x64x32xbf16, #tpu.memory_space<vmem>>, vector<1x64x32xbf16>
    %9 = vector.shape_cast %8 : vector<1x64x32xbf16> to vector<64x32xbf16>
    %cst_12 = arith.constant dense<0.000000e+00> : vector<440x32xf32>
    %10 = tpu.matmul %7, %9, %cst_12 {dimension_numbers = #tpu.dot_dimension_numbers<[1], [0], [0], [1], [0, 0, 1, 1], [], []>} : vector<440x64xbf16>, vector<64x32xbf16>, vector<440x32xf32> -> vector<440x32xf32>
    %11 = arith.addf %5, %10 : vector<440x32xf32>
    %c0_13 = arith.constant 0 : index
    %c22 = arith.constant 22 : index
    %c0_14 = arith.constant 0 : index
    %12 = vector.load %arg1[%c0_13, %c22, %c0_14] : memref<1x463x64xbf16, #tpu.memory_space<vmem>>, vector<1x440x64xbf16>
    %13 = vector.shape_cast %12 : vector<1x440x64xbf16> to vector<440x64xbf16>
    %c2 = arith.constant 2 : index
    %c0_15 = arith.constant 0 : index
    %c0_16 = arith.constant 0 : index
    %14 = vector.load %arg2[%c2, %c0_15, %c0_16] : memref<4x64x32xbf16, #tpu.memory_space<vmem>>, vector<1x64x32xbf16>
    %15 = vector.shape_cast %14 : vector<1x64x32xbf16> to vector<64x32xbf16>
    %cst_17 = arith.constant dense<0.000000e+00> : vector<440x32xf32>
    %16 = tpu.matmul %13, %15, %cst_17 {dimension_numbers = #tpu.dot_dimension_numbers<[1], [0], [0], [1], [0, 0, 1, 1], [], []>} : vector<440x64xbf16>, vector<64x32xbf16>, vector<440x32xf32> -> vector<440x32xf32>
    %17 = arith.addf %11, %16 : vector<440x32xf32>
    %c0_18 = arith.constant 0 : index
    %c23 = arith.constant 23 : index
    %c0_19 = arith.constant 0 : index
    %18 = vector.load %arg1[%c0_18, %c23, %c0_19] : memref<1x463x64xbf16, #tpu.memory_space<vmem>>, vector<1x440x64xbf16>
    %19 = vector.shape_cast %18 : vector<1x440x64xbf16> to vector<440x64xbf16>
    %c3 = arith.constant 3 : index
    %c0_20 = arith.constant 0 : index
    %c0_21 = arith.constant 0 : index
    %20 = vector.load %arg2[%c3, %c0_20, %c0_21] : memref<4x64x32xbf16, #tpu.memory_space<vmem>>, vector<1x64x32xbf16>
    %21 = vector.shape_cast %20 : vector<1x64x32xbf16> to vector<64x32xbf16>
    %cst_22 = arith.constant dense<0.000000e+00> : vector<440x32xf32>
    %22 = tpu.matmul %19, %21, %cst_22 {dimension_numbers = #tpu.dot_dimension_numbers<[1], [0], [0], [1], [0, 0, 1, 1], [], []>} : vector<440x64xbf16>, vector<64x32xbf16>, vector<440x32xf32> -> vector<440x32xf32>
    %23 = arith.addf %17, %22 : vector<440x32xf32>
    %24 = vector.broadcast %0 : vector<1x32xf32> to vector<440x32xf32>
    %25 = arith.addf %23, %24 : vector<440x32xf32>
    %cst_23 = arith.constant 0.000000e+00 : f32
    %26 = vector.broadcast %cst_23 : f32 to vector<440x32xf32>
    %27 = arith.maximumf %25, %26 : vector<440x32xf32>
    %28 = arith.truncf %27 : vector<440x32xf32> to vector<440x32xbf16>
    %c0_24 = arith.constant 0 : index
    %c0_25 = arith.constant 0 : index
    %c0_26 = arith.constant 0 : index
    %29 = vector.load %arg4[%c0_24, %c0_25, %c0_26] : memref<1x440x32xbf16, #tpu.memory_space<vmem>>, vector<1x440x32xbf16>
    %30 = vector.shape_cast %29 : vector<1x440x32xbf16> to vector<440x32xbf16>
    %31 = vector.shape_cast %28 : vector<440x32xbf16> to vector<1x440x32xbf16>
    tpu.vector_store %arg4[%c0_24, %c0_25, %c0_26], %31 {strides = array<i32>} : memref<1x440x32xbf16, #tpu.memory_space<vmem>>, vector<1x440x32xbf16>,
    return
  }
  func.func @transform_0(%arg0: i32) -> (i32, i32, i32) {
    %c0_i32 = arith.constant 0 : i32
    %c0_i32_0 = arith.constant 0 : i32
    %c0_i32_1 = arith.constant 0 : i32
    return %arg0, %c0_i32, %c0_i32_0 : i32, i32, i32
  }
  func.func @transform_1(%arg0: i32) -> (i32, i32, i32) {
    %c0_i32 = arith.constant 0 : i32
    %c0_i32_0 = arith.constant 0 : i32
    %c0_i32_1 = arith.constant 0 : i32
    %c0_i32_2 = arith.constant 0 : i32
    return %c0_i32, %c0_i32_0, %c0_i32_1 : i32, i32, i32
  }
  func.func @transform_2(%arg0: i32) -> (i32, i32) {
    %c0_i32 = arith.constant 0 : i32
    %c0_i32_0 = arith.constant 0 : i32
    %c0_i32_1 = arith.constant 0 : i32
    return %c0_i32, %c0_i32_0 : i32, i32
  }
  func.func @transform_3(%arg0: i32) -> (i32, i32, i32) {
    %c0_i32 = arith.constant 0 : i32
    %c0_i32_0 = arith.constant 0 : i32
    %c0_i32_1 = arith.constant 0 : i32
    return %arg0, %c0_i32, %c0_i32_0 : i32, i32, i32
  }
}

module attributes {stable_mosaic.version = 11 : i64} {
  func.func @_conv_kernel(%arg0: i32, %arg1: memref<1x111x128xbf16, #tpu.memory_space<vmem>>, %arg2: memref<4x128x64xbf16, #tpu.memory_space<vmem>>, %arg3: memref<1x64xf32, #tpu.memory_space<vmem>>, %arg4: memref<1x99x64xbf16, #tpu.memory_space<vmem>>) attributes {dimension_semantics = [#tpu.dimension_semantics<parallel>], iteration_bounds = array<i64: 2>, scalar_prefetch = 0 : i64, scratch_operands = 0 : i64, tpu.core_type = #tpu.core_type<tc>, window_params = [{transform_indices = @transform_0, window_bounds = array<i64: 1, 111, 128>}, {pipeline_mode = #tpu.pipeline_mode<synchronous>, transform_indices = @transform_1, window_bounds = array<i64: 4, 128, 64>}, {pipeline_mode = #tpu.pipeline_mode<synchronous>, transform_indices = @transform_2, window_bounds = array<i64: 1, 64>}, {transform_indices = @transform_3, window_bounds = array<i64: 1, 99, 64>}]} {
    %c0 = arith.constant 0 : index
    %c0_0 = arith.constant 0 : index
    %0 = vector.load %arg3[%c0, %c0_0] : memref<1x64xf32, #tpu.memory_space<vmem>>, vector<1x64xf32>
    %c0_1 = arith.constant 0 : index
    %c0_2 = arith.constant 0 : index
    %c0_3 = arith.constant 0 : index
    %1 = vector.load %arg1[%c0_1, %c0_2, %c0_3] : memref<1x111x128xbf16, #tpu.memory_space<vmem>>, vector<1x99x128xbf16>
    %2 = vector.shape_cast %1 : vector<1x99x128xbf16> to vector<99x128xbf16>
    %c0_4 = arith.constant 0 : index
    %c0_5 = arith.constant 0 : index
    %c0_6 = arith.constant 0 : index
    %3 = vector.load %arg2[%c0_4, %c0_5, %c0_6] : memref<4x128x64xbf16, #tpu.memory_space<vmem>>, vector<1x128x64xbf16>
    %4 = vector.shape_cast %3 : vector<1x128x64xbf16> to vector<128x64xbf16>
    %cst = arith.constant dense<0.000000e+00> : vector<99x64xf32>
    %5 = tpu.matmul %2, %4, %cst {dimension_numbers = #tpu.dot_dimension_numbers<[1], [0], [0], [1], [0, 0, 1, 1], [], []>} : vector<99x128xbf16>, vector<128x64xbf16>, vector<99x64xf32> -> vector<99x64xf32>
    %c0_7 = arith.constant 0 : index
    %c1 = arith.constant 1 : index
    %c0_8 = arith.constant 0 : index
    %6 = vector.load %arg1[%c0_7, %c1, %c0_8] : memref<1x111x128xbf16, #tpu.memory_space<vmem>>, vector<1x99x128xbf16>
    %7 = vector.shape_cast %6 : vector<1x99x128xbf16> to vector<99x128xbf16>
    %c1_9 = arith.constant 1 : index
    %c0_10 = arith.constant 0 : index
    %c0_11 = arith.constant 0 : index
    %8 = vector.load %arg2[%c1_9, %c0_10, %c0_11] : memref<4x128x64xbf16, #tpu.memory_space<vmem>>, vector<1x128x64xbf16>
    %9 = vector.shape_cast %8 : vector<1x128x64xbf16> to vector<128x64xbf16>
    %cst_12 = arith.constant dense<0.000000e+00> : vector<99x64xf32>
    %10 = tpu.matmul %7, %9, %cst_12 {dimension_numbers = #tpu.dot_dimension_numbers<[1], [0], [0], [1], [0, 0, 1, 1], [], []>} : vector<99x128xbf16>, vector<128x64xbf16>, vector<99x64xf32> -> vector<99x64xf32>
    %11 = arith.addf %5, %10 : vector<99x64xf32>
    %c0_13 = arith.constant 0 : index
    %c11 = arith.constant 11 : index
    %c0_14 = arith.constant 0 : index
    %12 = vector.load %arg1[%c0_13, %c11, %c0_14] : memref<1x111x128xbf16, #tpu.memory_space<vmem>>, vector<1x99x128xbf16>
    %13 = vector.shape_cast %12 : vector<1x99x128xbf16> to vector<99x128xbf16>
    %c2 = arith.constant 2 : index
    %c0_15 = arith.constant 0 : index
    %c0_16 = arith.constant 0 : index
    %14 = vector.load %arg2[%c2, %c0_15, %c0_16] : memref<4x128x64xbf16, #tpu.memory_space<vmem>>, vector<1x128x64xbf16>
    %15 = vector.shape_cast %14 : vector<1x128x64xbf16> to vector<128x64xbf16>
    %cst_17 = arith.constant dense<0.000000e+00> : vector<99x64xf32>
    %16 = tpu.matmul %13, %15, %cst_17 {dimension_numbers = #tpu.dot_dimension_numbers<[1], [0], [0], [1], [0, 0, 1, 1], [], []>} : vector<99x128xbf16>, vector<128x64xbf16>, vector<99x64xf32> -> vector<99x64xf32>
    %17 = arith.addf %11, %16 : vector<99x64xf32>
    %c0_18 = arith.constant 0 : index
    %c12 = arith.constant 12 : index
    %c0_19 = arith.constant 0 : index
    %18 = vector.load %arg1[%c0_18, %c12, %c0_19] : memref<1x111x128xbf16, #tpu.memory_space<vmem>>, vector<1x99x128xbf16>
    %19 = vector.shape_cast %18 : vector<1x99x128xbf16> to vector<99x128xbf16>
    %c3 = arith.constant 3 : index
    %c0_20 = arith.constant 0 : index
    %c0_21 = arith.constant 0 : index
    %20 = vector.load %arg2[%c3, %c0_20, %c0_21] : memref<4x128x64xbf16, #tpu.memory_space<vmem>>, vector<1x128x64xbf16>
    %21 = vector.shape_cast %20 : vector<1x128x64xbf16> to vector<128x64xbf16>
    %cst_22 = arith.constant dense<0.000000e+00> : vector<99x64xf32>
    %22 = tpu.matmul %19, %21, %cst_22 {dimension_numbers = #tpu.dot_dimension_numbers<[1], [0], [0], [1], [0, 0, 1, 1], [], []>} : vector<99x128xbf16>, vector<128x64xbf16>, vector<99x64xf32> -> vector<99x64xf32>
    %23 = arith.addf %17, %22 : vector<99x64xf32>
    %24 = vector.broadcast %0 : vector<1x64xf32> to vector<99x64xf32>
    %25 = arith.addf %23, %24 : vector<99x64xf32>
    %cst_23 = arith.constant 0.000000e+00 : f32
    %26 = vector.broadcast %cst_23 : f32 to vector<99x64xf32>
    %27 = arith.maximumf %25, %26 : vector<99x64xf32>
    %28 = arith.truncf %27 : vector<99x64xf32> to vector<99x64xbf16>
    %c0_24 = arith.constant 0 : index
    %c0_25 = arith.constant 0 : index
    %c0_26 = arith.constant 0 : index
    %29 = vector.load %arg4[%c0_24, %c0_25, %c0_26] : memref<1x99x64xbf16, #tpu.memory_space<vmem>>, vector<1x99x64xbf16>
    %30 = vector.shape_cast %29 : vector<1x99x64xbf16> to vector<99x64xbf16>
    %31 = vector.shape_cast %28 : vector<99x64xbf16> to vector<1x99x64xbf16>
    tpu.vector_store %arg4[%c0_24, %c0_25, %c0_26], %31 {strides = array<i32>} : memref<1x99x64xbf16, #tpu.memory_space<vmem>>, vector<1x99x64xbf16>,
    return
  }
  func.func @transform_0(%arg0: i32) -> (i32, i32, i32) {
    %c0_i32 = arith.constant 0 : i32
    %c0_i32_0 = arith.constant 0 : i32
    %c0_i32_1 = arith.constant 0 : i32
    return %arg0, %c0_i32, %c0_i32_0 : i32, i32, i32
  }
  func.func @transform_1(%arg0: i32) -> (i32, i32, i32) {
    %c0_i32 = arith.constant 0 : i32
    %c0_i32_0 = arith.constant 0 : i32
    %c0_i32_1 = arith.constant 0 : i32
    %c0_i32_2 = arith.constant 0 : i32
    return %c0_i32, %c0_i32_0, %c0_i32_1 : i32, i32, i32
  }
  func.func @transform_2(%arg0: i32) -> (i32, i32) {
    %c0_i32 = arith.constant 0 : i32
    %c0_i32_0 = arith.constant 0 : i32
    %c0_i32_1 = arith.constant 0 : i32
    return %c0_i32, %c0_i32_0 : i32, i32
  }
  func.func @transform_3(%arg0: i32) -> (i32, i32, i32) {
    %c0_i32 = arith.constant 0 : i32
    %c0_i32_0 = arith.constant 0 : i32
    %c0_i32_1 = arith.constant 0 : i32
    return %arg0, %c0_i32, %c0_i32_0 : i32, i32, i32
  }
}

module attributes {stable_mosaic.version = 11 : i64} {
  func.func @_conv_kernel(%arg0: i32, %arg1: memref<1x101x64xbf16, #tpu.memory_space<vmem>>, %arg2: memref<9x64x64xbf16, #tpu.memory_space<vmem>>, %arg3: memref<1x64xf32, #tpu.memory_space<vmem>>, %arg4: memref<1x77x64xbf16, #tpu.memory_space<vmem>>) attributes {dimension_semantics = [#tpu.dimension_semantics<parallel>], iteration_bounds = array<i64: 2>, scalar_prefetch = 0 : i64, scratch_operands = 0 : i64, tpu.core_type = #tpu.core_type<tc>, window_params = [{transform_indices = @transform_0, window_bounds = array<i64: 1, 101, 64>}, {pipeline_mode = #tpu.pipeline_mode<synchronous>, transform_indices = @transform_1, window_bounds = array<i64: 9, 64, 64>}, {pipeline_mode = #tpu.pipeline_mode<synchronous>, transform_indices = @transform_2, window_bounds = array<i64: 1, 64>}, {transform_indices = @transform_3, window_bounds = array<i64: 1, 77, 64>}]} {
    %c0 = arith.constant 0 : index
    %c0_0 = arith.constant 0 : index
    %0 = vector.load %arg3[%c0, %c0_0] : memref<1x64xf32, #tpu.memory_space<vmem>>, vector<1x64xf32>
    %c0_1 = arith.constant 0 : index
    %c0_2 = arith.constant 0 : index
    %c0_3 = arith.constant 0 : index
    %1 = vector.load %arg1[%c0_1, %c0_2, %c0_3] : memref<1x101x64xbf16, #tpu.memory_space<vmem>>, vector<1x77x64xbf16>
    %2 = vector.shape_cast %1 : vector<1x77x64xbf16> to vector<77x64xbf16>
    %c0_4 = arith.constant 0 : index
    %c0_5 = arith.constant 0 : index
    %c0_6 = arith.constant 0 : index
    %3 = vector.load %arg2[%c0_4, %c0_5, %c0_6] : memref<9x64x64xbf16, #tpu.memory_space<vmem>>, vector<1x64x64xbf16>
    %4 = vector.shape_cast %3 : vector<1x64x64xbf16> to vector<64x64xbf16>
    %cst = arith.constant dense<0.000000e+00> : vector<77x64xf32>
    %5 = tpu.matmul %2, %4, %cst {dimension_numbers = #tpu.dot_dimension_numbers<[1], [0], [0], [1], [0, 0, 1, 1], [], []>} : vector<77x64xbf16>, vector<64x64xbf16>, vector<77x64xf32> -> vector<77x64xf32>
    %c0_7 = arith.constant 0 : index
    %c1 = arith.constant 1 : index
    %c0_8 = arith.constant 0 : index
    %6 = vector.load %arg1[%c0_7, %c1, %c0_8] : memref<1x101x64xbf16, #tpu.memory_space<vmem>>, vector<1x77x64xbf16>
    %7 = vector.shape_cast %6 : vector<1x77x64xbf16> to vector<77x64xbf16>
    %c1_9 = arith.constant 1 : index
    %c0_10 = arith.constant 0 : index
    %c0_11 = arith.constant 0 : index
    %8 = vector.load %arg2[%c1_9, %c0_10, %c0_11] : memref<9x64x64xbf16, #tpu.memory_space<vmem>>, vector<1x64x64xbf16>
    %9 = vector.shape_cast %8 : vector<1x64x64xbf16> to vector<64x64xbf16>
    %cst_12 = arith.constant dense<0.000000e+00> : vector<77x64xf32>
    %10 = tpu.matmul %7, %9, %cst_12 {dimension_numbers = #tpu.dot_dimension_numbers<[1], [0], [0], [1], [0, 0, 1, 1], [], []>} : vector<77x64xbf16>, vector<64x64xbf16>, vector<77x64xf32> -> vector<77x64xf32>
    %11 = arith.addf %5, %10 : vector<77x64xf32>
    %c0_13 = arith.constant 0 : index
    %c2 = arith.constant 2 : index
    %c0_14 = arith.constant 0 : index
    %12 = vector.load %arg1[%c0_13, %c2, %c0_14] : memref<1x101x64xbf16, #tpu.memory_space<vmem>>, vector<1x77x64xbf16>
    %13 = vector.shape_cast %12 : vector<1x77x64xbf16> to vector<77x64xbf16>
    %c2_15 = arith.constant 2 : index
    %c0_16 = arith.constant 0 : index
    %c0_17 = arith.constant 0 : index
    %14 = vector.load %arg2[%c2_15, %c0_16, %c0_17] : memref<9x64x64xbf16, #tpu.memory_space<vmem>>, vector<1x64x64xbf16>
    %15 = vector.shape_cast %14 : vector<1x64x64xbf16> to vector<64x64xbf16>
    %cst_18 = arith.constant dense<0.000000e+00> : vector<77x64xf32>
    %16 = tpu.matmul %13, %15, %cst_18 {dimension_numbers = #tpu.dot_dimension_numbers<[1], [0], [0], [1], [0, 0, 1, 1], [], []>} : vector<77x64xbf16>, vector<64x64xbf16>, vector<77x64xf32> -> vector<77x64xf32>
    %17 = arith.addf %11, %16 : vector<77x64xf32>
    %c0_19 = arith.constant 0 : index
    %c11 = arith.constant 11 : index
    %c0_20 = arith.constant 0 : index
    %18 = vector.load %arg1[%c0_19, %c11, %c0_20] : memref<1x101x64xbf16, #tpu.memory_space<vmem>>, vector<1x77x64xbf16>
    %19 = vector.shape_cast %18 : vector<1x77x64xbf16> to vector<77x64xbf16>
    %c3 = arith.constant 3 : index
    %c0_21 = arith.constant 0 : index
    %c0_22 = arith.constant 0 : index
    %20 = vector.load %arg2[%c3, %c0_21, %c0_22] : memref<9x64x64xbf16, #tpu.memory_space<vmem>>, vector<1x64x64xbf16>
    %21 = vector.shape_cast %20 : vector<1x64x64xbf16> to vector<64x64xbf16>
    %cst_23 = arith.constant dense<0.000000e+00> : vector<77x64xf32>
    %22 = tpu.matmul %19, %21, %cst_23 {dimension_numbers = #tpu.dot_dimension_numbers<[1], [0], [0], [1], [0, 0, 1, 1], [], []>} : vector<77x64xbf16>, vector<64x64xbf16>, vector<77x64xf32> -> vector<77x64xf32>
    %23 = arith.addf %17, %22 : vector<77x64xf32>
    %c0_24 = arith.constant 0 : index
    %c12 = arith.constant 12 : index
    %c0_25 = arith.constant 0 : index
    %24 = vector.load %arg1[%c0_24, %c12, %c0_25] : memref<1x101x64xbf16, #tpu.memory_space<vmem>>, vector<1x77x64xbf16>
    %25 = vector.shape_cast %24 : vector<1x77x64xbf16> to vector<77x64xbf16>
    %c4 = arith.constant 4 : index
    %c0_26 = arith.constant 0 : index
    %c0_27 = arith.constant 0 : index
    %26 = vector.load %arg2[%c4, %c0_26, %c0_27] : memref<9x64x64xbf16, #tpu.memory_space<vmem>>, vector<1x64x64xbf16>
    %27 = vector.shape_cast %26 : vector<1x64x64xbf16> to vector<64x64xbf16>
    %cst_28 = arith.constant dense<0.000000e+00> : vector<77x64xf32>
    %28 = tpu.matmul %25, %27, %cst_28 {dimension_numbers = #tpu.dot_dimension_numbers<[1], [0], [0], [1], [0, 0, 1, 1], [], []>} : vector<77x64xbf16>, vector<64x64xbf16>, vector<77x64xf32> -> vector<77x64xf32>
    %29 = arith.addf %23, %28 : vector<77x64xf32>
    %c0_29 = arith.constant 0 : index
    %c13 = arith.constant 13 : index
    %c0_30 = arith.constant 0 : index
    %30 = vector.load %arg1[%c0_29, %c13, %c0_30] : memref<1x101x64xbf16, #tpu.memory_space<vmem>>, vector<1x77x64xbf16>
    %31 = vector.shape_cast %30 : vector<1x77x64xbf16> to vector<77x64xbf16>
    %c5 = arith.constant 5 : index
    %c0_31 = arith.constant 0 : index
    %c0_32 = arith.constant 0 : index
    %32 = vector.load %arg2[%c5, %c0_31, %c0_32] : memref<9x64x64xbf16, #tpu.memory_space<vmem>>, vector<1x64x64xbf16>
    %33 = vector.shape_cast %32 : vector<1x64x64xbf16> to vector<64x64xbf16>
    %cst_33 = arith.constant dense<0.000000e+00> : vector<77x64xf32>
    %34 = tpu.matmul %31, %33, %cst_33 {dimension_numbers = #tpu.dot_dimension_numbers<[1], [0], [0], [1], [0, 0, 1, 1], [], []>} : vector<77x64xbf16>, vector<64x64xbf16>, vector<77x64xf32> -> vector<77x64xf32>
    %35 = arith.addf %29, %34 : vector<77x64xf32>
    %c0_34 = arith.constant 0 : index
    %c22 = arith.constant 22 : index
    %c0_35 = arith.constant 0 : index
    %36 = vector.load %arg1[%c0_34, %c22, %c0_35] : memref<1x101x64xbf16, #tpu.memory_space<vmem>>, vector<1x77x64xbf16>
    %37 = vector.shape_cast %36 : vector<1x77x64xbf16> to vector<77x64xbf16>
    %c6 = arith.constant 6 : index
    %c0_36 = arith.constant 0 : index
    %c0_37 = arith.constant 0 : index
    %38 = vector.load %arg2[%c6, %c0_36, %c0_37] : memref<9x64x64xbf16, #tpu.memory_space<vmem>>, vector<1x64x64xbf16>
    %39 = vector.shape_cast %38 : vector<1x64x64xbf16> to vector<64x64xbf16>
    %cst_38 = arith.constant dense<0.000000e+00> : vector<77x64xf32>
    %40 = tpu.matmul %37, %39, %cst_38 {dimension_numbers = #tpu.dot_dimension_numbers<[1], [0], [0], [1], [0, 0, 1, 1], [], []>} : vector<77x64xbf16>, vector<64x64xbf16>, vector<77x64xf32> -> vector<77x64xf32>
    %41 = arith.addf %35, %40 : vector<77x64xf32>
    %c0_39 = arith.constant 0 : index
    %c23 = arith.constant 23 : index
    %c0_40 = arith.constant 0 : index
    %42 = vector.load %arg1[%c0_39, %c23, %c0_40] : memref<1x101x64xbf16, #tpu.memory_space<vmem>>, vector<1x77x64xbf16>
    %43 = vector.shape_cast %42 : vector<1x77x64xbf16> to vector<77x64xbf16>
    %c7 = arith.constant 7 : index
    %c0_41 = arith.constant 0 : index
    %c0_42 = arith.constant 0 : index
    %44 = vector.load %arg2[%c7, %c0_41, %c0_42] : memref<9x64x64xbf16, #tpu.memory_space<vmem>>, vector<1x64x64xbf16>
    %45 = vector.shape_cast %44 : vector<1x64x64xbf16> to vector<64x64xbf16>
    %cst_43 = arith.constant dense<0.000000e+00> : vector<77x64xf32>
    %46 = tpu.matmul %43, %45, %cst_43 {dimension_numbers = #tpu.dot_dimension_numbers<[1], [0], [0], [1], [0, 0, 1, 1], [], []>} : vector<77x64xbf16>, vector<64x64xbf16>, vector<77x64xf32> -> vector<77x64xf32>
    %47 = arith.addf %41, %46 : vector<77x64xf32>
    %c0_44 = arith.constant 0 : index
    %c24 = arith.constant 24 : index
    %c0_45 = arith.constant 0 : index
    %48 = vector.load %arg1[%c0_44, %c24, %c0_45] : memref<1x101x64xbf16, #tpu.memory_space<vmem>>, vector<1x77x64xbf16>
    %49 = vector.shape_cast %48 : vector<1x77x64xbf16> to vector<77x64xbf16>
    %c8 = arith.constant 8 : index
    %c0_46 = arith.constant 0 : index
    %c0_47 = arith.constant 0 : index
    %50 = vector.load %arg2[%c8, %c0_46, %c0_47] : memref<9x64x64xbf16, #tpu.memory_space<vmem>>, vector<1x64x64xbf16>
    %51 = vector.shape_cast %50 : vector<1x64x64xbf16> to vector<64x64xbf16>
    %cst_48 = arith.constant dense<0.000000e+00> : vector<77x64xf32>
    %52 = tpu.matmul %49, %51, %cst_48 {dimension_numbers = #tpu.dot_dimension_numbers<[1], [0], [0], [1], [0, 0, 1, 1], [], []>} : vector<77x64xbf16>, vector<64x64xbf16>, vector<77x64xf32> -> vector<77x64xf32>
    %53 = arith.addf %47, %52 : vector<77x64xf32>
    %54 = vector.broadcast %0 : vector<1x64xf32> to vector<77x64xf32>
    %55 = arith.addf %53, %54 : vector<77x64xf32>
    %cst_49 = arith.constant 0.000000e+00 : f32
    %56 = vector.broadcast %cst_49 : f32 to vector<77x64xf32>
    %57 = arith.maximumf %55, %56 : vector<77x64xf32>
    %58 = arith.truncf %57 : vector<77x64xf32> to vector<77x64xbf16>
    %c0_50 = arith.constant 0 : index
    %c0_51 = arith.constant 0 : index
    %c0_52 = arith.constant 0 : index
    %59 = vector.load %arg4[%c0_50, %c0_51, %c0_52] : memref<1x77x64xbf16, #tpu.memory_space<vmem>>, vector<1x77x64xbf16>
    %60 = vector.shape_cast %59 : vector<1x77x64xbf16> to vector<77x64xbf16>
    %61 = vector.shape_cast %58 : vector<77x64xbf16> to vector<1x77x64xbf16>
    tpu.vector_store %arg4[%c0_50, %c0_51, %c0_52], %61 {strides = array<i32>} : memref<1x77x64xbf16, #tpu.memory_space<vmem>>, vector<1x77x64xbf16>,
    return
  }
  func.func @transform_0(%arg0: i32) -> (i32, i32, i32) {
    %c0_i32 = arith.constant 0 : i32
    %c0_i32_0 = arith.constant 0 : i32
    %c0_i32_1 = arith.constant 0 : i32
    return %arg0, %c0_i32, %c0_i32_0 : i32, i32, i32
  }
  func.func @transform_1(%arg0: i32) -> (i32, i32, i32) {
    %c0_i32 = arith.constant 0 : i32
    %c0_i32_0 = arith.constant 0 : i32
    %c0_i32_1 = arith.constant 0 : i32
    %c0_i32_2 = arith.constant 0 : i32
    return %c0_i32, %c0_i32_0, %c0_i32_1 : i32, i32, i32
  }
  func.func @transform_2(%arg0: i32) -> (i32, i32) {
    %c0_i32 = arith.constant 0 : i32
    %c0_i32_0 = arith.constant 0 : i32
    %c0_i32_1 = arith.constant 0 : i32
    return %c0_i32, %c0_i32_0 : i32, i32
  }
  func.func @transform_3(%arg0: i32) -> (i32, i32, i32) {
    %c0_i32 = arith.constant 0 : i32
    %c0_i32_0 = arith.constant 0 : i32
    %c0_i32_1 = arith.constant 0 : i32
    return %arg0, %c0_i32, %c0_i32_0 : i32, i32, i32
  }
}

module attributes {stable_mosaic.version = 11 : i64} {
  func.func @_mlp_head_kernel(%arg0: i32, %arg1: memref<8x3136xbf16, #tpu.memory_space<vmem>>, %arg2: memref<3136x512xbf16, #tpu.memory_space<vmem>>, %arg3: memref<1x512xf32, #tpu.memory_space<vmem>>, %arg4: memref<512x128xbf16, #tpu.memory_space<vmem>>, %arg5: memref<1x128xf32, #tpu.memory_space<vmem>>, %arg6: memref<8x128xf32, #tpu.memory_space<vmem>>) attributes {dimension_semantics = [#tpu.dimension_semantics<parallel>], iteration_bounds = array<i64: 1>, scalar_prefetch = 0 : i64, scratch_operands = 0 : i64, tpu.core_type = #tpu.core_type<tc>, window_params = [{transform_indices = @transform_0, window_bounds = array<i64: 8, 3136>}, {pipeline_mode = #tpu.pipeline_mode<synchronous>, transform_indices = @transform_1, window_bounds = array<i64: 3136, 512>}, {pipeline_mode = #tpu.pipeline_mode<synchronous>, transform_indices = @transform_2, window_bounds = array<i64: 1, 512>}, {pipeline_mode = #tpu.pipeline_mode<synchronous>, transform_indices = @transform_3, window_bounds = array<i64: 512, 128>}, {pipeline_mode = #tpu.pipeline_mode<synchronous>, transform_indices = @transform_4, window_bounds = array<i64: 1, 128>}, {transform_indices = @transform_5, window_bounds = array<i64: 8, 128>}]} {
    %c0 = arith.constant 0 : index
    %c0_0 = arith.constant 0 : index
    %0 = vector.load %arg1[%c0, %c0_0] : memref<8x3136xbf16, #tpu.memory_space<vmem>>, vector<8x3136xbf16>
    %c0_1 = arith.constant 0 : index
    %c0_2 = arith.constant 0 : index
    %1 = vector.load %arg2[%c0_1, %c0_2] : memref<3136x512xbf16, #tpu.memory_space<vmem>>, vector<3136x512xbf16>
    %cst = arith.constant dense<0.000000e+00> : vector<8x512xf32>
    %2 = tpu.matmul %0, %1, %cst {dimension_numbers = #tpu.dot_dimension_numbers<[1], [0], [0], [1], [0, 0, 1, 1], [], []>} : vector<8x3136xbf16>, vector<3136x512xbf16>, vector<8x512xf32> -> vector<8x512xf32>
    %c0_3 = arith.constant 0 : index
    %c0_4 = arith.constant 0 : index
    %3 = vector.load %arg3[%c0_3, %c0_4] : memref<1x512xf32, #tpu.memory_space<vmem>>, vector<1x512xf32>
    %4 = vector.broadcast %3 : vector<1x512xf32> to vector<8x512xf32>
    %5 = arith.addf %2, %4 : vector<8x512xf32>
    %cst_5 = arith.constant 0.000000e+00 : f32
    %6 = vector.broadcast %cst_5 : f32 to vector<8x512xf32>
    %7 = arith.maximumf %5, %6 : vector<8x512xf32>
    %8 = arith.truncf %7 : vector<8x512xf32> to vector<8x512xbf16>
    %c0_6 = arith.constant 0 : index
    %c0_7 = arith.constant 0 : index
    %9 = vector.load %arg4[%c0_6, %c0_7] : memref<512x128xbf16, #tpu.memory_space<vmem>>, vector<512x128xbf16>
    %cst_8 = arith.constant dense<0.000000e+00> : vector<8x128xf32>
    %10 = tpu.matmul %8, %9, %cst_8 {dimension_numbers = #tpu.dot_dimension_numbers<[1], [0], [0], [1], [0, 0, 1, 1], [], []>} : vector<8x512xbf16>, vector<512x128xbf16>, vector<8x128xf32> -> vector<8x128xf32>
    %c0_9 = arith.constant 0 : index
    %c0_10 = arith.constant 0 : index
    %11 = vector.load %arg5[%c0_9, %c0_10] : memref<1x128xf32, #tpu.memory_space<vmem>>, vector<1x128xf32>
    %12 = vector.broadcast %11 : vector<1x128xf32> to vector<8x128xf32>
    %13 = arith.addf %10, %12 : vector<8x128xf32>
    %c0_11 = arith.constant 0 : index
    %c0_12 = arith.constant 0 : index
    %14 = vector.load %arg6[%c0_11, %c0_12] : memref<8x128xf32, #tpu.memory_space<vmem>>, vector<8x128xf32>
    tpu.vector_store %arg6[%c0_11, %c0_12], %13 {strides = array<i32>} : memref<8x128xf32, #tpu.memory_space<vmem>>, vector<8x128xf32>,
    return
  }
  func.func @transform_0(%arg0: i32) -> (i32, i32) {
    %c0_i32 = arith.constant 0 : i32
    %c0_i32_0 = arith.constant 0 : i32
    return %arg0, %c0_i32 : i32, i32
  }
  func.func @transform_1(%arg0: i32) -> (i32, i32) {
    %c0_i32 = arith.constant 0 : i32
    %c0_i32_0 = arith.constant 0 : i32
    %c0_i32_1 = arith.constant 0 : i32
    return %c0_i32, %c0_i32_0 : i32, i32
  }
  func.func @transform_2(%arg0: i32) -> (i32, i32) {
    %c0_i32 = arith.constant 0 : i32
    %c0_i32_0 = arith.constant 0 : i32
    %c0_i32_1 = arith.constant 0 : i32
    return %c0_i32, %c0_i32_0 : i32, i32
  }
  func.func @transform_3(%arg0: i32) -> (i32, i32) {
    %c0_i32 = arith.constant 0 : i32
    %c0_i32_0 = arith.constant 0 : i32
    %c0_i32_1 = arith.constant 0 : i32
    return %c0_i32, %c0_i32_0 : i32, i32
  }
  func.func @transform_4(%arg0: i32) -> (i32, i32) {
    %c0_i32 = arith.constant 0 : i32
    %c0_i32_0 = arith.constant 0 : i32
    %c0_i32_1 = arith.constant 0 : i32
    return %c0_i32, %c0_i32_0 : i32, i32
  }
  func.func @transform_5(%arg0: i32) -> (i32, i32) {
    %c0_i32 = arith.constant 0 : i32
    %c0_i32_0 = arith.constant 0 : i32
    return %arg0, %c0_i32 : i32, i32
  }
}

</mosaic_0001>

<bundles_post_ra>
// kernel: dqn_forward.5
= control target key start
LH: loop header
LB: loop body
LE: loop exit
PB: predicated region body
PF: predicated region fallthrough
CT: control target
= control target key end

     0   :  { %s1688_s12 = smov 0   ;;  %s2044_s0 = inlined_call_operand.vmem [shape: bf16[2,111,128], index: 0, kind: input, shape index: {}]   ;;  %s2045_s1 = inlined_call_operand.vmem [shape: bf16[4,128,64], index: 1, kind: input, shape index: {}]   ;;  %s2046_s2 = inlined_call_operand.vmem [shape: f32[1,64], index: 2, kind: input, shape index: {}]   ;;  %s2047_s3 = inlined_call_operand.vmem [shape: bf16[2,99,64], index: 3, kind: output, shape index: {}]  }
   0x1 LB: > { %s1230_s13 = sadd.s32 4294967295, %s1664_s12   ;;  %p1234_p0 = scmp.ge.s32.totalorder %s1664_s12, 1  ;;  %s1664_s12 = sphi %s1688_s12, %s13_s12  }
   0x2   : > { %p137_p1 = scmp.lt.s32.totalorder %s1664_s12, 3 }
   0x4   : > { %p138_p2 = pnand %p1234_p0, %p137_p1 }
   0x5   : > { %p161_p3 = scmp.lt.s32.totalorder (!%p138_p2), %s1230_s13, 1 }
   0x6   : > { %141 = sbr.rel (%p138_p2) target bundleno = 353 (0x161), region = 32 }
   0xb   : > { %v1610_v0 = vld [vmem:[%s2045_s1 + $0x78] sm:$0xff]   ;;  %v1666_v1 = vmov 0.0   ;;  %v1612_v3 = vld [vmem:[%s2045_s1 + $0x70] sm:$0xff]   ;;  %vm1667_vm0 = vmmov 0   ;;  %v1614_v5 = vld [vmem:[%s2045_s1 + $0x68] sm:$0xff]   ;;  %s2049_s13 = smov (!%p161_p3, %s1230_s13), 1 }
   0xc   : > { %1422 = vmatprep.subr.bf16.mxu0 %v1666_v1  ;;  %1466 = vmatprep.subr.bf16.mxu1 %v1666_v1  ;;  %v1611_v2 = vld [vmem:[%s2045_s1 + $0x38] sm:$0xff]   ;;  %v1613_v4 = vld [vmem:[%s2045_s1 + $0x30] sm:$0xff]   ;;  %v1615_v6 = vld [vmem:[%s2045_s1 + $0x28] sm:$0xff]   ;;  %s1598_s28 = smul.u32 56, %s2049_s13  ;;  %vm252_vm1 = vsmask.f32 7424 }
   0xd   : > { %1423 = vmatpush3.bf16.msra.mxu0 %v1610_v0  ;;  %1438 = vmatprep.mubr.msk.bf16.mxu0 %vm1667_vm0, %v1666_v1  ;;  %v1616_v7 = vld [vmem:[%s2045_s1 + $0x60] sm:$0xff]   ;;  %v1618_v9 = vld [vmem:[%s2045_s1 + $0x58] sm:$0xff]   ;;  %v1620_v11 = vld [vmem:[%s2045_s1 + $0x50] sm:$0xff]   ;;  %vm657_vm2 = vsmask.f32 6400  ;;  %vm901_vm3 = vcmask 1045504  }
   0xe   : > { %1467 = vmatpush3.bf16.msra.mxu1 %v1611_v2  ;;  %1424 = vmatprep.subr.bf16.mxu0 %v1666_v1  ;;  %v1617_v8 = vld [vmem:[%s2045_s1 + $0x20] sm:$0xff]   ;;  %s1741_s8 = scalar_lea.vmem %s2044_s0, %s1598_s28  ;;  %v1619_v10 = vld [vmem:[%s2045_s1 + $0x18] sm:$0xff]   ;;  %v1621_v14 = vld [vmem:[%s2045_s1 + $0x10] sm:$0xff]   ;;  %s1599_s7 = smul.u32 52, %s2049_s13  ;;  %vm1156_vm4 = vcmask 519168   ;;  %vm1169_vm5 = vcmask 517120  }
   0xf   : > { %1468 = vmatprep.subr.bf16.mxu1 %v1666_v1  ;;  %1482 = vmatprep.mubr.msk.bf16.mxu1 %vm1667_vm0, %v1666_v1  ;;  %v1626_v12 = vld [vmem:[%s1741_s8] sm:$0xff]   ;;  %v1627_v13 = vld [vmem:[%s1741_s8 + $0x8] sm:$0xff]   ;;  %v1630_v25 = vld [vmem:[%s1741_s8 + $0x10] sm:$0xff]   ;;  %vm1170_vm6 = vsmask.f32 1280 }
  0x10   : > { %v256_v15 = vshll.u32 %v1626_v12, 16  ;;  %v1622_v16 = vld [vmem:[%s2045_s1 + $0x48] sm:$0xff]   ;;  %v254_v17 = vshrl.u32 %v1626_v12, 16  ;;  %v261_v19 = vshll.u32 %v1627_v13, 16  ;;  %v1624_v21 = vld [vmem:[%s2045_s1 + $0x40] sm:$0xff]   ;;  %v1628_v26 = vld [vmem:[%s2045_s1 + $0xb8] sm:$0xff]   ;;  %s1981_s11 = scalar_lea.vmem %s2047_s3, %s1599_s7 }
  0x11   : > { %1425 = vmatpush3.bf16.msra.mxu0 %v1612_v3  ;;  %v1623_v20 = vld [vmem:[%s2045_s1 + $0x8] sm:$0xff]   ;;  %v1625_v22 = vld [vmem:[%s2045_s1] sm:$0xff]   ;;  %v265_v28 = vshrl.u32 %v1627_v13, 16  ;;  %v269_v29 = vshll.u32 %v1630_v25, 16  ;;  %v1629_v30 = vld [vmem:[%s2045_s1 + $0xf8] sm:$0xff]   ;;  %v273_v36 = vshrl.u32 %v1630_v25, 16 }
  0x12   : > { %1469 = vmatpush3.bf16.msra.mxu1 %v1613_v4  ;;  %1426 = vmatprep.subr.bf16.mxu0 %v1666_v1  ;;  %v258_v18 = vrot.slane %v256_v15, 1  ;;  %v263_v24 = vrot.slane %v261_v19, 1  ;;  %v1785_v31 = vld [vmem:[%s1741_s8 + $0x18] sm:$0xff]   ;;  %v1631_v34 = vld [vmem:[%s2045_s1 + $0xb0] sm:$0xff]   ;;  %v1633_v39 = vld [vmem:[%s2045_s1 + $0xa8] sm:$0xff]  }
  0x13   : > { %1470 = vmatprep.subr.bf16.mxu1 %v1666_v1  ;;  %v271_v33 = vrot.slane %v269_v29, 1  ;;  %v1632_v35 = vld [vmem:[%s2045_s1 + $0xf0] sm:$0xff]   ;;  %v277_v37 = vshll.u32 %v1785_v31, 16  ;;  %v1635_v40 = vld [vmem:[%s2045_s1 + $0xe8] sm:$0xff]   ;;  %v1637_v42 = vld [vmem:[%s1741_s8 + $0x20] sm:$0xff]   ;;  %v281_v47 = vshrl.u32 %v1785_v31, 16 }
  0x14   : > { %v259_v23 = vor.u32 %v258_v18, %v254_v17  ;;  %v267_v32 = vor.u32 %v265_v28, %v263_v24  ;;  %v1636_v44 = vld [vmem:[%s2045_s1 + $0xa0] sm:$0xff]   ;;  %v285_v48 = vshll.u32 %v1637_v42, 16  ;;  %v1639_v49 = vld [vmem:[%s2045_s1 + $0x98] sm:$0xff]   ;;  %v1641_v53 = vld [vmem:[%s1741_s8 + $0x28] sm:$0xff]   ;;  %v289_v57 = vshrl.u32 %v1637_v42, 16 }
  0x15   : > { %1427 = vmatpush3.bf16.msra.mxu0 %v1614_v5  ;;  %v279_v41 = vrot.slane %v277_v37, 1  ;;  %v275_v43 = vor.u32 %v273_v36, %v271_v33  ;;  %v1638_v45 = vld [vmem:[%s2045_s1 + $0xe0] sm:$0xff]   ;;  %v1640_v50 = vld [vmem:[%s2045_s1 + $0xd8] sm:$0xff]   ;;  %v1642_v54 = vld [vmem:[%s2045_s1 + $0x90] sm:$0xff]   ;;  %v293_v58 = vshll.u32 %v1641_v53, 16  ;;  %v297_v4 = vshrl.u32 %v1641_v53, 16 }
  0x16   : > { %1471 = vmatpush3.bf16.msra.mxu1 %v1615_v6  ;;  %1428 = vmatprep.subr.bf16.mxu0 %v1666_v1  ;;  %v264_v27 = vsel %vm252_vm1, %v259_v23, %v263_v24  ;;  %v272_v38 = vsel %vm252_vm1, %v267_v32, %v271_v33  ;;  %v287_v52 = vrot.slane %v285_v48, 1  ;;  %v1643_v55 = vld [vmem:[%s2045_s1 + $0xd0] sm:$0xff]   ;;  %v1645_v59 = vld [vmem:[%s2045_s1 + $0x88] sm:$0xff]   ;;  %v1647_v0 = vld [vmem:[%s2045_s1 + $0x80] sm:$0xff]  }
  0x17   : > { %1472 = vmatprep.subr.bf16.mxu1 %v1666_v1  ;;  %v280_v46 = vsel %vm252_vm1, %v275_v43, %v279_v41  ;;  %v283_v51 = vor.u32 %v281_v47, %v279_v41  ;;  %v1646_v60 = vld [vmem:[%s2045_s1 + $0xc8] sm:$0xff]   ;;  %v295_v62 = vrot.slane %v293_v58, 1  ;;  %v1644_v63 = vld [vmem:[%s1741_s8 + $0x30] ss:$0 sps:$4 sm:$0x33]   ;;  %v1648_v2 = vld [vmem:[%s2045_s1 + $0xc0] sm:$0xff]  }
  0x18   : > { %v291_v61 = vor.u32 %v289_v57, %v287_v52  ;;  %v301_v5 = vshll.u32 %v1644_v63, 16  ;;  %v876_v18 = vld [vmem:[%s1741_s8 + $0x4] sm:$0xc]  ;;  %v1652_v24 = vld [vmem:[%s1741_s8 + $0x14] sm:$0xff]   ;;  %vm1171_vm7 = vmand %vm1169_vm5, %vm1170_vm6 }
  0x19   : > { %1429 = vmatpush3.bf16.msra.mxu0 %v1616_v7  ;;  %v288_v56 = vsel %vm252_vm1, %v283_v51, %v287_v52  ;;  %v299_v6 = vor.u32 %v297_v4, %v295_v62  ;;  %v676_v28 = vshrl.u32 %v1652_v24, 16  ;;  %v679_v29 = vshll.u32 %v1652_v24, 16 }
  0x1a   : > { %1473 = vmatpush3.bf16.msra.mxu1 %v1617_v8  ;;  %1430 = vmatprep.subr.bf16.mxu0 %v1666_v1  ;;  %v296_v3 = vsel %vm252_vm1, %v291_v61, %v295_v62  ;;  %v303_v7 = vrot.slane %v301_v5, 1  ;;  %v594_v8 = vld [vmem:[%s1741_s8 + $0x4] sm:$0xe]  ;;  %v1656_v62 = vld [vmem:[%s1741_s8 + $0x34] ss:$0 sps:$4 sm:$0x77]  }
  0x1b   : > { %1474 = vmatprep.subr.bf16.mxu1 %v1666_v1  ;;  %v678_v33 = vrot.slane %v676_v28, 1 }
  0x1d   : > { %1431 = vmatpush3.bf16.msra.mxu0 %v1618_v9  ;;  %v595_v9 = vld [vmem:[%s1741_s8 + $0x8] sm:$0xf] }
  0x1e   : > { %1475 = vmatpush3.bf16.msra.mxu1 %v1619_v10  ;;  %1432 = vmatprep.subr.bf16.mxu0 %v1666_v1  ;;  %v304_v10 = vsel %vm252_vm1, %v299_v6, %v303_v7 }
  0x1f   : > { %1476 = vmatprep.subr.bf16.mxu1 %v1666_v1 }
  0x21   : > { %1433 = vmatpush3.bf16.msra.mxu0 %v1620_v11  ;;  %v1292_v11 = vcombine.low %v594_v8, %v595_v9 }
  0x22   : > { %1477 = vmatpush3.bf16.msra.mxu1 %v1621_v14  ;;  %1434 = vmatprep.subr.bf16.mxu0 %v1666_v1 }
  0x23   : > { %1478 = vmatprep.subr.bf16.mxu1 %v1666_v1  ;;  %v659_v14 = vshrl.u32 %v1292_v11, 16  ;;  %v662_v15 = vshll.u32 %v1292_v11, 16 }
  0x25   : > { %1435 = vmatpush3.bf16.msra.mxu0 %v1622_v16 }
  0x26   : > { %1479 = vmatpush3.bf16.msra.mxu1 %v1623_v20  ;;  %1436 = vmatprep.subr.bf16.mxu0 %v1666_v1  ;;  %v661_v20 = vrot.slane %v659_v14, 1 }
  0x27   : > { %1480 = vmatprep.subr.bf16.mxu1 %v1666_v1 }
  0x29   : > { %1437 = vmatpush3.bf16.msra.mxu0 %v1624_v21  ;;  %v664_v21 = vrot.slane %v662_v15, 2 }
  0x2a   : > { %1481 = vmatpush3.bf16.msra.mxu1 %v1625_v22  ;;  %1510 = vmatprep.subr.bf16.mxu0 %v1666_v1 }
  0x2b   : > { %1554 = vmatprep.subr.bf16.mxu1 %v1666_v1 }
  0x2c   : > { %1439 = vmatmul.mubr.bf16.vlgmr.msra.gmra.mxu0 %v264_v27 }
  0x2d   : > { %1483 = vmatmul.mubr.bf16.vlgmr.msra.gmra.mxu1 %v1626_v12  ;;  %1511 = vmatpush3.bf16.msra.mxu0 %v1628_v26  ;;  %v1650_v12 = vld [vmem:[%s1741_s8 + $0xc] sm:$0xff]   ;;  %v665_v26 = vor.u32 %v664_v21, %v661_v20 }
  0x2e   : > { %1555 = vmatpush3.bf16.msra.mxu1 %v1629_v30  ;;  %1442 = vmatprep.mubr.msk.bf16.mxu0 %vm1667_vm0, %v1666_v1  ;;  %v667_v16 = vshrl.u32 %v1650_v12, 16  ;;  %v670_v17 = vshll.u32 %v1650_v12, 16 }
  0x2f   : > { %1486 = vmatprep.mubr.msk.bf16.mxu1 %vm1667_vm0, %v1666_v1  ;;  %1512 = vmatprep.subr.bf16.mxu0 %v1666_v1 }
  0x30   : > { %1556 = vmatprep.subr.bf16.mxu1 %v1666_v1  ;;  %v669_v22 = vrot.slane %v667_v16, 1  ;;  %v672_v23 = vrot.slane %v670_v17, 2 }
  0x31   : > { %1513 = vmatpush3.bf16.msra.mxu0 %v1631_v34  ;;  %v681_v34 = vrot.slane %v679_v29, 2 }
  0x32   : > { %1557 = vmatpush3.bf16.msra.mxu1 %v1632_v35  ;;  %1514 = vmatprep.subr.bf16.mxu0 %v1666_v1  ;;  %v673_v27 = vor.u32 %v672_v23, %v669_v22  ;;  %v1653_v35 = vld [vmem:[%s1741_s8 + $0x1c] sm:$0xff]  }
  0x33   : > { %1558 = vmatprep.subr.bf16.mxu1 %v1666_v1  ;;  %v682_v37 = vor.u32 %v681_v34, %v678_v33 }
  0x34   : > { %1443 = vmatmul.mubr.bf16.gmra.mxu0 %v272_v38  ;;  %v674_v32 = vsel %vm657_vm2, %v665_v26, %v673_v27  ;;  %v685_v38 = vshrl.u32 %v1653_v35, 16 }
  0x35   : > { %1487 = vmatmul.mubr.bf16.gmra.mxu1 %v1627_v13  ;;  %1446 = vmatprep.mubr.msk.bf16.mxu0 %vm1667_vm0, %v1666_v1  ;;  %v305_v13 = vshrl.u32 %v1644_v63, 16  ;;  %v683_v41 = vsel %vm657_vm2, %v673_v27, %v682_v37 }
  0x36   : > { %1490 = vmatprep.mubr.msk.bf16.mxu1 %vm1667_vm0, %v1666_v1  ;;  %1515 = vmatpush3.bf16.msra.mxu0 %v1633_v39  ;;  %v688_v39 = vshll.u32 %v1653_v35, 16 }
  0x37   : > { %1559 = vmatpush3.bf16.msra.mxu1 %v1635_v40  ;;  %1516 = vmatprep.subr.bf16.mxu0 %v1666_v1  ;;  %v307_v19 = vor.u32 %v305_v13, %v303_v7  ;;  %v905_v40 = vrot.slane %v1652_v24, 2 }
  0x38   : > { %1560 = vmatprep.subr.bf16.mxu1 %v1666_v1  ;;  %v690_v43 = vrot.slane %v688_v39, 2 }
  0x3a   : > { %1517 = vmatpush3.bf16.msra.mxu0 %v1636_v44  ;;  %v1654_v44 = vld [vmem:[%s1741_s8 + $0x24] sm:$0xff]  }
  0x3b   : > { %1561 = vmatpush3.bf16.msra.mxu1 %v1638_v45  ;;  %1518 = vmatprep.subr.bf16.mxu0 %v1666_v1  ;;  %v694_v47 = vshrl.u32 %v1654_v44, 16  ;;  %v697_v48 = vshll.u32 %v1654_v44, 16  ;;  %v909_v58 = vrot.slane %v1654_v44, 2 }
  0x3c   : > { %1447 = vmatmul.mubr.bf16.gmra.mxu0 %v280_v46  ;;  %1562 = vmatprep.subr.bf16.mxu1 %v1666_v1 }
  0x3d   : > { %1491 = vmatmul.mubr.bf16.gmra.mxu1 %v1630_v25  ;;  %1450 = vmatprep.mubr.msk.bf16.mxu0 %vm1667_vm0, %v1666_v1  ;;  %v1323_v25 = vcombine.low %v876_v18, %v595_v9  ;;  %v696_v51 = vrot.slane %v694_v47, 1  ;;  %v699_v52 = vrot.slane %v697_v48, 2  ;;  %v1657_v9 = vld [vmem:[%s1741_s8 + $0x34] ss:$0 sps:$4 sm:$0xff]  }
  0x3e   : > { %1494 = vmatprep.mubr.msk.bf16.mxu1 %vm1667_vm0, %v1666_v1  ;;  %1519 = vmatpush3.bf16.msra.mxu0 %v1639_v49  ;;  %v907_v49 = vrot.slane %v1653_v35, 2  ;;  %v913_v11 = vrot.slane %v1657_v9, 2 }
  0x3f   : > { %1563 = vmatpush3.bf16.msra.mxu1 %v1640_v50  ;;  %1520 = vmatprep.subr.bf16.mxu0 %v1666_v1  ;;  %v902_v30 = vrot.slane %v1323_v25, 2 }
  0x40   : > { %1564 = vmatprep.subr.bf16.mxu1 %v1666_v1 }
  0x42   : > { %1521 = vmatpush3.bf16.msra.mxu0 %v1642_v54  ;;  %v908_v54 = vsel %vm901_vm3, %v905_v40, %v907_v49 }
  0x43   : > { %1565 = vmatpush3.bf16.msra.mxu1 %v1643_v55  ;;  %1522 = vmatprep.subr.bf16.mxu0 %v1666_v1  ;;  %v700_v55 = vor.u32 %v699_v52, %v696_v51 }
  0x44   : > { %1451 = vmatmul.mubr.bf16.gmra.mxu0 %v288_v56  ;;  %1566 = vmatprep.subr.bf16.mxu1 %v1666_v1 }
  0x45   : > { %1495 = vmatmul.mubr.bf16.gmra.mxu1 %v1785_v31  ;;  %1454 = vmatprep.mubr.msk.bf16.mxu0 %vm1667_vm0, %v1666_v1  ;;  %v903_v31 = vrot.slane %v1650_v12, 2 }
  0x46   : > { %1498 = vmatprep.mubr.msk.bf16.mxu1 %vm1667_vm0, %v1666_v1  ;;  %1523 = vmatpush3.bf16.msra.mxu0 %v1645_v59 }
  0x47   : > { %1567 = vmatpush3.bf16.msra.mxu1 %v1646_v60  ;;  %1524 = vmatprep.subr.bf16.mxu0 %v1666_v1  ;;  %v904_v36 = vsel %vm901_vm3, %v902_v30, %v903_v31  ;;  %v906_v45 = vsel %vm901_vm3, %v903_v31, %v905_v40 }
  0x48   : > { %1568 = vmatprep.subr.bf16.mxu1 %v1666_v1 }
  0x4a   : > { %1525 = vmatpush3.bf16.msra.mxu0 %v1647_v0 }
  0x4b   : > { %1569 = vmatpush3.bf16.msra.mxu1 %v1648_v2  ;;  %v712_v2 = vshrl.u32 %v1656_v62, 16 }
  0x4c   : > { %1455 = vmatmul.mubr.bf16.gmra.mxu0 %v296_v3  ;;  %v715_v3 = vshll.u32 %v1656_v62, 16 }
  0x4d   : > { %1499 = vmatmul.mubr.bf16.gmra.mxu1 %v1637_v42  ;;  %1458 = vmatprep.mubr.msk.bf16.mxu0 %vm1667_vm0, %v1666_v1  ;;  %v687_v42 = vrot.slane %v685_v38, 1  ;;  %v714_v6 = vrot.slane %v712_v2, 1 }
  0x4e   : > { %1502 = vmatprep.mubr.msk.bf16.mxu1 %vm1667_vm0, %v1666_v1  ;;  %v717_v7 = vrot.slane %v715_v3, 2 }
  0x4f   : > { %v691_v46 = vor.u32 %v690_v43, %v687_v42 }
  0x51   : > { %v692_v50 = vsel %vm657_vm2, %v682_v37, %v691_v46  ;;  %v701_v59 = vsel %vm657_vm2, %v691_v46, %v700_v55 }
  0x54   : > { %1459 = vmatmul.mubr.bf16.gmra.mxu0 %v304_v10  ;;  %v718_v10 = vor.u32 %v717_v7, %v714_v6 }
  0x55   : > { %1503 = vmatmul.mubr.bf16.gmra.mxu1 %v1641_v53  ;;  %1462 = vmatprep.mubr.msk.bf16.mxu0 %vm1667_vm0, %v1666_v1  ;;  %v1655_v53 = vld [vmem:[%s1741_s8 + $0x2c] sm:$0xff]  }
  0x56   : > { %1506 = vmatprep.mubr.msk.bf16.mxu1 %vm1667_vm0, %v1666_v1  ;;  %v703_v56 = vshrl.u32 %v1655_v53, 16  ;;  %v706_v57 = vshll.u32 %v1655_v53, 16  ;;  %v911_v4 = vrot.slane %v1655_v53, 2 }
  0x58   : > { %v705_v60 = vrot.slane %v703_v56, 1  ;;  %v708_v61 = vrot.slane %v706_v57, 2  ;;  %v912_v8 = vsel %vm901_vm3, %v909_v58, %v911_v4  ;;  %v914_v13 = vsel %vm901_vm3, %v911_v4, %v913_v11 }
  0x5a   : > { %v709_v0 = vor.u32 %v708_v61, %v705_v60 }
  0x5c   : > { %1463 = vmatmul.mubr.bf16.gmra.mxu0 %v307_v19  ;;  %v710_v5 = vsel %vm657_vm2, %v700_v55, %v709_v0  ;;  %v719_v12 = vsel %vm657_vm2, %v709_v0, %v718_v10 }
  0x5d   : > { %1507 = vmatmul.mubr.bf16.gmra.mxu1 %v1644_v63  ;;  %1526 = vmatprep.mubr.msk.bf16.mxu0 %vm1667_vm0, %v1666_v1  ;;  %v910_v63 = vsel %vm901_vm3, %v907_v49, %v909_v58 }
  0x5e   : > { %1570 = vmatprep.mubr.msk.bf16.mxu1 %vm1667_vm0, %v1666_v1 }
  0x64   : > { %1527 = vmatmul.mubr.bf16.vlgmr.msra.gmra.mxu0 %v674_v32 }
  0x65   : > { %1571 = vmatmul.mubr.bf16.vlgmr.msra.gmra.mxu1 %v904_v36  ;;  %1530 = vmatprep.mubr.msk.bf16.mxu0 %vm1667_vm0, %v1666_v1 }
  0x66   : > { %1574 = vmatprep.mubr.msk.bf16.mxu1 %vm1667_vm0, %v1666_v1 }
  0x6c   : > { %1531 = vmatmul.mubr.bf16.gmra.mxu0 %v683_v41 }
  0x6d   : > { %1575 = vmatmul.mubr.bf16.gmra.mxu1 %v906_v45  ;;  %1534 = vmatprep.mubr.msk.bf16.mxu0 %vm1667_vm0, %v1666_v1 }
  0x6e   : > { %1578 = vmatprep.mubr.msk.bf16.mxu1 %vm1667_vm0, %v1666_v1 }
  0x74   : > { %1535 = vmatmul.mubr.bf16.gmra.mxu0 %v692_v50 }
  0x75   : > { %1579 = vmatmul.mubr.bf16.gmra.mxu1 %v908_v54  ;;  %1538 = vmatprep.mubr.msk.bf16.mxu0 %vm1667_vm0, %v1666_v1 }
  0x76   : > { %1582 = vmatprep.mubr.msk.bf16.mxu1 %vm1667_vm0, %v1666_v1 }
  0x7c   : > { %1539 = vmatmul.mubr.bf16.gmra.mxu0 %v701_v59 }
  0x7d   : > { %1583 = vmatmul.mubr.bf16.gmra.mxu1 %v910_v63  ;;  %1542 = vmatprep.mubr.msk.bf16.mxu0 %vm1667_vm0, %v1666_v1 }
  0x7e   : > { %1586 = vmatprep.mubr.msk.bf16.mxu1 %vm1667_vm0, %v1666_v1 }
  0x84   : > { %1543 = vmatmul.mubr.bf16.gmra.mxu0 %v710_v5 }
  0x85   : > { %1587 = vmatmul.mubr.bf16.gmra.mxu1 %v912_v8  ;;  %1546 = vmatprep.mubr.msk.bf16.mxu0 %vm1667_vm0, %v1666_v1 }
  0x86   : > { %1590 = vmatprep.mubr.msk.bf16.mxu1 %vm1667_vm0, %v1666_v1 }
  0x8c   : > { %1547 = vmatmul.mubr.bf16.gmra.mxu0 %v719_v12 }
  0x8d   : > { %1591 = vmatmul.mubr.bf16.gmra.mxu1 %v914_v13  ;;  %1550 = vmatprep.mubr.msk.bf16.mxu0 %vm1667_vm0, %v1666_v1 }
  0x8e   : > { %1594 = vmatprep.mubr.msk.bf16.mxu1 %vm1667_vm0, %v1666_v1 }
  0x94   : > { %1551 = vmatmul.mubr.bf16.gmra.mxu0 %v718_v10  ;;  %v1973_v10 = vld [vmem:[%s2046_s2] ss:$0 sm:$0xff] }
  0x95   : > { %1595 = vmatmul.mubr.bf16.gmra.mxu1 %v913_v11 }
  0xec   : > { %v397_v14 = vpop.f32.mrf.mxu0 }
  0xed   : > { %v540_v15 = vpop.f32.mrf.mxu1 }
  0xee   : > { %v1440_v16 = vpop.f32.mrf.mxu0  ;;  %v541_v5 = vadd.f32 %v540_v15, %v397_v14 }
  0xef   : > { %v1484_v17 = vpop.f32.mrf.mxu1 }
  0xf0   : > { %v400_v18 = vpop.f32.mrf.mxu0 }
  0xf1   : > { %v543_v19 = vpop.f32.mrf.mxu1 }
  0xf2   : > { %v1441_v20 = vpop.f32.mrf.mxu0  ;;  %v544_v12 = vadd.f32 %v543_v19, %v400_v18 }
  0xf3   : > { %v1485_v21 = vpop.f32.mrf.mxu1 }
  0xf4   : > { %v1928_v22 = vpop.f32.mrf.mxu0 }
  0xf5   : > { %v548_v23 = vpop.f32.mrf.mxu1 }
  0xf6   : > { %v1444_v24 = vpop.f32.mrf.mxu0  ;;  %v549_v15 = vadd.f32 %v548_v23, %v1928_v22 }
  0xf7   : > { %v1488_v25 = vpop.f32.mrf.mxu1 }
  0xf8   : > { %v1930_v26 = vpop.f32.mrf.mxu0 }
  0xf9   : > { %v1932_v27 = vpop.f32.mrf.mxu1 }
  0xfa   : > { %v1445_v1 = vpop.f32.mrf.mxu0  ;;  %v552_v22 = vadd.f32 %v1932_v27, %v1930_v26 }
  0xfb   : > { %v1489_v28 = vpop.f32.mrf.mxu1 }
  0xfc   : > { %v1934_v29 = vpop.f32.mrf.mxu0 }
  0xfd   : > { %v1936_v30 = vpop.f32.mrf.mxu1 }
  0xfe   : > { %v1448_v31 = vpop.f32.mrf.mxu0 }
  0xff   : > { %v1492_v32 = vpop.f32.mrf.mxu1 }
 0x100   : > { %v1938_v33 = vpop.f32.mrf.mxu0 }
 0x101   : > { %v1940_v34 = vpop.f32.mrf.mxu1 }
 0x102   : > { %v1449_v35 = vpop.f32.mrf.mxu0 }
 0x103   : > { %v1493_v36 = vpop.f32.mrf.mxu1 }
 0x104   : > { %v1942_v37 = vpop.f32.mrf.mxu0 }
 0x105   : > { %v1944_v38 = vpop.f32.mrf.mxu1 }
 0x106   : > { %v1452_v39 = vpop.f32.mrf.mxu0 }
 0x107   : > { %v1496_v40 = vpop.f32.mrf.mxu1 }
 0x108   : > { %v1946_v41 = vpop.f32.mrf.mxu0 }
 0x109   : > { %v1948_v42 = vpop.f32.mrf.mxu1 }
 0x10a   : > { %v1453_v43 = vpop.f32.mrf.mxu0 }
 0x10b   : > { %v1497_v44 = vpop.f32.mrf.mxu1 }
 0x10c   : > { %v1950_v45 = vpop.f32.mrf.mxu0 }
 0x10d   : > { %v1952_v46 = vpop.f32.mrf.mxu1 }
 0x10e   : > { %v1456_v47 = vpop.f32.mrf.mxu0 }
 0x10f   : > { %v1500_v48 = vpop.f32.mrf.mxu1 }
 0x110   : > { %v1954_v49 = vpop.f32.mrf.mxu0 }
 0x111   : > { %v1956_v50 = vpop.f32.mrf.mxu1 }
 0x112   : > { %v1457_v51 = vpop.f32.mrf.mxu0 }
 0x113   : > { %v1501_v52 = vpop.f32.mrf.mxu1 }
 0x114   : > { %v1958_v53 = vpop.f32.mrf.mxu0 }
 0x115   : > { %v1960_v54 = vpop.f32.mrf.mxu1 }
 0x116   : > { %v1460_v55 = vpop.f32.mrf.mxu0 }
 0x117   : > { %v1504_v56 = vpop.f32.mrf.mxu1  ;;  %v557_v55 = vadd.f32 %v1936_v30, %v1934_v29 }
 0x118   : > { %v1962_v57 = vpop.f32.mrf.mxu0 }
 0x119   : > { %v1964_v58 = vpop.f32.mrf.mxu1 }
 0x11a   : > { %v1461_v59 = vpop.f32.mrf.mxu0 }
 0x11b   : > { %v1505_v60 = vpop.f32.mrf.mxu1 }
 0x11c   : > { %v1966_v61 = vpop.f32.mrf.mxu0 }
 0x11d   : > { %v1968_v62 = vpop.f32.mrf.mxu1 }
 0x11e   : > { %v1464_v63 = vpop.f32.mrf.mxu0 }
 0x11f   : > { %v1508_v0 = vpop.f32.mrf.mxu1 }
 0x120   : > { %v448_v2 = vpop.f32.mrf.mxu0 }
 0x121   : > { %v591_v3 = vpop.f32.mrf.mxu1 }
 0x122   : > { %v1465_v4 = vpop.f32.mrf.mxu0 }
 0x123   : > { %v1509_v6 = vpop.f32.mrf.mxu1  ;;  %v560_v4 = vadd.f32 %v1940_v34, %v1938_v33 }
 0x124   : > { %v809_v7 = vpop.f32.mrf.mxu0 }
 0x125   : > { %v863_v8 = vadd.f32 %v809_v7, %v541_v5  ;;  %v1004_v9 = vpop.f32.mrf.mxu1 }
 0x126   : > { %v1528_v11 = vpop.f32.mrf.mxu0 }
 0x127   : > { %v1058_v13 = vadd.f32 %v1004_v9, %v863_v8  ;;  %v1572_v16 = vpop.f32.mrf.mxu1 }
 0x128   : > { %v812_v17 = vpop.f32.mrf.mxu0 }
 0x129   : > { %v1077_v20 = vadd.f32 %v1973_v10, %v1058_v13  ;;  %v864_v21 = vadd.f32 %v812_v17, %v544_v12  ;;  %v1007_v24 = vpop.f32.mrf.mxu1  ;;  %v565_v13 = vadd.f32 %v1944_v38, %v1942_v37 }
 0x12a   : > { %v1529_v14 = vpop.f32.mrf.mxu0 }
 0x12b   : > { %v1090_v25 = vmax.f32 %v1077_v20, 0.0  ;;  %v1059_v1 = vadd.f32 %v1007_v24, %v864_v21  ;;  %v1573_v28 = vpop.f32.mrf.mxu1 }
 0x12c   : > { %v817_v18 = vpop.f32.mrf.mxu0 }
 0x12d   : > { %v1349_v19 = vpack.c.bf16 %v1090_v25, %v1090_v25  ;;  %v1078_v31 = vadd.f32 %v1973_v10, %v1059_v1  ;;  %v865_v32 = vadd.f32 %v817_v18, %v549_v15  ;;  %v1012_v35 = vpop.f32.mrf.mxu1  ;;  %v568_v25 = vadd.f32 %v1948_v42, %v1946_v41 }
 0x12e   : > { %v1532_v36 = vpop.f32.mrf.mxu0 }
 0x12f   : > { %1157 = vst.msk [vmem:[%s1981_s11] sm:$0xf] %vm1156_vm4, %v1349_v19  ;;  %v1091_v23 = vmax.f32 %v1078_v31, 0.0  ;;  %v1060_v39 = vadd.f32 %v1012_v35, %v865_v32  ;;  %v1576_v40 = vpop.f32.mrf.mxu1  ;;  %v573_v36 = vadd.f32 %v1952_v46, %v1950_v45 }
 0x130   : > { %v820_v43 = vpop.f32.mrf.mxu0 }
 0x131   : > { %v1350_v44 = vpack.c.bf16 %v1091_v23, %v1091_v23  ;;  %v1079_v47 = vadd.f32 %v1973_v10, %v1060_v39  ;;  %v866_v48 = vadd.f32 %v820_v43, %v552_v22  ;;  %v1015_v51 = vpop.f32.mrf.mxu1 }
 0x132   : > { %v1533_v52 = vpop.f32.mrf.mxu0 }
 0x133   : > { %1158 = vst.msk [vmem:[%s1981_s11 + $0x4] sm:$0xf] %vm1156_vm4, %v1350_v44  ;;  %v1092_v56 = vmax.f32 %v1079_v47, 0.0  ;;  %v1061_v26 = vadd.f32 %v1015_v51, %v866_v48  ;;  %v1577_v27 = vpop.f32.mrf.mxu1  ;;  %v576_v48 = vadd.f32 %v1956_v50, %v1954_v49 }
 0x134   : > { %v825_v59 = vpop.f32.mrf.mxu0 }
 0x135   : > { %v1351_v60 = vpack.c.bf16 %v1092_v56, %v1092_v56  ;;  %v1080_v63 = vadd.f32 %v1973_v10, %v1061_v26  ;;  %v867_v0 = vadd.f32 %v825_v59, %v557_v55  ;;  %v1020_v2 = vpop.f32.mrf.mxu1 }
 0x136   : > { %v1536_v3 = vpop.f32.mrf.mxu0 }
 0x137   : > { %1159 = vst.msk [vmem:[%s1981_s11 + $0x8] sm:$0xf] %vm1156_vm4, %v1351_v60  ;;  %v1093_v5 = vmax.f32 %v1080_v63, 0.0  ;;  %v1062_v29 = vadd.f32 %v1020_v2, %v867_v0  ;;  %v1580_v30 = vpop.f32.mrf.mxu1  ;;  %v581_v60 = vadd.f32 %v1960_v54, %v1958_v53 }
 0x138   : > { %v828_v6 = vpop.f32.mrf.mxu0  ;;  %v584_v30 = vadd.f32 %v1964_v58, %v1962_v57 }
 0x139   : > { %v1352_v7 = vpack.c.bf16 %v1093_v5, %v1093_v5  ;;  %v1081_v8 = vadd.f32 %v1973_v10, %v1062_v29  ;;  %v868_v9 = vadd.f32 %v828_v6, %v560_v4  ;;  %v1023_v11 = vpop.f32.mrf.mxu1 }
 0x13a   : > { %v1537_v12 = vpop.f32.mrf.mxu0 }
 0x13b   : > { %1160 = vst.msk [vmem:[%s1981_s11 + $0xc] sm:$0xf] %vm1156_vm4, %v1352_v7  ;;  %v1094_v16 = vmax.f32 %v1081_v8, 0.0  ;;  %v1063_v33 = vadd.f32 %v1023_v11, %v868_v9  ;;  %v1581_v34 = vpop.f32.mrf.mxu1 }
 0x13c   : > { %v833_v17 = vpop.f32.mrf.mxu0 }
 0x13d   : > { %v1353_v20 = vpack.c.bf16 %v1094_v16, %v1094_v16  ;;  %v1082_v21 = vadd.f32 %v1973_v10, %v1063_v33  ;;  %v869_v24 = vadd.f32 %v833_v17, %v565_v13  ;;  %v1028_v14 = vpop.f32.mrf.mxu1  ;;  %v589_v16 = vadd.f32 %v1968_v62, %v1966_v61 }
 0x13e   : > { %v1540_v15 = vpop.f32.mrf.mxu0 }
 0x13f   : > { %1161 = vst.msk [vmem:[%s1981_s11 + $0x10] sm:$0xf] %vm1156_vm4, %v1353_v20  ;;  %v1095_v1 = vmax.f32 %v1082_v21, 0.0  ;;  %v1064_v37 = vadd.f32 %v1028_v14, %v869_v24  ;;  %v1584_v38 = vpop.f32.mrf.mxu1 }
 0x140   : > { %v836_v28 = vpop.f32.mrf.mxu0 }
 0x141   : > { %v1354_v18 = vpack.c.bf16 %v1095_v1, %v1095_v1  ;;  %v1083_v19 = vadd.f32 %v1973_v10, %v1064_v37  ;;  %v870_v31 = vadd.f32 %v836_v28, %v568_v25  ;;  %v1031_v32 = vpop.f32.mrf.mxu1 }
 0x142   : > { %v1541_v35 = vpop.f32.mrf.mxu0 }
 0x143   : > { %1162 = vst.msk [vmem:[%s1981_s11 + $0x14] sm:$0xf] %vm1156_vm4, %v1354_v18  ;;  %v1096_v22 = vmax.f32 %v1083_v19, 0.0  ;;  %v1065_v41 = vadd.f32 %v1031_v32, %v870_v31  ;;  %v1585_v42 = vpop.f32.mrf.mxu1  ;;  %v1172_v31 = vld [vmem:[%s1981_s11 + $0x30] sm:$0x3] }
 0x144   : > { %v841_v23 = vpop.f32.mrf.mxu0 }
 0x145   : > { %v1355_v39 = vpack.c.bf16 %v1096_v22, %v1096_v22  ;;  %v1084_v40 = vadd.f32 %v1973_v10, %v1065_v41  ;;  %v871_v43 = vadd.f32 %v841_v23, %v573_v36  ;;  %v1036_v44 = vpop.f32.mrf.mxu1 }
 0x146   : > { %v1544_v47 = vpop.f32.mrf.mxu0 }
 0x147   : > { %1163 = vst.msk [vmem:[%s1981_s11 + $0x18] sm:$0xf] %vm1156_vm4, %v1355_v39  ;;  %v1097_v51 = vmax.f32 %v1084_v40, 0.0  ;;  %v1066_v45 = vadd.f32 %v1036_v44, %v871_v43  ;;  %v1588_v46 = vpop.f32.mrf.mxu1 }
 0x148   : > { %v844_v52 = vpop.f32.mrf.mxu0 }
 0x149   : > { %v1356_v55 = vpack.c.bf16 %v1097_v51, %v1097_v51  ;;  %v1085_v56 = vadd.f32 %v1973_v10, %v1066_v45  ;;  %v872_v26 = vadd.f32 %v844_v52, %v576_v48  ;;  %v1039_v27 = vpop.f32.mrf.mxu1 }
 0x14a   : > { %v1545_v59 = vpop.f32.mrf.mxu0 }
 0x14b   : > { %1164 = vst.msk [vmem:[%s1981_s11 + $0x1c] sm:$0xf] %vm1156_vm4, %v1356_v55  ;;  %v1098_v63 = vmax.f32 %v1085_v56, 0.0  ;;  %v1067_v49 = vadd.f32 %v1039_v27, %v872_v26  ;;  %v1589_v50 = vpop.f32.mrf.mxu1 }
 0x14c   : > { %v849_v0 = vpop.f32.mrf.mxu0 }
 0x14d   : > { %v1357_v2 = vpack.c.bf16 %v1098_v63, %v1098_v63  ;;  %v1086_v3 = vadd.f32 %v1973_v10, %v1067_v49  ;;  %v873_v4 = vadd.f32 %v849_v0, %v581_v60  ;;  %v1044_v5 = vpop.f32.mrf.mxu1 }
 0x14e   : > { %v1548_v29 = vpop.f32.mrf.mxu0 }
 0x14f   : > { %1165 = vst.msk [vmem:[%s1981_s11 + $0x20] sm:$0xf] %vm1156_vm4, %v1357_v2  ;;  %v1099_v6 = vmax.f32 %v1086_v3, 0.0  ;;  %v1068_v53 = vadd.f32 %v1044_v5, %v873_v4  ;;  %v1592_v54 = vpop.f32.mrf.mxu1 }
 0x150   : > { %v852_v7 = vpop.f32.mrf.mxu0 }
 0x151   : > { %v1358_v8 = vpack.c.bf16 %v1099_v6, %v1099_v6  ;;  %v1087_v9 = vadd.f32 %v1973_v10, %v1068_v53  ;;  %v874_v11 = vadd.f32 %v852_v7, %v584_v30  ;;  %v1047_v12 = vpop.f32.mrf.mxu1 }
 0x152   : > { %v1549_v13 = vpop.f32.mrf.mxu0 }
 0x153   : > { %1166 = vst.msk [vmem:[%s1981_s11 + $0x24] sm:$0xf] %vm1156_vm4, %v1358_v8  ;;  %v1100_v33 = vmax.f32 %v1087_v9, 0.0  ;;  %v1069_v57 = vadd.f32 %v1047_v12, %v874_v11  ;;  %v1593_v58 = vpop.f32.mrf.mxu1 }
 0x154   : > { %v857_v34 = vpop.f32.mrf.mxu0 }
 0x155   : > { %v1359_v17 = vpack.c.bf16 %v1100_v33, %v1100_v33  ;;  %v1088_v20 = vadd.f32 %v1973_v10, %v1069_v57  ;;  %v875_v21 = vadd.f32 %v857_v34, %v589_v16  ;;  %v1052_v24 = vpop.f32.mrf.mxu1 }
 0x156   : > { %v1552_v14 = vpop.f32.mrf.mxu0 }
 0x157   : > { %1167 = vst.msk [vmem:[%s1981_s11 + $0x28] sm:$0xf] %vm1156_vm4, %v1359_v17  ;;  %v1101_v15 = vmax.f32 %v1088_v20, 0.0  ;;  %v1070_v25 = vadd.f32 %v1052_v24, %v875_v21  ;;  %v1596_v61 = vpop.f32.mrf.mxu1 }
 0x158   : > { %v860_v62 = vpop.f32.mrf.mxu0 }
 0x159   : > { %v1360_v1 = vpack.c.bf16 %v1101_v15, %v1101_v15  ;;  %v1089_v37 = vadd.f32 %v1973_v10, %v1070_v25  ;;  %v1055_v38 = vpop.f32.mrf.mxu1 }
 0x15a   : > { %v1553_v28 = vpop.f32.mrf.mxu0 }
 0x15b   : > { %1168 = vst.msk [vmem:[%s1981_s11 + $0x2c] sm:$0xf] %vm1156_vm4, %v1360_v1  ;;  %v1102_v18 = vmax.f32 %v1089_v37, 0.0  ;;  %v1597_v19 = vpop.f32.mrf.mxu1 }
 0x15d   : > { %v1361_v32 = vpack.c.bf16 %v1102_v18, %v1102_v18 }
 0x15f   : > { %v1173_v35 = vsel %vm1171_vm7, %v1361_v32, %v1172_v31 }
 0x160   : > { %1174 = vst [vmem:[%s1981_s11 + $0x30] sm:$0x3] %v1173_v35 }
 0x161 PF: > { %s13_s12 = sadd.s32 1, %s1664_s12  }
 0x162   : > { %p10_p4 = scmp.ge.s32.totalorder %s13_s12, 4  }
 0x164   :  { %12 = sbr.rel (!%p10_p4) target bundleno = 1 (0x1), region = 65 }

// kernel: dqn_forward.6
= control target key start
LH: loop header
LB: loop body
LE: loop exit
PB: predicated region body
PF: predicated region fallthrough
CT: control target
= control target key end

     0   :  { %s2507_s12 = smov 0   ;;  %s3112_s0 = inlined_call_operand.vmem [shape: bf16[2,101,64], index: 0, kind: input, shape index: {}]   ;;  %s3113_s1 = inlined_call_operand.vmem [shape: bf16[9,64,64], index: 1, kind: input, shape index: {}]   ;;  %s3114_s2 = inlined_call_operand.vmem [shape: f32[1,64], index: 2, kind: input, shape index: {}]   ;;  %s3115_s3 = inlined_call_operand.vmem [shape: bf16[2,77,64], index: 3, kind: output, shape index: {}]  }
   0x1 LB: > { %s1855_s13 = sadd.s32 4294967295, %s2483_s12   ;;  %p1859_p0 = scmp.ge.s32.totalorder %s2483_s12, 1  ;;  %s2483_s12 = sphi %s2507_s12, %s13_s12  }
   0x2   : > { %p137_p1 = scmp.lt.s32.totalorder %s2483_s12, 3 }
   0x4   : > { %p138_p2 = pnand %p1859_p0, %p137_p1 }
   0x5   : > { %p161_p3 = scmp.lt.s32.totalorder (!%p138_p2), %s1855_s13, 1 }
   0x6   : > { %141 = sbr.rel (%p138_p2) target bundleno = 413 (0x19d), region = 32 }
   0xb   : > { %v2412_v0 = vld [vmem:[%s3113_s1 + $0x38] sm:$0xff]   ;;  %v2485_v1 = vmov 0.0   ;;  %v2413_v2 = vld [vmem:[%s3113_s1 + $0x30] sm:$0xff]   ;;  %vm2486_vm0 = vmmov 0   ;;  %s3117_s13 = smov (!%p161_p3, %s1855_s13), 1  ;;  %v2414_v3 = vld [vmem:[%s3113_s1 + $0x28] sm:$0xff]  }
   0xc   : > { %2392 = vmatprep.subr.bf16.mxu1 %v2485_v1  ;;  %2140 = vmatprep.subr.bf16.mxu0 %v2485_v1  ;;  %s2400_s20 = smul.u32 52, %s3117_s13  ;;  %v2415_v4 = vld [vmem:[%s3113_s1 + $0x20] sm:$0xff]   ;;  %vm289_vm1 = vcmask 523264   ;;  %vm225_vm2 = vsmask.f32 7424  ;;  %v2418_v20 = vld [vmem:[%s3113_s1 + $0x18] sm:$0xff]  }
   0xd   : > { %2396 = vmatpush3.bf16.msra.mxu1 %v2412_v0  ;;  %2141 = vmatpush3.bf16.msra.mxu0 %v2412_v0  ;;  %v2421_v30 = vld [vmem:[%s3113_s1 + $0x58] sm:$0xff]   ;;  %v2422_v33 = vld [vmem:[%s3113_s1 + $0x10] sm:$0xff]   ;;  %v2425_v40 = vld [vmem:[%s3113_s1 + $0x8] sm:$0xff]   ;;  %vm502_vm3 = vcmask 1046528   ;;  %vm893_vm4 = vcmask 1045504   ;;  %vm1260_vm6 = vcmask 1044480  }
   0xe   : > { %2393 = vmatprep.subr.bf16.mxu1 %v2485_v1  ;;  %2142 = vmatprep.subr.bf16.mxu0 %v2485_v1  ;;  %s2543_s25 = scalar_lea.vmem %s3112_s0, %s2400_s20  ;;  %v2424_v36 = vld [vmem:[%s3113_s1 + $0x50] sm:$0xff]   ;;  %v2426_v42 = vld [vmem:[%s3113_s1 + $0x48] sm:$0xff]   ;;  %v2428_v45 = vld [vmem:[%s3113_s1] sm:$0xff]   ;;  %vm678_vm5 = vsmask.f32 6400  ;;  %s2401_s18 = smul.u32 40, %s3117_s13 }
   0xf   : > { %2156 = vmatprep.mubr.msk.bf16.mxu1 %vm2486_vm0, %v2485_v1  ;;  %2148 = vmatprep.mubr.msk.bf16.mxu0 %vm2486_vm0, %v2485_v1  ;;  %v2546_v5 = vld [vmem:[%s2543_s25 + $0x10] sm:$0xff]   ;;  %v2549_v6 = vld [vmem:[%s2543_s25 + $0x18] sm:$0xff]   ;;  %v173_v7 = vld [vmem:[%s2543_s25] sm:$0xf]  ;;  %vm1036_vm7 = vsmask.f32 5376 }
  0x10   : > { %v2555_v8 = vld [vmem:[%s2543_s25 + $0x4] sm:$0xf]  ;;  %v242_v9 = vshll.u32 %v2546_v5, 16  ;;  %v246_v10 = vshrl.u32 %v2546_v5, 16  ;;  %v250_v11 = vshll.u32 %v2549_v6, 16  ;;  %v2564_v13 = vld [vmem:[%s2543_s25 + $0x8] sm:$0xff]   ;;  %s3060_s21 = scalar_lea.vmem %s3115_s3, %s2401_s18 }
  0x11   : > { %2397 = vmatpush3.bf16.msra.mxu1 %v2413_v2  ;;  %2143 = vmatpush3.bf16.msra.mxu0 %v2413_v2  ;;  %v2561_v12 = vcombine.low %v173_v7, %v2555_v8  ;;  %v2567_v14 = vld [vmem:[%s2543_s25 + $0x20] sm:$0xf]  ;;  %v182_v15 = vld [vmem:[%s2543_s25 + $0x24] sm:$0x7]  ;;  %v234_v21 = vshll.u32 %v2564_v13, 16  ;;  %v254_v25 = vshrl.u32 %v2549_v6, 16 }
  0x12   : > { %2394 = vmatprep.subr.bf16.mxu1 %v2485_v1  ;;  %2144 = vmatprep.subr.bf16.mxu0 %v2485_v1  ;;  %v244_v16 = vrot.slane %v242_v9, 1  ;;  %v252_v17 = vrot.slane %v250_v11, 1  ;;  %v2579_v22 = vcombine.low %v2567_v14, %v182_v15  ;;  %v238_v31 = vshrl.u32 %v2564_v13, 16  ;;  %v485_v38 = vld [vmem:[%s2543_s25] sm:$0xe]  ;;  %v2431_v51 = vld [vmem:[%s3113_s1 + $0x98] sm:$0xff]  }
  0x13   : > { %v227_v18 = vshrl.u32 %v2561_v12, 16  ;;  %v229_v19 = vshll.u32 %v2561_v12, 16  ;;  %v236_v26 = vrot.slane %v234_v21, 1  ;;  %v1901_v44 = vcombine.low %v485_v38, %v2555_v8  ;;  %v2427_v46 = vld [vmem:[%s3113_s1 + $0x40] sm:$0xff]   ;;  %v2433_v53 = vld [vmem:[%s3113_s1 + $0x90] sm:$0xff]   ;;  %v2430_v54 = vld [vmem:[%s3113_s1 + $0x78] sm:$0xff]  }
  0x14   : > { %v248_v23 = vor.u32 %v246_v10, %v244_v16  ;;  %v258_v27 = vshll.u32 %v2579_v22, 16  ;;  %v256_v34 = vor.u32 %v254_v25, %v252_v17  ;;  %v262_v43 = vshrl.u32 %v2579_v22, 16  ;;  %v2436_v56 = vld [vmem:[%s3113_s1 + $0x88] sm:$0xff]   ;;  %v2432_v57 = vld [vmem:[%s3113_s1 + $0x70] sm:$0xff]   ;;  %v2438_v59 = vld [vmem:[%s3113_s1 + $0x80] sm:$0xff]  }
  0x15   : > { %2398 = vmatpush3.bf16.msra.mxu1 %v2414_v3  ;;  %2145 = vmatpush3.bf16.msra.mxu0 %v2414_v3  ;;  %v231_v24 = vrot.slane %v229_v19, 1  ;;  %v240_v37 = vor.u32 %v238_v31, %v236_v26  ;;  %v503_v47 = vrot.slane %v1901_v44, 1  ;;  %v504_v48 = vrot.slane %v2564_v13, 1  ;;  %v486_v60 = vld [vmem:[%s2543_s25 + $0x24] sm:$0xf]  ;;  %v2435_v61 = vld [vmem:[%s3113_s1 + $0x68] sm:$0xff]  }
  0x16   : > { %2395 = vmatprep.subr.bf16.mxu1 %v2485_v1  ;;  %2146 = vmatprep.subr.bf16.mxu0 %v2485_v1  ;;  %v253_v28 = vsel %vm225_vm2, %v248_v23, %v252_v17  ;;  %v260_v35 = vrot.slane %v258_v27, 1  ;;  %v506_v52 = vrot.slane %v2546_v5, 1  ;;  %v508_v58 = vrot.slane %v2549_v6, 1  ;;  %v2437_v0 = vld [vmem:[%s3113_s1 + $0x60] sm:$0xff]   ;;  %v2442_v7 = vld [vmem:[%s2543_s25 + $0xc] sm:$0xff]   ;;  %v2723_v21 = vld [vmem:[%s2543_s25 + $0x14] sm:$0xff]  }
  0x17   : > { %v232_v29 = vor.u32 %v231_v24, %v227_v18  ;;  %v245_v41 = vsel %vm225_vm2, %v240_v37, %v244_v16  ;;  %v505_v50 = vsel %vm502_vm3, %v503_v47, %v504_v48  ;;  %v1902_v63 = vcombine.low %v2567_v14, %v486_v60  ;;  %v2703_v8 = vld [vmem:[%s2543_s25 + $0x4] sm:$0xfc]   ;;  %v2706_v9 = vld [vmem:[%s2543_s25 + $0xc] sm:$0xff]   ;;  %v2446_v18 = vld [vmem:[%s2543_s25 + $0x14] sm:$0xff]  }
  0x18   : > { %v261_v39 = vsel %vm225_vm2, %v256_v34, %v260_v35  ;;  %v264_v49 = vor.u32 %v262_v43, %v260_v35  ;;  %v507_v55 = vsel %vm502_vm3, %v504_v48, %v506_v52  ;;  %v509_v62 = vsel %vm502_vm3, %v506_v52, %v508_v58  ;;  %v2744_v34 = vld [vmem:[%s2543_s25 + $0x1c] sm:$0xff]   ;;  %v2453_v35 = vld [vmem:[%s3113_s1 + $0xc8] sm:$0xff]   ;;  %v2447_v37 = vld [vmem:[%s3113_s1 + $0xb0] sm:$0xff]  }
  0x19   : > { %2399 = vmatpush3.bf16.msra.mxu1 %v2415_v4  ;;  %2147 = vmatpush3.bf16.msra.mxu0 %v2415_v4  ;;  %v237_v32 = vsel %vm225_vm2, %v232_v29, %v236_v26  ;;  %v510_v2 = vrot.slane %v1902_v63, 1  ;;  %v2441_v4 = vld [vmem:[%s2543_s25 + $0x4] sm:$0xfe]   ;;  %v688_v11 = vshrl.u32 %v2442_v7, 16  ;;  %v895_v14 = vrot.slane %v2706_v9, 2  ;;  %v2443_v29 = vld [vmem:[%s3113_s1 + $0xb8] sm:$0xff]  }
  0x1a   : > { %2168 = vmatprep.subr.bf16.mxu1 %v2485_v1  ;;  %2196 = vmatprep.subr.bf16.mxu0 %v2485_v1  ;;  %v683_v10 = vshll.u32 %v2441_v4, 16  ;;  %v697_v25 = vshrl.u32 %v2446_v18, 16  ;;  %v700_v26 = vshll.u32 %v2446_v18, 16  ;;  %v897_v27 = vrot.slane %v2723_v21, 2  ;;  %v2773_v48 = vld [vmem:[%s2543_s25 + $0x24] sm:$0xff]  }
  0x1b   : > { %v511_v3 = vsel %vm502_vm3, %v508_v58, %v510_v2  ;;  %v690_v16 = vrot.slane %v688_v11, 1  ;;  %v2456_v52 = vld [vmem:[%s3113_s1 + $0xa0] sm:$0xff]   ;;  %v2791_v58 = vld [vmem:[%s2543_s25 + $0x2c] ss:$0 sps:$4 sm:$0x11]   ;;  %v1046_v11 = vshrl.u32 %v2706_v9, 16 }
  0x1c   : > { %2157 = vmatmul.mubr.msk.bf16.vlgmr.msra.gmra.mxu1 %vm289_vm1, %v253_v28  ;;  %2149 = vmatmul.mubr.msk.bf16.vlgmr.msra.gmra.mxu0 %vm289_vm1, %v237_v32  ;;  %v702_v31 = vrot.slane %v700_v26, 2  ;;  %v2450_v32 = vld [vmem:[%s2543_s25 + $0x1c] sm:$0xff]   ;;  %v903_v60 = vrot.slane %v2791_v58, 2  ;;  %v2805_v63 = vld [vmem:[%s2543_s25 + $0x10] sm:$0xf]  ;;  %v1058_v26 = vshll.u32 %v2723_v21, 16 }
  0x1d   : > { %2169 = vmatpush3.bf16.msra.mxu1 %v2418_v20  ;;  %2160 = vmatprep.mubr.msk.bf16.mxu1 %vm2486_vm0, %v2485_v1  ;;  %v2444_v20 = vld [vmem:[%s3113_s1 + $0xd8] sm:$0xff]   ;;  %v706_v38 = vshrl.u32 %v2450_v32, 16  ;;  %vm1403_vm8 = vsmask.f32 4352  ;;  %vm1784_vm9 = vcmask 519168   ;;  %vm1794_vm10 = vcmask 518144  }
  0x1e   : > { %2170 = vmatprep.subr.bf16.mxu1 %v2485_v1  ;;  %2197 = vmatpush3.bf16.msra.mxu0 %v2421_v30  ;;  %v699_v30 = vrot.slane %v697_v25, 1  ;;  %v1055_v25 = vshrl.u32 %v2723_v21, 16  ;;  %vm1795_vm11 = vsmask.f32 2304 }
  0x1f   : > { %2152 = vmatprep.mubr.msk.bf16.mxu0 %vm2486_vm0, %v2485_v1  ;;  %2198 = vmatprep.subr.bf16.mxu0 %v2485_v1  ;;  %v708_v43 = vrot.slane %v706_v38, 1  ;;  %v2463_v38 = vld [vmem:[%s3113_s1 + $0xf0] sm:$0xff]   ;;  %vm1796_vm12 = vmand %vm1794_vm10, %vm1795_vm11 }
  0x21   : > { %2171 = vmatpush3.bf16.msra.mxu1 %v2422_v33  ;;  %v898_v33 = vsel %vm893_vm4, %v895_v14, %v897_v27 }
  0x22   : > { %2172 = vmatprep.subr.bf16.mxu1 %v2485_v1  ;;  %2199 = vmatpush3.bf16.msra.mxu0 %v2424_v36  ;;  %v703_v36 = vor.u32 %v702_v31, %v699_v30  ;;  %v2460_v30 = vld [vmem:[%s3113_s1 + $0xf8] sm:$0xff]   ;;  %v1057_v31 = vrot.slane %v1055_v25, 2 }
  0x23   : > { %2200 = vmatprep.subr.bf16.mxu0 %v2485_v1 }
  0x24   : > { %2161 = vmatmul.mubr.msk.bf16.gmra.mxu1 %vm289_vm1, %v261_v39  ;;  %2153 = vmatmul.mubr.msk.bf16.gmra.mxu0 %vm289_vm1, %v245_v41  ;;  %v709_v39 = vshll.u32 %v2450_v32, 16  ;;  %v2457_v41 = vld [vmem:[%s3113_s1 + $0xc0] sm:$0xff]   ;;  %v1060_v32 = vrot.slane %v1058_v26, 3 }
  0x25   : > { %2173 = vmatpush3.bf16.msra.mxu1 %v2425_v40  ;;  %2164 = vmatprep.mubr.msk.bf16.mxu1 %vm2486_vm0, %v2485_v1  ;;  %v899_v40 = vrot.slane %v2744_v34, 2 }
  0x26   : > { %2174 = vmatprep.subr.bf16.mxu1 %v2485_v1  ;;  %2201 = vmatpush3.bf16.msra.mxu0 %v2426_v42  ;;  %v711_v44 = vrot.slane %v709_v39, 2  ;;  %v1064_v39 = vshrl.u32 %v2744_v34, 16 }
  0x27   : > { %2204 = vmatprep.mubr.msk.bf16.mxu0 %vm2486_vm0, %v2485_v1  ;;  %2202 = vmatprep.subr.bf16.mxu0 %v2485_v1  ;;  %v900_v47 = vsel %vm893_vm4, %v897_v27, %v899_v40 }
  0x29   : > { %2175 = vmatpush3.bf16.msra.mxu1 %v2428_v45  ;;  %v2452_v45 = vld [vmem:[%s3113_s1 + $0xa8] sm:$0xff]  }
  0x2a   : > { %2224 = vmatprep.subr.bf16.mxu1 %v2485_v1  ;;  %2203 = vmatpush3.bf16.msra.mxu0 %v2427_v46  ;;  %v2454_v46 = vld [vmem:[%s2543_s25 + $0x24] sm:$0xff]  }
  0x2b   : > { %2252 = vmatprep.subr.bf16.mxu0 %v2485_v1 }
  0x2c   : > { %2165 = vmatmul.mubr.msk.bf16.gmra.mxu1 %vm289_vm1, %v264_v49  ;;  %v712_v49 = vor.u32 %v711_v44, %v708_v43  ;;  %v2894_v43 = vld [vmem:[%s2543_s25 + $0x28] sm:$0xf]  ;;  %v2897_v44 = vld [vmem:[%s2543_s25 + $0x2c] sm:$0xf] }
  0x2d   : > { %2176 = vmatprep.mubr.msk.bf16.mxu1 %vm2486_vm0, %v2485_v1  ;;  %2205 = vmatmul.mubr.msk.bf16.vlgmr.msra.gmra.mxu0 %vm289_vm1, %v505_v50  ;;  %v715_v50 = vshrl.u32 %v2454_v46, 16 }
  0x2e   : > { %2253 = vmatpush3.bf16.msra.mxu0 %v2431_v51  ;;  %2208 = vmatprep.mubr.msk.bf16.mxu0 %vm2486_vm0, %v2485_v1  ;;  %v718_v51 = vshll.u32 %v2454_v46, 16 }
  0x2f   : > { %2254 = vmatprep.subr.bf16.mxu0 %v2485_v1 }
  0x32   : > { %2255 = vmatpush3.bf16.msra.mxu0 %v2433_v53  ;;  %v901_v53 = vrot.slane %v2773_v48, 2 }
  0x33   : > { %2256 = vmatprep.subr.bf16.mxu0 %v2485_v1 }
  0x34   : > { %2177 = vmatmul.mubr.msk.bf16.vlgmr.msra.gmra.mxu1 %vm289_vm1, %v2561_v12  ;;  %v691_v12 = vshll.u32 %v2442_v7, 16 }
  0x35   : > { %2225 = vmatpush3.bf16.msra.mxu1 %v2430_v54  ;;  %2180 = vmatprep.mubr.msk.bf16.mxu1 %vm2486_vm0, %v2485_v1  ;;  %v713_v54 = vsel %vm678_vm5, %v703_v36, %v712_v49 }
  0x36   : > { %2209 = vmatmul.mubr.msk.bf16.gmra.mxu0 %vm289_vm1, %v507_v55  ;;  %2226 = vmatprep.subr.bf16.mxu1 %v2485_v1  ;;  %v693_v17 = vrot.slane %v691_v12, 2  ;;  %v717_v55 = vrot.slane %v715_v50, 1  ;;  %v1049_v12 = vshll.u32 %v2706_v9, 16  ;;  %v2908_v50 = vcombine.low %v2894_v43, %v2897_v44 }
  0x37   : > { %2212 = vmatprep.mubr.msk.bf16.mxu0 %vm2486_vm0, %v2485_v1  ;;  %2257 = vmatpush3.bf16.msra.mxu0 %v2436_v56  ;;  %v720_v56 = vrot.slane %v718_v51, 2 }
  0x38   : > { %2258 = vmatprep.subr.bf16.mxu0 %v2485_v1  ;;  %v694_v24 = vor.u32 %v693_v17, %v690_v16  ;;  %v1048_v17 = vrot.slane %v1046_v11, 2  ;;  %v1051_v18 = vrot.slane %v1049_v12, 3 }
  0x39   : > { %2227 = vmatpush3.bf16.msra.mxu1 %v2432_v57  ;;  %v902_v57 = vsel %vm893_vm4, %v899_v40, %v901_v53  ;;  %v1067_v40 = vshll.u32 %v2744_v34, 16 }
  0x3a   : > { %2228 = vmatprep.subr.bf16.mxu1 %v2485_v1  ;;  %v704_v42 = vsel %vm678_vm5, %v694_v24, %v703_v36  ;;  %v2468_v36 = vld [vmem:[%s3113_s1 + $0x108] sm:$0xff]  }
  0x3b   : > { %2259 = vmatpush3.bf16.msra.mxu0 %v2438_v59  ;;  %v721_v59 = vor.u32 %v720_v56, %v717_v55  ;;  %v1069_v46 = vrot.slane %v1067_v40, 3  ;;  %v1268_v55 = vrot.slane %v2908_v50, 3 }
  0x3c   : > { %2181 = vmatmul.mubr.msk.bf16.gmra.mxu1 %vm289_vm1, %v2564_v13  ;;  %2308 = vmatprep.subr.bf16.mxu0 %v2485_v1  ;;  %v894_v13 = vrot.slane %v2703_v8, 2 }
  0x3d   : > { %2184 = vmatprep.mubr.msk.bf16.mxu1 %vm2486_vm0, %v2485_v1  ;;  %2229 = vmatpush3.bf16.msra.mxu1 %v2435_v61  ;;  %v1212_v61 = vld [vmem:[%s2543_s25 + $0x8] sm:$0x8] }
  0x3e   : > { %2213 = vmatmul.mubr.msk.bf16.gmra.mxu0 %vm289_vm1, %v509_v62  ;;  %2230 = vmatprep.subr.bf16.mxu1 %v2485_v1  ;;  %v896_v19 = vsel %vm893_vm4, %v894_v13, %v895_v14  ;;  %v2802_v62 = vld [vmem:[%s2543_s25 + $0xc] sm:$0xf] }
  0x3f   : > { %2216 = vmatprep.mubr.msk.bf16.mxu0 %vm2486_vm0, %v2485_v1  ;;  %v2022_v25 = vcombine.low %v2802_v62, %v2805_v63 }
  0x41   : > { %2231 = vmatpush3.bf16.msra.mxu1 %v2437_v0  ;;  %v2808_v0 = vld [vmem:[%s2543_s25 + $0x14] sm:$0xf] }
  0x42   : > { %2280 = vmatprep.subr.bf16.mxu1 %v2485_v1  ;;  %v2817_v7 = vcombine.low %v2805_v63, %v2808_v0 }
  0x44   : > { %2185 = vmatmul.mubr.msk.bf16.gmra.mxu1 %vm289_vm1, %v2546_v5  ;;  %v680_v5 = vshrl.u32 %v2441_v4, 16  ;;  %v2813_v4 = vcombine.low %v1212_v61, %v2802_v62  ;;  %v1262_v14 = vrot.slane %v2817_v7, 3 }
  0x45   : > { %2188 = vmatprep.mubr.msk.bf16.mxu1 %vm2486_vm0, %v2485_v1 }
  0x46   : > { %2217 = vmatmul.mubr.msk.bf16.gmra.mxu0 %vm289_vm1, %v511_v3  ;;  %v682_v15 = vrot.slane %v680_v5, 1  ;;  %v904_v3 = vsel %vm893_vm4, %v901_v53, %v903_v60  ;;  %v1038_v5 = vshrl.u32 %v2703_v8, 16  ;;  %v1261_v13 = vrot.slane %v2813_v4, 3  ;;  %v2926_v60 = vld [vmem:[%s2543_s25 + $0x30] ss:$0 sps:$4 sm:$0x33]  }
  0x47   : > { %2220 = vmatprep.mubr.msk.bf16.mxu0 %vm2486_vm0, %v2485_v1  ;;  %v1076_v53 = vshll.u32 %v2773_v48, 16 }
  0x48   : > { %v1040_v16 = vrot.slane %v1038_v5, 2  ;;  %v1263_v9 = vsel %vm1260_vm6, %v1261_v13, %v1262_v14  ;;  %v1270_v5 = vrot.slane %v2926_v60, 3 }
  0x4a   : > { %v1271_v13 = vsel %vm1260_vm6, %v1268_v55, %v1270_v5 }
  0x4c   : > { %2189 = vmatmul.mubr.msk.bf16.gmra.mxu1 %vm289_vm1, %v2549_v6  ;;  %v685_v6 = vrot.slane %v683_v10, 2  ;;  %v1041_v10 = vshll.u32 %v2703_v8, 16 }
  0x4d   : > { %2192 = vmatprep.mubr.msk.bf16.mxu1 %vm2486_vm0, %v2485_v1 }
  0x4e   : > { %2221 = vmatmul.mubr.msk.bf16.gmra.mxu0 %vm289_vm1, %v510_v2  ;;  %v686_v23 = vor.u32 %v685_v6, %v682_v15  ;;  %v722_v2 = vsel %vm678_vm5, %v712_v49, %v721_v59  ;;  %v2832_v15 = vld [vmem:[%s2543_s25 + $0x18] sm:$0xf]  ;;  %v2835_v6 = vld [vmem:[%s2543_s25 + $0x1c] sm:$0xf]  ;;  %v1043_v8 = vrot.slane %v1041_v10, 3 }
  0x4f   : > { %2260 = vmatprep.mubr.msk.bf16.mxu0 %vm2486_vm0, %v2485_v1 }
  0x50   : > { %v695_v28 = vsel %vm678_vm5, %v686_v23, %v694_v24  ;;  %v1044_v23 = vor.u32 %v1043_v8, %v1040_v16  ;;  %v1052_v24 = vor.u32 %v1051_v18, %v1048_v17  ;;  %v1408_v16 = vshll.u32 %v2813_v4, 16 }
  0x51   : > { %v1413_v8 = vshrl.u32 %v2817_v7, 16  ;;  %v1416_v17 = vshll.u32 %v2817_v7, 16 }
  0x52   : > { %v1053_v21 = vsel %vm1036_vm7, %v1044_v23, %v1052_v24 }
  0x53   : > { %v1415_v23 = vrot.slane %v1413_v8, 3 }
  0x54   : > { %2193 = vmatmul.mubr.msk.bf16.gmra.mxu1 %vm289_vm1, %v2579_v22  ;;  %v2449_v22 = vld [vmem:[%s3113_s1 + $0xd0] sm:$0xff]  }
  0x55   : > { %2232 = vmatprep.mubr.msk.bf16.mxu1 %vm2486_vm0, %v2485_v1 }
  0x56   : > { %2261 = vmatmul.mubr.msk.bf16.vlgmr.msra.gmra.mxu0 %vm289_vm1, %v896_v19  ;;  %v2461_v19 = vld [vmem:[%s3113_s1 + $0x118] sm:$0xff]  }
  0x57   : > { %2309 = vmatpush3.bf16.msra.mxu0 %v2444_v20  ;;  %2264 = vmatprep.mubr.msk.bf16.mxu0 %vm2486_vm0, %v2485_v1  ;;  %v2843_v20 = vcombine.low %v2832_v15, %v2835_v6 }
  0x58   : > { %2310 = vmatprep.subr.bf16.mxu0 %v2485_v1 }
  0x59   : > { %v1264_v27 = vrot.slane %v2843_v20, 3  ;;  %v1422_v26 = vshrl.u32 %v2843_v20, 16 }
  0x5b   : > { %2311 = vmatpush3.bf16.msra.mxu0 %v2449_v22  ;;  %v2465_v22 = vld [vmem:[%s3113_s1 + $0x110] sm:$0xff]   ;;  %v1424_v62 = vrot.slane %v1422_v26, 3 }
  0x5c   : > { %2233 = vmatmul.mubr.msk.bf16.vlgmr.msra.gmra.mxu1 %vm289_vm1, %v695_v28  ;;  %2312 = vmatprep.subr.bf16.mxu0 %v2485_v1  ;;  %v2859_v28 = vld [vmem:[%s2543_s25 + $0x20] sm:$0xf] }
  0x5d   : > { %2281 = vmatpush3.bf16.msra.mxu1 %v2443_v29  ;;  %2236 = vmatprep.mubr.msk.bf16.mxu1 %vm2486_vm0, %v2485_v1  ;;  %v2862_v29 = vld [vmem:[%s2543_s25 + $0x24] sm:$0xf] }
  0x5e   : > { %2265 = vmatmul.mubr.msk.bf16.gmra.mxu0 %vm289_vm1, %v898_v33  ;;  %2282 = vmatprep.subr.bf16.mxu1 %v2485_v1  ;;  %v1265_v33 = vsel %vm1260_vm6, %v1262_v14, %v1264_v27  ;;  %v1405_v14 = vshrl.u32 %v2813_v4, 16 }
  0x5f   : > { %2268 = vmatprep.mubr.msk.bf16.mxu0 %vm2486_vm0, %v2485_v1  ;;  %2313 = vmatpush3.bf16.msra.mxu0 %v2453_v35  ;;  %v2871_v35 = vcombine.low %v2859_v28, %v2862_v29 }
  0x60   : > { %2314 = vmatprep.subr.bf16.mxu0 %v2485_v1  ;;  %v1407_v18 = vrot.slane %v1405_v14, 3 }
  0x61   : > { %2283 = vmatpush3.bf16.msra.mxu1 %v2447_v37  ;;  %v1061_v37 = vor.u32 %v1060_v32, %v1057_v31  ;;  %v1434_v31 = vshll.u32 %v2871_v35, 16 }
  0x62   : > { %2284 = vmatprep.subr.bf16.mxu1 %v2485_v1 }
  0x63   : > { %2315 = vmatpush3.bf16.msra.mxu0 %v2457_v41  ;;  %v1266_v41 = vrot.slane %v2871_v35, 3  ;;  %v1062_v34 = vsel %vm1036_vm7, %v1052_v24, %v1061_v37  ;;  %v1418_v24 = vrot.slane %v1416_v17, 4 }
  0x64   : > { %2237 = vmatmul.mubr.msk.bf16.gmra.mxu1 %vm289_vm1, %v704_v42  ;;  %2364 = vmatprep.subr.bf16.mxu0 %v2485_v1  ;;  %v2471_v42 = vld [vmem:[%s3113_s1 + $0x100] sm:$0xff]  }
  0x65   : > { %2240 = vmatprep.mubr.msk.bf16.mxu1 %vm2486_vm0, %v2485_v1  ;;  %2285 = vmatpush3.bf16.msra.mxu1 %v2452_v45  ;;  %v1066_v45 = vrot.slane %v1064_v39, 2  ;;  %v1267_v49 = vsel %vm1260_vm6, %v1264_v27, %v1266_v41  ;;  %v1419_v7 = vor.u32 %v1418_v24, %v1415_v23  ;;  %v1425_v27 = vshll.u32 %v2843_v20, 16 }
  0x66   : > { %2269 = vmatmul.mubr.msk.bf16.gmra.mxu0 %vm289_vm1, %v900_v47  ;;  %2286 = vmatprep.subr.bf16.mxu1 %v2485_v1  ;;  %v2467_v47 = vld [vmem:[%s3113_s1 + $0xe8] sm:$0xff]   ;;  %v1431_v20 = vshrl.u32 %v2871_v35, 16  ;;  %v1440_v35 = vshrl.u32 %v2908_v50, 16 }
  0x67   : > { %2272 = vmatprep.mubr.msk.bf16.mxu0 %vm2486_vm0, %v2485_v1  ;;  %v1070_v51 = vor.u32 %v1069_v46, %v1066_v45  ;;  %v1427_v63 = vrot.slane %v1425_v27, 4 }
  0x68   : > { %v1442_v39 = vrot.slane %v1440_v35, 3 }
  0x69   : > { %2287 = vmatpush3.bf16.msra.mxu1 %v2456_v52  ;;  %v1073_v52 = vshrl.u32 %v2773_v48, 16  ;;  %v1071_v56 = vsel %vm1036_vm7, %v1061_v37, %v1070_v51  ;;  %v1269_v48 = vsel %vm1260_vm6, %v1266_v41, %v1268_v55  ;;  %v1443_v37 = vshll.u32 %v2908_v50, 16 }
  0x6a   : > { %2336 = vmatprep.subr.bf16.mxu1 %v2485_v1  ;;  %v1449_v41 = vshrl.u32 %v2926_v60, 16 }
  0x6c   : > { %2241 = vmatmul.mubr.msk.bf16.gmra.mxu1 %vm289_vm1, %v713_v54  ;;  %v2470_v54 = vld [vmem:[%s3113_s1 + $0xe0] sm:$0xff]   ;;  %v1451_v46 = vrot.slane %v1449_v41, 3 }
  0x6d   : > { %2244 = vmatprep.mubr.msk.bf16.mxu1 %vm2486_vm0, %v2485_v1 }
  0x6e   : > { %2273 = vmatmul.mubr.msk.bf16.gmra.mxu0 %vm289_vm1, %v902_v57  ;;  %v1075_v57 = vrot.slane %v1073_v52, 2 }
  0x6f   : > { %2276 = vmatprep.mubr.msk.bf16.mxu0 %vm2486_vm0, %v2485_v1 }
  0x74   : > { %2245 = vmatmul.mubr.msk.bf16.gmra.mxu1 %vm289_vm1, %v722_v2  ;;  %v1082_v2 = vshrl.u32 %v2791_v58, 16 }
  0x75   : > { %2248 = vmatprep.mubr.msk.bf16.mxu1 %vm2486_vm0, %v2485_v1 }
  0x76   : > { %2277 = vmatmul.mubr.msk.bf16.gmra.mxu0 %vm289_vm1, %v904_v3  ;;  %v1085_v3 = vshll.u32 %v2791_v58, 16  ;;  %v1084_v11 = vrot.slane %v1082_v2, 2 }
  0x77   : > { %2316 = vmatprep.mubr.msk.bf16.mxu0 %vm2486_vm0, %v2485_v1 }
  0x78   : > { %v1087_v12 = vrot.slane %v1085_v3, 3 }
  0x7a   : > { %v1088_v58 = vor.u32 %v1087_v12, %v1084_v11 }
  0x7c   : > { %2249 = vmatmul.mubr.msk.bf16.gmra.mxu1 %vm289_vm1, %v721_v59  ;;  %v1078_v59 = vrot.slane %v1076_v53, 3 }
  0x7d   : > { %2288 = vmatprep.mubr.msk.bf16.mxu1 %vm2486_vm0, %v2485_v1 }
  0x7e   : > { %2317 = vmatmul.mubr.msk.bf16.vlgmr.msra.gmra.mxu0 %vm289_vm1, %v1263_v9  ;;  %v1079_v61 = vor.u32 %v1078_v59, %v1075_v57 }
  0x7f   : > { %2365 = vmatpush3.bf16.msra.mxu0 %v2461_v19  ;;  %2320 = vmatprep.mubr.msk.bf16.mxu0 %vm2486_vm0, %v2485_v1  ;;  %v1410_v19 = vrot.slane %v1408_v16, 4 }
  0x80   : > { %2366 = vmatprep.subr.bf16.mxu0 %v2485_v1  ;;  %v1080_v10 = vsel %vm1036_vm7, %v1070_v51, %v1079_v61  ;;  %v1089_v9 = vsel %vm1036_vm7, %v1079_v61, %v1088_v58 }
  0x81   : > { %v1411_v4 = vor.u32 %v1410_v19, %v1407_v18 }
  0x83   : > { %2367 = vmatpush3.bf16.msra.mxu0 %v2465_v22  ;;  %v1420_v22 = vsel %vm1403_vm8, %v1411_v4, %v1419_v7 }
  0x84   : > { %2289 = vmatmul.mubr.msk.bf16.vlgmr.msra.gmra.mxu1 %vm289_vm1, %v1053_v21  ;;  %2368 = vmatprep.subr.bf16.mxu0 %v2485_v1  ;;  %v2023_v21 = vcombine.low %v2808_v0, %v2832_v15  ;;  %v2024_v0 = vcombine.low %v2835_v6, %v2859_v28  ;;  %v1445_v6 = vrot.slane %v1443_v37, 4  ;;  %v2025_v28 = vcombine.low %v2862_v29, %v2894_v43 }
  0x85   : > { %2337 = vmatpush3.bf16.msra.mxu1 %v2460_v30  ;;  %2292 = vmatprep.mubr.msk.bf16.mxu1 %vm2486_vm0, %v2485_v1  ;;  %v1428_v30 = vor.u32 %v1427_v63, %v1424_v62 }
  0x86   : > { %2321 = vmatmul.mubr.msk.bf16.gmra.mxu0 %vm289_vm1, %v1265_v33  ;;  %2338 = vmatprep.subr.bf16.mxu1 %v2485_v1  ;;  %v1433_v33 = vrot.slane %v1431_v20, 3  ;;  %v1446_v40 = vor.u32 %v1445_v6, %v1442_v39 }
  0x87   : > { %2324 = vmatprep.mubr.msk.bf16.mxu0 %vm2486_vm0, %v2485_v1  ;;  %2369 = vmatpush3.bf16.msra.mxu0 %v2468_v36  ;;  %v1429_v32 = vsel %vm1403_vm8, %v1419_v7, %v1428_v30  ;;  %v1436_v36 = vrot.slane %v1434_v31, 4 }
  0x88   : > { %2370 = vmatprep.subr.bf16.mxu0 %v2485_v1 }
  0x89   : > { %2339 = vmatpush3.bf16.msra.mxu1 %v2463_v38  ;;  %v1437_v15 = vor.u32 %v1436_v36, %v1433_v33 }
  0x8a   : > { %2340 = vmatprep.subr.bf16.mxu1 %v2485_v1 }
  0x8b   : > { %2371 = vmatpush3.bf16.msra.mxu0 %v2471_v42  ;;  %v1438_v38 = vsel %vm1403_vm8, %v1428_v30, %v1437_v15  ;;  %v1452_v42 = vshll.u32 %v2926_v60, 16  ;;  %v1447_v45 = vsel %vm1403_vm8, %v1437_v15, %v1446_v40 }
  0x8c   : > { %2293 = vmatmul.mubr.msk.bf16.gmra.mxu1 %vm289_vm1, %v1062_v34  ;;  %v1579_v34 = vld [vmem:[%s2543_s25 + $0x30] sm:$0x7] }
  0x8d   : > { %2296 = vmatprep.mubr.msk.bf16.mxu1 %vm2486_vm0, %v2485_v1  ;;  %2341 = vmatpush3.bf16.msra.mxu1 %v2467_v47  ;;  %v1454_v29 = vrot.slane %v1452_v42, 4  ;;  %v2026_v43 = vcombine.low %v2897_v44, %v1579_v34 }
  0x8e   : > { %2325 = vmatmul.mubr.msk.bf16.gmra.mxu0 %vm289_vm1, %v1267_v49  ;;  %2342 = vmatprep.subr.bf16.mxu1 %v2485_v1 }
  0x8f   : > { %2328 = vmatprep.mubr.msk.bf16.mxu0 %vm2486_vm0, %v2485_v1  ;;  %v1455_v47 = vor.u32 %v1454_v29, %v1451_v46 }
  0x91   : > { %2343 = vmatpush3.bf16.msra.mxu1 %v2470_v54  ;;  %v1456_v49 = vsel %vm1403_vm8, %v1446_v40, %v1455_v47 }
  0x94   : > { %2297 = vmatmul.mubr.msk.bf16.gmra.mxu1 %vm289_vm1, %v1071_v56 }
  0x95   : > { %2300 = vmatprep.mubr.msk.bf16.mxu1 %vm2486_vm0, %v2485_v1 }
  0x96   : > { %2329 = vmatmul.mubr.msk.bf16.gmra.mxu0 %vm289_vm1, %v1269_v48 }
  0x97   : > { %2332 = vmatprep.mubr.msk.bf16.mxu0 %vm2486_vm0, %v2485_v1 }
  0x9c   : > { %2301 = vmatmul.mubr.msk.bf16.gmra.mxu1 %vm289_vm1, %v1080_v10 }
  0x9d   : > { %2304 = vmatprep.mubr.msk.bf16.mxu1 %vm2486_vm0, %v2485_v1 }
  0x9e   : > { %2333 = vmatmul.mubr.msk.bf16.gmra.mxu0 %vm289_vm1, %v1271_v13 }
  0x9f   : > { %2372 = vmatprep.mubr.msk.bf16.mxu0 %vm2486_vm0, %v2485_v1 }
  0xa4   : > { %2305 = vmatmul.mubr.msk.bf16.gmra.mxu1 %vm289_vm1, %v1089_v9 }
  0xa5   : > { %2344 = vmatprep.mubr.msk.bf16.mxu1 %vm2486_vm0, %v2485_v1 }
  0xa6   : > { %2373 = vmatmul.mubr.msk.bf16.vlgmr.msra.gmra.mxu0 %vm289_vm1, %v2022_v25 }
  0xa7   : > { %2376 = vmatprep.mubr.msk.bf16.mxu0 %vm2486_vm0, %v2485_v1 }
  0xac   : > { %2345 = vmatmul.mubr.msk.bf16.vlgmr.msra.gmra.mxu1 %vm289_vm1, %v1420_v22 }
  0xad   : > { %2348 = vmatprep.mubr.msk.bf16.mxu1 %vm2486_vm0, %v2485_v1 }
  0xae   : > { %2377 = vmatmul.mubr.msk.bf16.gmra.mxu0 %vm289_vm1, %v2023_v21 }
  0xaf   : > { %2380 = vmatprep.mubr.msk.bf16.mxu0 %vm2486_vm0, %v2485_v1 }
  0xb4   : > { %2349 = vmatmul.mubr.msk.bf16.gmra.mxu1 %vm289_vm1, %v1429_v32 }
  0xb5   : > { %2352 = vmatprep.mubr.msk.bf16.mxu1 %vm2486_vm0, %v2485_v1 }
  0xb6   : > { %2381 = vmatmul.mubr.msk.bf16.gmra.mxu0 %vm289_vm1, %v2024_v0 }
  0xb7   : > { %2384 = vmatprep.mubr.msk.bf16.mxu0 %vm2486_vm0, %v2485_v1 }
  0xbc   : > { %2353 = vmatmul.mubr.msk.bf16.gmra.mxu1 %vm289_vm1, %v1438_v38 }
  0xbd   : > { %2356 = vmatprep.mubr.msk.bf16.mxu1 %vm2486_vm0, %v2485_v1 }
  0xbe   : > { %2385 = vmatmul.mubr.msk.bf16.gmra.mxu0 %vm289_vm1, %v2025_v28 }
  0xbf   : > { %2388 = vmatprep.mubr.msk.bf16.mxu0 %vm2486_vm0, %v2485_v1 }
  0xc4   : > { %2357 = vmatmul.mubr.msk.bf16.gmra.mxu1 %vm289_vm1, %v1447_v45 }
  0xc5   : > { %2360 = vmatprep.mubr.msk.bf16.mxu1 %vm2486_vm0, %v2485_v1 }
  0xc6   : > { %2389 = vmatmul.mubr.msk.bf16.gmra.mxu0 %vm289_vm1, %v2026_v43 }
  0xcc   : > { %2361 = vmatmul.mubr.msk.bf16.gmra.mxu1 %vm289_vm1, %v1456_v49 }
  0xdc   : > { %v355_v50 = vpop.f32.mrf.mxu1  ;;  %v339_v52 = vpop.f32.mrf.mxu0 }
  0xde   : > { %v2158_v51 = vpop.f32.mrf.mxu1  ;;  %v2150_v54 = vpop.f32.mrf.mxu0 }
  0xe0   : > { %v358_v53 = vpop.f32.mrf.mxu1  ;;  %v342_v56 = vpop.f32.mrf.mxu0 }
  0xe2   : > { %v2159_v55 = vpop.f32.mrf.mxu1  ;;  %v2151_v57 = vpop.f32.mrf.mxu0 }
  0xe4   : > { %v363_v44 = vpop.f32.mrf.mxu1  ;;  %v347_v48 = vpop.f32.mrf.mxu0 }
  0xe6   : > { %v2162_v59 = vpop.f32.mrf.mxu1  ;;  %v2154_v1 = vpop.f32.mrf.mxu0 }
  0xe8   : > { %v366_v60 = vpop.f32.mrf.mxu1  ;;  %v350_v2 = vpop.f32.mrf.mxu0 }
  0xea   : > { %v2163_v61 = vpop.f32.mrf.mxu1  ;;  %v2155_v5 = vpop.f32.mrf.mxu0 }
  0xec   : > { %v371_v3 = vpop.f32.mrf.mxu1 }
  0xed   : > { %v585_v11 = vpop.f32.mrf.mxu0 }
  0xee   : > { %v2166_v10 = vpop.f32.mrf.mxu1 }
  0xef   : > { %v2206_v13 = vpop.f32.mrf.mxu0 }
  0xf0   : > { %v374_v12 = vpop.f32.mrf.mxu1 }
  0xf1   : > { %v588_v58 = vpop.f32.mrf.mxu0 }
  0xf2   : > { %v2167_v14 = vpop.f32.mrf.mxu1 }
  0xf3   : > { %v2207_v8 = vpop.f32.mrf.mxu0 }
  0xf4   : > { %v446_v16 = vpop.f32.mrf.mxu1 }
  0xf5   : > { %v447_v17 = vadd.f32 %v446_v16, %v339_v52 }
  0xf6   : > { %v2178_v18 = vpop.f32.mrf.mxu1  ;;  %v593_v9 = vpop.f32.mrf.mxu0 }
  0xf7   : > { %v624_v19 = vadd.f32 %v585_v11, %v447_v17 }
  0xf8   : > { %v449_v23 = vpop.f32.mrf.mxu1  ;;  %v2210_v24 = vpop.f32.mrf.mxu0 }
  0xf9   : > { %v450_v25 = vadd.f32 %v449_v23, %v342_v56 }
  0xfa   : > { %v2179_v4 = vpop.f32.mrf.mxu1  ;;  %v596_v7 = vpop.f32.mrf.mxu0 }
  0xfb   : > { %v625_v26 = vadd.f32 %v588_v58, %v450_v25 }
  0xfc   : > { %v454_v27 = vpop.f32.mrf.mxu1  ;;  %v2211_v22 = vpop.f32.mrf.mxu0 }
  0xfd   : > { %v455_v62 = vadd.f32 %v454_v27, %v347_v48 }
  0xfe   : > { %v2182_v63 = vpop.f32.mrf.mxu1  ;;  %v601_v21 = vpop.f32.mrf.mxu0 }
  0xff   : > { %v626_v30 = vadd.f32 %v593_v9, %v455_v62 }
 0x100   : > { %v457_v20 = vpop.f32.mrf.mxu1  ;;  %v2214_v31 = vpop.f32.mrf.mxu0 }
 0x101   : > { %v458_v32 = vadd.f32 %v457_v20, %v350_v2 }
 0x102   : > { %v2183_v33 = vpop.f32.mrf.mxu1  ;;  %v604_v36 = vpop.f32.mrf.mxu0 }
 0x103   : > { %v627_v0 = vadd.f32 %v596_v7, %v458_v32 }
 0x104   : > { %v462_v15 = vpop.f32.mrf.mxu1  ;;  %v2215_v35 = vpop.f32.mrf.mxu0 }
 0x105   : > { %v463_v37 = vadd.f32 %v462_v15, %v355_v50 }
 0x106   : > { %v2186_v38 = vpop.f32.mrf.mxu1  ;;  %v609_v39 = vpop.f32.mrf.mxu0 }
 0x107   : > { %v628_v6 = vadd.f32 %v601_v21, %v463_v37 }
 0x108   : > { %v465_v28 = vpop.f32.mrf.mxu1  ;;  %v2218_v40 = vpop.f32.mrf.mxu0 }
 0x109   : > { %v466_v41 = vadd.f32 %v465_v28, %v358_v53 }
 0x10a   : > { %v2187_v42 = vpop.f32.mrf.mxu1  ;;  %v612_v34 = vpop.f32.mrf.mxu0 }
 0x10b   : > { %v629_v45 = vadd.f32 %v604_v36, %v466_v41 }
 0x10c   : > { %v470_v46 = vpop.f32.mrf.mxu1  ;;  %v2219_v29 = vpop.f32.mrf.mxu0 }
 0x10d   : > { %v471_v43 = vadd.f32 %v470_v46, %v363_v44 }
 0x10e   : > { %v2190_v47 = vpop.f32.mrf.mxu1  ;;  %v617_v49 = vpop.f32.mrf.mxu0 }
 0x10f   : > { %v630_v51 = vadd.f32 %v609_v39, %v471_v43 }
 0x110   : > { %v473_v52 = vpop.f32.mrf.mxu1  ;;  %v2222_v54 = vpop.f32.mrf.mxu0 }
 0x111   : > { %v474_v55 = vadd.f32 %v473_v52, %v366_v60 }
 0x112   : > { %v2191_v56 = vpop.f32.mrf.mxu1  ;;  %v620_v50 = vpop.f32.mrf.mxu0 }
 0x113   : > { %v631_v57 = vadd.f32 %v612_v34, %v474_v55 }
 0x114   : > { %v478_v59 = vpop.f32.mrf.mxu1  ;;  %v2223_v48 = vpop.f32.mrf.mxu0 }
 0x115   : > { %v479_v1 = vadd.f32 %v478_v59, %v371_v3 }
 0x116   : > { %v2194_v61 = vpop.f32.mrf.mxu1  ;;  %v978_v53 = vpop.f32.mrf.mxu0 }
 0x117   : > { %v632_v2 = vadd.f32 %v617_v49, %v479_v1 }
 0x118   : > { %v481_v5 = vpop.f32.mrf.mxu1  ;;  %v2262_v10 = vpop.f32.mrf.mxu0 }
 0x119   : > { %v482_v11 = vadd.f32 %v481_v5, %v374_v12 }
 0x11a   : > { %v2195_v13 = vpop.f32.mrf.mxu1  ;;  %v981_v44 = vpop.f32.mrf.mxu0 }
 0x11b   : > { %v633_v14 = vadd.f32 %v620_v50, %v482_v11 }
 0x11c   : > { %v796_v58 = vpop.f32.mrf.mxu1  ;;  %v2263_v16 = vpop.f32.mrf.mxu0 }
 0x11d   : > { %v835_v8 = vadd.f32 %v796_v58, %v624_v19 }
 0x11e   : > { %v2234_v17 = vpop.f32.mrf.mxu1  ;;  %v986_v60 = vpop.f32.mrf.mxu0 }
 0x11f   : > { %v3002_v18 = vadd.f32 %v978_v53, %v835_v8 }
 0x120   : > { %v799_v9 = vpop.f32.mrf.mxu1  ;;  %v2266_v23 = vpop.f32.mrf.mxu0 }
 0x121   : > { %v836_v24 = vadd.f32 %v799_v9, %v625_v26 }
 0x122   : > { %v2235_v3 = vpop.f32.mrf.mxu1  ;;  %v989_v25 = vpop.f32.mrf.mxu0 }
 0x123   : > { %v3004_v4 = vadd.f32 %v981_v44, %v836_v24 }
 0x124   : > { %v804_v7 = vpop.f32.mrf.mxu1  ;;  %v2267_v27 = vpop.f32.mrf.mxu0 }
 0x125   : > { %v837_v12 = vadd.f32 %v804_v7, %v626_v30 }
 0x126   : > { %v2238_v22 = vpop.f32.mrf.mxu1  ;;  %v994_v62 = vpop.f32.mrf.mxu0 }
 0x127   : > { %v3006_v63 = vadd.f32 %v986_v60, %v837_v12 }
 0x128   : > { %v807_v21 = vpop.f32.mrf.mxu1  ;;  %v2270_v19 = vpop.f32.mrf.mxu0 }
 0x129   : > { %v838_v20 = vadd.f32 %v807_v21, %v627_v0 }
 0x12a   : > { %v2239_v31 = vpop.f32.mrf.mxu1  ;;  %v997_v32 = vpop.f32.mrf.mxu0 }
 0x12b   : > { %v3008_v33 = vadd.f32 %v989_v25, %v838_v20 }
 0x12c   : > { %v812_v36 = vpop.f32.mrf.mxu1  ;;  %v2271_v26 = vpop.f32.mrf.mxu0 }
 0x12d   : > { %v839_v15 = vadd.f32 %v812_v36, %v628_v6 }
 0x12e   : > { %v2242_v35 = vpop.f32.mrf.mxu1  ;;  %v1002_v37 = vpop.f32.mrf.mxu0 }
 0x12f   : > { %v3010_v38 = vadd.f32 %v994_v62, %v839_v15 }
 0x130   : > { %v815_v39 = vpop.f32.mrf.mxu1  ;;  %v2274_v30 = vpop.f32.mrf.mxu0 }
 0x131   : > { %v840_v28 = vadd.f32 %v815_v39, %v629_v45 }
 0x132   : > { %v2243_v40 = vpop.f32.mrf.mxu1  ;;  %v1005_v41 = vpop.f32.mrf.mxu0 }
 0x133   : > { %v3012_v42 = vadd.f32 %v997_v32, %v840_v28 }
 0x134   : > { %v820_v34 = vpop.f32.mrf.mxu1  ;;  %v2275_v0 = vpop.f32.mrf.mxu0 }
 0x135   : > { %v841_v46 = vadd.f32 %v820_v34, %v630_v51 }
 0x136   : > { %v2246_v29 = vpop.f32.mrf.mxu1  ;;  %v1010_v43 = vpop.f32.mrf.mxu0 }
 0x137   : > { %v3014_v47 = vadd.f32 %v1002_v37, %v841_v46 }
 0x138   : > { %v823_v49 = vpop.f32.mrf.mxu1  ;;  %v2278_v6 = vpop.f32.mrf.mxu0 }
 0x139   : > { %v842_v52 = vadd.f32 %v823_v49, %v631_v57 }
 0x13a   : > { %v2247_v54 = vpop.f32.mrf.mxu1  ;;  %v1013_v55 = vpop.f32.mrf.mxu0 }
 0x13b   : > { %v3016_v56 = vadd.f32 %v1005_v41, %v842_v52 }
 0x13c   : > { %v828_v50 = vpop.f32.mrf.mxu1  ;;  %v2279_v45 = vpop.f32.mrf.mxu0 }
 0x13d   : > { %v843_v59 = vadd.f32 %v828_v50, %v632_v2 }
 0x13e   : > { %v2250_v48 = vpop.f32.mrf.mxu1  ;;  %v1345_v1 = vpop.f32.mrf.mxu0 }
 0x13f   : > { %v3018_v61 = vadd.f32 %v1010_v43, %v843_v59  ;;  %v3051_v59 = vld [vmem:[%s3114_s2] ss:$0 sm:$0xff] }
 0x140   : > { %v831_v53 = vpop.f32.mrf.mxu1  ;;  %v2318_v51 = vpop.f32.mrf.mxu0 }
 0x141   : > { %v844_v5 = vadd.f32 %v831_v53, %v633_v14 }
 0x142   : > { %v2251_v10 = vpop.f32.mrf.mxu1  ;;  %v1348_v11 = vpop.f32.mrf.mxu0 }
 0x143   : > { %v3020_v13 = vadd.f32 %v1013_v55, %v844_v5 }
 0x144   : > { %v1163_v44 = vpop.f32.mrf.mxu1  ;;  %v2319_v57 = vpop.f32.mrf.mxu0 }
 0x145   : > { %v1202_v46 = vadd.f32 %v1163_v44, %v3002_v18 }
 0x146   : > { %v2290_v58 = vpop.f32.mrf.mxu1  ;;  %v1353_v16 = vpop.f32.mrf.mxu0 }
 0x147   : > { %v1384_v54 = vadd.f32 %v1345_v1, %v1202_v46 }
 0x148   : > { %v1166_v8 = vpop.f32.mrf.mxu1  ;;  %v2322_v17 = vpop.f32.mrf.mxu0 }
 0x149   : > { %v1203_v52 = vadd.f32 %v1166_v8, %v3004_v4 }
 0x14a   : > { %v2291_v60 = vpop.f32.mrf.mxu1  ;;  %v3022_v9 = vpop.f32.mrf.mxu0 }
 0x14b   : > { %v1385_v5 = vadd.f32 %v1348_v11, %v1203_v52 }
 0x14c   : > { %v1171_v2 = vpop.f32.mrf.mxu1  ;;  %v2323_v23 = vpop.f32.mrf.mxu0 }
 0x14d   : > { %v1204_v18 = vadd.f32 %v1171_v2, %v3006_v63 }
 0x14e   : > { %v2294_v24 = vpop.f32.mrf.mxu1  ;;  %v3024_v3 = vpop.f32.mrf.mxu0 }
 0x14f   : > { %v1386_v23 = vadd.f32 %v1353_v16, %v1204_v18 }
 0x150   : > { %v1174_v25 = vpop.f32.mrf.mxu1  ;;  %v2326_v14 = vpop.f32.mrf.mxu0 }
 0x151   : > { %v1205_v8 = vadd.f32 %v1174_v25, %v3008_v33 }
 0x152   : > { %v2295_v7 = vpop.f32.mrf.mxu1  ;;  %v3026_v27 = vpop.f32.mrf.mxu0 }
 0x154   : > { %v1179_v12 = vpop.f32.mrf.mxu1  ;;  %v2327_v22 = vpop.f32.mrf.mxu0 }
 0x155   : > { %v1206_v33 = vadd.f32 %v1179_v12, %v3010_v38 }
 0x156   : > { %v2298_v62 = vpop.f32.mrf.mxu1  ;;  %v3028_v21 = vpop.f32.mrf.mxu0 }
 0x157   : > { %v1387_v62 = vadd.f32 %v3022_v9, %v1205_v8 }
 0x158   : > { %v3030_v19 = vpop.f32.mrf.mxu1  ;;  %v2330_v20 = vpop.f32.mrf.mxu0 }
 0x15a   : > { %v2299_v31 = vpop.f32.mrf.mxu1  ;;  %v3032_v32 = vpop.f32.mrf.mxu0 }
 0x15c   : > { %v3034_v36 = vpop.f32.mrf.mxu1  ;;  %v2331_v26 = vpop.f32.mrf.mxu0 }
 0x15e   : > { %v2302_v15 = vpop.f32.mrf.mxu1  ;;  %v3036_v35 = vpop.f32.mrf.mxu0 }
 0x160   : > { %v3038_v37 = vpop.f32.mrf.mxu1  ;;  %v2334_v39 = vpop.f32.mrf.mxu0 }
 0x162   : > { %v2303_v30 = vpop.f32.mrf.mxu1  ;;  %v3040_v28 = vpop.f32.mrf.mxu0 }
 0x164   : > { %v3042_v40 = vpop.f32.mrf.mxu1  ;;  %v2335_v41 = vpop.f32.mrf.mxu0 }
 0x166   : > { %v2306_v34 = vpop.f32.mrf.mxu1  ;;  %v1669_v0 = vpop.f32.mrf.mxu0 }
 0x167   : > { %v1207_v34 = vadd.f32 %v3030_v19, %v3012_v42 }
 0x168   : > { %v3045_v29 = vpop.f32.mrf.mxu1  ;;  %v2374_v43 = vpop.f32.mrf.mxu0 }
 0x16a   : > { %v2307_v49 = vpop.f32.mrf.mxu1  ;;  %v1672_v6 = vpop.f32.mrf.mxu0 }
 0x16c   : > { %v1530_v55 = vpop.f32.mrf.mxu1  ;;  %v2375_v50 = vpop.f32.mrf.mxu0 }
 0x16d   : > { %v1569_v45 = vadd.f32 %v1530_v55, %v1384_v54  ;;  %v1208_v55 = vadd.f32 %v3034_v36, %v3014_v47  ;;  %v1389_v50 = vadd.f32 %v3026_v27, %v1207_v34 }
 0x16e   : > { %v2346_v48 = vpop.f32.mrf.mxu1  ;;  %v1677_v53 = vpop.f32.mrf.mxu0 }
 0x16f   : > { %v1708_v51 = vadd.f32 %v1669_v0, %v1569_v45  ;;  %v1388_v0 = vadd.f32 %v3024_v3, %v1206_v33 }
 0x170   : > { %v1533_v10 = vpop.f32.mrf.mxu1  ;;  %v2378_v44 = vpop.f32.mrf.mxu0 }
 0x171   : > { %v1724_v4 = vadd.f32 %v3051_v59, %v1708_v51  ;;  %v1570_v1 = vadd.f32 %v1533_v10, %v1385_v5  ;;  %v1209_v10 = vadd.f32 %v3038_v37, %v3016_v56  ;;  %v1390_v44 = vadd.f32 %v3028_v21, %v1208_v55 }
 0x172   : > { %v2347_v57 = vpop.f32.mrf.mxu1  ;;  %v1680_v58 = vpop.f32.mrf.mxu0 }
 0x173   : > { %v1734_v17 = vmax.f32 %v1724_v4, 0.0  ;;  %v1709_v60 = vadd.f32 %v1672_v6, %v1570_v1 }
 0x174   : > { %v1538_v63 = vpop.f32.mrf.mxu1  ;;  %v2379_v11 = vpop.f32.mrf.mxu0 }
 0x175   : > { %v2049_v2 = vpack.c.bf16 %v1734_v17, %v1734_v17  ;;  %v1725_v24 = vadd.f32 %v3051_v59, %v1709_v60  ;;  %v1571_v14 = vadd.f32 %v1538_v63, %v1386_v23  ;;  %v1210_v60 = vadd.f32 %v3042_v40, %v3018_v61 }
 0x176   : > { %v2350_v7 = vpop.f32.mrf.mxu1  ;;  %v1685_v22 = vpop.f32.mrf.mxu0  ;;  %v1391_v23 = vadd.f32 %v3032_v32, %v1209_v10 }
 0x177   : > { %1785 = vst.msk [vmem:[%s3060_s21] sm:$0xf] %vm1784_vm9, %v2049_v2  ;;  %v1735_v16 = vmax.f32 %v1725_v24, 0.0  ;;  %v1710_v25 = vadd.f32 %v1677_v53, %v1571_v14  ;;  %v1392_v33 = vadd.f32 %v3036_v35, %v1210_v60 }
 0x178   : > { %v1541_v20 = vpop.f32.mrf.mxu1  ;;  %v2382_v31 = vpop.f32.mrf.mxu0 }
 0x179   : > { %v2050_v26 = vpack.c.bf16 %v1735_v16, %v1735_v16  ;;  %v1726_v15 = vadd.f32 %v3051_v59, %v1710_v25  ;;  %v1572_v39 = vadd.f32 %v1541_v20, %v1387_v62 }
 0x17a   : > { %v2351_v30 = vpop.f32.mrf.mxu1  ;;  %v1688_v41 = vpop.f32.mrf.mxu0 }
 0x17b   : > { %1786 = vst.msk [vmem:[%s3060_s21 + $0x4] sm:$0xf] %vm1784_vm9, %v2050_v26  ;;  %v1736_v38 = vmax.f32 %v1726_v15, 0.0  ;;  %v1711_v12 = vadd.f32 %v1680_v58, %v1572_v39 }
 0x17c   : > { %v1546_v46 = vpop.f32.mrf.mxu1  ;;  %v2383_v9 = vpop.f32.mrf.mxu0 }
 0x17d   : > { %v2051_v43 = vpack.c.bf16 %v1736_v38, %v1736_v38  ;;  %v1727_v49 = vadd.f32 %v3051_v59, %v1711_v12  ;;  %v1573_v6 = vadd.f32 %v1546_v46, %v1388_v0  ;;  %v1797_v46 = vld [vmem:[%s3060_s21 + $0x24] sm:$0x7] }
 0x17e   : > { %v2354_v52 = vpop.f32.mrf.mxu1  ;;  %v1693_v54 = vpop.f32.mrf.mxu0 }
 0x17f   : > { %1787 = vst.msk [vmem:[%s3060_s21 + $0x8] sm:$0xf] %vm1784_vm9, %v2051_v43  ;;  %v1737_v42 = vmax.f32 %v1727_v49, 0.0  ;;  %v1712_v19 = vadd.f32 %v1685_v22, %v1573_v6  ;;  %v1211_v22 = vadd.f32 %v3045_v29, %v3020_v13 }
 0x180   : > { %v1549_v45 = vpop.f32.mrf.mxu1  ;;  %v2386_v3 = vpop.f32.mrf.mxu0 }
 0x181   : > { %v2052_v48 = vpack.c.bf16 %v1737_v42, %v1737_v42  ;;  %v1728_v53 = vadd.f32 %v3051_v59, %v1712_v19  ;;  %v1574_v18 = vadd.f32 %v1549_v45, %v1389_v50  ;;  %v1393_v13 = vadd.f32 %v3040_v28, %v1211_v22 }
 0x182   : > { %v2355_v51 = vpop.f32.mrf.mxu1  ;;  %v1696_v5 = vpop.f32.mrf.mxu0 }
 0x183   : > { %1788 = vst.msk [vmem:[%s3060_s21 + $0xc] sm:$0xf] %vm1784_vm9, %v2052_v48  ;;  %v1738_v47 = vmax.f32 %v1728_v53, 0.0  ;;  %v1713_v36 = vadd.f32 %v1688_v41, %v1574_v18 }
 0x184   : > { %v1554_v4 = vpop.f32.mrf.mxu1  ;;  %v2387_v27 = vpop.f32.mrf.mxu0 }
 0x185   : > { %v2053_v1 = vpack.c.bf16 %v1738_v47, %v1738_v47  ;;  %v1729_v57 = vadd.f32 %v3051_v59, %v1713_v36  ;;  %v1575_v58 = vadd.f32 %v1554_v4, %v1390_v44 }
 0x186   : > { %v2358_v8 = vpop.f32.mrf.mxu1  ;;  %v1701_v17 = vpop.f32.mrf.mxu0 }
 0x187   : > { %1789 = vst.msk [vmem:[%s3060_s21 + $0x10] sm:$0xf] %vm1784_vm9, %v2053_v1  ;;  %v1739_v56 = vmax.f32 %v1729_v57, 0.0  ;;  %v1714_v37 = vadd.f32 %v1693_v54, %v1575_v58 }
 0x188   : > { %v1557_v63 = vpop.f32.mrf.mxu1  ;;  %v2390_v21 = vpop.f32.mrf.mxu0 }
 0x189   : > { %v2054_v11 = vpack.c.bf16 %v1739_v56, %v1739_v56  ;;  %v1730_v2 = vadd.f32 %v3051_v59, %v1714_v37  ;;  %v1576_v24 = vadd.f32 %v1557_v63, %v1391_v23 }
 0x18a   : > { %v2359_v14 = vpop.f32.mrf.mxu1  ;;  %v1704_v7 = vpop.f32.mrf.mxu0 }
 0x18b   : > { %1790 = vst.msk [vmem:[%s3060_s21 + $0x14] sm:$0xf] %vm1784_vm9, %v2054_v11  ;;  %v1740_v61 = vmax.f32 %v1730_v2, 0.0  ;;  %v1715_v40 = vadd.f32 %v1696_v5, %v1576_v24 }
 0x18c   : > { %v1562_v32 = vpop.f32.mrf.mxu1  ;;  %v2391_v16 = vpop.f32.mrf.mxu0 }
 0x18d   : > { %v2055_v25 = vpack.c.bf16 %v1740_v61, %v1740_v61  ;;  %v1731_v62 = vadd.f32 %v3051_v59, %v1715_v40  ;;  %v1577_v20 = vadd.f32 %v1562_v32, %v1392_v33 }
 0x18e   : > { %v2362_v31 = vpop.f32.mrf.mxu1 }
 0x18f   : > { %1791 = vst.msk [vmem:[%s3060_s21 + $0x18] sm:$0xf] %vm1784_vm9, %v2055_v25  ;;  %v1741_v26 = vmax.f32 %v1731_v62, 0.0  ;;  %v1716_v15 = vadd.f32 %v1701_v17, %v1577_v20 }
 0x190   : > { %v1565_v29 = vpop.f32.mrf.mxu1 }
 0x191   : > { %v2056_v39 = vpack.c.bf16 %v1741_v26, %v1741_v26  ;;  %v1732_v35 = vadd.f32 %v3051_v59, %v1716_v15  ;;  %v1578_v30 = vadd.f32 %v1565_v29, %v1393_v13 }
 0x192   : > { %v2363_v41 = vpop.f32.mrf.mxu1 }
 0x193   : > { %1792 = vst.msk [vmem:[%s3060_s21 + $0x1c] sm:$0xf] %vm1784_vm9, %v2056_v39  ;;  %v1742_v34 = vmax.f32 %v1732_v35, 0.0  ;;  %v1717_v38 = vadd.f32 %v1704_v7, %v1578_v30 }
 0x195   : > { %v2057_v12 = vpack.c.bf16 %v1742_v34, %v1742_v34  ;;  %v1733_v0 = vadd.f32 %v3051_v59, %v1717_v38 }
 0x197   : > { %1793 = vst.msk [vmem:[%s3060_s21 + $0x20] sm:$0xf] %vm1784_vm9, %v2057_v12  ;;  %v1743_v28 = vmax.f32 %v1733_v0, 0.0 }
 0x199   : > { %v2058_v9 = vpack.c.bf16 %v1743_v28, %v1743_v28 }
 0x19b   : > { %v1798_v43 = vsel %vm1796_vm12, %v2058_v9, %v1797_v46 }
 0x19c   : > { %1799 = vst [vmem:[%s3060_s21 + $0x24] sm:$0x7] %v1798_v43 }
 0x19d PF: > { %s13_s12 = sadd.s32 1, %s2483_s12  }
 0x19e   : > { %p10_p4 = scmp.ge.s32.totalorder %s13_s12, 4  }
 0x1a0   :  { %12 = sbr.rel (!%p10_p4) target bundleno = 1 (0x1), region = 70 }

// kernel: dqn_forward.4
= control target key start
LH: loop header
LB: loop body
LE: loop exit
PB: predicated region body
PF: predicated region fallthrough
CT: control target
= control target key end

     0   :  { %s3951_s12 = smov 0   ;;  %s4626_s0 = inlined_call_operand.vmem [shape: bf16[2,463,64], index: 0, kind: input, shape index: {}]   ;;  %s4627_s1 = inlined_call_operand.vmem [shape: bf16[4,64,32], index: 1, kind: input, shape index: {}]   ;;  %s4628_s2 = inlined_call_operand.vmem [shape: f32[1,32], index: 2, kind: input, shape index: {}]   ;;  %s4629_s3 = inlined_call_operand.vmem [shape: bf16[2,440,32], index: 3, kind: output, shape index: {}]  }
   0x1 LB: > { %s3125_s13 = sadd.s32 4294967295, %s3929_s12   ;;  %p3129_p0 = scmp.ge.s32.totalorder %s3929_s12, 1  ;;  %s3929_s12 = sphi %s3951_s12, %s13_s12  }
   0x2   : > { %p137_p1 = scmp.lt.s32.totalorder %s3929_s12, 3 }
   0x4   : > { %p138_p2 = pnand %p3129_p0, %p137_p1 }
   0x6   : > { %141 = sbr.rel (%p138_p2) target bundleno = 454 (0x1c6), region = 32 }
   0xb   : > { %v3849_v0 = vld [vmem:[%s4627_s1 + $0x38] sm:$0xff]   ;;  %p161_p3 = scmp.lt.s32.totalorder %s3125_s13, 1  ;;  %v3851_v2 = vld [vmem:[%s4627_s1 + $0x30] sm:$0xff]   ;;  %v3853_v4 = vld [vmem:[%s4627_s1 + $0x28] sm:$0xff]   ;;  %vm634_vm0 = vcmask 523264   ;;  %vm1518_vm2 = vcmask 1044480  }
   0xc   : > { %v3850_v1 = vld [vmem:[%s4627_s1 + $0x18] sm:$0xff]   ;;  %3583 = vmatprep.subr.bf16.mxu0 %v3849_v0  ;;  %v3852_v3 = vld [vmem:[%s4627_s1 + $0x10] sm:$0xff]   ;;  %v3854_v5 = vld [vmem:[%s4627_s1 + $0x8] sm:$0xff]   ;;  %vm386_vm1 = vsmask.f32 7424  ;;  %vm3014_vm4 = vcmask 257024  }
   0xd   : > { %s4647_s13 = smov (!%p161_p3, %s3125_s13), 1  ;;  %3647 = vmatprep.subr.bf16.mxu1 %v3850_v1  ;;  %3584 = vmatpush3.bf16.msra.mxu0 %v3849_v0  ;;  %v3855_v6 = vld [vmem:[%s4627_s1 + $0x20] sm:$0xff]   ;;  %v3860_v16 = vld [vmem:[%s4627_s1 + $0x58] sm:$0xff]   ;;  %v3868_v43 = vld [vmem:[%s4627_s1 + $0x50] sm:$0xff]   ;;  %vm2006_vm3 = vsmask.f32 4352 }
   0xe   : > { %3648 = vmatpush3.bf16.msra.mxu1 %v3850_v1  ;;  %3585 = vmatprep.subr.bf16.mxu0 %v3851_v2  ;;  %s3839_s24 = smul.u32 232, %s4647_s13  ;;  %v3856_v7 = vld [vmem:[%s4627_s1] sm:$0xff]   ;;  %v3861_v19 = vld [vmem:[%s4627_s1 + $0x78] sm:$0xff]   ;;  %v3869_v44 = vld [vmem:[%s4627_s1 + $0x70] sm:$0xff]  }
   0xf   : > { %3649 = vmatprep.subr.bf16.mxu1 %v3852_v3  ;;  %v3878_v60 = vld [vmem:[%s4627_s1 + $0x48] sm:$0xff]   ;;  %s3840_s27 = smul.u32 220, %s4647_s13 }
  0x10   : > { %s3986_s4 = scalar_lea.vmem %s4626_s0, %s3839_s24  ;;  %v3879_v0 = vld [vmem:[%s4627_s1 + $0x68] sm:$0xff]  }
  0x11   : > { %3586 = vmatpush3.bf16.msra.mxu0 %v3851_v2  ;;  %v3857_v8 = vld [vmem:[%s3986_s4] sm:$0xff]   ;;  %v3858_v9 = vld [vmem:[%s3986_s4 + $0x8] sm:$0xff]   ;;  %v3859_v10 = vld [vmem:[%s3986_s4 + $0x10] sm:$0xff]   ;;  %s4407_s30 = scalar_lea.vmem %s4629_s3, %s3840_s27 }
  0x12   : > { %3650 = vmatpush3.bf16.msra.mxu1 %v3852_v3  ;;  %3587 = vmatprep.subr.bf16.mxu0 %v3853_v4  ;;  %v388_v11 = vshrl.u32 %v3857_v8, 16  ;;  %v390_v12 = vshll.u32 %v3857_v8, 16  ;;  %v395_v13 = vshll.u32 %v3858_v9, 16  ;;  %v399_v14 = vshrl.u32 %v3858_v9, 16  ;;  %v3862_v20 = vld [vmem:[%s3986_s4 + $0x18] sm:$0xff]   ;;  %v3863_v26 = vld [vmem:[%s3986_s4 + $0x20] sm:$0xff]  }
  0x13   : > { %3651 = vmatprep.subr.bf16.mxu1 %v3854_v5  ;;  %3655 = vmatprep.mubr.msk.bf16.mxu1 %vm634_vm0, %v3857_v8  ;;  %v403_v15 = vshll.u32 %v3859_v10, 16  ;;  %v407_v22 = vshrl.u32 %v3859_v10, 16  ;;  %v411_v25 = vshll.u32 %v3862_v20, 16  ;;  %v415_v28 = vshrl.u32 %v3862_v20, 16  ;;  %v3864_v29 = vld [vmem:[%s3986_s4 + $0x28] sm:$0xff]   ;;  %v3865_v38 = vld [vmem:[%s3986_s4 + $0x30] sm:$0xff]  }
  0x14   : > { %v392_v17 = vrot.slane %v390_v12, 1  ;;  %v397_v18 = vrot.slane %v395_v13, 1  ;;  %v419_v33 = vshll.u32 %v3863_v26, 16  ;;  %v423_v34 = vshrl.u32 %v3863_v26, 16  ;;  %v3866_v42 = vld [vmem:[%s3986_s4 + $0x38] sm:$0xff]   ;;  %v3867_v52 = vld [vmem:[%s3986_s4 + $0x40] sm:$0xff]  }
  0x15   : > { %3588 = vmatpush3.bf16.msra.mxu0 %v3853_v4  ;;  %v405_v21 = vrot.slane %v403_v15, 1  ;;  %v413_v32 = vrot.slane %v411_v25, 1  ;;  %v427_v35 = vshll.u32 %v3864_v29, 16  ;;  %v435_v45 = vshll.u32 %v3865_v38, 16  ;;  %v3870_v56 = vld [vmem:[%s3986_s4 + $0x48] sm:$0xff]   ;;  %v3871_v2 = vld [vmem:[%s3986_s4 + $0x50] sm:$0xff]  }
  0x16   : > { %3652 = vmatpush3.bf16.msra.mxu1 %v3854_v5  ;;  %3589 = vmatprep.subr.bf16.mxu0 %v3855_v6  ;;  %v393_v23 = vor.u32 %v392_v17, %v388_v11  ;;  %v401_v24 = vor.u32 %v399_v14, %v397_v18  ;;  %v421_v37 = vrot.slane %v419_v33, 1  ;;  %v431_v47 = vshrl.u32 %v3864_v29, 16  ;;  %v3873_v14 = vld [vmem:[%s3986_s4 + $0x60] sm:$0xff]  }
  0x17   : > { %3653 = vmatprep.subr.bf16.mxu1 %v3856_v7  ;;  %v409_v27 = vor.u32 %v407_v22, %v405_v21  ;;  %v417_v39 = vor.u32 %v415_v28, %v413_v32  ;;  %v429_v41 = vrot.slane %v427_v35, 1  ;;  %v439_v49 = vshrl.u32 %v3865_v38, 16  ;;  %v3887_v17 = vld [vmem:[%s4627_s1 + $0x60] sm:$0xff]   ;;  %v3875_v28 = vld [vmem:[%s3986_s4 + $0x70] sm:$0xff]  }
  0x18   : > { %v398_v30 = vsel %vm386_vm1, %v393_v23, %v397_v18  ;;  %v406_v31 = vsel %vm386_vm1, %v401_v24, %v405_v21  ;;  %v425_v40 = vor.u32 %v423_v34, %v421_v37  ;;  %v443_v50 = vshll.u32 %v3866_v42, 16 }
  0x19   : > { %3590 = vmatpush3.bf16.msra.mxu0 %v3855_v6  ;;  %3591 = vmatprep.mubr.msk.bf16.mxu0 %vm634_vm0, %v398_v30  ;;  %v414_v36 = vsel %vm386_vm1, %v409_v27, %v413_v32  ;;  %v422_v46 = vsel %vm386_vm1, %v417_v39, %v421_v37  ;;  %v437_v51 = vrot.slane %v435_v45, 1  ;;  %v433_v53 = vor.u32 %v431_v47, %v429_v41  ;;  %v3872_v6 = vld [vmem:[%s3986_s4 + $0x58] sm:$0xff]  }
  0x1a   : > { %3654 = vmatpush3.bf16.msra.mxu1 %v3856_v7  ;;  %3711 = vmatprep.subr.bf16.mxu0 %v3860_v16  ;;  %v430_v48 = vsel %vm386_vm1, %v425_v40, %v429_v41  ;;  %v445_v55 = vrot.slane %v443_v50, 1  ;;  %v451_v57 = vshll.u32 %v3867_v52, 16  ;;  %v447_v59 = vshrl.u32 %v3866_v42, 16  ;;  %v3876_v32 = vld [vmem:[%s3986_s4 + $0x78] sm:$0xff]   ;;  %v3877_v40 = vld [vmem:[%s3986_s4 + $0x80] sm:$0xff]  }
  0x1b   : > { %3775 = vmatprep.subr.bf16.mxu1 %v3861_v19  ;;  %v441_v54 = vor.u32 %v439_v49, %v437_v51  ;;  %v438_v58 = vsel %vm386_vm1, %v433_v53, %v437_v51  ;;  %v455_v62 = vshrl.u32 %v3867_v52, 16  ;;  %v459_v63 = vshll.u32 %v3870_v56, 16 }
  0x1c   : > { %3592 = vmatmul.mubr.msk.bf16.vlgmr.msra.gmra.mxu0 %vm634_vm0, %v406_v31  ;;  %v453_v1 = vrot.slane %v451_v57, 1  ;;  %v449_v3 = vor.u32 %v447_v59, %v445_v55  ;;  %v467_v7 = vshll.u32 %v3871_v2, 16  ;;  %v471_v11 = vshrl.u32 %v3871_v2, 16 }
  0x1d   : > { %3656 = vmatmul.mubr.msk.bf16.vlgmr.msra.gmra.mxu1 %vm634_vm0, %v3858_v9  ;;  %3712 = vmatpush3.bf16.msra.mxu0 %v3860_v16  ;;  %v446_v61 = vsel %vm386_vm1, %v441_v54, %v445_v55  ;;  %v461_v5 = vrot.slane %v459_v63, 1  ;;  %v463_v9 = vshrl.u32 %v3870_v56, 16  ;;  %v475_v12 = vshll.u32 %v3872_v6, 16  ;;  %v3886_v16 = vld [vmem:[%s4627_s1 + $0x40] sm:$0xff]  }
  0x1e   : > { %3776 = vmatpush3.bf16.msra.mxu1 %v3861_v19  ;;  %3595 = vmatprep.mubr.msk.bf16.mxu0 %vm634_vm0, %v414_v36  ;;  %v457_v4 = vor.u32 %v455_v62, %v453_v1  ;;  %v454_v8 = vsel %vm386_vm1, %v449_v3, %v453_v1  ;;  %v469_v13 = vrot.slane %v467_v7, 1  ;;  %v479_v21 = vshrl.u32 %v3872_v6, 16 }
  0x1f   : > { %3659 = vmatprep.mubr.msk.bf16.mxu1 %vm634_vm0, %v3859_v10  ;;  %3713 = vmatprep.subr.bf16.mxu0 %v3868_v43  ;;  %v465_v15 = vor.u32 %v463_v9, %v461_v5  ;;  %v477_v19 = vrot.slane %v475_v12, 1  ;;  %v483_v22 = vshll.u32 %v3873_v14, 16  ;;  %v487_v25 = vshrl.u32 %v3873_v14, 16  ;;  %v3885_v12 = vld [vmem:[%s3986_s4 + $0xb0] sm:$0xff]  }
  0x20   : > { %3777 = vmatprep.subr.bf16.mxu1 %v3869_v44  ;;  %v462_v10 = vsel %vm386_vm1, %v457_v4, %v461_v5  ;;  %v473_v18 = vor.u32 %v471_v11, %v469_v13  ;;  %v499_v33 = vshll.u32 %v3875_v28, 16  ;;  %v503_v37 = vshrl.u32 %v3875_v28, 16  ;;  %v3884_v4 = vld [vmem:[%s3986_s4 + $0xa8] sm:$0xff]  }
  0x21   : > { %3714 = vmatpush3.bf16.msra.mxu0 %v3868_v43  ;;  %v470_v23 = vsel %vm386_vm1, %v465_v15, %v469_v13  ;;  %v485_v27 = vrot.slane %v483_v22, 1  ;;  %v515_v45 = vshll.u32 %v3877_v40, 16  ;;  %v511_v47 = vshrl.u32 %v3876_v32, 16 }
  0x22   : > { %3778 = vmatpush3.bf16.msra.mxu1 %v3869_v44  ;;  %3715 = vmatprep.subr.bf16.mxu0 %v3878_v60  ;;  %v478_v24 = vsel %vm386_vm1, %v473_v18, %v477_v19  ;;  %v501_v39 = vrot.slane %v499_v33, 1  ;;  %v3880_v44 = vld [vmem:[%s3986_s4 + $0x88] sm:$0xff]   ;;  %v519_v49 = vshrl.u32 %v3877_v40, 16 }
  0x23   : > { %3779 = vmatprep.subr.bf16.mxu1 %v3879_v0  ;;  %v489_v30 = vor.u32 %v487_v25, %v485_v27  ;;  %v523_v50 = vshll.u32 %v3880_v44, 16  ;;  %v517_v51 = vrot.slane %v515_v45, 1  ;;  %v527_v59 = vshrl.u32 %v3880_v44, 16 }
  0x24   : > { %3596 = vmatmul.mubr.msk.bf16.gmra.mxu0 %vm634_vm0, %v422_v46 }
  0x25   : > { %3660 = vmatmul.mubr.msk.bf16.gmra.mxu1 %vm634_vm0, %v3862_v20  ;;  %3599 = vmatprep.mubr.msk.bf16.mxu0 %vm634_vm0, %v430_v48  ;;  %v3874_v20 = vld [vmem:[%s3986_s4 + $0x68] sm:$0xff]   ;;  %v521_v54 = vor.u32 %v519_v49, %v517_v51  ;;  %v525_v55 = vrot.slane %v523_v50, 1  ;;  %v3895_v50 = vld [vmem:[%s3986_s4 + $0x10] sm:$0xff]  }
  0x26   : > { %3663 = vmatprep.mubr.msk.bf16.mxu1 %vm634_vm0, %v3863_v26  ;;  %3716 = vmatpush3.bf16.msra.mxu0 %v3878_v60  ;;  %v491_v26 = vshll.u32 %v3874_v20, 16  ;;  %v495_v35 = vshrl.u32 %v3874_v20, 16  ;;  %v3894_v49 = vld [vmem:[%s3986_s4 + $0x8] sm:$0xf8]  }
  0x27   : > { %3780 = vmatpush3.bf16.msra.mxu1 %v3879_v0  ;;  %3717 = vmatprep.subr.bf16.mxu0 %v3886_v16  ;;  %v526_v60 = vsel %vm386_vm1, %v521_v54, %v525_v55  ;;  %v3883_v0 = vld [vmem:[%s3986_s4 + $0xa0] sm:$0xff]   ;;  %v529_v1 = vor.u32 %v527_v59, %v525_v55  ;;  %v2008_v55 = vshrl.u32 %v3894_v49, 16 }
  0x28   : > { %3781 = vmatprep.subr.bf16.mxu1 %v3887_v17  ;;  %v493_v31 = vrot.slane %v491_v26, 1  ;;  %v547_v5 = vshll.u32 %v3883_v0, 16  ;;  %v551_v9 = vshrl.u32 %v3883_v0, 16 }
  0x2a   : > { %3718 = vmatpush3.bf16.msra.mxu0 %v3886_v16  ;;  %v494_v36 = vsel %vm386_vm1, %v489_v30, %v493_v31  ;;  %v497_v41 = vor.u32 %v495_v35, %v493_v31  ;;  %v549_v11 = vrot.slane %v547_v5, 1  ;;  %v3888_v16 = vld [vmem:[%s3986_s4 + $0xb8] sm:$0xff]   ;;  %v1520_v5 = vrot.slane %v3895_v50, 3 }
  0x2b   : > { %3782 = vmatpush3.bf16.msra.mxu1 %v3887_v17  ;;  %v563_v17 = vshll.u32 %v3885_v12, 16  ;;  %v571_v22 = vshll.u32 %v3888_v16, 16  ;;  %v575_v31 = vshrl.u32 %v3888_v16, 16  ;;  %v4107_v35 = vld [vmem:[%s3986_s4 + $0xd8] sm:$0xf] }
  0x2c   : > { %3600 = vmatmul.mubr.msk.bf16.gmra.mxu0 %vm634_vm0, %v438_v58  ;;  %v502_v46 = vsel %vm386_vm1, %v497_v41, %v501_v39 }
  0x2d   : > { %3664 = vmatmul.mubr.msk.bf16.gmra.mxu1 %vm634_vm0, %v3864_v29  ;;  %3603 = vmatprep.mubr.msk.bf16.mxu0 %vm634_vm0, %v446_v61  ;;  %v481_v29 = vor.u32 %v479_v21, %v477_v19  ;;  %v559_v19 = vshrl.u32 %v3884_v4, 16  ;;  %v567_v21 = vshrl.u32 %v3885_v12, 16 }
  0x2e   : > { %3667 = vmatprep.mubr.msk.bf16.mxu1 %vm634_vm0, %v3865_v38  ;;  %v507_v38 = vshll.u32 %v3876_v32, 16 }
  0x2f   : > { %v486_v34 = vsel %vm386_vm1, %v481_v29, %v485_v27  ;;  %v573_v27 = vrot.slane %v571_v22, 1 }
  0x30   : > { %v509_v43 = vrot.slane %v507_v38, 1 }
  0x32   : > { %v513_v53 = vor.u32 %v511_v47, %v509_v43 }
  0x34   : > { %3604 = vmatmul.mubr.msk.bf16.gmra.mxu0 %vm634_vm0, %v454_v8  ;;  %v518_v58 = vsel %vm386_vm1, %v513_v53, %v517_v51 }
  0x35   : > { %3668 = vmatmul.mubr.msk.bf16.gmra.mxu1 %vm634_vm0, %v3866_v42  ;;  %3607 = vmatprep.mubr.msk.bf16.mxu0 %vm634_vm0, %v462_v10  ;;  %v505_v42 = vor.u32 %v503_v37, %v501_v39  ;;  %v555_v10 = vshll.u32 %v3884_v4, 16  ;;  %v3891_v37 = vld [vmem:[%s3986_s4 + $0xd0] sm:$0xff]   ;;  %v577_v39 = vor.u32 %v575_v31, %v573_v27 }
  0x36   : > { %3671 = vmatprep.mubr.msk.bf16.mxu1 %vm634_vm0, %v3867_v52  ;;  %v3881_v52 = vld [vmem:[%s3986_s4 + $0x90] sm:$0xff]  }
  0x37   : > { %v510_v48 = vsel %vm386_vm1, %v505_v42, %v509_v43  ;;  %v531_v57 = vshll.u32 %v3881_v52, 16  ;;  %v535_v61 = vshrl.u32 %v3881_v52, 16  ;;  %v557_v15 = vrot.slane %v555_v10, 1 }
  0x38   : > { %v595_v43 = vshll.u32 %v3891_v37, 16 }
  0x39   : > { %v533_v63 = vrot.slane %v531_v57, 1  ;;  %v561_v25 = vor.u32 %v559_v19, %v557_v15  ;;  %v2016_v57 = vshrl.u32 %v3895_v50, 16 }
  0x3a   : > { %v597_v51 = vrot.slane %v595_v43, 1 }
  0x3c   : > { %3608 = vmatmul.mubr.msk.bf16.gmra.mxu0 %vm634_vm0, %v470_v23  ;;  %v565_v23 = vrot.slane %v563_v17, 1 }
  0x3d   : > { %3672 = vmatmul.mubr.msk.bf16.gmra.mxu1 %vm634_vm0, %v3870_v56  ;;  %3611 = vmatprep.mubr.msk.bf16.mxu0 %vm634_vm0, %v478_v24  ;;  %v3882_v56 = vld [vmem:[%s3986_s4 + $0x98] sm:$0xff]   ;;  %v3889_v24 = vld [vmem:[%s3986_s4 + $0xc0] sm:$0xff]  }
  0x3e   : > { %3675 = vmatprep.mubr.msk.bf16.mxu1 %vm634_vm0, %v3871_v2  ;;  %v539_v62 = vshll.u32 %v3882_v56, 16  ;;  %v537_v2 = vor.u32 %v535_v61, %v533_v63  ;;  %v543_v7 = vshrl.u32 %v3882_v56, 16  ;;  %v569_v26 = vor.u32 %v567_v21, %v565_v23  ;;  %v3896_v61 = vld [vmem:[%s3986_s4 + $0x18] sm:$0xff]   ;;  %v3899_v21 = vld [vmem:[%s3986_s4 + $0x30] sm:$0xff]  }
  0x3f   : > { %v579_v29 = vshll.u32 %v3889_v24, 16  ;;  %v566_v30 = vsel %vm386_vm1, %v561_v25, %v565_v23  ;;  %v583_v33 = vshrl.u32 %v3889_v24, 16  ;;  %v1522_v22 = vrot.slane %v3896_v61, 3 }
  0x40   : > { %v541_v3 = vrot.slane %v539_v62, 1  ;;  %v2010_v62 = vrot.slane %v2008_v55, 3 }
  0x41   : > { %v581_v38 = vrot.slane %v579_v29, 1  ;;  %v2055_v29 = vshll.u32 %v3899_v21, 16 }
  0x42   : > { %v542_v8 = vsel %vm386_vm1, %v537_v2, %v541_v3  ;;  %v545_v13 = vor.u32 %v543_v7, %v541_v3  ;;  %v3897_v2 = vld [vmem:[%s3986_s4 + $0x20] sm:$0xff]   ;;  %v2028_v7 = vshll.u32 %v3896_v61, 16 }
  0x43   : > { %v585_v41 = vor.u32 %v583_v33, %v581_v38  ;;  %v2034_v10 = vshrl.u32 %v3897_v2, 16 }
  0x44   : > { %3612 = vmatmul.mubr.msk.bf16.gmra.mxu0 %vm634_vm0, %v486_v34  ;;  %v550_v18 = vsel %vm386_vm1, %v545_v13, %v549_v11  ;;  %v3200_v13 = vcombine.low %v4107_v35, %v4107_v35 }
  0x45   : > { %3676 = vmatmul.mubr.msk.bf16.gmra.mxu1 %vm634_vm0, %v3872_v6  ;;  %3615 = vmatprep.mubr.msk.bf16.mxu0 %vm634_vm0, %v494_v36  ;;  %v534_v6 = vsel %vm386_vm1, %v529_v1, %v533_v63  ;;  %v236_v36 = vld [vmem:[%s3986_s4 + $0xdc] sm:$0x1]  ;;  %v2036_v19 = vrot.slane %v2034_v10, 3 }
  0x46   : > { %3679 = vmatprep.mubr.msk.bf16.mxu1 %vm634_vm0, %v3873_v14  ;;  %v553_v14 = vor.u32 %v551_v9, %v549_v11  ;;  %v2037_v11 = vshll.u32 %v3897_v2, 16 }
  0x4c   : > { %3616 = vmatmul.mubr.msk.bf16.gmra.mxu0 %vm634_vm0, %v502_v46  ;;  %v599_v46 = vshrl.u32 %v3891_v37, 16 }
  0x4d   : > { %3680 = vmatmul.mubr.msk.bf16.gmra.mxu1 %vm634_vm0, %v3874_v20  ;;  %3619 = vmatprep.mubr.msk.bf16.mxu0 %vm634_vm0, %v510_v48  ;;  %v558_v20 = vsel %vm386_vm1, %v553_v14, %v557_v15  ;;  %v2030_v15 = vrot.slane %v2028_v7, 4 }
  0x4e   : > { %3683 = vmatprep.mubr.msk.bf16.mxu1 %vm634_vm0, %v3875_v28  ;;  %v3890_v28 = vld [vmem:[%s3986_s4 + $0xc8] sm:$0xff]   ;;  %v601_v53 = vor.u32 %v599_v46, %v597_v51 }
  0x4f   : > { %v587_v34 = vshll.u32 %v3890_v28, 16  ;;  %v591_v45 = vshrl.u32 %v3890_v28, 16 }
  0x51   : > { %v589_v42 = vrot.slane %v587_v34, 1  ;;  %v3900_v34 = vld [vmem:[%s3986_s4 + $0x38] sm:$0xff]  }
  0x52   : > { %v2064_v43 = vshll.u32 %v3900_v34, 16 }
  0x53   : > { %v590_v48 = vsel %vm386_vm1, %v585_v41, %v589_v42 }
  0x54   : > { %3620 = vmatmul.mubr.msk.bf16.gmra.mxu0 %vm634_vm0, %v518_v58  ;;  %v2019_v58 = vshll.u32 %v3895_v50, 16 }
  0x55   : > { %3684 = vmatmul.mubr.msk.bf16.gmra.mxu1 %vm634_vm0, %v3876_v32  ;;  %3623 = vmatprep.mubr.msk.bf16.mxu0 %vm634_vm0, %v526_v60  ;;  %v574_v32 = vsel %vm386_vm1, %v569_v26, %v573_v27  ;;  %v1524_v26 = vrot.slane %v3897_v2, 3 }
  0x56   : > { %3687 = vmatprep.mubr.msk.bf16.mxu1 %vm634_vm0, %v3877_v40  ;;  %v3167_v40 = vcombine.low %v4107_v35, %v236_v36  ;;  %v2021_v1 = vrot.slane %v2019_v58, 4  ;;  %v1530_v58 = vrot.slane %v3900_v34, 3 }
  0x57   : > { %v1525_v35 = vsel %vm1518_vm2, %v1522_v22, %v1524_v26 }
  0x58   : > { %v603_v47 = vshll.u32 %v3167_v40, 16  ;;  %v607_v3 = vshrl.u32 %v3167_v40, 16 }
  0x5a   : > { %v605_v54 = vrot.slane %v603_v47, 1 }
  0x5c   : > { %3624 = vmatmul.mubr.msk.bf16.gmra.mxu0 %vm634_vm0, %v534_v6  ;;  %v606_v60 = vsel %vm386_vm1, %v601_v53, %v605_v54  ;;  %v2025_v6 = vshrl.u32 %v3896_v61, 16 }
  0x5d   : > { %3688 = vmatmul.mubr.msk.bf16.gmra.mxu1 %vm634_vm0, %v3880_v44  ;;  %3627 = vmatprep.mubr.msk.bf16.mxu0 %vm634_vm0, %v542_v8  ;;  %v582_v44 = vsel %vm386_vm1, %v577_v39, %v581_v38  ;;  %v2057_v38 = vrot.slane %v2055_v29, 4  ;;  %v3901_v39 = vld [vmem:[%s3986_s4 + $0x40] sm:$0xff]   ;;  %v3907_v29 = vld [vmem:[%s3986_s4 + $0x70] sm:$0xff]  }
  0x5e   : > { %3691 = vmatprep.mubr.msk.bf16.mxu1 %vm634_vm0, %v3881_v52  ;;  %v593_v52 = vor.u32 %v591_v45, %v589_v42  ;;  %v2027_v14 = vrot.slane %v2025_v6, 3  ;;  %v2061_v42 = vshrl.u32 %v3900_v34, 16  ;;  %v2070_v46 = vshrl.u32 %v3901_v39, 16  ;;  %v3904_v6 = vld [vmem:[%s3986_s4 + $0x58] sm:$0xff]  }
  0x5f   : > { %v2073_v47 = vshll.u32 %v3901_v39, 16 }
  0x60   : > { %v598_v59 = vsel %vm386_vm1, %v593_v52, %v597_v51  ;;  %v2031_v23 = vor.u32 %v2030_v15, %v2027_v14  ;;  %v2063_v50 = vrot.slane %v2061_v42, 3  ;;  %v2066_v51 = vrot.slane %v2064_v43, 4  ;;  %v3902_v52 = vld [vmem:[%s3986_s4 + $0x48] sm:$0xff]   ;;  %v3908_v42 = vld [vmem:[%s3986_s4 + $0x78] sm:$0xff]  }
  0x61   : > { %v2072_v55 = vrot.slane %v2070_v46, 3  ;;  %v2082_v61 = vshll.u32 %v3902_v52, 16  ;;  %v2097_v14 = vshrl.u32 %v3904_v6, 16  ;;  %v2100_v15 = vshll.u32 %v3904_v6, 16 }
  0x64   : > { %3628 = vmatmul.mubr.msk.bf16.gmra.mxu0 %vm634_vm0, %v550_v18 }
  0x65   : > { %3692 = vmatmul.mubr.msk.bf16.gmra.mxu1 %vm634_vm0, %v3882_v56  ;;  %3631 = vmatprep.mubr.msk.bf16.mxu0 %vm634_vm0, %v558_v20  ;;  %v2011_v56 = vshll.u32 %v3894_v49, 16  ;;  %v2039_v20 = vrot.slane %v2037_v11, 4  ;;  %v3905_v11 = vld [vmem:[%s3986_s4 + $0x60] sm:$0xff]  }
  0x66   : > { %3695 = vmatprep.mubr.msk.bf16.mxu1 %vm634_vm0, %v3883_v0  ;;  %v2018_v0 = vrot.slane %v2016_v57, 3  ;;  %v3903_v57 = vld [vmem:[%s3986_s4 + $0x50] sm:$0xff]   ;;  %v1540_v34 = vrot.slane %v3905_v11, 3 }
  0x67   : > { %v2013_v63 = vrot.slane %v2011_v56, 4  ;;  %v2040_v27 = vor.u32 %v2039_v20, %v2036_v19  ;;  %v2075_v56 = vrot.slane %v2073_v47, 4  ;;  %v2109_v19 = vshll.u32 %v3905_v11, 16  ;;  %v3909_v47 = vld [vmem:[%s3986_s4 + $0x80] sm:$0xff]  }
  0x68   : > { %v2022_v9 = vor.u32 %v2021_v1, %v2018_v0  ;;  %v2088_v0 = vshrl.u32 %v3903_v57, 16  ;;  %v2091_v1 = vshll.u32 %v3903_v57, 16 }
  0x69   : > { %v2014_v8 = vor.u32 %v2013_v63, %v2010_v62  ;;  %v2041_v36 = vsel %vm2006_vm3, %v2031_v23, %v2040_v27  ;;  %v1532_v62 = vrot.slane %v3901_v39, 3  ;;  %v2076_v63 = vor.u32 %v2075_v56, %v2072_v55 }
  0x6a   : > { %v2032_v31 = vsel %vm2006_vm3, %v2022_v9, %v2031_v23  ;;  %v2093_v10 = vrot.slane %v2091_v1, 4  ;;  %v2102_v23 = vrot.slane %v2100_v15, 4  ;;  %v2145_v55 = vshll.u32 %v3909_v47, 16  ;;  %v3911_v1 = vld [vmem:[%s3986_s4 + $0x90] sm:$0xff]  }
  0x6b   : > { %v2023_v18 = vsel %vm2006_vm3, %v2014_v8, %v2022_v9  ;;  %v1533_v7 = vsel %vm1518_vm2, %v1530_v58, %v1532_v62  ;;  %v2090_v9 = vrot.slane %v2088_v0, 3 }
  0x6c   : > { %3632 = vmatmul.mubr.msk.bf16.gmra.mxu0 %vm634_vm0, %v566_v30  ;;  %v1523_v30 = vsel %vm1518_vm2, %v1520_v5, %v1522_v22  ;;  %v2099_v22 = vrot.slane %v2097_v14, 3  ;;  %v2147_v0 = vrot.slane %v2145_v55, 4  ;;  %v3912_v14 = vld [vmem:[%s3986_s4 + $0x98] sm:$0xff]   ;;  %v4228_v55 = vld [vmem:[%s3986_s4 + $0xc0] sm:$0xff]  }
  0x6d   : > { %3696 = vmatmul.mubr.msk.bf16.gmra.mxu1 %vm634_vm0, %v3884_v4  ;;  %3635 = vmatprep.mubr.msk.bf16.mxu0 %vm634_vm0, %v574_v32  ;;  %v1519_v4 = vrot.slane %v3894_v49, 3 }
  0x6e   : > { %3699 = vmatprep.mubr.msk.bf16.mxu1 %vm634_vm0, %v3885_v12  ;;  %v609_v12 = vor.u32 %v607_v3, %v605_v54 }
  0x6f   : > { %v1521_v17 = vsel %vm1518_vm2, %v1519_v4, %v1520_v5  ;;  %v2084_v5 = vrot.slane %v2082_v61, 4 }
  0x74   : > { %3636 = vmatmul.mubr.msk.bf16.gmra.mxu0 %vm634_vm0, %v582_v44  ;;  %v1528_v44 = vrot.slane %v3899_v21, 3 }
  0x75   : > { %3700 = vmatmul.mubr.msk.bf16.gmra.mxu1 %vm634_vm0, %v3888_v16  ;;  %3639 = vmatprep.mubr.msk.bf16.mxu0 %vm634_vm0, %v590_v48  ;;  %v3898_v16 = vld [vmem:[%s3986_s4 + $0x28] sm:$0xff]  }
  0x76   : > { %3703 = vmatprep.mubr.msk.bf16.mxu1 %vm634_vm0, %v3889_v24  ;;  %v2043_v24 = vshrl.u32 %v3898_v16, 16  ;;  %v2046_v25 = vshll.u32 %v3898_v16, 16  ;;  %v1526_v40 = vrot.slane %v3898_v16, 3  ;;  %v1531_v2 = vsel %vm1518_vm2, %v1528_v44, %v1530_v58 }
  0x77   : > { %v1536_v16 = vrot.slane %v3903_v57, 3 }
  0x78   : > { %v2045_v32 = vrot.slane %v2043_v24, 3  ;;  %v2048_v33 = vrot.slane %v2046_v25, 4  ;;  %v1527_v48 = vsel %vm1518_vm2, %v1524_v26, %v1526_v40  ;;  %v1529_v53 = vsel %vm1518_vm2, %v1526_v40, %v1528_v44  ;;  %v3906_v24 = vld [vmem:[%s3986_s4 + $0x68] sm:$0xff]  }
  0x7a   : > { %v2049_v41 = vor.u32 %v2048_v33, %v2045_v32  ;;  %v2115_v32 = vshrl.u32 %v3906_v24, 16  ;;  %v2118_v33 = vshll.u32 %v3906_v24, 16 }
  0x7c   : > { %3640 = vmatmul.mubr.msk.bf16.gmra.mxu0 %vm634_vm0, %v598_v59  ;;  %v2050_v49 = vsel %vm2006_vm3, %v2040_v27, %v2049_v41  ;;  %v2067_v59 = vor.u32 %v2066_v51, %v2063_v50  ;;  %v2117_v40 = vrot.slane %v2115_v32, 3  ;;  %v2133_v50 = vshrl.u32 %v3908_v42, 16  ;;  %v3914_v32 = vld [vmem:[%s3986_s4 + $0xa8] sm:$0xff]  }
  0x7d   : > { %3704 = vmatmul.mubr.msk.bf16.gmra.mxu1 %vm634_vm0, %v3890_v28  ;;  %3643 = vmatprep.mubr.msk.bf16.mxu0 %vm634_vm0, %v606_v60  ;;  %v2052_v28 = vshrl.u32 %v3899_v21, 16  ;;  %v2079_v60 = vshrl.u32 %v3902_v52, 16  ;;  %v2136_v51 = vshll.u32 %v3908_v42, 16 }
  0x7e   : > { %3707 = vmatprep.mubr.msk.bf16.mxu1 %vm634_vm0, %v3891_v37  ;;  %v2077_v8 = vsel %vm2006_vm3, %v2067_v59, %v2076_v63  ;;  %v2135_v58 = vrot.slane %v2133_v50, 3  ;;  %v3916_v50 = vld [vmem:[%s3986_s4 + $0xb8] sm:$0xff]  }
  0x7f   : > { %v2054_v37 = vrot.slane %v2052_v28, 3  ;;  %v2081_v4 = vrot.slane %v2079_v60, 3  ;;  %v2111_v28 = vrot.slane %v2109_v19, 4  ;;  %v3910_v60 = vld [vmem:[%s3986_s4 + $0x88] sm:$0xff]   ;;  %v3913_v19 = vld [vmem:[%s3986_s4 + $0xa0] sm:$0xff]  }
  0x81   : > { %v2058_v45 = vor.u32 %v2057_v38, %v2054_v37  ;;  %v2127_v37 = vshll.u32 %v3907_v29, 16 }
  0x83   : > { %v2059_v54 = vsel %vm2006_vm3, %v2049_v41, %v2058_v45  ;;  %v2068_v3 = vsel %vm2006_vm3, %v2058_v45, %v2067_v59  ;;  %v2120_v41 = vrot.slane %v2118_v33, 4  ;;  %v2129_v46 = vrot.slane %v2127_v37, 4  ;;  %v3915_v37 = vld [vmem:[%s3986_s4 + $0xb0] sm:$0xff]  }
  0x84   : > { %3644 = vmatmul.mubr.msk.bf16.gmra.mxu0 %vm634_vm0, %v609_v12  ;;  %v1534_v12 = vrot.slane %v3902_v52, 3  ;;  %v1544_v52 = vrot.slane %v3907_v29, 3  ;;  %v2138_v59 = vrot.slane %v2136_v51, 4 }
  0x85   : > { %3708 = vmatmul.mubr.msk.bf16.gmra.mxu1 %vm634_vm0, %v3200_v13  ;;  %3719 = vmatprep.mubr.msk.bf16.mxu0 %vm634_vm0, %v1521_v17  ;;  %v2085_v13 = vor.u32 %v2084_v5, %v2081_v4  ;;  %v2094_v17 = vor.u32 %v2093_v10, %v2090_v9  ;;  %v2151_v4 = vshrl.u32 %v3910_v60, 16  ;;  %v2154_v5 = vshll.u32 %v3910_v60, 16 }
  0x86   : > { %3783 = vmatprep.mubr.msk.bf16.mxu1 %vm634_vm0, %v2023_v18  ;;  %v2106_v18 = vshrl.u32 %v3905_v11, 16  ;;  %v1535_v20 = vsel %vm1518_vm2, %v1532_v62, %v1534_v12  ;;  %v1537_v25 = vsel %vm1518_vm2, %v1534_v12, %v1536_v16  ;;  %v2163_v9 = vshll.u32 %v3911_v1, 16 }
  0x87   : > { %v2086_v21 = vsel %vm2006_vm3, %v2076_v63, %v2085_v13  ;;  %v2095_v26 = vsel %vm2006_vm3, %v2085_v13, %v2094_v17  ;;  %v2153_v12 = vrot.slane %v2151_v4, 3  ;;  %v2156_v13 = vrot.slane %v2154_v5, 4  ;;  %v3918_v4 = vld [vmem:[%s3986_s4 + $0xc8] sm:$0xff]  }
  0x88   : > { %v2108_v27 = vrot.slane %v2106_v18, 3  ;;  %v2165_v18 = vrot.slane %v2163_v9, 4  ;;  %v4242_v9 = vld [vmem:[%s3986_s4 + $0xd0] sm:$0xff]  }
  0x8c   : > { %3720 = vmatmul.mubr.msk.bf16.vlgmr.msra.gmra.mxu0 %vm634_vm0, %v1523_v30  ;;  %v1538_v30 = vrot.slane %v3904_v6, 3  ;;  %v1548_v6 = vrot.slane %v3909_v47, 3 }
  0x8d   : > { %3784 = vmatmul.mubr.msk.bf16.vlgmr.msra.gmra.mxu1 %vm634_vm0, %v2032_v31  ;;  %3723 = vmatprep.mubr.msk.bf16.mxu0 %vm634_vm0, %v1525_v35  ;;  %v2103_v31 = vor.u32 %v2102_v23, %v2099_v22  ;;  %v2112_v35 = vor.u32 %v2111_v28, %v2108_v27  ;;  %v2169_v22 = vshrl.u32 %v3912_v14, 16  ;;  %v2172_v23 = vshll.u32 %v3912_v14, 16 }
  0x8e   : > { %3787 = vmatprep.mubr.msk.bf16.mxu1 %vm634_vm0, %v2041_v36  ;;  %v2124_v36 = vshrl.u32 %v3907_v29, 16  ;;  %v1539_v38 = vsel %vm1518_vm2, %v1536_v16, %v1538_v30  ;;  %v1541_v43 = vsel %vm1518_vm2, %v1538_v30, %v1540_v34  ;;  %v2181_v27 = vshll.u32 %v3913_v19, 16 }
  0x8f   : > { %v2104_v39 = vsel %vm2006_vm3, %v2094_v17, %v2103_v31  ;;  %v2113_v44 = vsel %vm2006_vm3, %v2103_v31, %v2112_v35  ;;  %v2171_v30 = vrot.slane %v2169_v22, 3  ;;  %v2174_v31 = vrot.slane %v2172_v23, 4 }
  0x90   : > { %v2126_v45 = vrot.slane %v2124_v36, 3  ;;  %v2183_v36 = vrot.slane %v2181_v27, 4 }
  0x94   : > { %3724 = vmatmul.mubr.msk.bf16.gmra.mxu0 %vm634_vm0, %v1527_v48  ;;  %v1542_v48 = vrot.slane %v3906_v24, 3  ;;  %v1552_v24 = vrot.slane %v3911_v1, 3 }
  0x95   : > { %3788 = vmatmul.mubr.msk.bf16.gmra.mxu1 %vm634_vm0, %v2050_v49  ;;  %3727 = vmatprep.mubr.msk.bf16.mxu0 %vm634_vm0, %v1529_v53  ;;  %v2121_v49 = vor.u32 %v2120_v41, %v2117_v40  ;;  %v2130_v53 = vor.u32 %v2129_v46, %v2126_v45  ;;  %v2187_v40 = vshrl.u32 %v3914_v32, 16  ;;  %v2190_v41 = vshll.u32 %v3914_v32, 16 }
  0x96   : > { %3791 = vmatprep.mubr.msk.bf16.mxu1 %vm634_vm0, %v2059_v54  ;;  %v2142_v54 = vshrl.u32 %v3909_v47, 16  ;;  %v1543_v56 = vsel %vm1518_vm2, %v1540_v34, %v1542_v48  ;;  %v1545_v61 = vsel %vm1518_vm2, %v1542_v48, %v1544_v52  ;;  %v2199_v45 = vshll.u32 %v3915_v37, 16 }
  0x97   : > { %v2122_v57 = vsel %vm2006_vm3, %v2112_v35, %v2121_v49  ;;  %v2131_v62 = vsel %vm2006_vm3, %v2121_v49, %v2130_v53  ;;  %v2189_v48 = vrot.slane %v2187_v40, 3  ;;  %v2192_v49 = vrot.slane %v2190_v41, 4 }
  0x98   : > { %v2144_v63 = vrot.slane %v2142_v54, 3  ;;  %v2201_v54 = vrot.slane %v2199_v45, 4 }
  0x9c   : > { %3728 = vmatmul.mubr.msk.bf16.gmra.mxu0 %vm634_vm0, %v1531_v2  ;;  %v1546_v2 = vrot.slane %v3908_v42, 3  ;;  %v1556_v42 = vrot.slane %v3913_v19, 3 }
  0x9d   : > { %3792 = vmatmul.mubr.msk.bf16.gmra.mxu1 %vm634_vm0, %v2068_v3  ;;  %3731 = vmatprep.mubr.msk.bf16.mxu0 %vm634_vm0, %v1533_v7  ;;  %v2139_v3 = vor.u32 %v2138_v59, %v2135_v58  ;;  %v2148_v7 = vor.u32 %v2147_v0, %v2144_v63  ;;  %v2205_v58 = vshrl.u32 %v3916_v50, 16  ;;  %v2208_v59 = vshll.u32 %v3916_v50, 16 }
  0x9e   : > { %3795 = vmatprep.mubr.msk.bf16.mxu1 %vm634_vm0, %v2077_v8  ;;  %v2160_v8 = vshrl.u32 %v3911_v1, 16  ;;  %v1547_v10 = vsel %vm1518_vm2, %v1544_v52, %v1546_v2  ;;  %v1549_v15 = vsel %vm1518_vm2, %v1546_v2, %v1548_v6  ;;  %v2217_v63 = vshll.u32 %v4228_v55, 16 }
  0x9f   : > { %v2140_v11 = vsel %vm2006_vm3, %v2130_v53, %v2139_v3  ;;  %v2149_v16 = vsel %vm2006_vm3, %v2139_v3, %v2148_v7  ;;  %v2207_v2 = vrot.slane %v2205_v58, 3  ;;  %v2210_v3 = vrot.slane %v2208_v59, 4 }
  0xa0   : > { %v2162_v17 = vrot.slane %v2160_v8, 3  ;;  %v2219_v8 = vrot.slane %v2217_v63, 4 }
  0xa4   : > { %3732 = vmatmul.mubr.msk.bf16.gmra.mxu0 %vm634_vm0, %v1535_v20  ;;  %v1550_v20 = vrot.slane %v3910_v60, 3  ;;  %v1560_v60 = vrot.slane %v3915_v37, 3 }
  0xa5   : > { %3796 = vmatmul.mubr.msk.bf16.gmra.mxu1 %vm634_vm0, %v2086_v21  ;;  %3735 = vmatprep.mubr.msk.bf16.mxu0 %vm634_vm0, %v1537_v25  ;;  %v2157_v21 = vor.u32 %v2156_v13, %v2153_v12  ;;  %v2166_v25 = vor.u32 %v2165_v18, %v2162_v17  ;;  %v1564_v12 = vrot.slane %v4228_v55, 3  ;;  %v2223_v13 = vshrl.u32 %v3918_v4, 16  ;;  %v1367_v18 = vld [vmem:[%s3986_s4 + $0xe0] sm:$0xf] }
  0xa6   : > { %3799 = vmatprep.mubr.msk.bf16.mxu1 %vm634_vm0, %v2095_v26  ;;  %v2178_v26 = vshrl.u32 %v3913_v19, 16  ;;  %v1551_v28 = vsel %vm1518_vm2, %v1548_v6, %v1550_v20  ;;  %v1553_v33 = vsel %vm1518_vm2, %v1550_v20, %v1552_v24  ;;  %v2235_v17 = vshll.u32 %v4242_v9, 16  ;;  %v1993_v19 = vld [vmem:[%s3986_s4 + $0xe4] sm:$0xf] }
  0xa7   : > { %v2158_v29 = vsel %vm2006_vm3, %v2148_v7, %v2157_v21  ;;  %v2167_v34 = vsel %vm2006_vm3, %v2157_v21, %v2166_v25  ;;  %v2225_v23 = vrot.slane %v2223_v13, 3 }
  0xa8   : > { %v2180_v35 = vrot.slane %v2178_v26, 3 }
  0xac   : > { %3736 = vmatmul.mubr.msk.bf16.gmra.mxu0 %vm634_vm0, %v1539_v38  ;;  %v1554_v38 = vrot.slane %v3912_v14, 3  ;;  %v2226_v14 = vshll.u32 %v3918_v4, 16 }
  0xad   : > { %3800 = vmatmul.mubr.msk.bf16.gmra.mxu1 %vm634_vm0, %v2104_v39  ;;  %3739 = vmatprep.mubr.msk.bf16.mxu0 %vm634_vm0, %v1541_v43  ;;  %v2175_v39 = vor.u32 %v2174_v31, %v2171_v30  ;;  %v2184_v43 = vor.u32 %v2183_v36, %v2180_v35 }
  0xae   : > { %3803 = vmatprep.mubr.msk.bf16.mxu1 %vm634_vm0, %v2113_v44  ;;  %v2196_v44 = vshrl.u32 %v3915_v37, 16  ;;  %v1555_v46 = vsel %vm1518_vm2, %v1552_v24, %v1554_v38  ;;  %v1557_v51 = vsel %vm1518_vm2, %v1554_v38, %v1556_v42  ;;  %v2228_v24 = vrot.slane %v2226_v14, 4 }
  0xaf   : > { %v2176_v47 = vsel %vm2006_vm3, %v2166_v25, %v2175_v39  ;;  %v2185_v52 = vsel %vm2006_vm3, %v2175_v39, %v2184_v43  ;;  %v3920_v25 = vld [vmem:[%s3986_s4 + $0xd8] sm:$0xff]  }
  0xb0   : > { %v2198_v53 = vrot.slane %v2196_v44, 3  ;;  %v2229_v35 = vor.u32 %v2228_v24, %v2225_v23  ;;  %v2241_v36 = vshrl.u32 %v3920_v25, 16  ;;  %v2244_v37 = vshll.u32 %v3920_v25, 16  ;;  %v1368_v44 = vld [vmem:[%s3986_s4 + $0xe4] sm:$0x7] }
  0xb1   : > { %v1570_v63 = vrot.slane %v3920_v25, 3 }
  0xb4   : > { %3740 = vmatmul.mubr.msk.bf16.gmra.mxu0 %vm634_vm0, %v1543_v56  ;;  %v1558_v56 = vrot.slane %v3914_v32, 3  ;;  %v1566_v32 = vrot.slane %v3918_v4, 3 }
  0xb5   : > { %3804 = vmatmul.mubr.msk.bf16.gmra.mxu1 %vm634_vm0, %v2122_v57  ;;  %3743 = vmatprep.mubr.msk.bf16.mxu0 %vm634_vm0, %v1545_v61  ;;  %v2193_v57 = vor.u32 %v2192_v49, %v2189_v48  ;;  %v2202_v61 = vor.u32 %v2201_v54, %v2198_v53 }
  0xb6   : > { %3807 = vmatprep.mubr.msk.bf16.mxu1 %vm634_vm0, %v2131_v62  ;;  %v2214_v62 = vshrl.u32 %v4228_v55, 16  ;;  %v1559_v0 = vsel %vm1518_vm2, %v1556_v42, %v1558_v56  ;;  %v1561_v5 = vsel %vm1518_vm2, %v1558_v56, %v1560_v60  ;;  %v3268_v56 = vcombine.low %v1367_v18, %v1368_v44 }
  0xb7   : > { %v2194_v1 = vsel %vm2006_vm3, %v2184_v43, %v2193_v57  ;;  %v2203_v6 = vsel %vm2006_vm3, %v2193_v57, %v2202_v61 }
  0xb8   : > { %v2216_v7 = vrot.slane %v2214_v62, 3 }
  0xbc   : > { %3744 = vmatmul.mubr.msk.bf16.gmra.mxu0 %vm634_vm0, %v1547_v10  ;;  %v1562_v10 = vrot.slane %v3916_v50, 3 }
  0xbd   : > { %3808 = vmatmul.mubr.msk.bf16.gmra.mxu1 %vm634_vm0, %v2140_v11  ;;  %3747 = vmatprep.mubr.msk.bf16.mxu0 %vm634_vm0, %v1549_v15  ;;  %v2211_v11 = vor.u32 %v2210_v3, %v2207_v2  ;;  %v2220_v15 = vor.u32 %v2219_v8, %v2216_v7  ;;  %v1572_v3 = vrot.slane %v3268_v56, 3 }
  0xbe   : > { %3811 = vmatprep.mubr.msk.bf16.mxu1 %vm634_vm0, %v2149_v16  ;;  %v2232_v16 = vshrl.u32 %v4242_v9, 16  ;;  %v1563_v20 = vsel %vm1518_vm2, %v1560_v60, %v1562_v10  ;;  %v1565_v22 = vsel %vm1518_vm2, %v1562_v10, %v1564_v12 }
  0xbf   : > { %v2212_v21 = vsel %vm2006_vm3, %v2202_v61, %v2211_v11  ;;  %v2221_v26 = vsel %vm2006_vm3, %v2211_v11, %v2220_v15  ;;  %v2230_v50 = vsel %vm2006_vm3, %v2220_v15, %v2229_v35  ;;  %v1573_v13 = vsel %vm1518_vm2, %v1570_v63, %v1572_v3 }
  0xc0   : > { %v2234_v27 = vrot.slane %v2232_v16, 3 }
  0xc4   : > { %3748 = vmatmul.mubr.msk.bf16.gmra.mxu0 %vm634_vm0, %v1551_v28  ;;  %v2237_v28 = vrot.slane %v2235_v17, 4 }
  0xc5   : > { %3812 = vmatmul.mubr.msk.bf16.gmra.mxu1 %vm634_vm0, %v2158_v29  ;;  %3751 = vmatprep.mubr.msk.bf16.mxu0 %vm634_vm0, %v1553_v33  ;;  %v3309_v29 = vcombine.low %v1367_v18, %v1993_v19  ;;  %v1568_v33 = vrot.slane %v4242_v9, 3 }
  0xc6   : > { %3815 = vmatprep.mubr.msk.bf16.mxu1 %vm634_vm0, %v2167_v34  ;;  %v2238_v40 = vor.u32 %v2237_v28, %v2234_v27 }
  0xc7   : > { %v2250_v41 = vshrl.u32 %v3309_v29, 16  ;;  %v2253_v42 = vshll.u32 %v3309_v29, 16  ;;  %v1569_v48 = vsel %vm1518_vm2, %v1566_v32, %v1568_v33  ;;  %v1571_v9 = vsel %vm1518_vm2, %v1568_v33, %v1570_v63 }
  0xc8   : > { %v2239_v55 = vsel %vm2006_vm3, %v2229_v35, %v2238_v40 }
  0xc9   : > { %v2252_v57 = vrot.slane %v2250_v41, 3  ;;  %v2255_v58 = vrot.slane %v2253_v42, 4 }
  0xcb   : > { %v2256_v4 = vor.u32 %v2255_v58, %v2252_v57 }
  0xcc   : > { %3752 = vmatmul.mubr.msk.bf16.gmra.mxu0 %vm634_vm0, %v1555_v46 }
  0xcd   : > { %3816 = vmatmul.mubr.msk.bf16.gmra.mxu1 %vm634_vm0, %v2176_v47  ;;  %3755 = vmatprep.mubr.msk.bf16.mxu0 %vm634_vm0, %v1557_v51  ;;  %v1567_v47 = vsel %vm1518_vm2, %v1564_v12, %v1566_v32  ;;  %v2243_v51 = vrot.slane %v2241_v36, 3 }
  0xce   : > { %3819 = vmatprep.mubr.msk.bf16.mxu1 %vm634_vm0, %v2185_v52  ;;  %v2246_v52 = vrot.slane %v2244_v37, 4 }
  0xd4   : > { %3756 = vmatmul.mubr.msk.bf16.gmra.mxu0 %vm634_vm0, %v1559_v0  ;;  %v2247_v0 = vor.u32 %v2246_v52, %v2243_v51 }
  0xd5   : > { %3820 = vmatmul.mubr.msk.bf16.gmra.mxu1 %vm634_vm0, %v2194_v1  ;;  %3759 = vmatprep.mubr.msk.bf16.mxu0 %vm634_vm0, %v1561_v5 }
  0xd6   : > { %3823 = vmatprep.mubr.msk.bf16.mxu1 %vm634_vm0, %v2203_v6  ;;  %v2248_v10 = vsel %vm2006_vm3, %v2238_v40, %v2247_v0  ;;  %v2257_v14 = vsel %vm2006_vm3, %v2247_v0, %v2256_v4 }
  0xdc   : > { %v3593_v30 = vpop.f32.mrf.mxu0  ;;  %3760 = vmatmul.mubr.msk.bf16.gmra.mxu0 %vm634_vm0, %v1563_v20 }
  0xdd   : > { %v3657_v31 = vpop.f32.mrf.mxu1  ;;  %3824 = vmatmul.mubr.msk.bf16.gmra.mxu1 %vm634_vm0, %v2212_v21  ;;  %3763 = vmatprep.mubr.msk.bf16.mxu0 %vm634_vm0, %v1565_v22 }
  0xde   : > { %v4261_v34 = vadd.f32 %v3657_v31, %v3593_v30  ;;  %3827 = vmatprep.mubr.msk.bf16.mxu1 %vm634_vm0, %v2221_v26  ;;  %v753_v38 = vpop.f32.mrf.mxu0 }
  0xdf   : > { %v1091_v39 = vpop.f32.mrf.mxu1 }
  0xe0   : > { %v4265_v43 = vadd.f32 %v1091_v39, %v753_v38  ;;  %v3594_v45 = vpop.f32.mrf.mxu0 }
  0xe1   : > { %v3658_v46 = vpop.f32.mrf.mxu1 }
  0xe2   : > { %v4270_v49 = vadd.f32 %v3658_v46, %v3594_v45  ;;  %v756_v53 = vpop.f32.mrf.mxu0 }
  0xe3   : > { %v1094_v54 = vpop.f32.mrf.mxu1 }
  0xe4   : > { %v4274_v59 = vadd.f32 %v1094_v54, %v756_v53  ;;  %v3597_v60 = vpop.f32.mrf.mxu0  ;;  %3764 = vmatmul.mubr.msk.bf16.gmra.mxu0 %vm634_vm0, %v1567_v47 }
  0xe5   : > { %v3661_v61 = vpop.f32.mrf.mxu1  ;;  %3828 = vmatmul.mubr.msk.bf16.gmra.mxu1 %vm634_vm0, %v2230_v50  ;;  %3767 = vmatprep.mubr.msk.bf16.mxu0 %vm634_vm0, %v1569_v48 }
  0xe6   : > { %v4278_v62 = vadd.f32 %v3661_v61, %v3597_v60  ;;  %3831 = vmatprep.mubr.msk.bf16.mxu1 %vm634_vm0, %v2239_v55  ;;  %v769_v1 = vpop.f32.mrf.mxu0 }
  0xe7   : > { %v1107_v2 = vpop.f32.mrf.mxu1 }
  0xe8   : > { %v4282_v5 = vadd.f32 %v1107_v2, %v769_v1  ;;  %v3598_v6 = vpop.f32.mrf.mxu0 }
  0xe9   : > { %v3662_v7 = vpop.f32.mrf.mxu1 }
  0xea   : > { %v4284_v8 = vadd.f32 %v3662_v7, %v3598_v6  ;;  %v772_v11 = vpop.f32.mrf.mxu0 }
  0xeb   : > { %v1110_v12 = vpop.f32.mrf.mxu1 }
  0xec   : > { %v4290_v15 = vadd.f32 %v1110_v12, %v772_v11  ;;  %v3601_v16 = vpop.f32.mrf.mxu0  ;;  %3768 = vmatmul.mubr.msk.bf16.gmra.mxu0 %vm634_vm0, %v1571_v9 }
  0xed   : > { %v3665_v17 = vpop.f32.mrf.mxu1  ;;  %3832 = vmatmul.mubr.msk.bf16.gmra.mxu1 %vm634_vm0, %v2248_v10  ;;  %3771 = vmatprep.mubr.msk.bf16.mxu0 %vm634_vm0, %v1573_v13 }
  0xee   : > { %v4294_v18 = vadd.f32 %v3665_v17, %v3601_v16  ;;  %3835 = vmatprep.mubr.msk.bf16.mxu1 %vm634_vm0, %v2257_v14  ;;  %v785_v19 = vpop.f32.mrf.mxu0 }
  0xef   : > { %v1123_v20 = vpop.f32.mrf.mxu1 }
  0xf0   : > { %v4298_v21 = vadd.f32 %v1123_v20, %v785_v19  ;;  %v3602_v22 = vpop.f32.mrf.mxu0 }
  0xf1   : > { %v3666_v23 = vpop.f32.mrf.mxu1 }
  0xf2   : > { %v4300_v24 = vadd.f32 %v3666_v23, %v3602_v22  ;;  %v788_v25 = vpop.f32.mrf.mxu0 }
  0xf3   : > { %v1126_v26 = vpop.f32.mrf.mxu1 }
  0xf4   : > { %v4302_v27 = vadd.f32 %v1126_v26, %v788_v25  ;;  %v3605_v28 = vpop.f32.mrf.mxu0  ;;  %3772 = vmatmul.mubr.msk.bf16.gmra.mxu0 %vm634_vm0, %v1572_v3 }
  0xf5   : > { %v3669_v29 = vpop.f32.mrf.mxu1  ;;  %3836 = vmatmul.mubr.msk.bf16.gmra.mxu1 %vm634_vm0, %v2256_v4 }
  0xf6   : > { %v4306_v30 = vadd.f32 %v3669_v29, %v3605_v28  ;;  %v801_v31 = vpop.f32.mrf.mxu0 }
  0xf7   : > { %v1139_v32 = vpop.f32.mrf.mxu1 }
  0xf8   : > { %v4308_v33 = vadd.f32 %v1139_v32, %v801_v31  ;;  %v3606_v35 = vpop.f32.mrf.mxu0 }
  0xf9   : > { %v3670_v36 = vpop.f32.mrf.mxu1 }
  0xfa   : > { %v4310_v37 = vadd.f32 %v3670_v36, %v3606_v35  ;;  %v804_v38 = vpop.f32.mrf.mxu0 }
  0xfb   : > { %v1142_v39 = vpop.f32.mrf.mxu1 }
  0xfc   : > { %v4312_v40 = vadd.f32 %v1142_v39, %v804_v38  ;;  %v3609_v41 = vpop.f32.mrf.mxu0 }
  0xfd   : > { %v3673_v42 = vpop.f32.mrf.mxu1 }
  0xfe   : > { %v4314_v44 = vadd.f32 %v3673_v42, %v3609_v41  ;;  %v817_v45 = vpop.f32.mrf.mxu0 }
  0xff   : > { %v1155_v46 = vpop.f32.mrf.mxu1 }
 0x100   : > { %v4316_v47 = vadd.f32 %v1155_v46, %v817_v45  ;;  %v3610_v48 = vpop.f32.mrf.mxu0 }
 0x101   : > { %v3674_v50 = vpop.f32.mrf.mxu1 }
 0x102   : > { %v4318_v51 = vadd.f32 %v3674_v50, %v3610_v48  ;;  %v820_v52 = vpop.f32.mrf.mxu0 }
 0x103   : > { %v1158_v53 = vpop.f32.mrf.mxu1 }
 0x104   : > { %v4320_v54 = vadd.f32 %v1158_v53, %v820_v52  ;;  %v3613_v55 = vpop.f32.mrf.mxu0 }
 0x105   : > { %v3677_v56 = vpop.f32.mrf.mxu1 }
 0x106   : > { %v4322_v57 = vadd.f32 %v3677_v56, %v3613_v55  ;;  %v833_v58 = vpop.f32.mrf.mxu0 }
 0x107   : > { %v1171_v60 = vpop.f32.mrf.mxu1 }
 0x108   : > { %v4324_v61 = vadd.f32 %v1171_v60, %v833_v58  ;;  %v3614_v63 = vpop.f32.mrf.mxu0 }
 0x109   : > { %v3678_v0 = vpop.f32.mrf.mxu1 }
 0x10a   : > { %v4326_v1 = vadd.f32 %v3678_v0, %v3614_v63  ;;  %v836_v2 = vpop.f32.mrf.mxu0 }
 0x10b   : > { %v1174_v3 = vpop.f32.mrf.mxu1 }
 0x10c   : > { %v4328_v4 = vadd.f32 %v1174_v3, %v836_v2  ;;  %v3617_v6 = vpop.f32.mrf.mxu0 }
 0x10d   : > { %v3681_v7 = vpop.f32.mrf.mxu1 }
 0x10e   : > { %v4330_v9 = vadd.f32 %v3681_v7, %v3617_v6  ;;  %v849_v10 = vpop.f32.mrf.mxu0 }
 0x10f   : > { %v1187_v11 = vpop.f32.mrf.mxu1 }
 0x110   : > { %v4332_v12 = vadd.f32 %v1187_v11, %v849_v10  ;;  %v3618_v13 = vpop.f32.mrf.mxu0 }
 0x111   : > { %v3682_v14 = vpop.f32.mrf.mxu1 }
 0x112   : > { %v4334_v16 = vadd.f32 %v3682_v14, %v3618_v13  ;;  %v852_v17 = vpop.f32.mrf.mxu0 }
 0x113   : > { %v1190_v19 = vpop.f32.mrf.mxu1 }
 0x114   : > { %v4336_v20 = vadd.f32 %v1190_v19, %v852_v17  ;;  %v3621_v22 = vpop.f32.mrf.mxu0 }
 0x115   : > { %v3685_v23 = vpop.f32.mrf.mxu1 }
 0x116   : > { %v4338_v25 = vadd.f32 %v3685_v23, %v3621_v22  ;;  %v865_v26 = vpop.f32.mrf.mxu0 }
 0x117   : > { %v1203_v28 = vpop.f32.mrf.mxu1 }
 0x118   : > { %v4340_v29 = vadd.f32 %v1203_v28, %v865_v26  ;;  %v3622_v31 = vpop.f32.mrf.mxu0 }
 0x119   : > { %v3686_v32 = vpop.f32.mrf.mxu1 }
 0x11a   : > { %v4342_v35 = vadd.f32 %v3686_v32, %v3622_v31  ;;  %v868_v36 = vpop.f32.mrf.mxu0 }
 0x11b   : > { %v1206_v38 = vpop.f32.mrf.mxu1 }
 0x11c   : > { %v4344_v39 = vadd.f32 %v1206_v38, %v868_v36  ;;  %v3625_v41 = vpop.f32.mrf.mxu0 }
 0x11d   : > { %v3689_v42 = vpop.f32.mrf.mxu1 }
 0x11e   : > { %v4346_v45 = vadd.f32 %v3689_v42, %v3625_v41  ;;  %v881_v46 = vpop.f32.mrf.mxu0 }
 0x11f   : > { %v1219_v48 = vpop.f32.mrf.mxu1 }
 0x120   : > { %v4348_v50 = vadd.f32 %v1219_v48, %v881_v46  ;;  %v3626_v52 = vpop.f32.mrf.mxu0 }
 0x121   : > { %v3690_v53 = vpop.f32.mrf.mxu1 }
 0x122   : > { %v4350_v55 = vadd.f32 %v3690_v53, %v3626_v52  ;;  %v884_v56 = vpop.f32.mrf.mxu0 }
 0x123   : > { %v1222_v58 = vpop.f32.mrf.mxu1 }
 0x124   : > { %v4352_v60 = vadd.f32 %v1222_v58, %v884_v56  ;;  %v3629_v63 = vpop.f32.mrf.mxu0 }
 0x125   : > { %v3693_v0 = vpop.f32.mrf.mxu1 }
 0x126   : > { %v4354_v2 = vadd.f32 %v3693_v0, %v3629_v63  ;;  %v897_v3 = vpop.f32.mrf.mxu0 }
 0x127   : > { %v1235_v6 = vpop.f32.mrf.mxu1 }
 0x128   : > { %v4356_v7 = vadd.f32 %v1235_v6, %v897_v3  ;;  %v3630_v10 = vpop.f32.mrf.mxu0 }
 0x129   : > { %v3694_v11 = vpop.f32.mrf.mxu1 }
 0x12a   : > { %v4358_v13 = vadd.f32 %v3694_v11, %v3630_v10  ;;  %v900_v14 = vpop.f32.mrf.mxu0 }
 0x12b   : > { %v1238_v17 = vpop.f32.mrf.mxu1 }
 0x12c   : > { %v4360_v19 = vadd.f32 %v1238_v17, %v900_v14  ;;  %v3633_v22 = vpop.f32.mrf.mxu0 }
 0x12d   : > { %v3697_v23 = vpop.f32.mrf.mxu1 }
 0x12e   : > { %v4362_v26 = vadd.f32 %v3697_v23, %v3633_v22  ;;  %v913_v28 = vpop.f32.mrf.mxu0 }
 0x12f   : > { %v1251_v31 = vpop.f32.mrf.mxu1 }
 0x130   : > { %v4364_v32 = vadd.f32 %v1251_v31, %v913_v28  ;;  %v3634_v36 = vpop.f32.mrf.mxu0 }
 0x131   : > { %v3698_v38 = vpop.f32.mrf.mxu1 }
 0x132   : > { %v4366_v41 = vadd.f32 %v3698_v38, %v3634_v36  ;;  %v916_v42 = vpop.f32.mrf.mxu0 }
 0x133   : > { %v1254_v46 = vpop.f32.mrf.mxu1 }
 0x134   : > { %v4368_v48 = vadd.f32 %v1254_v46, %v916_v42  ;;  %v3637_v52 = vpop.f32.mrf.mxu0 }
 0x135   : > { %v3701_v53 = vpop.f32.mrf.mxu1 }
 0x136   : > { %v4370_v56 = vadd.f32 %v3701_v53, %v3637_v52  ;;  %v929_v58 = vpop.f32.mrf.mxu0 }
 0x137   : > { %v1267_v63 = vpop.f32.mrf.mxu1 }
 0x138   : > { %v4372_v0 = vadd.f32 %v1267_v63, %v929_v58  ;;  %v3638_v3 = vpop.f32.mrf.mxu0 }
 0x139   : > { %v3702_v6 = vpop.f32.mrf.mxu1 }
 0x13a   : > { %v4374_v10 = vadd.f32 %v3702_v6, %v3638_v3  ;;  %v932_v11 = vpop.f32.mrf.mxu0 }
 0x13b   : > { %v1270_v14 = vpop.f32.mrf.mxu1 }
 0x13c   : > { %v4376_v17 = vadd.f32 %v1270_v14, %v932_v11  ;;  %v3641_v22 = vpop.f32.mrf.mxu0 }
 0x13d   : > { %v3705_v23 = vpop.f32.mrf.mxu1 }
 0x13e   : > { %4630 = vst [vmem:[#allocation2_spill] sm:$0xff] %v4376_v17  ;;  %v4378_v28 = vadd.f32 %v3705_v23, %v3641_v22  ;;  %v945_v31 = vpop.f32.mrf.mxu0 }
 0x13f   : > { %v1283_v36 = vpop.f32.mrf.mxu1 }
 0x140   : > { %4631 = vst [vmem:[#allocation3_spill] sm:$0xff] %v4378_v28  ;;  %v4380_v38 = vadd.f32 %v1283_v36, %v945_v31  ;;  %v3642_v42 = vpop.f32.mrf.mxu0 }
 0x141   : > { %v3706_v46 = vpop.f32.mrf.mxu1 }
 0x142   : > { %4632 = vst [vmem:[#allocation4_spill] sm:$0xff] %v4380_v38  ;;  %v4382_v52 = vadd.f32 %v3706_v46, %v3642_v42  ;;  %v948_v53 = vpop.f32.mrf.mxu0 }
 0x143   : > { %v1286_v58 = vpop.f32.mrf.mxu1 }
 0x144   : > { %4633 = vst [vmem:[#allocation5_spill] sm:$0xff] %v4382_v52  ;;  %v4384_v63 = vadd.f32 %v1286_v58, %v948_v53  ;;  %v3645_v3 = vpop.f32.mrf.mxu0  ;;  %v4396_v58 = vld [vmem:[%s4628_s2] ss:$0 sm:$0xff] }
 0x145   : > { %v3709_v6 = vpop.f32.mrf.mxu1 }
 0x146   : > { %4634 = vst [vmem:[#allocation6_spill] sm:$0xff] %v4384_v63  ;;  %v4386_v11 = vadd.f32 %v3709_v6, %v3645_v3  ;;  %v961_v14 = vpop.f32.mrf.mxu0 }
 0x147   : > { %v1299_v22 = vpop.f32.mrf.mxu1 }
 0x148   : > { %4635 = vst [vmem:[#allocation7_spill] sm:$0xff] %v4386_v11  ;;  %v4388_v23 = vadd.f32 %v1299_v22, %v961_v14  ;;  %v3646_v28 = vpop.f32.mrf.mxu0 }
 0x149   : > { %v3710_v31 = vpop.f32.mrf.mxu1 }
 0x14a   : > { %4636 = vst [vmem:[#allocation8_spill] sm:$0xff] %v4388_v23  ;;  %v964_v36 = vpop.f32.mrf.mxu0 }
 0x14b   : > { %v1302_v38 = vpop.f32.mrf.mxu1 }
 0x14c   : > { %v4390_v17 = vadd.f32 %v1302_v38, %v964_v36  ;;  %v3721_v42 = vpop.f32.mrf.mxu0 }
 0x14d   : > { %v3785_v46 = vpop.f32.mrf.mxu1  ;;  %v1940_v53 = vadd.f32 %v3721_v42, %v4261_v34 }
 0x14e   : > { %4637 = vst [vmem:[#allocation9_spill] sm:$0xff] %v4390_v17  ;;  %v1716_v3 = vpop.f32.mrf.mxu0 }
 0x14f   : > { %v2400_v6 = vpop.f32.mrf.mxu1  ;;  %v2624_v11 = vadd.f32 %v3785_v46, %v1940_v53  ;;  %v1938_v14 = vadd.f32 %v1716_v3, %v4265_v43 }
 0x150   : > { %v3722_v28 = vpop.f32.mrf.mxu0 }
 0x151   : > { %v3786_v22 = vpop.f32.mrf.mxu1  ;;  %v2685_v38 = vadd.f32 %v4396_v58, %v2624_v11  ;;  %v2622_v31 = vadd.f32 %v2400_v6, %v1938_v14  ;;  %v1941_v36 = vadd.f32 %v3722_v28, %v4270_v49 }
 0x152   : > { %v1719_v17 = vpop.f32.mrf.mxu0 }
 0x153   : > { %v2403_v34 = vpop.f32.mrf.mxu1  ;;  %v2740_v42 = vmax.f32 %v2685_v38, 0.0  ;;  %v2683_v23 = vadd.f32 %v4396_v58, %v2622_v31  ;;  %v2625_v63 = vadd.f32 %v3786_v22, %v1941_v36  ;;  %v1939_v52 = vadd.f32 %v1719_v17, %v4274_v59 }
 0x154   : > { %v3725_v43 = vpop.f32.mrf.mxu0 }
 0x155   : > { %v3789_v11 = vpop.f32.mrf.mxu1  ;;  %v3402_v46 = vpack.c.bf16 %v2740_v42, %v2740_v42  ;;  %v2738_v49 = vmax.f32 %v2683_v23, 0.0  ;;  %v2686_v53 = vadd.f32 %v4396_v58, %v2625_v63  ;;  %v2623_v3 = vadd.f32 %v2403_v34, %v1939_v52 }
 0x156   : > { %v1944_v6 = vadd.f32 %v3725_v43, %v4278_v62  ;;  %v1732_v14 = vpop.f32.mrf.mxu0 }
 0x157   : > { %v2416_v28 = vpop.f32.mrf.mxu1  ;;  %3017 = vst.msk [vmem:[%s4407_s30 + $0x8] sm:$0xf] %vm3014_vm4, %v3402_v46  ;;  %v3400_v59 = vpack.c.bf16 %v2738_v49, %v2738_v49  ;;  %v2741_v17 = vmax.f32 %v2686_v53, 0.0  ;;  %v2684_v22 = vadd.f32 %v4396_v58, %v2623_v3  ;;  %v1942_v38 = vadd.f32 %v1732_v14, %v4282_v5 }
 0x158   : > { %v2628_v31 = vadd.f32 %v3789_v11, %v1944_v6  ;;  %v3726_v36 = vpop.f32.mrf.mxu0 }
 0x159   : > { %v3790_v42 = vpop.f32.mrf.mxu1  ;;  %3015 = vst.msk [vmem:[%s4407_s30] sm:$0xf] %vm3014_vm4, %v3400_v59  ;;  %v3403_v52 = vpack.c.bf16 %v2741_v17, %v2741_v17  ;;  %v2739_v63 = vmax.f32 %v2684_v22, 0.0  ;;  %v2626_v62 = vadd.f32 %v2416_v28, %v1942_v38  ;;  %v1945_v23 = vadd.f32 %v3726_v36, %v4284_v8 }
 0x15a   : > { %v2689_v34 = vadd.f32 %v4396_v58, %v2628_v31  ;;  %v1735_v43 = vpop.f32.mrf.mxu0 }
 0x15b   : > { %v2419_v46 = vpop.f32.mrf.mxu1  ;;  %3018 = vst.msk [vmem:[%s4407_s30 + $0xc] sm:$0xf] %vm3014_vm4, %v3403_v52  ;;  %v3401_v49 = vpack.c.bf16 %v2739_v63, %v2739_v63  ;;  %v2687_v5 = vadd.f32 %v4396_v58, %v2626_v62  ;;  %v2629_v11 = vadd.f32 %v3790_v42, %v1945_v23  ;;  %v1943_v53 = vadd.f32 %v1735_v43, %v4290_v15 }
 0x15c   : > { %v2744_v3 = vmax.f32 %v2689_v34, 0.0  ;;  %v3729_v6 = vpop.f32.mrf.mxu0 }
 0x15d   : > { %v3793_v14 = vpop.f32.mrf.mxu1  ;;  %3016 = vst.msk [vmem:[%s4407_s30 + $0x4] sm:$0xf] %vm3014_vm4, %v3401_v49  ;;  %v2742_v8 = vmax.f32 %v2687_v5, 0.0  ;;  %v2690_v28 = vadd.f32 %v4396_v58, %v2629_v11  ;;  %v2627_v59 = vadd.f32 %v2419_v46, %v1943_v53  ;;  %v1948_v17 = vadd.f32 %v3729_v6, %v4294_v18 }
 0x15e   : > { %v3406_v22 = vpack.c.bf16 %v2744_v3, %v2744_v3  ;;  %v1748_v38 = vpop.f32.mrf.mxu0 }
 0x15f   : > { %v2432_v31 = vpop.f32.mrf.mxu1  ;;  %v3404_v36 = vpack.c.bf16 %v2742_v8, %v2742_v8  ;;  %v2745_v42 = vmax.f32 %v2690_v28, 0.0  ;;  %v2688_v15 = vadd.f32 %v4396_v58, %v2627_v59  ;;  %v2632_v52 = vadd.f32 %v3793_v14, %v1948_v17 }
 0x160   : > { %3021 = vst.msk [vmem:[%s4407_s30 + $0x18] sm:$0xf] %vm3014_vm4, %v3406_v22  ;;  %v1946_v63 = vadd.f32 %v1748_v38, %v4298_v21  ;;  %v3730_v62 = vpop.f32.mrf.mxu0 }
 0x161   : > { %v3794_v23 = vpop.f32.mrf.mxu1  ;;  %3019 = vst.msk [vmem:[%s4407_s30 + $0x10] sm:$0xf] %vm3014_vm4, %v3404_v36  ;;  %v3407_v34 = vpack.c.bf16 %v2745_v42, %v2745_v42  ;;  %v2743_v18 = vmax.f32 %v2688_v15, 0.0  ;;  %v2693_v43 = vadd.f32 %v4396_v58, %v2632_v52  ;;  %v1949_v46 = vadd.f32 %v3730_v62, %v4300_v24 }
 0x162   : > { %v2630_v49 = vadd.f32 %v2432_v31, %v1946_v63  ;;  %v1751_v5 = vpop.f32.mrf.mxu0 }
 0x163   : > { %v2435_v11 = vpop.f32.mrf.mxu1  ;;  %3022 = vst.msk [vmem:[%s4407_s30 + $0x1c] sm:$0xf] %vm3014_vm4, %v3407_v34  ;;  %v3405_v53 = vpack.c.bf16 %v2743_v18, %v2743_v18  ;;  %v2748_v3 = vmax.f32 %v2693_v43, 0.0  ;;  %v2633_v21 = vadd.f32 %v3794_v23, %v1949_v46  ;;  %v1947_v6 = vadd.f32 %v1751_v5, %v4302_v27 }
 0x164   : > { %v2691_v14 = vadd.f32 %v4396_v58, %v2630_v49  ;;  %v3733_v8 = vpop.f32.mrf.mxu0 }
 0x165   : > { %v3797_v28 = vpop.f32.mrf.mxu1  ;;  %3020 = vst.msk [vmem:[%s4407_s30 + $0x14] sm:$0xf] %vm3014_vm4, %v3405_v53  ;;  %v3410_v59 = vpack.c.bf16 %v2748_v3, %v2748_v3  ;;  %v2694_v24 = vadd.f32 %v4396_v58, %v2633_v21  ;;  %v2631_v17 = vadd.f32 %v2435_v11, %v1947_v6  ;;  %v1952_v22 = vadd.f32 %v3733_v8, %v4306_v30 }
 0x166   : > { %v2746_v38 = vmax.f32 %v2691_v14, 0.0  ;;  %v1764_v31 = vpop.f32.mrf.mxu0 }
 0x167   : > { %v2448_v36 = vpop.f32.mrf.mxu1  ;;  %3025 = vst.msk [vmem:[%s4407_s30 + $0x28] sm:$0xf] %vm3014_vm4, %v3410_v59  ;;  %v2749_v27 = vmax.f32 %v2694_v24, 0.0  ;;  %v2692_v42 = vadd.f32 %v4396_v58, %v2631_v17  ;;  %v2636_v15 = vadd.f32 %v3797_v28, %v1952_v22  ;;  %v1950_v52 = vadd.f32 %v1764_v31, %v4308_v33 }
 0x168   : > { %v3408_v63 = vpack.c.bf16 %v2746_v38, %v2746_v38  ;;  %v3734_v62 = vpop.f32.mrf.mxu0 }
 0x169   : > { %v3798_v23 = vpop.f32.mrf.mxu1  ;;  %v3411_v34 = vpack.c.bf16 %v2749_v27, %v2749_v27  ;;  %v2747_v18 = vmax.f32 %v2692_v42, 0.0  ;;  %v2697_v30 = vadd.f32 %v4396_v58, %v2636_v15  ;;  %v2634_v43 = vadd.f32 %v2448_v36, %v1950_v52 }
 0x16a   : > { %3023 = vst.msk [vmem:[%s4407_s30 + $0x20] sm:$0xf] %vm3014_vm4, %v3408_v63  ;;  %v1953_v46 = vadd.f32 %v3734_v62, %v4310_v37  ;;  %v1767_v49 = vpop.f32.mrf.mxu0 }
 0x16b   : > { %v2451_v5 = vpop.f32.mrf.mxu1  ;;  %3026 = vst.msk [vmem:[%s4407_s30 + $0x2c] sm:$0xf] %vm3014_vm4, %v3411_v34  ;;  %v3409_v11 = vpack.c.bf16 %v2747_v18, %v2747_v18  ;;  %v2752_v33 = vmax.f32 %v2697_v30, 0.0  ;;  %v2695_v53 = vadd.f32 %v4396_v58, %v2634_v43  ;;  %v1951_v3 = vadd.f32 %v1767_v49, %v4312_v40 }
 0x16c   : > { %v2637_v21 = vadd.f32 %v3798_v23, %v1953_v46  ;;  %v3737_v6 = vpop.f32.mrf.mxu0 }
 0x16d   : > { %v3801_v14 = vpop.f32.mrf.mxu1  ;;  %3024 = vst.msk [vmem:[%s4407_s30 + $0x24] sm:$0xf] %vm3014_vm4, %v3409_v11  ;;  %v3414_v8 = vpack.c.bf16 %v2752_v33, %v2752_v33  ;;  %v2750_v28 = vmax.f32 %v2695_v53, 0.0  ;;  %v2635_v37 = vadd.f32 %v2451_v5, %v1951_v3  ;;  %v1956_v59 = vadd.f32 %v3737_v6, %v4314_v44 }
 0x16e   : > { %v2698_v24 = vadd.f32 %v4396_v58, %v2637_v21  ;;  %v1780_v17 = vpop.f32.mrf.mxu0 }
 0x16f   : > { %v2464_v22 = vpop.f32.mrf.mxu1  ;;  %3029 = vst.msk [vmem:[%s4407_s30 + $0x38] sm:$0xf] %vm3014_vm4, %v3414_v8  ;;  %v3412_v38 = vpack.c.bf16 %v2750_v28, %v2750_v28  ;;  %v2696_v40 = vadd.f32 %v4396_v58, %v2635_v37  ;;  %v2640_v31 = vadd.f32 %v3801_v14, %v1956_v59  ;;  %v1954_v36 = vadd.f32 %v1780_v17, %v4316_v47 }
 0x170   : > { %v2753_v27 = vmax.f32 %v2698_v24, 0.0  ;;  %v3738_v42 = vpop.f32.mrf.mxu0 }
 0x171   : > { %v3802_v15 = vpop.f32.mrf.mxu1  ;;  %3027 = vst.msk [vmem:[%s4407_s30 + $0x30] sm:$0xf] %vm3014_vm4, %v3412_v38  ;;  %v2751_v44 = vmax.f32 %v2696_v40, 0.0  ;;  %v2701_v52 = vadd.f32 %v4396_v58, %v2640_v31  ;;  %v2638_v63 = vadd.f32 %v2464_v22, %v1954_v36  ;;  %v1957_v62 = vadd.f32 %v3738_v42, %v4318_v51 }
 0x172   : > { %v3415_v23 = vpack.c.bf16 %v2753_v27, %v2753_v27  ;;  %v1783_v34 = vpop.f32.mrf.mxu0 }
 0x173   : > { %v2467_v18 = vpop.f32.mrf.mxu1  ;;  %v3413_v30 = vpack.c.bf16 %v2751_v44, %v2751_v44  ;;  %v2756_v43 = vmax.f32 %v2701_v52, 0.0  ;;  %v2699_v47 = vadd.f32 %v4396_v58, %v2638_v63  ;;  %v2641_v46 = vadd.f32 %v3802_v15, %v1957_v62 }
 0x174   : > { %3030 = vst.msk [vmem:[%s4407_s30 + $0x3c] sm:$0xf] %vm3014_vm4, %v3415_v23  ;;  %v1955_v49 = vadd.f32 %v1783_v34, %v4320_v54  ;;  %v3741_v5 = vpop.f32.mrf.mxu0 }
 0x175   : > { %v3805_v11 = vpop.f32.mrf.mxu1  ;;  %3028 = vst.msk [vmem:[%s4407_s30 + $0x34] sm:$0xf] %vm3014_vm4, %v3413_v30  ;;  %v3418_v33 = vpack.c.bf16 %v2756_v43, %v2756_v43  ;;  %v2754_v51 = vmax.f32 %v2699_v47, 0.0  ;;  %v2702_v53 = vadd.f32 %v4396_v58, %v2641_v46  ;;  %v1960_v3 = vadd.f32 %v3741_v5, %v4322_v57 }
 0x176   : > { %v2639_v21 = vadd.f32 %v2467_v18, %v1955_v49  ;;  %v1796_v6 = vpop.f32.mrf.mxu0 }
 0x177   : > { %v2480_v14 = vpop.f32.mrf.mxu1  ;;  %3033 = vst.msk [vmem:[%s4407_s30 + $0x48] sm:$0xf] %vm3014_vm4, %v3418_v33  ;;  %v3416_v8 = vpack.c.bf16 %v2754_v51, %v2754_v51  ;;  %v2757_v28 = vmax.f32 %v2702_v53, 0.0  ;;  %v2644_v54 = vadd.f32 %v3805_v11, %v1960_v3  ;;  %v1958_v37 = vadd.f32 %v1796_v6, %v4324_v61 }
 0x178   : > { %v2700_v59 = vadd.f32 %v4396_v58, %v2639_v21  ;;  %v3742_v24 = vpop.f32.mrf.mxu0 }
 0x179   : > { %v3806_v17 = vpop.f32.mrf.mxu1  ;;  %3031 = vst.msk [vmem:[%s4407_s30 + $0x40] sm:$0xf] %vm3014_vm4, %v3416_v8  ;;  %v3419_v22 = vpack.c.bf16 %v2757_v28, %v2757_v28  ;;  %v2705_v57 = vadd.f32 %v4396_v58, %v2644_v54  ;;  %v2642_v38 = vadd.f32 %v2480_v14, %v1958_v37  ;;  %v1961_v40 = vadd.f32 %v3742_v24, %v4326_v1 }
 0x17a   : > { %v2755_v31 = vmax.f32 %v2700_v59, 0.0  ;;  %v1799_v36 = vpop.f32.mrf.mxu0 }
 0x17b   : > { %v2483_v27 = vpop.f32.mrf.mxu1  ;;  %3034 = vst.msk [vmem:[%s4407_s30 + $0x4c] sm:$0xf] %vm3014_vm4, %v3419_v22  ;;  %v2760_v61 = vmax.f32 %v2705_v57, 0.0  ;;  %v2703_v42 = vadd.f32 %v4396_v58, %v2642_v38  ;;  %v2645_v15 = vadd.f32 %v3806_v17, %v1961_v40  ;;  %v1959_v44 = vadd.f32 %v1799_v36, %v4328_v4 }
 0x17c   : > { %v3417_v52 = vpack.c.bf16 %v2755_v31, %v2755_v31  ;;  %v3745_v63 = vpop.f32.mrf.mxu0 }
 0x17d   : > { %v3809_v62 = vpop.f32.mrf.mxu1  ;;  %v3422_v23 = vpack.c.bf16 %v2760_v61, %v2760_v61  ;;  %v2758_v34 = vmax.f32 %v2703_v42, 0.0  ;;  %v2706_v1 = vadd.f32 %v4396_v58, %v2645_v15  ;;  %v2643_v18 = vadd.f32 %v2483_v27, %v1959_v44 }
 0x17e   : > { %3032 = vst.msk [vmem:[%s4407_s30 + $0x44] sm:$0xf] %vm3014_vm4, %v3417_v52  ;;  %v1964_v30 = vadd.f32 %v3745_v63, %v4330_v9  ;;  %v1812_v43 = vpop.f32.mrf.mxu0 }
 0x17f   : > { %v2496_v47 = vpop.f32.mrf.mxu1  ;;  %3037 = vst.msk [vmem:[%s4407_s30 + $0x58] sm:$0xf] %vm3014_vm4, %v3422_v23  ;;  %v3420_v46 = vpack.c.bf16 %v2758_v34, %v2758_v34  ;;  %v2761_v4 = vmax.f32 %v2706_v1, 0.0  ;;  %v2704_v49 = vadd.f32 %v4396_v58, %v2643_v18  ;;  %v1962_v5 = vadd.f32 %v1812_v43, %v4332_v12 }
 0x180   : > { %v2648_v11 = vadd.f32 %v3809_v62, %v1964_v30  ;;  %v3746_v33 = vpop.f32.mrf.mxu0 }
 0x181   : > { %v3810_v51 = vpop.f32.mrf.mxu1  ;;  %3035 = vst.msk [vmem:[%s4407_s30 + $0x50] sm:$0xf] %vm3014_vm4, %v3420_v46  ;;  %v3423_v53 = vpack.c.bf16 %v2761_v4, %v2761_v4  ;;  %v2759_v3 = vmax.f32 %v2704_v49, 0.0  ;;  %v2646_v9 = vadd.f32 %v2496_v47, %v1962_v5  ;;  %v1965_v21 = vadd.f32 %v3746_v33, %v4334_v16 }
 0x182   : > { %v2709_v6 = vadd.f32 %v4396_v58, %v2648_v11  ;;  %v1815_v14 = vpop.f32.mrf.mxu0 }
 0x183   : > { %v2499_v8 = vpop.f32.mrf.mxu1  ;;  %3038 = vst.msk [vmem:[%s4407_s30 + $0x5c] sm:$0xf] %vm3014_vm4, %v3423_v53  ;;  %v3421_v28 = vpack.c.bf16 %v2759_v3, %v2759_v3  ;;  %v2707_v12 = vadd.f32 %v4396_v58, %v2646_v9  ;;  %v2649_v54 = vadd.f32 %v3810_v51, %v1965_v21  ;;  %v1963_v37 = vadd.f32 %v1815_v14, %v4336_v20 }
 0x184   : > { %v2764_v59 = vmax.f32 %v2709_v6, 0.0  ;;  %v3749_v24 = vpop.f32.mrf.mxu0 }
 0x185   : > { %v3813_v17 = vpop.f32.mrf.mxu1  ;;  %3036 = vst.msk [vmem:[%s4407_s30 + $0x54] sm:$0xf] %vm3014_vm4, %v3421_v28  ;;  %v2762_v16 = vmax.f32 %v2707_v12, 0.0  ;;  %v2710_v22 = vadd.f32 %v4396_v58, %v2649_v54  ;;  %v2647_v57 = vadd.f32 %v2499_v8, %v1963_v37  ;;  %v1968_v38 = vadd.f32 %v3749_v24, %v4338_v25 }
 0x186   : > { %v3426_v40 = vpack.c.bf16 %v2764_v59, %v2764_v59  ;;  %v1828_v31 = vpop.f32.mrf.mxu0 }
 0x187   : > { %v2512_v36 = vpop.f32.mrf.mxu1  ;;  %v3424_v27 = vpack.c.bf16 %v2762_v16, %v2762_v16  ;;  %v2765_v61 = vmax.f32 %v2710_v22, 0.0  ;;  %v2708_v20 = vadd.f32 %v4396_v58, %v2647_v57  ;;  %v2652_v42 = vadd.f32 %v3813_v17, %v1968_v38 }
 0x188   : > { %3041 = vst.msk [vmem:[%s4407_s30 + $0x68] sm:$0xf] %vm3014_vm4, %v3426_v40  ;;  %v1966_v15 = vadd.f32 %v1828_v31, %v4340_v29  ;;  %v3750_v44 = vpop.f32.mrf.mxu0 }
 0x189   : > { %v3814_v52 = vpop.f32.mrf.mxu1  ;;  %3039 = vst.msk [vmem:[%s4407_s30 + $0x60] sm:$0xf] %vm3014_vm4, %v3424_v27  ;;  %v3427_v63 = vpack.c.bf16 %v2765_v61, %v2765_v61  ;;  %v2763_v25 = vmax.f32 %v2708_v20, 0.0  ;;  %v2713_v62 = vadd.f32 %v4396_v58, %v2652_v42  ;;  %v1969_v23 = vadd.f32 %v3750_v44, %v4342_v35 }
 0x18a   : > { %v2650_v34 = vadd.f32 %v2512_v36, %v1966_v15  ;;  %v1831_v1 = vpop.f32.mrf.mxu0 }
 0x18b   : > { %v2515_v18 = vpop.f32.mrf.mxu1  ;;  %3042 = vst.msk [vmem:[%s4407_s30 + $0x6c] sm:$0xf] %vm3014_vm4, %v3427_v63  ;;  %v3425_v30 = vpack.c.bf16 %v2763_v25, %v2763_v25  ;;  %v2768_v43 = vmax.f32 %v2713_v62, 0.0  ;;  %v2653_v29 = vadd.f32 %v3814_v52, %v1969_v23  ;;  %v1967_v47 = vadd.f32 %v1831_v1, %v4344_v39 }
 0x18c   : > { %v2711_v46 = vadd.f32 %v4396_v58, %v2650_v34  ;;  %v3753_v4 = vpop.f32.mrf.mxu0 }
 0x18d   : > { %v3817_v49 = vpop.f32.mrf.mxu1  ;;  %3040 = vst.msk [vmem:[%s4407_s30 + $0x64] sm:$0xf] %vm3014_vm4, %v3425_v30  ;;  %v3430_v5 = vpack.c.bf16 %v2768_v43, %v2768_v43  ;;  %v2714_v35 = vadd.f32 %v4396_v58, %v2653_v29  ;;  %v2651_v11 = vadd.f32 %v2515_v18, %v1967_v47  ;;  %v1972_v33 = vadd.f32 %v3753_v4, %v4346_v45 }
 0x18e   : > { %v2766_v51 = vmax.f32 %v2711_v46, 0.0  ;;  %v1844_v53 = vpop.f32.mrf.mxu0 }
 0x18f   : > { %v2528_v3 = vpop.f32.mrf.mxu1  ;;  %3045 = vst.msk [vmem:[%s4407_s30 + $0x78] sm:$0xf] %vm3014_vm4, %v3430_v5  ;;  %v2769_v39 = vmax.f32 %v2714_v35, 0.0  ;;  %v2712_v9 = vadd.f32 %v4396_v58, %v2651_v11  ;;  %v2656_v21 = vadd.f32 %v3817_v49, %v1972_v33  ;;  %v1970_v6 = vadd.f32 %v1844_v53, %v4348_v50 }
 0x190   : > { %v3428_v14 = vpack.c.bf16 %v2766_v51, %v2766_v51  ;;  %v3754_v8 = vpop.f32.mrf.mxu0 }
 0x191   : > { %v3818_v28 = vpop.f32.mrf.mxu1  ;;  %v3431_v12 = vpack.c.bf16 %v2769_v39, %v2769_v39  ;;  %v2767_v54 = vmax.f32 %v2712_v9, 0.0  ;;  %v2717_v45 = vadd.f32 %v4396_v58, %v2656_v21  ;;  %v2654_v37 = vadd.f32 %v2528_v3, %v1970_v6 }
 0x192   : > { %3043 = vst.msk [vmem:[%s4407_s30 + $0x70] sm:$0xf] %vm3014_vm4, %v3428_v14  ;;  %v1973_v59 = vadd.f32 %v3754_v8, %v4350_v55  ;;  %v1847_v24 = vpop.f32.mrf.mxu0 }
 0x193   : > { %v2531_v17 = vpop.f32.mrf.mxu1  ;;  %3046 = vst.msk [vmem:[%s4407_s30 + $0x7c] sm:$0xf] %vm3014_vm4, %v3431_v12  ;;  %v3429_v16 = vpack.c.bf16 %v2767_v54, %v2767_v54  ;;  %v2772_v50 = vmax.f32 %v2717_v45, 0.0  ;;  %v2715_v22 = vadd.f32 %v4396_v58, %v2654_v37  ;;  %v1971_v57 = vadd.f32 %v1847_v24, %v4352_v60 }
 0x194   : > { %v2657_v38 = vadd.f32 %v3818_v28, %v1973_v59  ;;  %v3757_v40 = vpop.f32.mrf.mxu0 }
 0x195   : > { %v3821_v31 = vpop.f32.mrf.mxu1  ;;  %3044 = vst.msk [vmem:[%s4407_s30 + $0x74] sm:$0xf] %vm3014_vm4, %v3429_v16  ;;  %v3434_v36 = vpack.c.bf16 %v2772_v50, %v2772_v50  ;;  %v2770_v27 = vmax.f32 %v2715_v22, 0.0  ;;  %v2655_v55 = vadd.f32 %v2531_v17, %v1971_v57  ;;  %v1976_v61 = vadd.f32 %v3757_v40, %v4354_v2 }
 0x196   : > { %v2718_v20 = vadd.f32 %v4396_v58, %v2657_v38  ;;  %v1860_v42 = vpop.f32.mrf.mxu0 }
 0x197   : > { %v2544_v15 = vpop.f32.mrf.mxu1  ;;  %3049 = vst.msk [vmem:[%s4407_s30 + $0x88] sm:$0xf] %vm3014_vm4, %v3434_v36  ;;  %v3432_v44 = vpack.c.bf16 %v2770_v27, %v2770_v27  ;;  %v2716_v60 = vadd.f32 %v4396_v58, %v2655_v55  ;;  %v2660_v52 = vadd.f32 %v3821_v31, %v1976_v61  ;;  %v1974_v63 = vadd.f32 %v1860_v42, %v4356_v7 }
 0x198   : > { %v2773_v25 = vmax.f32 %v2718_v20, 0.0  ;;  %v3758_v62 = vpop.f32.mrf.mxu0 }
 0x199   : > { %v3822_v23 = vpop.f32.mrf.mxu1  ;;  %3047 = vst.msk [vmem:[%s4407_s30 + $0x80] sm:$0xf] %vm3014_vm4, %v3432_v44  ;;  %v2771_v2 = vmax.f32 %v2716_v60, 0.0  ;;  %v2721_v34 = vadd.f32 %v4396_v58, %v2660_v52  ;;  %v2658_v1 = vadd.f32 %v2544_v15, %v1974_v63  ;;  %v1977_v18 = vadd.f32 %v3758_v62, %v4358_v13 }
 0x19a   : > { %v3435_v30 = vpack.c.bf16 %v2773_v25, %v2773_v25  ;;  %v1863_v43 = vpop.f32.mrf.mxu0 }
 0x19b   : > { %v2547_v29 = vpop.f32.mrf.mxu1  ;;  %v3433_v47 = vpack.c.bf16 %v2771_v2, %v2771_v2  ;;  %v2776_v46 = vmax.f32 %v2721_v34, 0.0  ;;  %v2719_v7 = vadd.f32 %v4396_v58, %v2658_v1  ;;  %v2661_v4 = vadd.f32 %v3822_v23, %v1977_v18 }
 0x19c   : > { %3050 = vst.msk [vmem:[%s4407_s30 + $0x8c] sm:$0xf] %vm3014_vm4, %v3435_v30  ;;  %v1975_v49 = vadd.f32 %v1863_v43, %v4360_v19  ;;  %v3761_v5 = vpop.f32.mrf.mxu0  ;;  %v4638_v30 = vld [vmem:[#allocation2_spill] sm:$0xff] }
 0x19d   : > { %v3825_v35 = vpop.f32.mrf.mxu1  ;;  %3048 = vst.msk [vmem:[%s4407_s30 + $0x84] sm:$0xf] %vm3014_vm4, %v3433_v47  ;;  %v3438_v11 = vpack.c.bf16 %v2776_v46, %v2776_v46  ;;  %v2774_v13 = vmax.f32 %v2719_v7, 0.0  ;;  %v2722_v33 = vadd.f32 %v4396_v58, %v2661_v4  ;;  %v1980_v51 = vadd.f32 %v3761_v5, %v4362_v26 }
 0x19e   : > { %v2659_v53 = vadd.f32 %v2547_v29, %v1975_v49  ;;  %v1876_v3 = vpop.f32.mrf.mxu0  ;;  %v4639_v49 = vld [vmem:[#allocation3_spill] sm:$0xff] }
 0x19f   : > { %v2560_v39 = vpop.f32.mrf.mxu1  ;;  %3053 = vst.msk [vmem:[%s4407_s30 + $0x98] sm:$0xf] %vm3014_vm4, %v3438_v11  ;;  %v3436_v9 = vpack.c.bf16 %v2774_v13, %v2774_v13  ;;  %v2777_v21 = vmax.f32 %v2722_v33, 0.0  ;;  %v2664_v19 = vadd.f32 %v3825_v35, %v1980_v51  ;;  %v1978_v6 = vadd.f32 %v1876_v3, %v4364_v32 }
 0x1a0   : > { %v2720_v14 = vadd.f32 %v4396_v58, %v2659_v53  ;;  %v3762_v8 = vpop.f32.mrf.mxu0 }
 0x1a1   : > { %v3826_v28 = vpop.f32.mrf.mxu1  ;;  %3051 = vst.msk [vmem:[%s4407_s30 + $0x90] sm:$0xf] %vm3014_vm4, %v3436_v9  ;;  %v3439_v12 = vpack.c.bf16 %v2777_v21, %v2777_v21  ;;  %v2725_v26 = vadd.f32 %v4396_v58, %v2664_v19  ;;  %v2662_v54 = vadd.f32 %v2560_v39, %v1978_v6  ;;  %v1981_v45 = vadd.f32 %v3762_v8, %v4366_v41  ;;  %v4640_v39 = vld [vmem:[#allocation4_spill] sm:$0xff] }
 0x1a2   : > { %v2775_v37 = vmax.f32 %v2720_v14, 0.0  ;;  %v1879_v59 = vpop.f32.mrf.mxu0 }
 0x1a3   : > { %v2563_v24 = vpop.f32.mrf.mxu1  ;;  %3054 = vst.msk [vmem:[%s4407_s30 + $0x9c] sm:$0xf] %vm3014_vm4, %v3439_v12  ;;  %v2780_v32 = vmax.f32 %v2725_v26, 0.0  ;;  %v2723_v17 = vadd.f32 %v4396_v58, %v2662_v54  ;;  %v2665_v16 = vadd.f32 %v3826_v28, %v1981_v45  ;;  %v1979_v50 = vadd.f32 %v1879_v59, %v4368_v48  ;;  %v4641_v28 = vld [vmem:[#allocation5_spill] sm:$0xff] }
 0x1a4   : > { %v3437_v22 = vpack.c.bf16 %v2775_v37, %v2775_v37  ;;  %v3765_v57 = vpop.f32.mrf.mxu0 }
 0x1a5   : > { %v3829_v38 = vpop.f32.mrf.mxu1  ;;  %v3442_v40 = vpack.c.bf16 %v2780_v32, %v2780_v32  ;;  %v2778_v31 = vmax.f32 %v2723_v17, 0.0  ;;  %v2726_v41 = vadd.f32 %v4396_v58, %v2665_v16  ;;  %v2663_v36 = vadd.f32 %v2563_v24, %v1979_v50  ;;  %v4642_v32 = vld [vmem:[#allocation6_spill] sm:$0xff] }
 0x1a6   : > { %3052 = vst.msk [vmem:[%s4407_s30 + $0x94] sm:$0xf] %vm3014_vm4, %v3437_v22  ;;  %v1984_v27 = vadd.f32 %v3765_v57, %v4370_v56  ;;  %v1892_v55 = vpop.f32.mrf.mxu0 }
 0x1a7   : > { %v2576_v61 = vpop.f32.mrf.mxu1  ;;  %3057 = vst.msk [vmem:[%s4407_s30 + $0xa8] sm:$0xf] %vm3014_vm4, %v3442_v40  ;;  %v3440_v20 = vpack.c.bf16 %v2778_v31, %v2778_v31  ;;  %v2781_v48 = vmax.f32 %v2726_v41, 0.0  ;;  %v2724_v42 = vadd.f32 %v4396_v58, %v2663_v36  ;;  %v1982_v15 = vadd.f32 %v1892_v55, %v4372_v0  ;;  %v4643_v31 = vld [vmem:[#allocation7_spill] sm:$0xff] }
 0x1a8   : > { %v2668_v44 = vadd.f32 %v3829_v38, %v1984_v27  ;;  %v3766_v60 = vpop.f32.mrf.mxu0 }
 0x1a9   : > { %v3830_v52 = vpop.f32.mrf.mxu1  ;;  %3055 = vst.msk [vmem:[%s4407_s30 + $0xa0] sm:$0xf] %vm3014_vm4, %v3440_v20  ;;  %v3443_v63 = vpack.c.bf16 %v2781_v48, %v2781_v48  ;;  %v2779_v25 = vmax.f32 %v2724_v42, 0.0  ;;  %v2666_v56 = vadd.f32 %v2576_v61, %v1982_v15  ;;  %v1985_v62 = vadd.f32 %v3766_v60, %v4374_v10  ;;  %v4644_v42 = vld [vmem:[#allocation8_spill] sm:$0xff] }
 0x1aa   : > { %v2729_v23 = vadd.f32 %v4396_v58, %v2668_v44  ;;  %v1895_v2 = vpop.f32.mrf.mxu0 }
 0x1ab   : > { %v2579_v34 = vpop.f32.mrf.mxu1  ;;  %3058 = vst.msk [vmem:[%s4407_s30 + $0xac] sm:$0xf] %vm3014_vm4, %v3443_v63  ;;  %v3441_v1 = vpack.c.bf16 %v2779_v25, %v2779_v25  ;;  %v2727_v0 = vadd.f32 %v4396_v58, %v2666_v56  ;;  %v2669_v18 = vadd.f32 %v3830_v52, %v1985_v62  ;;  %v1983_v43 = vadd.f32 %v1895_v2, %v4638_v30 }
 0x1ac   : > { %v2784_v29 = vmax.f32 %v2729_v23, 0.0  ;;  %v3769_v47 = vpop.f32.mrf.mxu0 }
 0x1ad   : > { %v3833_v46 = vpop.f32.mrf.mxu1  ;;  %3056 = vst.msk [vmem:[%s4407_s30 + $0xa4] sm:$0xf] %vm3014_vm4, %v3441_v1  ;;  %v2782_v10 = vmax.f32 %v2727_v0, 0.0  ;;  %v2730_v7 = vadd.f32 %v4396_v58, %v2669_v18  ;;  %v2667_v4 = vadd.f32 %v2579_v34, %v1983_v43  ;;  %v1988_v5 = vadd.f32 %v3769_v47, %v4639_v49  ;;  %v4645_v0 = vld [vmem:[#allocation9_spill] sm:$0xff] }
 0x1ae   : > { %v3446_v35 = vpack.c.bf16 %v2784_v29, %v2784_v29  ;;  %v1908_v11 = vpop.f32.mrf.mxu0 }
 0x1af   : > { %v2592_v13 = vpop.f32.mrf.mxu1  ;;  %v3444_v33 = vpack.c.bf16 %v2782_v10, %v2782_v10  ;;  %v2785_v51 = vmax.f32 %v2730_v7, 0.0  ;;  %v2728_v53 = vadd.f32 %v4396_v58, %v2667_v4  ;;  %v2672_v3 = vadd.f32 %v3833_v46, %v1988_v5 }
 0x1b0   : > { %3061 = vst.msk [vmem:[%s4407_s30 + $0xb8] sm:$0xf] %vm3014_vm4, %v3446_v35  ;;  %v1986_v9 = vadd.f32 %v1908_v11, %v4640_v39  ;;  %v3770_v21 = vpop.f32.mrf.mxu0 }
 0x1b1   : > { %v3834_v19 = vpop.f32.mrf.mxu1  ;;  %3059 = vst.msk [vmem:[%s4407_s30 + $0xb0] sm:$0xf] %vm3014_vm4, %v3444_v33  ;;  %v3447_v6 = vpack.c.bf16 %v2785_v51, %v2785_v51  ;;  %v2783_v14 = vmax.f32 %v2728_v53, 0.0  ;;  %v2733_v8 = vadd.f32 %v4396_v58, %v2672_v3  ;;  %v1989_v12 = vadd.f32 %v3770_v21, %v4641_v28 }
 0x1b2   : > { %v2670_v26 = vadd.f32 %v2592_v13, %v1986_v9  ;;  %v1911_v54 = vpop.f32.mrf.mxu0 }
 0x1b3   : > { %v2595_v45 = vpop.f32.mrf.mxu1  ;;  %3062 = vst.msk [vmem:[%s4407_s30 + $0xbc] sm:$0xf] %vm3014_vm4, %v3447_v6  ;;  %v3445_v37 = vpack.c.bf16 %v2783_v14, %v2783_v14  ;;  %v2788_v59 = vmax.f32 %v2733_v8, 0.0  ;;  %v2673_v24 = vadd.f32 %v3834_v19, %v1989_v12  ;;  %v1987_v17 = vadd.f32 %v1911_v54, %v4642_v32 }
 0x1b4   : > { %v2731_v16 = vadd.f32 %v4396_v58, %v2670_v26  ;;  %v3773_v50 = vpop.f32.mrf.mxu0 }
 0x1b5   : > { %v3837_v22 = vpop.f32.mrf.mxu1  ;;  %3060 = vst.msk [vmem:[%s4407_s30 + $0xb4] sm:$0xf] %vm3014_vm4, %v3445_v37  ;;  %v3450_v57 = vpack.c.bf16 %v2788_v59, %v2788_v59  ;;  %v2734_v38 = vadd.f32 %v4396_v58, %v2673_v24  ;;  %v2671_v40 = vadd.f32 %v2595_v45, %v1987_v17  ;;  %v1992_v41 = vadd.f32 %v3773_v50, %v4643_v31 }
 0x1b6   : > { %v2786_v36 = vmax.f32 %v2731_v16, 0.0  ;;  %v1924_v27 = vpop.f32.mrf.mxu0 }
 0x1b7   : > { %v2608_v55 = vpop.f32.mrf.mxu1  ;;  %3065 = vst.msk [vmem:[%s4407_s30 + $0xc8] sm:$0xf] %vm3014_vm4, %v3450_v57  ;;  %v2789_v61 = vmax.f32 %v2734_v38, 0.0  ;;  %v2732_v20 = vadd.f32 %v4396_v58, %v2671_v40  ;;  %v2676_v48 = vadd.f32 %v3837_v22, %v1992_v41  ;;  %v1990_v15 = vadd.f32 %v1924_v27, %v4644_v42 }
 0x1b8   : > { %v3448_v44 = vpack.c.bf16 %v2786_v36, %v2786_v36  ;;  %v3774_v60 = vpop.f32.mrf.mxu0 }
 0x1b9   : > { %v3838_v52 = vpop.f32.mrf.mxu1  ;;  %v3451_v63 = vpack.c.bf16 %v2789_v61, %v2789_v61  ;;  %v2787_v25 = vmax.f32 %v2732_v20, 0.0  ;;  %v2737_v56 = vadd.f32 %v4396_v58, %v2676_v48  ;;  %v2674_v62 = vadd.f32 %v2608_v55, %v1990_v15 }
 0x1ba   : > { %3063 = vst.msk [vmem:[%s4407_s30 + $0xc0] sm:$0xf] %vm3014_vm4, %v3448_v44  ;;  %v1927_v23 = vpop.f32.mrf.mxu0 }
 0x1bb   : > { %3066 = vst.msk [vmem:[%s4407_s30 + $0xcc] sm:$0xf] %vm3014_vm4, %v3451_v63  ;;  %v3449_v2 = vpack.c.bf16 %v2787_v25, %v2787_v25  ;;  %v2792_v34 = vmax.f32 %v2737_v56, 0.0  ;;  %v2735_v1 = vadd.f32 %v4396_v58, %v2674_v62  ;;  %v1991_v18 = vadd.f32 %v1927_v23, %v4645_v0  ;;  %v2611_v30 = vpop.f32.mrf.mxu1 }
 0x1bd   : > { %3064 = vst.msk [vmem:[%s4407_s30 + $0xc4] sm:$0xf] %vm3014_vm4, %v3449_v2  ;;  %v3454_v43 = vpack.c.bf16 %v2792_v34, %v2792_v34  ;;  %v2790_v29 = vmax.f32 %v2735_v1, 0.0  ;;  %v2675_v47 = vadd.f32 %v2611_v30, %v1991_v18 }
 0x1bf   : > { %3069 = vst.msk [vmem:[%s4407_s30 + $0xd8] sm:$0xf] %vm3014_vm4, %v3454_v43  ;;  %v3452_v46 = vpack.c.bf16 %v2790_v29, %v2790_v29  ;;  %v2736_v10 = vadd.f32 %v4396_v58, %v2675_v47 }
 0x1c1   : > { %3067 = vst.msk [vmem:[%s4407_s30 + $0xd0] sm:$0xf] %vm3014_vm4, %v3452_v46  ;;  %v2791_v7 = vmax.f32 %v2736_v10, 0.0 }
 0x1c3   : > { %v3453_v4 = vpack.c.bf16 %v2791_v7, %v2791_v7 }
 0x1c5   : > { %3068 = vst.msk [vmem:[%s4407_s30 + $0xd4] sm:$0xf] %vm3014_vm4, %v3453_v4 }
 0x1c6 PF: > { %s13_s12 = sadd.s32 1, %s3929_s12  }
 0x1c7   : > { %p10_p4 = scmp.ge.s32.totalorder %s13_s12, 4  }
 0x1c9   :  { %12 = sbr.rel (!%p10_p4) target bundleno = 1 (0x1), region = 65 }

// kernel: dqn_forward.7
= control target key start
LH: loop header
LB: loop body
LE: loop exit
PB: predicated region body
PF: predicated region fallthrough
CT: control target
= control target key end

     0   :  { %vm4847_vm0 = vcmask 523264   ;;  %s11144_s1 = inlined_call_operand.vmem [shape: bf16[3136,512], index: 1, kind: input, shape index: {}]   ;;  %s11145_s0 = inlined_call_operand.vmem [shape: bf16[8,3136], index: 0, kind: input, shape index: {}]   ;;  %s11146_s2 = inlined_call_operand.vmem [shape: f32[1,512], index: 2, kind: input, shape index: {}]   ;;  %s11147_s3 = inlined_call_operand.vmem [shape: bf16[512,128], index: 3, kind: input, shape index: {}]   ;;  %s11148_s4 = inlined_call_operand.vmem [shape: f32[1,128], index: 4, kind: input, shape index: {}]   ;;  %s11149_s5 = inlined_call_operand.vmem [shape: f32[8,128], index: 5, kind: output, shape index: {}]  }
   0x1   :  { %v7162_v0 = vld [vmem:[%s11144_s1 + $0xe4] ss:$16 sps:$4 sm:$0xff]   ;;  %v7166_v2 = vld [vmem:[%s11144_s1 + $0xe0] ss:$16 sps:$4 sm:$0xff]   ;;  %v22_v48 = vld [vmem:[%s11145_s0 + $0x8] sm:$0xff] }
   0x2   :  { %v7164_v1 = vld [vmem:[%s11144_s1 + $0x2e4] ss:$16 sps:$4 sm:$0xff]   ;;  %4851 = vmatprep.subr.bf16.mxu0 %v7162_v0  ;;  %v7167_v3 = vld [vmem:[%s11144_s1 + $0x2e0] ss:$16 sps:$4 sm:$0xff]   ;;  %v8580_v51 = vcombine.high %v22_v48, %v22_v48 }
   0x3   :  { %4892 = vmatprep.subr.bf16.mxu1 %v7164_v1  ;;  %v7168_v4 = vld [vmem:[%s11144_s1 + $0xc4] ss:$16 sps:$4 sm:$0xff]   ;;  %4852 = vmatpush1.bf16.msra.mxu0 %v7166_v2  ;;  %v7172_v6 = vld [vmem:[%s11144_s1 + $0xc0] ss:$16 sps:$4 sm:$0xff]  }
   0x4   :  { %4893 = vmatpush1.bf16.msra.mxu1 %v7167_v3  ;;  %v7170_v5 = vld [vmem:[%s11144_s1 + $0x2c4] ss:$16 sps:$4 sm:$0xff]   ;;  %4853 = vmatprep.subr.bf16.mxu0 %v7168_v4  ;;  %v7173_v7 = vld [vmem:[%s11144_s1 + $0x2c0] ss:$16 sps:$4 sm:$0xff]  }
   0x5   :  { %4894 = vmatprep.subr.bf16.mxu1 %v7170_v5  ;;  %v7174_v8 = vld [vmem:[%s11144_s1 + $0xa4] ss:$16 sps:$4 sm:$0xff]   ;;  %v7178_v10 = vld [vmem:[%s11144_s1 + $0xa0] ss:$16 sps:$4 sm:$0xff]   ;;  %4924 = vmatprep.mubr.bf16.mxu1 %v8580_v51 }
   0x6   :  { %v7176_v9 = vld [vmem:[%s11144_s1 + $0x2a4] ss:$16 sps:$4 sm:$0xff]   ;;  %v7179_v11 = vld [vmem:[%s11144_s1 + $0x2a0] ss:$16 sps:$4 sm:$0xff]  }
   0x7   :  { %4854 = vmatpush1.bf16.msra.mxu0 %v7172_v6  ;;  %v7180_v12 = vld [vmem:[%s11144_s1 + $0x84] ss:$16 sps:$4 sm:$0xff]   ;;  %v7184_v14 = vld [vmem:[%s11144_s1 + $0x80] ss:$16 sps:$4 sm:$0xff]  }
   0x8   :  { %4895 = vmatpush1.bf16.msra.mxu1 %v7173_v7  ;;  %4855 = vmatprep.subr.bf16.mxu0 %v7174_v8  ;;  %v7182_v13 = vld [vmem:[%s11144_s1 + $0x284] ss:$16 sps:$4 sm:$0xff]   ;;  %v7185_v15 = vld [vmem:[%s11144_s1 + $0x280] ss:$16 sps:$4 sm:$0xff]   ;;  %v8640_v7 = vcombine.low %v22_v48, %v22_v48 }
   0x9   :  { %4896 = vmatprep.subr.bf16.mxu1 %v7176_v9  ;;  %v7186_v16 = vld [vmem:[%s11144_s1 + $0x64] ss:$16 sps:$4 sm:$0xff]   ;;  %v7190_v18 = vld [vmem:[%s11144_s1 + $0x60] ss:$16 sps:$4 sm:$0xff]  }
   0xa   :  { %v7188_v17 = vld [vmem:[%s11144_s1 + $0x264] ss:$16 sps:$4 sm:$0xff]   ;;  %v7191_v19 = vld [vmem:[%s11144_s1 + $0x260] ss:$16 sps:$4 sm:$0xff]  }
   0xb   :  { %4856 = vmatpush1.bf16.msra.mxu0 %v7178_v10  ;;  %v7192_v20 = vld [vmem:[%s11144_s1 + $0x44] ss:$16 sps:$4 sm:$0xff]   ;;  %v7196_v22 = vld [vmem:[%s11144_s1 + $0x40] ss:$16 sps:$4 sm:$0xff]  }
   0xc   :  { %4897 = vmatpush1.bf16.msra.mxu1 %v7179_v11  ;;  %4857 = vmatprep.subr.bf16.mxu0 %v7180_v12  ;;  %v7194_v21 = vld [vmem:[%s11144_s1 + $0x244] ss:$16 sps:$4 sm:$0xff]   ;;  %v7197_v23 = vld [vmem:[%s11144_s1 + $0x240] ss:$16 sps:$4 sm:$0xff]  }
   0xd   :  { %4898 = vmatprep.subr.bf16.mxu1 %v7182_v13  ;;  %v7198_v24 = vld [vmem:[%s11144_s1 + $0x24] ss:$16 sps:$4 sm:$0xff]   ;;  %v7202_v26 = vld [vmem:[%s11144_s1 + $0x20] ss:$16 sps:$4 sm:$0xff]  }
   0xe   :  { %v7200_v25 = vld [vmem:[%s11144_s1 + $0x224] ss:$16 sps:$4 sm:$0xff]   ;;  %v7203_v27 = vld [vmem:[%s11144_s1 + $0x220] ss:$16 sps:$4 sm:$0xff]  }
   0xf   :  { %4858 = vmatpush1.bf16.msra.mxu0 %v7184_v14  ;;  %v7204_v28 = vld [vmem:[%s11144_s1 + $0x4] ss:$16 sps:$4 sm:$0xff]   ;;  %v7208_v30 = vld [vmem:[%s11144_s1] ss:$16 sps:$4 sm:$0xff]  }
  0x10   :  { %4899 = vmatpush1.bf16.msra.mxu1 %v7185_v15  ;;  %4859 = vmatprep.subr.bf16.mxu0 %v7186_v16  ;;  %v7206_v29 = vld [vmem:[%s11144_s1 + $0x204] ss:$16 sps:$4 sm:$0xff]   ;;  %v7209_v31 = vld [vmem:[%s11144_s1 + $0x200] ss:$16 sps:$4 sm:$0xff]  }
  0x11   :  { %4900 = vmatprep.subr.bf16.mxu1 %v7188_v17  ;;  %v7210_v32 = vld [vmem:[%s11144_s1 + $0x1e4] ss:$16 sps:$4 sm:$0xff]   ;;  %v7214_v34 = vld [vmem:[%s11144_s1 + $0x1e0] ss:$16 sps:$4 sm:$0xff]  }
  0x12   :  { %v7212_v33 = vld [vmem:[%s11144_s1 + $0x3e4] ss:$16 sps:$4 sm:$0xff]   ;;  %v7215_v35 = vld [vmem:[%s11144_s1 + $0x3e0] ss:$16 sps:$4 sm:$0xff]  }
  0x13   :  { %4860 = vmatpush1.bf16.msra.mxu0 %v7190_v18  ;;  %v7216_v36 = vld [vmem:[%s11144_s1 + $0x1c4] ss:$16 sps:$4 sm:$0xff]   ;;  %v7220_v38 = vld [vmem:[%s11144_s1 + $0x1c0] ss:$16 sps:$4 sm:$0xff]  }
  0x14   :  { %4901 = vmatpush1.bf16.msra.mxu1 %v7191_v19  ;;  %4861 = vmatprep.subr.bf16.mxu0 %v7192_v20  ;;  %v7218_v37 = vld [vmem:[%s11144_s1 + $0x3c4] ss:$16 sps:$4 sm:$0xff]   ;;  %v7221_v39 = vld [vmem:[%s11144_s1 + $0x3c0] ss:$16 sps:$4 sm:$0xff]  }
  0x15   :  { %4902 = vmatprep.subr.bf16.mxu1 %v7194_v21  ;;  %v7222_v40 = vld [vmem:[%s11144_s1 + $0x1a4] ss:$16 sps:$4 sm:$0xff]   ;;  %v7226_v42 = vld [vmem:[%s11144_s1 + $0x1a0] ss:$16 sps:$4 sm:$0xff]  }
  0x16   :  { %v7224_v41 = vld [vmem:[%s11144_s1 + $0x3a4] ss:$16 sps:$4 sm:$0xff]   ;;  %v7227_v43 = vld [vmem:[%s11144_s1 + $0x3a0] ss:$16 sps:$4 sm:$0xff]  }
  0x17   :  { %4862 = vmatpush1.bf16.msra.mxu0 %v7196_v22  ;;  %v7228_v44 = vld [vmem:[%s11144_s1 + $0x184] ss:$16 sps:$4 sm:$0xff]   ;;  %v7232_v49 = vld [vmem:[%s11144_s1 + $0x180] ss:$16 sps:$4 sm:$0xff]  }
  0x18   :  { %4903 = vmatpush1.bf16.msra.mxu1 %v7197_v23  ;;  %4863 = vmatprep.subr.bf16.mxu0 %v7198_v24  ;;  %v7230_v45 = vld [vmem:[%s11144_s1 + $0x384] ss:$16 sps:$4 sm:$0xff]   ;;  %v7233_v50 = vld [vmem:[%s11144_s1 + $0x380] ss:$16 sps:$4 sm:$0xff]  }
  0x19   :  { %4904 = vmatprep.subr.bf16.mxu1 %v7200_v25  ;;  %v21_v46 = vld [vmem:[%s11145_s0] sm:$0xff] }
  0x1a   :  { %v8569_v47 = vcombine.high %v21_v46, %v21_v46  ;;  %v7234_v52 = vld [vmem:[%s11144_s1 + $0x164] ss:$16 sps:$4 sm:$0xff]   ;;  %v7238_v54 = vld [vmem:[%s11144_s1 + $0x160] ss:$16 sps:$4 sm:$0xff]   ;;  %v8638_v6 = vcombine.low %v21_v46, %v21_v46 }
  0x1b   :  { %4864 = vmatpush1.bf16.msra.mxu0 %v7202_v26  ;;  %v7236_v53 = vld [vmem:[%s11144_s1 + $0x364] ss:$16 sps:$4 sm:$0xff]   ;;  %v7239_v55 = vld [vmem:[%s11144_s1 + $0x360] ss:$16 sps:$4 sm:$0xff]  }
  0x1c   :  { %4905 = vmatpush1.bf16.msra.mxu1 %v7203_v27  ;;  %4865 = vmatprep.subr.bf16.mxu0 %v7204_v28  ;;  %v7240_v56 = vld [vmem:[%s11144_s1 + $0x144] ss:$16 sps:$4 sm:$0xff]   ;;  %v7244_v58 = vld [vmem:[%s11144_s1 + $0x140] ss:$16 sps:$4 sm:$0xff]  }
  0x1d   :  { %4906 = vmatprep.subr.bf16.mxu1 %v7206_v29  ;;  %4883 = vmatprep.mubr.bf16.mxu0 %v8569_v47  ;;  %v7242_v57 = vld [vmem:[%s11144_s1 + $0x344] ss:$16 sps:$4 sm:$0xff]   ;;  %v7245_v59 = vld [vmem:[%s11144_s1 + $0x340] ss:$16 sps:$4 sm:$0xff]  }
  0x1e   :  { %v7246_v60 = vld [vmem:[%s11144_s1 + $0x124] ss:$16 sps:$4 sm:$0xff]   ;;  %v7250_v62 = vld [vmem:[%s11144_s1 + $0x120] ss:$16 sps:$4 sm:$0xff]  }
  0x1f   :  { %4866 = vmatpush1.bf16.msra.mxu0 %v7208_v30  ;;  %v7248_v61 = vld [vmem:[%s11144_s1 + $0x324] ss:$16 sps:$4 sm:$0xff]   ;;  %v7251_v63 = vld [vmem:[%s11144_s1 + $0x320] ss:$16 sps:$4 sm:$0xff]  }
  0x20   :  { %4907 = vmatpush1.bf16.msra.mxu1 %v7209_v31  ;;  %4867 = vmatprep.subr.bf16.mxu0 %v7210_v32  ;;  %v7252_v0 = vld [vmem:[%s11144_s1 + $0x104] ss:$16 sps:$4 sm:$0xff]   ;;  %v7256_v2 = vld [vmem:[%s11144_s1 + $0x100] ss:$16 sps:$4 sm:$0xff]  }
  0x21   :  { %4908 = vmatprep.subr.bf16.mxu1 %v7212_v33  ;;  %v7254_v1 = vld [vmem:[%s11144_s1 + $0x304] ss:$16 sps:$4 sm:$0xff]   ;;  %v7257_v3 = vld [vmem:[%s11144_s1 + $0x300] ss:$16 sps:$4 sm:$0xff]   ;;  %v8724_v33 = vld [vmem:[%s11145_s0 + $0x18] sm:$0xff] }
  0x22   :  { %v7264_v4 = vld [vmem:[%s11144_s1 + $0x4e4] ss:$16 sps:$4 sm:$0xff]   ;;  %v7262_v8 = vld [vmem:[%s11144_s1 + $0x4e0] ss:$16 sps:$4 sm:$0xff]  }
  0x23   :  { %4868 = vmatpush2.bf16.msra.mxu0 %v7214_v34  ;;  %v7267_v5 = vld [vmem:[%s11144_s1 + $0x6e4] ss:$16 sps:$4 sm:$0xff]   ;;  %v7265_v9 = vld [vmem:[%s11144_s1 + $0x6e0] ss:$16 sps:$4 sm:$0xff]  }
  0x24   :  { %4909 = vmatpush2.bf16.msra.mxu1 %v7215_v35  ;;  %4869 = vmatprep.subr.bf16.mxu0 %v7216_v36  ;;  %v7270_v10 = vld [vmem:[%s11144_s1 + $0x4c4] ss:$16 sps:$4 sm:$0xff]   ;;  %v7268_v12 = vld [vmem:[%s11144_s1 + $0x4c0] ss:$16 sps:$4 sm:$0xff]  }
  0x25   :  { %4910 = vmatprep.subr.bf16.mxu1 %v7218_v37  ;;  %v7273_v11 = vld [vmem:[%s11144_s1 + $0x6c4] ss:$16 sps:$4 sm:$0xff]   ;;  %v7271_v13 = vld [vmem:[%s11144_s1 + $0x6c0] ss:$16 sps:$4 sm:$0xff]   ;;  %v8738_v37 = vcombine.high %v8724_v33, %v8724_v33 }
  0x26   :  { %v7276_v14 = vld [vmem:[%s11144_s1 + $0x4a4] ss:$16 sps:$4 sm:$0xff]   ;;  %v7274_v16 = vld [vmem:[%s11144_s1 + $0x4a0] ss:$16 sps:$4 sm:$0xff]  }
  0x27   :  { %4870 = vmatpush2.bf16.msra.mxu0 %v7220_v38  ;;  %v7279_v15 = vld [vmem:[%s11144_s1 + $0x6a4] ss:$16 sps:$4 sm:$0xff]   ;;  %v7277_v17 = vld [vmem:[%s11144_s1 + $0x6a0] ss:$16 sps:$4 sm:$0xff]  }
  0x28   :  { %4911 = vmatpush2.bf16.msra.mxu1 %v7221_v39  ;;  %4871 = vmatprep.subr.bf16.mxu0 %v7222_v40  ;;  %v7282_v18 = vld [vmem:[%s11144_s1 + $0x484] ss:$16 sps:$4 sm:$0xff]   ;;  %v7280_v20 = vld [vmem:[%s11144_s1 + $0x480] ss:$16 sps:$4 sm:$0xff]  }
  0x29   :  { %4912 = vmatprep.subr.bf16.mxu1 %v7224_v41  ;;  %v7285_v19 = vld [vmem:[%s11144_s1 + $0x684] ss:$16 sps:$4 sm:$0xff]   ;;  %v7283_v21 = vld [vmem:[%s11144_s1 + $0x680] ss:$16 sps:$4 sm:$0xff]  }
  0x2a   :  { %v7288_v22 = vld [vmem:[%s11144_s1 + $0x464] ss:$16 sps:$4 sm:$0xff]   ;;  %v7286_v24 = vld [vmem:[%s11144_s1 + $0x460] ss:$16 sps:$4 sm:$0xff]  }
  0x2b   :  { %4872 = vmatpush2.bf16.msra.mxu0 %v7226_v42  ;;  %v7291_v23 = vld [vmem:[%s11144_s1 + $0x664] ss:$16 sps:$4 sm:$0xff]   ;;  %v7289_v25 = vld [vmem:[%s11144_s1 + $0x660] ss:$16 sps:$4 sm:$0xff]  }
  0x2c   :  { %4913 = vmatpush2.bf16.msra.mxu1 %v7227_v43  ;;  %4873 = vmatprep.subr.bf16.mxu0 %v7228_v44  ;;  %v7294_v26 = vld [vmem:[%s11144_s1 + $0x444] ss:$16 sps:$4 sm:$0xff]   ;;  %v7292_v28 = vld [vmem:[%s11144_s1 + $0x440] ss:$16 sps:$4 sm:$0xff]  }
  0x2d   :  { %4914 = vmatprep.subr.bf16.mxu1 %v7230_v45  ;;  %v7297_v27 = vld [vmem:[%s11144_s1 + $0x644] ss:$16 sps:$4 sm:$0xff]   ;;  %v7295_v29 = vld [vmem:[%s11144_s1 + $0x640] ss:$16 sps:$4 sm:$0xff]  }
  0x2e   :  { %v7300_v30 = vld [vmem:[%s11144_s1 + $0x424] ss:$16 sps:$4 sm:$0xff]   ;;  %v7298_v34 = vld [vmem:[%s11144_s1 + $0x420] ss:$16 sps:$4 sm:$0xff]  }
  0x2f   :  { %4874 = vmatpush2.bf16.msra.mxu0 %v7232_v49  ;;  %v7303_v31 = vld [vmem:[%s11144_s1 + $0x624] ss:$16 sps:$4 sm:$0xff]   ;;  %v7301_v35 = vld [vmem:[%s11144_s1 + $0x620] ss:$16 sps:$4 sm:$0xff]  }
  0x30   :  { %4915 = vmatpush2.bf16.msra.mxu1 %v7233_v50  ;;  %4875 = vmatprep.subr.bf16.mxu0 %v7234_v52  ;;  %v8719_v32 = vld [vmem:[%s11145_s0 + $0x10] sm:$0xff] }
  0x31   :  { %4916 = vmatprep.subr.bf16.mxu1 %v7236_v53  ;;  %v8734_v36 = vcombine.high %v8719_v32, %v8719_v32  ;;  %v7306_v38 = vld [vmem:[%s11144_s1 + $0x404] ss:$16 sps:$4 sm:$0xff]   ;;  %v7304_v40 = vld [vmem:[%s11144_s1 + $0x400] ss:$16 sps:$4 sm:$0xff]  }
  0x32   :  { %v7309_v39 = vld [vmem:[%s11144_s1 + $0x604] ss:$16 sps:$4 sm:$0xff]   ;;  %v7307_v41 = vld [vmem:[%s11144_s1 + $0x600] ss:$16 sps:$4 sm:$0xff]  }
  0x33   :  { %4876 = vmatpush2.bf16.msra.mxu0 %v7238_v54  ;;  %v7312_v42 = vld [vmem:[%s11144_s1 + $0x5e4] ss:$16 sps:$4 sm:$0xff]   ;;  %v7310_v44 = vld [vmem:[%s11144_s1 + $0x5e0] ss:$16 sps:$4 sm:$0xff]  }
  0x34   :  { %4917 = vmatpush2.bf16.msra.mxu1 %v7239_v55  ;;  %4877 = vmatprep.subr.bf16.mxu0 %v7240_v56  ;;  %v7315_v43 = vld [vmem:[%s11144_s1 + $0x7e4] ss:$16 sps:$4 sm:$0xff]   ;;  %v7313_v45 = vld [vmem:[%s11144_s1 + $0x7e0] ss:$16 sps:$4 sm:$0xff]  }
  0x35   :  { %4918 = vmatprep.subr.bf16.mxu1 %v7242_v57  ;;  %v7318_v46 = vld [vmem:[%s11144_s1 + $0x5c4] ss:$16 sps:$4 sm:$0xff]   ;;  %v7316_v49 = vld [vmem:[%s11144_s1 + $0x5c0] ss:$16 sps:$4 sm:$0xff]  }
  0x36   :  { %v7321_v48 = vld [vmem:[%s11144_s1 + $0x7c4] ss:$16 sps:$4 sm:$0xff]   ;;  %v7319_v50 = vld [vmem:[%s11144_s1 + $0x7c0] ss:$16 sps:$4 sm:$0xff]  }
  0x37   :  { %4878 = vmatpush2.bf16.msra.mxu0 %v7244_v58  ;;  %v7324_v52 = vld [vmem:[%s11144_s1 + $0x5a4] ss:$16 sps:$4 sm:$0xff]   ;;  %v7322_v54 = vld [vmem:[%s11144_s1 + $0x5a0] ss:$16 sps:$4 sm:$0xff]  }
  0x38   :  { %4919 = vmatpush2.bf16.msra.mxu1 %v7245_v59  ;;  %4879 = vmatprep.subr.bf16.mxu0 %v7246_v60  ;;  %v7327_v53 = vld [vmem:[%s11144_s1 + $0x7a4] ss:$16 sps:$4 sm:$0xff]   ;;  %v7325_v55 = vld [vmem:[%s11144_s1 + $0x7a0] ss:$16 sps:$4 sm:$0xff]  }
  0x39   :  { %4920 = vmatprep.subr.bf16.mxu1 %v7248_v61  ;;  %v7330_v56 = vld [vmem:[%s11144_s1 + $0x584] ss:$16 sps:$4 sm:$0xff]   ;;  %v7328_v58 = vld [vmem:[%s11144_s1 + $0x580] ss:$16 sps:$4 sm:$0xff]  }
  0x3a   :  { %v7333_v57 = vld [vmem:[%s11144_s1 + $0x784] ss:$16 sps:$4 sm:$0xff]   ;;  %v7331_v59 = vld [vmem:[%s11144_s1 + $0x780] ss:$16 sps:$4 sm:$0xff]  }
  0x3b   :  { %4880 = vmatpush2.bf16.msra.mxu0 %v7250_v62  ;;  %v7336_v60 = vld [vmem:[%s11144_s1 + $0x564] ss:$16 sps:$4 sm:$0xff]   ;;  %v7334_v62 = vld [vmem:[%s11144_s1 + $0x560] ss:$16 sps:$4 sm:$0xff]  }
  0x3c   :  { %4921 = vmatpush2.bf16.msra.mxu1 %v7251_v63  ;;  %4881 = vmatprep.subr.bf16.mxu0 %v7252_v0  ;;  %v7339_v61 = vld [vmem:[%s11144_s1 + $0x764] ss:$16 sps:$4 sm:$0xff]   ;;  %v7337_v63 = vld [vmem:[%s11144_s1 + $0x760] ss:$16 sps:$4 sm:$0xff]  }
  0x3d   :  { %4922 = vmatprep.subr.bf16.mxu1 %v7254_v1  ;;  %v7342_v0 = vld [vmem:[%s11144_s1 + $0x544] ss:$16 sps:$4 sm:$0xff]  }
  0x3e   :  { %v7345_v1 = vld [vmem:[%s11144_s1 + $0x744] ss:$16 sps:$4 sm:$0xff]  }
  0x3f   :  { %4882 = vmatpush2.bf16.msra.mxu0 %v7256_v2  ;;  %v7340_v2 = vld [vmem:[%s11144_s1 + $0x540] ss:$16 sps:$4 sm:$0xff]  }
  0x40   :  { %4923 = vmatpush2.bf16.msra.mxu1 %v7257_v3  ;;  %4933 = vmatprep.subr.bf16.mxu0 %v7264_v4  ;;  %v7343_v3 = vld [vmem:[%s11144_s1 + $0x740] ss:$16 sps:$4 sm:$0xff]   ;;  %v7348_v4 = vld [vmem:[%s11144_s1 + $0x524] ss:$16 sps:$4 sm:$0xff]  }
  0x41   :  { %4974 = vmatprep.subr.bf16.mxu1 %v7267_v5  ;;  %v7351_v5 = vld [vmem:[%s11144_s1 + $0x724] ss:$16 sps:$4 sm:$0xff]  }
  0x42   :  { %4884 = vmatmul.mubr.bf16.vlgmr.msra.gmra.mxu0 %v8638_v6 }
  0x43   :  { %4925 = vmatmul.mubr.bf16.vlgmr.msra.gmra.mxu1 %v8640_v7  ;;  %4934 = vmatpush1.bf16.msra.mxu0 %v7262_v8  ;;  %v7346_v8 = vld [vmem:[%s11144_s1 + $0x520] ss:$16 sps:$4 sm:$0xff]  }
  0x44   :  { %4975 = vmatpush1.bf16.msra.mxu1 %v7265_v9  ;;  %4935 = vmatprep.subr.bf16.mxu0 %v7270_v10  ;;  %v7349_v9 = vld [vmem:[%s11144_s1 + $0x720] ss:$16 sps:$4 sm:$0xff]   ;;  %v7354_v10 = vld [vmem:[%s11144_s1 + $0x504] ss:$16 sps:$4 sm:$0xff]  }
  0x45   :  { %4976 = vmatprep.subr.bf16.mxu1 %v7273_v11  ;;  %4965 = vmatprep.mubr.bf16.mxu0 %v8734_v36  ;;  %v7357_v11 = vld [vmem:[%s11144_s1 + $0x704] ss:$16 sps:$4 sm:$0xff]  }
  0x46   :  { %5006 = vmatprep.mubr.bf16.mxu1 %v8738_v37 }
  0x47   :  { %4936 = vmatpush1.bf16.msra.mxu0 %v7268_v12  ;;  %v7352_v12 = vld [vmem:[%s11144_s1 + $0x500] ss:$16 sps:$4 sm:$0xff]  }
  0x48   :  { %4977 = vmatpush1.bf16.msra.mxu1 %v7271_v13  ;;  %4937 = vmatprep.subr.bf16.mxu0 %v7276_v14  ;;  %v7355_v13 = vld [vmem:[%s11144_s1 + $0x700] ss:$16 sps:$4 sm:$0xff]   ;;  %v7364_v14 = vld [vmem:[%s11144_s1 + $0x8e4] ss:$16 sps:$4 sm:$0xff]  }
  0x49   :  { %4978 = vmatprep.subr.bf16.mxu1 %v7279_v15  ;;  %v7367_v15 = vld [vmem:[%s11144_s1 + $0xae4] ss:$16 sps:$4 sm:$0xff]  }
  0x4b   :  { %4938 = vmatpush1.bf16.msra.mxu0 %v7274_v16  ;;  %v8858_v16 = vcombine.low %v8719_v32, %v8719_v32  ;;  %v7382_v32 = vld [vmem:[%s11144_s1 + $0x884] ss:$16 sps:$4 sm:$0xff]  }
  0x4c   :  { %4979 = vmatpush1.bf16.msra.mxu1 %v7277_v17  ;;  %4939 = vmatprep.subr.bf16.mxu0 %v7282_v18  ;;  %v8862_v17 = vcombine.low %v8724_v33, %v8724_v33  ;;  %v7362_v18 = vld [vmem:[%s11144_s1 + $0x8e0] ss:$16 sps:$4 sm:$0xff]   ;;  %v7385_v33 = vld [vmem:[%s11144_s1 + $0xa84] ss:$16 sps:$4 sm:$0xff]  }
  0x4d   :  { %4980 = vmatprep.subr.bf16.mxu1 %v7285_v19  ;;  %v7365_v19 = vld [vmem:[%s11144_s1 + $0xae0] ss:$16 sps:$4 sm:$0xff]  }
  0x4f   :  { %4940 = vmatpush1.bf16.msra.mxu0 %v7280_v20  ;;  %v7370_v20 = vld [vmem:[%s11144_s1 + $0x8c4] ss:$16 sps:$4 sm:$0xff]  }
  0x50   :  { %4981 = vmatpush1.bf16.msra.mxu1 %v7283_v21  ;;  %4941 = vmatprep.subr.bf16.mxu0 %v7288_v22  ;;  %v7373_v21 = vld [vmem:[%s11144_s1 + $0xac4] ss:$16 sps:$4 sm:$0xff]  }
  0x51   :  { %4982 = vmatprep.subr.bf16.mxu1 %v7291_v23  ;;  %v8879_v22 = vld [vmem:[%s11145_s0 + $0x20] sm:$0xff]  ;;  %v8884_v23 = vld [vmem:[%s11145_s0 + $0x28] sm:$0xff] }
  0x53   :  { %4942 = vmatpush1.bf16.msra.mxu0 %v7286_v24  ;;  %v8888_v24 = vcombine.high %v8879_v22, %v8879_v22 }
  0x54   :  { %4983 = vmatpush1.bf16.msra.mxu1 %v7289_v25  ;;  %4943 = vmatprep.subr.bf16.mxu0 %v7294_v26  ;;  %v8892_v25 = vcombine.high %v8884_v23, %v8884_v23  ;;  %v7368_v26 = vld [vmem:[%s11144_s1 + $0x8c0] ss:$16 sps:$4 sm:$0xff]  }
  0x55   :  { %4984 = vmatprep.subr.bf16.mxu1 %v7297_v27  ;;  %v7371_v27 = vld [vmem:[%s11144_s1 + $0xac0] ss:$16 sps:$4 sm:$0xff]  }
  0x57   :  { %4944 = vmatpush1.bf16.msra.mxu0 %v7292_v28  ;;  %v7376_v28 = vld [vmem:[%s11144_s1 + $0x8a4] ss:$16 sps:$4 sm:$0xff]  }
  0x58   :  { %4985 = vmatpush1.bf16.msra.mxu1 %v7295_v29  ;;  %4945 = vmatprep.subr.bf16.mxu0 %v7300_v30  ;;  %v7379_v29 = vld [vmem:[%s11144_s1 + $0xaa4] ss:$16 sps:$4 sm:$0xff]   ;;  %v7374_v30 = vld [vmem:[%s11144_s1 + $0x8a0] ss:$16 sps:$4 sm:$0xff]  }
  0x59   :  { %4986 = vmatprep.subr.bf16.mxu1 %v7303_v31  ;;  %v7377_v31 = vld [vmem:[%s11144_s1 + $0xaa0] ss:$16 sps:$4 sm:$0xff]  }
  0x5b   :  { %4946 = vmatpush1.bf16.msra.mxu0 %v7298_v34  ;;  %v7380_v34 = vld [vmem:[%s11144_s1 + $0x880] ss:$16 sps:$4 sm:$0xff]  }
  0x5c   :  { %4987 = vmatpush1.bf16.msra.mxu1 %v7301_v35  ;;  %4947 = vmatprep.subr.bf16.mxu0 %v7306_v38  ;;  %v7383_v35 = vld [vmem:[%s11144_s1 + $0xa80] ss:$16 sps:$4 sm:$0xff]   ;;  %v7388_v38 = vld [vmem:[%s11144_s1 + $0x864] ss:$16 sps:$4 sm:$0xff]  }
  0x5d   :  { %4988 = vmatprep.subr.bf16.mxu1 %v7309_v39  ;;  %v7391_v39 = vld [vmem:[%s11144_s1 + $0xa64] ss:$16 sps:$4 sm:$0xff]  }
  0x5f   :  { %4948 = vmatpush1.bf16.msra.mxu0 %v7304_v40  ;;  %v7386_v40 = vld [vmem:[%s11144_s1 + $0x860] ss:$16 sps:$4 sm:$0xff]  }
  0x60   :  { %4989 = vmatpush1.bf16.msra.mxu1 %v7307_v41  ;;  %4949 = vmatprep.subr.bf16.mxu0 %v7312_v42  ;;  %v7389_v41 = vld [vmem:[%s11144_s1 + $0xa60] ss:$16 sps:$4 sm:$0xff]   ;;  %v7394_v42 = vld [vmem:[%s11144_s1 + $0x844] ss:$16 sps:$4 sm:$0xff]  }
  0x61   :  { %4990 = vmatprep.subr.bf16.mxu1 %v7315_v43  ;;  %v7397_v43 = vld [vmem:[%s11144_s1 + $0xa44] ss:$16 sps:$4 sm:$0xff]  }
  0x63   :  { %4950 = vmatpush2.bf16.msra.mxu0 %v7310_v44  ;;  %v7392_v44 = vld [vmem:[%s11144_s1 + $0x840] ss:$16 sps:$4 sm:$0xff]  }
  0x64   :  { %4991 = vmatpush2.bf16.msra.mxu1 %v7313_v45  ;;  %4951 = vmatprep.subr.bf16.mxu0 %v7318_v46  ;;  %v7395_v45 = vld [vmem:[%s11144_s1 + $0xa40] ss:$16 sps:$4 sm:$0xff]   ;;  %v7400_v46 = vld [vmem:[%s11144_s1 + $0x824] ss:$16 sps:$4 sm:$0xff]  }
  0x65   :  { %4992 = vmatprep.subr.bf16.mxu1 %v7321_v48  ;;  %v7403_v48 = vld [vmem:[%s11144_s1 + $0xa24] ss:$16 sps:$4 sm:$0xff]  }
  0x67   :  { %4952 = vmatpush2.bf16.msra.mxu0 %v7316_v49  ;;  %v7398_v49 = vld [vmem:[%s11144_s1 + $0x820] ss:$16 sps:$4 sm:$0xff]  }
  0x68   :  { %4993 = vmatpush2.bf16.msra.mxu1 %v7319_v50  ;;  %4953 = vmatprep.subr.bf16.mxu0 %v7324_v52  ;;  %v7401_v50 = vld [vmem:[%s11144_s1 + $0xa20] ss:$16 sps:$4 sm:$0xff]   ;;  %v7406_v52 = vld [vmem:[%s11144_s1 + $0x804] ss:$16 sps:$4 sm:$0xff]  }
  0x69   :  { %4994 = vmatprep.subr.bf16.mxu1 %v7327_v53  ;;  %v7409_v53 = vld [vmem:[%s11144_s1 + $0xa04] ss:$16 sps:$4 sm:$0xff]  }
  0x6b   :  { %4954 = vmatpush2.bf16.msra.mxu0 %v7322_v54  ;;  %v7404_v54 = vld [vmem:[%s11144_s1 + $0x800] ss:$16 sps:$4 sm:$0xff]  }
  0x6c   :  { %4995 = vmatpush2.bf16.msra.mxu1 %v7325_v55  ;;  %4955 = vmatprep.subr.bf16.mxu0 %v7330_v56  ;;  %v7407_v55 = vld [vmem:[%s11144_s1 + $0xa00] ss:$16 sps:$4 sm:$0xff]   ;;  %v7412_v56 = vld [vmem:[%s11144_s1 + $0x9e4] ss:$16 sps:$4 sm:$0xff]  }
  0x6d   :  { %4996 = vmatprep.subr.bf16.mxu1 %v7333_v57  ;;  %v7415_v57 = vld [vmem:[%s11144_s1 + $0xbe4] ss:$16 sps:$4 sm:$0xff]  }
  0x6f   :  { %4956 = vmatpush2.bf16.msra.mxu0 %v7328_v58  ;;  %v7410_v58 = vld [vmem:[%s11144_s1 + $0x9e0] ss:$16 sps:$4 sm:$0xff]  }
  0x70   :  { %4997 = vmatpush2.bf16.msra.mxu1 %v7331_v59  ;;  %4957 = vmatprep.subr.bf16.mxu0 %v7336_v60  ;;  %v7413_v59 = vld [vmem:[%s11144_s1 + $0xbe0] ss:$16 sps:$4 sm:$0xff]   ;;  %v7418_v60 = vld [vmem:[%s11144_s1 + $0x9c4] ss:$16 sps:$4 sm:$0xff]  }
  0x71   :  { %4998 = vmatprep.subr.bf16.mxu1 %v7339_v61  ;;  %v7421_v61 = vld [vmem:[%s11144_s1 + $0xbc4] ss:$16 sps:$4 sm:$0xff]  }
  0x73   :  { %4958 = vmatpush2.bf16.msra.mxu0 %v7334_v62  ;;  %v7416_v62 = vld [vmem:[%s11144_s1 + $0x9c0] ss:$16 sps:$4 sm:$0xff]  }
  0x74   :  { %4999 = vmatpush2.bf16.msra.mxu1 %v7337_v63  ;;  %4959 = vmatprep.subr.bf16.mxu0 %v7342_v0  ;;  %v7419_v63 = vld [vmem:[%s11144_s1 + $0xbc0] ss:$16 sps:$4 sm:$0xff]   ;;  %v7424_v0 = vld [vmem:[%s11144_s1 + $0x9a4] ss:$16 sps:$4 sm:$0xff]  }
  0x75   :  { %5000 = vmatprep.subr.bf16.mxu1 %v7345_v1  ;;  %v7427_v1 = vld [vmem:[%s11144_s1 + $0xba4] ss:$16 sps:$4 sm:$0xff]  }
  0x77   :  { %4960 = vmatpush2.bf16.msra.mxu0 %v7340_v2  ;;  %v7422_v2 = vld [vmem:[%s11144_s1 + $0x9a0] ss:$16 sps:$4 sm:$0xff]  }
  0x78   :  { %5001 = vmatpush2.bf16.msra.mxu1 %v7343_v3  ;;  %4961 = vmatprep.subr.bf16.mxu0 %v7348_v4  ;;  %v7425_v3 = vld [vmem:[%s11144_s1 + $0xba0] ss:$16 sps:$4 sm:$0xff]   ;;  %v7430_v4 = vld [vmem:[%s11144_s1 + $0x984] ss:$16 sps:$4 sm:$0xff]  }
  0x79   :  { %5002 = vmatprep.subr.bf16.mxu1 %v7351_v5  ;;  %v7433_v5 = vld [vmem:[%s11144_s1 + $0xb84] ss:$16 sps:$4 sm:$0xff]  }
  0x7b   :  { %4962 = vmatpush2.bf16.msra.mxu0 %v7346_v8  ;;  %v7428_v8 = vld [vmem:[%s11144_s1 + $0x980] ss:$16 sps:$4 sm:$0xff]  }
  0x7c   :  { %5003 = vmatpush2.bf16.msra.mxu1 %v7349_v9  ;;  %4963 = vmatprep.subr.bf16.mxu0 %v7354_v10  ;;  %v7431_v9 = vld [vmem:[%s11144_s1 + $0xb80] ss:$16 sps:$4 sm:$0xff]   ;;  %v7436_v10 = vld [vmem:[%s11144_s1 + $0x964] ss:$16 sps:$4 sm:$0xff]  }
  0x7d   :  { %5004 = vmatprep.subr.bf16.mxu1 %v7357_v11  ;;  %v7439_v11 = vld [vmem:[%s11144_s1 + $0xb64] ss:$16 sps:$4 sm:$0xff]  }
  0x7f   :  { %4964 = vmatpush2.bf16.msra.mxu0 %v7352_v12  ;;  %v7434_v12 = vld [vmem:[%s11144_s1 + $0x960] ss:$16 sps:$4 sm:$0xff]  }
  0x80   :  { %5005 = vmatpush2.bf16.msra.mxu1 %v7355_v13  ;;  %5015 = vmatprep.subr.bf16.mxu0 %v7364_v14  ;;  %v7437_v13 = vld [vmem:[%s11144_s1 + $0xb60] ss:$16 sps:$4 sm:$0xff]   ;;  %v7442_v14 = vld [vmem:[%s11144_s1 + $0x944] ss:$16 sps:$4 sm:$0xff]  }
  0x81   :  { %5056 = vmatprep.subr.bf16.mxu1 %v7367_v15  ;;  %v7445_v15 = vld [vmem:[%s11144_s1 + $0xb44] ss:$16 sps:$4 sm:$0xff]  }
  0x82   :  { %4966 = vmatmul.mubr.bf16.vlgmr.msra.gmra.mxu0 %v8858_v16 }
  0x83   :  { %5007 = vmatmul.mubr.bf16.vlgmr.msra.gmra.mxu1 %v8862_v17  ;;  %5016 = vmatpush1.bf16.msra.mxu0 %v7362_v18  ;;  %v7440_v18 = vld [vmem:[%s11144_s1 + $0x940] ss:$16 sps:$4 sm:$0xff]  }
  0x84   :  { %5057 = vmatpush1.bf16.msra.mxu1 %v7365_v19  ;;  %5017 = vmatprep.subr.bf16.mxu0 %v7370_v20  ;;  %v7443_v19 = vld [vmem:[%s11144_s1 + $0xb40] ss:$16 sps:$4 sm:$0xff]   ;;  %v7448_v20 = vld [vmem:[%s11144_s1 + $0x924] ss:$16 sps:$4 sm:$0xff]  }
  0x85   :  { %5058 = vmatprep.subr.bf16.mxu1 %v7373_v21  ;;  %5047 = vmatprep.mubr.bf16.mxu0 %v8888_v24  ;;  %v7451_v21 = vld [vmem:[%s11144_s1 + $0xb24] ss:$16 sps:$4 sm:$0xff]  }
  0x86   :  { %5088 = vmatprep.mubr.bf16.mxu1 %v8892_v25 }
  0x87   :  { %5018 = vmatpush1.bf16.msra.mxu0 %v7368_v26  ;;  %v7446_v26 = vld [vmem:[%s11144_s1 + $0x920] ss:$16 sps:$4 sm:$0xff]  }
  0x88   :  { %5059 = vmatpush1.bf16.msra.mxu1 %v7371_v27  ;;  %5019 = vmatprep.subr.bf16.mxu0 %v7376_v28  ;;  %v7449_v27 = vld [vmem:[%s11144_s1 + $0xb20] ss:$16 sps:$4 sm:$0xff]   ;;  %v7454_v28 = vld [vmem:[%s11144_s1 + $0x904] ss:$16 sps:$4 sm:$0xff]  }
  0x89   :  { %5060 = vmatprep.subr.bf16.mxu1 %v7379_v29  ;;  %v7457_v29 = vld [vmem:[%s11144_s1 + $0xb04] ss:$16 sps:$4 sm:$0xff]  }
  0x8b   :  { %5020 = vmatpush1.bf16.msra.mxu0 %v7374_v30  ;;  %v7452_v30 = vld [vmem:[%s11144_s1 + $0x900] ss:$16 sps:$4 sm:$0xff]  }
  0x8c   :  { %5061 = vmatpush1.bf16.msra.mxu1 %v7377_v31  ;;  %5021 = vmatprep.subr.bf16.mxu0 %v7382_v32  ;;  %v7455_v31 = vld [vmem:[%s11144_s1 + $0xb00] ss:$16 sps:$4 sm:$0xff]   ;;  %v7464_v32 = vld [vmem:[%s11144_s1 + $0xce4] ss:$16 sps:$4 sm:$0xff]  }
  0x8d   :  { %5062 = vmatprep.subr.bf16.mxu1 %v7385_v33  ;;  %v7467_v33 = vld [vmem:[%s11144_s1 + $0xee4] ss:$16 sps:$4 sm:$0xff]  }
  0x8f   :  { %5022 = vmatpush1.bf16.msra.mxu0 %v7380_v34  ;;  %v7462_v34 = vld [vmem:[%s11144_s1 + $0xce0] ss:$16 sps:$4 sm:$0xff]  }
  0x90   :  { %5063 = vmatpush1.bf16.msra.mxu1 %v7383_v35  ;;  %5023 = vmatprep.subr.bf16.mxu0 %v7388_v38  ;;  %v9084_v35 = vld [vmem:[%s11145_s0 + $0x30] sm:$0xff]  ;;  %v9088_v38 = vcombine.low %v8879_v22, %v8879_v22 }
  0x91   :  { %5064 = vmatprep.subr.bf16.mxu1 %v7391_v39  ;;  %v9092_v39 = vcombine.low %v8884_v23, %v8884_v23  ;;  %v7470_v22 = vld [vmem:[%s11144_s1 + $0xcc4] ss:$16 sps:$4 sm:$0xff]  }
  0x92   :  { %v7473_v23 = vld [vmem:[%s11144_s1 + $0xec4] ss:$16 sps:$4 sm:$0xff]  }
  0x93   :  { %5024 = vmatpush1.bf16.msra.mxu0 %v7386_v40  ;;  %v9097_v40 = vld [vmem:[%s11145_s0 + $0x38] sm:$0xff] }
  0x94   :  { %5065 = vmatpush1.bf16.msra.mxu1 %v7389_v41  ;;  %5025 = vmatprep.subr.bf16.mxu0 %v7394_v42  ;;  %v7465_v41 = vld [vmem:[%s11144_s1 + $0xee0] ss:$16 sps:$4 sm:$0xff]   ;;  %v9110_v42 = vcombine.high %v9084_v35, %v9084_v35 }
  0x95   :  { %5066 = vmatprep.subr.bf16.mxu1 %v7397_v43  ;;  %v9114_v43 = vcombine.high %v9097_v40, %v9097_v40 }
  0x97   :  { %5026 = vmatpush1.bf16.msra.mxu0 %v7392_v44  ;;  %v7468_v44 = vld [vmem:[%s11144_s1 + $0xcc0] ss:$16 sps:$4 sm:$0xff]  }
  0x98   :  { %5067 = vmatpush1.bf16.msra.mxu1 %v7395_v45  ;;  %5027 = vmatprep.subr.bf16.mxu0 %v7400_v46  ;;  %v7471_v45 = vld [vmem:[%s11144_s1 + $0xec0] ss:$16 sps:$4 sm:$0xff]   ;;  %v7476_v46 = vld [vmem:[%s11144_s1 + $0xca4] ss:$16 sps:$4 sm:$0xff]  }
  0x99   :  { %5068 = vmatprep.subr.bf16.mxu1 %v7403_v48  ;;  %v7479_v48 = vld [vmem:[%s11144_s1 + $0xea4] ss:$16 sps:$4 sm:$0xff]  }
  0x9b   :  { %5028 = vmatpush1.bf16.msra.mxu0 %v7398_v49  ;;  %v7474_v49 = vld [vmem:[%s11144_s1 + $0xca0] ss:$16 sps:$4 sm:$0xff]  }
  0x9c   :  { %5069 = vmatpush1.bf16.msra.mxu1 %v7401_v50  ;;  %5029 = vmatprep.subr.bf16.mxu0 %v7406_v52  ;;  %v7477_v50 = vld [vmem:[%s11144_s1 + $0xea0] ss:$16 sps:$4 sm:$0xff]   ;;  %v7482_v52 = vld [vmem:[%s11144_s1 + $0xc84] ss:$16 sps:$4 sm:$0xff]  }
  0x9d   :  { %5070 = vmatprep.subr.bf16.mxu1 %v7409_v53  ;;  %v7485_v53 = vld [vmem:[%s11144_s1 + $0xe84] ss:$16 sps:$4 sm:$0xff]  }
  0x9f   :  { %5030 = vmatpush1.bf16.msra.mxu0 %v7404_v54  ;;  %v7480_v54 = vld [vmem:[%s11144_s1 + $0xc80] ss:$16 sps:$4 sm:$0xff]  }
  0xa0   :  { %5071 = vmatpush1.bf16.msra.mxu1 %v7407_v55  ;;  %5031 = vmatprep.subr.bf16.mxu0 %v7412_v56  ;;  %v7483_v55 = vld [vmem:[%s11144_s1 + $0xe80] ss:$16 sps:$4 sm:$0xff]   ;;  %v7488_v56 = vld [vmem:[%s11144_s1 + $0xc64] ss:$16 sps:$4 sm:$0xff]  }
  0xa1   :  { %5072 = vmatprep.subr.bf16.mxu1 %v7415_v57  ;;  %v7491_v57 = vld [vmem:[%s11144_s1 + $0xe64] ss:$16 sps:$4 sm:$0xff]  }
  0xa3   :  { %5032 = vmatpush2.bf16.msra.mxu0 %v7410_v58  ;;  %v7486_v58 = vld [vmem:[%s11144_s1 + $0xc60] ss:$16 sps:$4 sm:$0xff]  }
  0xa4   :  { %5073 = vmatpush2.bf16.msra.mxu1 %v7413_v59  ;;  %5033 = vmatprep.subr.bf16.mxu0 %v7418_v60  ;;  %v7489_v59 = vld [vmem:[%s11144_s1 + $0xe60] ss:$16 sps:$4 sm:$0xff]   ;;  %v7494_v60 = vld [vmem:[%s11144_s1 + $0xc44] ss:$16 sps:$4 sm:$0xff]  }
  0xa5   :  { %5074 = vmatprep.subr.bf16.mxu1 %v7421_v61  ;;  %v7497_v61 = vld [vmem:[%s11144_s1 + $0xe44] ss:$16 sps:$4 sm:$0xff]  }
  0xa7   :  { %5034 = vmatpush2.bf16.msra.mxu0 %v7416_v62  ;;  %v7492_v62 = vld [vmem:[%s11144_s1 + $0xc40] ss:$16 sps:$4 sm:$0xff]  }
  0xa8   :  { %5075 = vmatpush2.bf16.msra.mxu1 %v7419_v63  ;;  %5035 = vmatprep.subr.bf16.mxu0 %v7424_v0  ;;  %v7495_v63 = vld [vmem:[%s11144_s1 + $0xe40] ss:$16 sps:$4 sm:$0xff]   ;;  %v7500_v0 = vld [vmem:[%s11144_s1 + $0xc24] ss:$16 sps:$4 sm:$0xff]  }
  0xa9   :  { %5076 = vmatprep.subr.bf16.mxu1 %v7427_v1  ;;  %v7503_v1 = vld [vmem:[%s11144_s1 + $0xe24] ss:$16 sps:$4 sm:$0xff]  }
  0xab   :  { %5036 = vmatpush2.bf16.msra.mxu0 %v7422_v2  ;;  %v7498_v2 = vld [vmem:[%s11144_s1 + $0xc20] ss:$16 sps:$4 sm:$0xff]  }
  0xac   :  { %5077 = vmatpush2.bf16.msra.mxu1 %v7425_v3  ;;  %5037 = vmatprep.subr.bf16.mxu0 %v7430_v4  ;;  %v7501_v3 = vld [vmem:[%s11144_s1 + $0xe20] ss:$16 sps:$4 sm:$0xff]   ;;  %v7506_v4 = vld [vmem:[%s11144_s1 + $0xc04] ss:$16 sps:$4 sm:$0xff]  }
  0xad   :  { %5078 = vmatprep.subr.bf16.mxu1 %v7433_v5  ;;  %v7509_v5 = vld [vmem:[%s11144_s1 + $0xe04] ss:$16 sps:$4 sm:$0xff]  }
  0xaf   :  { %5038 = vmatpush2.bf16.msra.mxu0 %v7428_v8  ;;  %v7504_v8 = vld [vmem:[%s11144_s1 + $0xc00] ss:$16 sps:$4 sm:$0xff]  }
  0xb0   :  { %5079 = vmatpush2.bf16.msra.mxu1 %v7431_v9  ;;  %5039 = vmatprep.subr.bf16.mxu0 %v7436_v10  ;;  %v7507_v9 = vld [vmem:[%s11144_s1 + $0xe00] ss:$16 sps:$4 sm:$0xff]   ;;  %v7512_v10 = vld [vmem:[%s11144_s1 + $0xde4] ss:$16 sps:$4 sm:$0xff]  }
  0xb1   :  { %5080 = vmatprep.subr.bf16.mxu1 %v7439_v11  ;;  %v7515_v11 = vld [vmem:[%s11144_s1 + $0xfe4] ss:$16 sps:$4 sm:$0xff]  }
  0xb3   :  { %5040 = vmatpush2.bf16.msra.mxu0 %v7434_v12  ;;  %v7510_v12 = vld [vmem:[%s11144_s1 + $0xde0] ss:$16 sps:$4 sm:$0xff]  }
  0xb4   :  { %5081 = vmatpush2.bf16.msra.mxu1 %v7437_v13  ;;  %5041 = vmatprep.subr.bf16.mxu0 %v7442_v14  ;;  %v7513_v13 = vld [vmem:[%s11144_s1 + $0xfe0] ss:$16 sps:$4 sm:$0xff]   ;;  %v7518_v14 = vld [vmem:[%s11144_s1 + $0xdc4] ss:$16 sps:$4 sm:$0xff]  }
  0xb5   :  { %5082 = vmatprep.subr.bf16.mxu1 %v7445_v15  ;;  %v7521_v15 = vld [vmem:[%s11144_s1 + $0xfc4] ss:$16 sps:$4 sm:$0xff]  }
  0xb7   :  { %5042 = vmatpush2.bf16.msra.mxu0 %v7440_v18  ;;  %v7516_v18 = vld [vmem:[%s11144_s1 + $0xdc0] ss:$16 sps:$4 sm:$0xff]  }
  0xb8   :  { %5083 = vmatpush2.bf16.msra.mxu1 %v7443_v19  ;;  %5043 = vmatprep.subr.bf16.mxu0 %v7448_v20  ;;  %v7519_v19 = vld [vmem:[%s11144_s1 + $0xfc0] ss:$16 sps:$4 sm:$0xff]   ;;  %v7524_v20 = vld [vmem:[%s11144_s1 + $0xda4] ss:$16 sps:$4 sm:$0xff]  }
  0xb9   :  { %5084 = vmatprep.subr.bf16.mxu1 %v7451_v21  ;;  %v7527_v21 = vld [vmem:[%s11144_s1 + $0xfa4] ss:$16 sps:$4 sm:$0xff]  }
  0xbb   :  { %5044 = vmatpush2.bf16.msra.mxu0 %v7446_v26  ;;  %v7522_v26 = vld [vmem:[%s11144_s1 + $0xda0] ss:$16 sps:$4 sm:$0xff]  }
  0xbc   :  { %5085 = vmatpush2.bf16.msra.mxu1 %v7449_v27  ;;  %5045 = vmatprep.subr.bf16.mxu0 %v7454_v28  ;;  %v7525_v27 = vld [vmem:[%s11144_s1 + $0xfa0] ss:$16 sps:$4 sm:$0xff]   ;;  %v7530_v28 = vld [vmem:[%s11144_s1 + $0xd84] ss:$16 sps:$4 sm:$0xff]  }
  0xbd   :  { %5086 = vmatprep.subr.bf16.mxu1 %v7457_v29  ;;  %v7533_v29 = vld [vmem:[%s11144_s1 + $0xf84] ss:$16 sps:$4 sm:$0xff]  }
  0xbf   :  { %5046 = vmatpush2.bf16.msra.mxu0 %v7452_v30  ;;  %v7528_v30 = vld [vmem:[%s11144_s1 + $0xd80] ss:$16 sps:$4 sm:$0xff]  }
  0xc0   :  { %5087 = vmatpush2.bf16.msra.mxu1 %v7455_v31  ;;  %5097 = vmatprep.subr.bf16.mxu0 %v7464_v32  ;;  %v7531_v31 = vld [vmem:[%s11144_s1 + $0xf80] ss:$16 sps:$4 sm:$0xff]   ;;  %v7536_v32 = vld [vmem:[%s11144_s1 + $0xd64] ss:$16 sps:$4 sm:$0xff]  }
  0xc1   :  { %5138 = vmatprep.subr.bf16.mxu1 %v7467_v33  ;;  %v7539_v33 = vld [vmem:[%s11144_s1 + $0xf64] ss:$16 sps:$4 sm:$0xff]  }
  0xc2   :  { %5048 = vmatmul.mubr.bf16.vlgmr.msra.gmra.mxu0 %v9088_v38 }
  0xc3   :  { %5089 = vmatmul.mubr.bf16.vlgmr.msra.gmra.mxu1 %v9092_v39  ;;  %5098 = vmatpush1.bf16.msra.mxu0 %v7462_v34  ;;  %v7534_v34 = vld [vmem:[%s11144_s1 + $0xd60] ss:$16 sps:$4 sm:$0xff]  }
  0xc4   :  { %5139 = vmatpush1.bf16.msra.mxu1 %v7465_v41  ;;  %5099 = vmatprep.subr.bf16.mxu0 %v7470_v22  ;;  %v7537_v41 = vld [vmem:[%s11144_s1 + $0xf60] ss:$16 sps:$4 sm:$0xff]   ;;  %v7542_v22 = vld [vmem:[%s11144_s1 + $0xd44] ss:$16 sps:$4 sm:$0xff]  }
  0xc5   :  { %5140 = vmatprep.subr.bf16.mxu1 %v7473_v23  ;;  %5129 = vmatprep.mubr.bf16.mxu0 %v9110_v42  ;;  %v7545_v23 = vld [vmem:[%s11144_s1 + $0xf44] ss:$16 sps:$4 sm:$0xff]  }
  0xc6   :  { %5170 = vmatprep.mubr.bf16.mxu1 %v9114_v43 }
  0xc7   :  { %5100 = vmatpush1.bf16.msra.mxu0 %v7468_v44  ;;  %v7540_v44 = vld [vmem:[%s11144_s1 + $0xd40] ss:$16 sps:$4 sm:$0xff]  }
  0xc8   :  { %5141 = vmatpush1.bf16.msra.mxu1 %v7471_v45  ;;  %5101 = vmatprep.subr.bf16.mxu0 %v7476_v46  ;;  %v7543_v45 = vld [vmem:[%s11144_s1 + $0xf40] ss:$16 sps:$4 sm:$0xff]   ;;  %v7548_v46 = vld [vmem:[%s11144_s1 + $0xd24] ss:$16 sps:$4 sm:$0xff]  }
  0xc9   :  { %5142 = vmatprep.subr.bf16.mxu1 %v7479_v48  ;;  %v820_v48 = vlaneseq }
  0xcb   :  { %5102 = vmatpush1.bf16.msra.mxu0 %v7474_v49  ;;  %v7551_v49 = vld [vmem:[%s11144_s1 + $0xf24] ss:$16 sps:$4 sm:$0xff]  }
  0xcc   :  { %5143 = vmatpush1.bf16.msra.mxu1 %v7477_v50  ;;  %5103 = vmatprep.subr.bf16.mxu0 %v7482_v52  ;;  %v7546_v50 = vld [vmem:[%s11144_s1 + $0xd20] ss:$16 sps:$4 sm:$0xff]  }
  0xcd   :  { %5144 = vmatprep.subr.bf16.mxu1 %v7485_v53  ;;  %v7549_v52 = vld [vmem:[%s11144_s1 + $0xf20] ss:$16 sps:$4 sm:$0xff]   ;;  %v7554_v53 = vld [vmem:[%s11144_s1 + $0xd04] ss:$16 sps:$4 sm:$0xff]  }
  0xcf   :  { %5104 = vmatpush1.bf16.msra.mxu0 %v7480_v54  ;;  %v9285_v54 = vshrl.u32 %v820_v48, 7  ;;  %v7586_v48 = vld [vmem:[%s11144_s1 + $0x1060] ss:$16 sps:$4 sm:$0xff]  }
  0xd0   :  { %5145 = vmatpush1.bf16.msra.mxu1 %v7483_v55  ;;  %5105 = vmatprep.subr.bf16.mxu0 %v7488_v56  ;;  %v7557_v55 = vld [vmem:[%s11144_s1 + $0xf04] ss:$16 sps:$4 sm:$0xff]   ;;  %v7552_v56 = vld [vmem:[%s11144_s1 + $0xd00] ss:$16 sps:$4 sm:$0xff]  }
  0xd1   :  { %5146 = vmatprep.subr.bf16.mxu1 %v7491_v57  ;;  %v7555_v57 = vld [vmem:[%s11144_s1 + $0xf00] ss:$16 sps:$4 sm:$0xff]  }
  0xd3   :  { %5106 = vmatpush1.bf16.msra.mxu0 %v7486_v58  ;;  %v818_v58 = vld [vmem:[%s11146_s2] sm:$0xf] }
  0xd4   :  { %5147 = vmatpush1.bf16.msra.mxu1 %v7489_v59  ;;  %5107 = vmatprep.subr.bf16.mxu0 %v7494_v60  ;;  %v822_v59 = vsub.s32 0, %v9285_v54  ;;  %v7564_v60 = vld [vmem:[%s11144_s1 + $0x10e4] ss:$16 sps:$4 sm:$0xff]  }
  0xd5   :  { %5148 = vmatprep.subr.bf16.mxu1 %v7497_v61  ;;  %v7567_v61 = vld [vmem:[%s11144_s1 + $0x12e4] ss:$16 sps:$4 sm:$0xff]  }
  0xd7   :  { %5108 = vmatpush1.bf16.msra.mxu0 %v7492_v62  ;;  %v7562_v62 = vld [vmem:[%s11144_s1 + $0x10e0] ss:$16 sps:$4 sm:$0xff]  }
  0xd8   :  { %5149 = vmatpush1.bf16.msra.mxu1 %v7495_v63  ;;  %5109 = vmatprep.subr.bf16.mxu0 %v7500_v0  ;;  %v826_v63 = vsub.s32 1, %v9285_v54  ;;  %v9312_v0 = vcombine.low %v9084_v35, %v9084_v35  ;;  %v7565_v35 = vld [vmem:[%s11144_s1 + $0x12e0] ss:$16 sps:$4 sm:$0xff]  }
  0xd9   :  { %5150 = vmatprep.subr.bf16.mxu1 %v7503_v1  ;;  %v9316_v1 = vcombine.low %v9097_v40, %v9097_v40  ;;  %v7570_v40 = vld [vmem:[%s11144_s1 + $0x10c4] ss:$16 sps:$4 sm:$0xff]  }
  0xdb   :  { %5110 = vmatpush1.bf16.msra.mxu0 %v7498_v2  ;;  %v9321_v2 = vld [vmem:[%s11145_s0 + $0x40] sm:$0xff] }
  0xdc   :  { %5151 = vmatpush1.bf16.msra.mxu1 %v7501_v3  ;;  %5111 = vmatprep.subr.bf16.mxu0 %v7506_v4  ;;  %v9326_v3 = vld [vmem:[%s11145_s0 + $0x48] sm:$0xff]  ;;  %v823_v4 = vrot.slane %v818_v58, %v822_v59  ;;  %v7601_v59 = vld [vmem:[%s11144_s1 + $0x1220] ss:$16 sps:$4 sm:$0xff]  }
  0xdd   :  { %5152 = vmatprep.subr.bf16.mxu1 %v7509_v5  ;;  %v7573_v5 = vld [vmem:[%s11144_s1 + $0x12c4] ss:$16 sps:$4 sm:$0xff]  }
  0xdf   :  { %5112 = vmatpush1.bf16.msra.mxu0 %v7504_v8  ;;  %v827_v8 = vrot.slane %v818_v58, %v826_v63  ;;  %v7598_v58 = vld [vmem:[%s11144_s1 + $0x1020] ss:$16 sps:$4 sm:$0xff]  }
  0xe0   :  { %5153 = vmatpush1.bf16.msra.mxu1 %v7507_v9  ;;  %5113 = vmatprep.subr.bf16.mxu0 %v7512_v10  ;;  %v9339_v9 = vcombine.high %v9321_v2, %v9321_v2  ;;  %v9343_v10 = vcombine.high %v9326_v3, %v9326_v3  ;;  %v7607_v63 = vld [vmem:[%s11144_s1 + $0x1200] ss:$16 sps:$4 sm:$0xff]  }
  0xe1   :  { %5154 = vmatprep.subr.bf16.mxu1 %v7515_v11 }
  0xe3   :  { %5114 = vmatpush2.bf16.msra.mxu0 %v7510_v12 }
  0xe4   :  { %5155 = vmatpush2.bf16.msra.mxu1 %v7513_v13  ;;  %5115 = vmatprep.subr.bf16.mxu0 %v7518_v14  ;;  %v7568_v13 = vld [vmem:[%s11144_s1 + $0x10c0] ss:$16 sps:$4 sm:$0xff]  }
  0xe5   :  { %5156 = vmatprep.subr.bf16.mxu1 %v7521_v15  ;;  %v7571_v15 = vld [vmem:[%s11144_s1 + $0x12c0] ss:$16 sps:$4 sm:$0xff]  }
  0xe7   :  { %5116 = vmatpush2.bf16.msra.mxu0 %v7516_v18 }
  0xe8   :  { %5157 = vmatpush2.bf16.msra.mxu1 %v7519_v19  ;;  %5117 = vmatprep.subr.bf16.mxu0 %v7524_v20  ;;  %v7576_v20 = vld [vmem:[%s11144_s1 + $0x10a4] ss:$16 sps:$4 sm:$0xff]  }
  0xe9   :  { %5158 = vmatprep.subr.bf16.mxu1 %v7527_v21  ;;  %v7579_v21 = vld [vmem:[%s11144_s1 + $0x12a4] ss:$16 sps:$4 sm:$0xff]  }
  0xeb   :  { %5118 = vmatpush2.bf16.msra.mxu0 %v7522_v26 }
  0xec   :  { %5159 = vmatpush2.bf16.msra.mxu1 %v7525_v27  ;;  %5119 = vmatprep.subr.bf16.mxu0 %v7530_v28 }
  0xed   :  { %5160 = vmatprep.subr.bf16.mxu1 %v7533_v29 }
  0xef   :  { %5120 = vmatpush2.bf16.msra.mxu0 %v7528_v30  ;;  %v7574_v30 = vld [vmem:[%s11144_s1 + $0x10a0] ss:$16 sps:$4 sm:$0xff]  }
  0xf0   :  { %5161 = vmatpush2.bf16.msra.mxu1 %v7531_v31  ;;  %5121 = vmatprep.subr.bf16.mxu0 %v7536_v32  ;;  %v7577_v32 = vld [vmem:[%s11144_s1 + $0x12a0] ss:$16 sps:$4 sm:$0xff]  }
  0xf1   :  { %5162 = vmatprep.subr.bf16.mxu1 %v7539_v33 }
  0xf3   :  { %5122 = vmatpush2.bf16.msra.mxu0 %v7534_v34 }
  0xf4   :  { %5163 = vmatpush2.bf16.msra.mxu1 %v7537_v41  ;;  %5123 = vmatprep.subr.bf16.mxu0 %v7542_v22  ;;  %v7582_v41 = vld [vmem:[%s11144_s1 + $0x1084] ss:$16 sps:$4 sm:$0xff]  }
  0xf5   :  { %5164 = vmatprep.subr.bf16.mxu1 %v7545_v23  ;;  %v7585_v22 = vld [vmem:[%s11144_s1 + $0x1284] ss:$16 sps:$4 sm:$0xff]   ;;  %v7580_v23 = vld [vmem:[%s11144_s1 + $0x1080] ss:$16 sps:$4 sm:$0xff]  }
  0xf7   :  { %5124 = vmatpush2.bf16.msra.mxu0 %v7540_v44  ;;  %v7583_v44 = vld [vmem:[%s11144_s1 + $0x1280] ss:$16 sps:$4 sm:$0xff]  }
  0xf8   :  { %5165 = vmatpush2.bf16.msra.mxu1 %v7543_v45  ;;  %5125 = vmatprep.subr.bf16.mxu0 %v7548_v46  ;;  %v7588_v45 = vld [vmem:[%s11144_s1 + $0x1064] ss:$16 sps:$4 sm:$0xff]  }
  0xf9   :  { %5166 = vmatprep.subr.bf16.mxu1 %v7551_v49  ;;  %v7591_v46 = vld [vmem:[%s11144_s1 + $0x1264] ss:$16 sps:$4 sm:$0xff]   ;;  %v7589_v49 = vld [vmem:[%s11144_s1 + $0x1260] ss:$16 sps:$4 sm:$0xff]  }
  0xfb   :  { %5126 = vmatpush2.bf16.msra.mxu0 %v7546_v50  ;;  %v7594_v50 = vld [vmem:[%s11144_s1 + $0x1044] ss:$16 sps:$4 sm:$0xff]  }
  0xfc   :  { %5167 = vmatpush2.bf16.msra.mxu1 %v7549_v52  ;;  %5127 = vmatprep.subr.bf16.mxu0 %v7554_v53  ;;  %v7597_v52 = vld [vmem:[%s11144_s1 + $0x1244] ss:$16 sps:$4 sm:$0xff]   ;;  %v7592_v53 = vld [vmem:[%s11144_s1 + $0x1040] ss:$16 sps:$4 sm:$0xff]  }
  0xfd   :  { %5168 = vmatprep.subr.bf16.mxu1 %v7557_v55  ;;  %v7595_v55 = vld [vmem:[%s11144_s1 + $0x1240] ss:$16 sps:$4 sm:$0xff]  }
  0xff   :  { %5128 = vmatpush2.bf16.msra.mxu0 %v7552_v56  ;;  %v7600_v56 = vld [vmem:[%s11144_s1 + $0x1024] ss:$16 sps:$4 sm:$0xff]  }
 0x100   :  { %5169 = vmatpush2.bf16.msra.mxu1 %v7555_v57  ;;  %5179 = vmatprep.subr.bf16.mxu0 %v7564_v60  ;;  %v7603_v57 = vld [vmem:[%s11144_s1 + $0x1224] ss:$16 sps:$4 sm:$0xff]  }
 0x101   :  { %5220 = vmatprep.subr.bf16.mxu1 %v7567_v61  ;;  %v7606_v60 = vld [vmem:[%s11144_s1 + $0x1004] ss:$16 sps:$4 sm:$0xff]  }
 0x102   :  { %v4885_v11 = vpop.f32.mrf.mxu0  ;;  %5130 = vmatmul.mubr.bf16.vlgmr.msra.gmra.mxu0 %v9312_v0  ;;  %v7609_v61 = vld [vmem:[%s11144_s1 + $0x1204] ss:$16 sps:$4 sm:$0xff]  }
 0x103   :  { %v4926_v12 = vpop.f32.mrf.mxu1  ;;  %5171 = vmatmul.mubr.bf16.vlgmr.msra.gmra.mxu1 %v9316_v1  ;;  %v4886_v14 = vadd.f32 %v4885_v11, %v823_v4  ;;  %5180 = vmatpush1.bf16.msra.mxu0 %v7562_v62  ;;  %v7604_v62 = vld [vmem:[%s11144_s1 + $0x1000] ss:$16 sps:$4 sm:$0xff]   ;;  %v7612_v4 = vld [vmem:[%s11144_s1 + $0x11e4] ss:$16 sps:$4 sm:$0xff]  }
 0x104   :  { %5221 = vmatpush1.bf16.msra.mxu1 %v7565_v35  ;;  %v4887_v18 = vpop.f32.mrf.mxu0  ;;  %5181 = vmatprep.subr.bf16.mxu0 %v7570_v40  ;;  %v7615_v35 = vld [vmem:[%s11144_s1 + $0x13e4] ss:$16 sps:$4 sm:$0xff]   ;;  %v7610_v40 = vld [vmem:[%s11144_s1 + $0x11e0] ss:$16 sps:$4 sm:$0xff]  }
 0x105   :  { %v4928_v19 = vpop.f32.mrf.mxu1  ;;  %5222 = vmatprep.subr.bf16.mxu1 %v7573_v5  ;;  %v9359_v26 = vadd.f32 %v4926_v12, %v4886_v14  ;;  %v4888_v27 = vadd.f32 %v4887_v18, %v827_v8  ;;  %5211 = vmatprep.mubr.bf16.mxu0 %v9339_v9  ;;  %v7613_v5 = vld [vmem:[%s11144_s1 + $0x13e0] ss:$16 sps:$4 sm:$0xff]   ;;  %v7618_v8 = vld [vmem:[%s11144_s1 + $0x11c4] ss:$16 sps:$4 sm:$0xff]  }
 0x106   :  { %5252 = vmatprep.mubr.bf16.mxu1 %v9343_v10  ;;  %v4889_v28 = vpop.f32.mrf.mxu0  ;;  %v7621_v11 = vld [vmem:[%s11144_s1 + $0x13c4] ss:$16 sps:$4 sm:$0xff]   ;;  %v7616_v12 = vld [vmem:[%s11144_s1 + $0x11c0] ss:$16 sps:$4 sm:$0xff]  }
 0x107   :  { %v4930_v29 = vpop.f32.mrf.mxu1  ;;  %v9366_v31 = vadd.f32 %v4928_v19, %v4888_v27  ;;  %5182 = vmatpush1.bf16.msra.mxu0 %v7568_v13  ;;  %v7619_v13 = vld [vmem:[%s11144_s1 + $0x13c0] ss:$16 sps:$4 sm:$0xff]   ;;  %v7624_v14 = vld [vmem:[%s11144_s1 + $0x11a4] ss:$16 sps:$4 sm:$0xff]  }
 0x108   :  { %5223 = vmatpush1.bf16.msra.mxu1 %v7571_v15  ;;  %v4890_v33 = vpop.f32.mrf.mxu0  ;;  %5183 = vmatprep.subr.bf16.mxu0 %v7576_v20  ;;  %v7627_v15 = vld [vmem:[%s11144_s1 + $0x13a4] ss:$16 sps:$4 sm:$0xff]   ;;  %v7622_v18 = vld [vmem:[%s11144_s1 + $0x11a0] ss:$16 sps:$4 sm:$0xff]  }
 0x109   :  { %v4931_v34 = vpop.f32.mrf.mxu1  ;;  %5224 = vmatprep.subr.bf16.mxu1 %v7579_v21  ;;  %v7625_v19 = vld [vmem:[%s11144_s1 + $0x13a0] ss:$16 sps:$4 sm:$0xff]   ;;  %v7630_v20 = vld [vmem:[%s11144_s1 + $0x1184] ss:$16 sps:$4 sm:$0xff]  }
 0x10a   :  { %v7633_v21 = vld [vmem:[%s11144_s1 + $0x1384] ss:$16 sps:$4 sm:$0xff]   ;;  %v7628_v27 = vld [vmem:[%s11144_s1 + $0x1180] ss:$16 sps:$4 sm:$0xff]  }
 0x10b   :  { %5184 = vmatpush1.bf16.msra.mxu0 %v7574_v30  ;;  %v7631_v28 = vld [vmem:[%s11144_s1 + $0x1380] ss:$16 sps:$4 sm:$0xff]   ;;  %v7636_v29 = vld [vmem:[%s11144_s1 + $0x1164] ss:$16 sps:$4 sm:$0xff]  }
 0x10c   :  { %5225 = vmatpush1.bf16.msra.mxu1 %v7577_v32  ;;  %5185 = vmatprep.subr.bf16.mxu0 %v7582_v41  ;;  %v7639_v30 = vld [vmem:[%s11144_s1 + $0x1364] ss:$16 sps:$4 sm:$0xff]   ;;  %v7634_v32 = vld [vmem:[%s11144_s1 + $0x1160] ss:$16 sps:$4 sm:$0xff]  }
 0x10d   :  { %5226 = vmatprep.subr.bf16.mxu1 %v7585_v22  ;;  %v7637_v33 = vld [vmem:[%s11144_s1 + $0x1360] ss:$16 sps:$4 sm:$0xff]   ;;  %v7642_v34 = vld [vmem:[%s11144_s1 + $0x1144] ss:$16 sps:$4 sm:$0xff]  }
 0x10e   :  { %v7645_v41 = vld [vmem:[%s11144_s1 + $0x1344] ss:$16 sps:$4 sm:$0xff]   ;;  %v7640_v22 = vld [vmem:[%s11144_s1 + $0x1140] ss:$16 sps:$4 sm:$0xff]  }
 0x10f   :  { %5186 = vmatpush1.bf16.msra.mxu0 %v7580_v23  ;;  %v7643_v23 = vld [vmem:[%s11144_s1 + $0x1340] ss:$16 sps:$4 sm:$0xff]  }
 0x110   :  { %5227 = vmatpush1.bf16.msra.mxu1 %v7583_v44  ;;  %5187 = vmatprep.subr.bf16.mxu0 %v7588_v45  ;;  %v7648_v44 = vld [vmem:[%s11144_s1 + $0x1124] ss:$16 sps:$4 sm:$0xff]  }
 0x111   :  { %5228 = vmatprep.subr.bf16.mxu1 %v7591_v46  ;;  %v7651_v45 = vld [vmem:[%s11144_s1 + $0x1324] ss:$16 sps:$4 sm:$0xff]   ;;  %v7646_v46 = vld [vmem:[%s11144_s1 + $0x1120] ss:$16 sps:$4 sm:$0xff]  }
 0x113   :  { %5188 = vmatpush1.bf16.msra.mxu0 %v7586_v48  ;;  %v7649_v48 = vld [vmem:[%s11144_s1 + $0x1320] ss:$16 sps:$4 sm:$0xff]  }
 0x114   :  { %5229 = vmatpush1.bf16.msra.mxu1 %v7589_v49  ;;  %5189 = vmatprep.subr.bf16.mxu0 %v7594_v50  ;;  %v7654_v49 = vld [vmem:[%s11144_s1 + $0x1104] ss:$16 sps:$4 sm:$0xff]  }
 0x115   :  { %5230 = vmatprep.subr.bf16.mxu1 %v7597_v52  ;;  %v7657_v50 = vld [vmem:[%s11144_s1 + $0x1304] ss:$16 sps:$4 sm:$0xff]   ;;  %v7652_v52 = vld [vmem:[%s11144_s1 + $0x1100] ss:$16 sps:$4 sm:$0xff]  }
 0x117   :  { %5190 = vmatpush1.bf16.msra.mxu0 %v7592_v53  ;;  %v7655_v53 = vld [vmem:[%s11144_s1 + $0x1300] ss:$16 sps:$4 sm:$0xff]  }
 0x118   :  { %5231 = vmatpush1.bf16.msra.mxu1 %v7595_v55  ;;  %5191 = vmatprep.subr.bf16.mxu0 %v7600_v56  ;;  %v7664_v55 = vld [vmem:[%s11144_s1 + $0x14e4] ss:$16 sps:$4 sm:$0xff]  }
 0x119   :  { %5232 = vmatprep.subr.bf16.mxu1 %v7603_v57  ;;  %v7667_v56 = vld [vmem:[%s11144_s1 + $0x16e4] ss:$16 sps:$4 sm:$0xff]  }
 0x11a   :  { %v9536_v57 = vld [vmem:[%s11145_s0 + $0x50] sm:$0xff] }
 0x11b   :  { %5192 = vmatpush1.bf16.msra.mxu0 %v7598_v58  ;;  %v9541_v58 = vld [vmem:[%s11145_s0 + $0x58] sm:$0xff] }
 0x11c   :  { %5233 = vmatpush1.bf16.msra.mxu1 %v7601_v59  ;;  %5193 = vmatprep.subr.bf16.mxu0 %v7606_v60  ;;  %v7662_v59 = vld [vmem:[%s11144_s1 + $0x14e0] ss:$16 sps:$4 sm:$0xff]  }
 0x11d   :  { %5234 = vmatprep.subr.bf16.mxu1 %v7609_v61  ;;  %v7665_v60 = vld [vmem:[%s11144_s1 + $0x16e0] ss:$16 sps:$4 sm:$0xff]   ;;  %v9551_v61 = vcombine.low %v9321_v2, %v9321_v2 }
 0x11e   :  { %v7668_v2 = vld [vmem:[%s11144_s1 + $0x14c0] ss:$16 sps:$4 sm:$0xff]  }
 0x11f   :  { %5194 = vmatpush1.bf16.msra.mxu0 %v7604_v62  ;;  %v9555_v62 = vcombine.low %v9326_v3, %v9326_v3  ;;  %v7671_v3 = vld [vmem:[%s11144_s1 + $0x16c0] ss:$16 sps:$4 sm:$0xff]  }
 0x120   :  { %5235 = vmatpush1.bf16.msra.mxu1 %v7607_v63  ;;  %5195 = vmatprep.subr.bf16.mxu0 %v7612_v4  ;;  %v7670_v63 = vld [vmem:[%s11144_s1 + $0x14c4] ss:$16 sps:$4 sm:$0xff]  }
 0x121   :  { %5236 = vmatprep.subr.bf16.mxu1 %v7615_v35  ;;  %v7673_v4 = vld [vmem:[%s11144_s1 + $0x16c4] ss:$16 sps:$4 sm:$0xff]   ;;  %v9571_v35 = vcombine.high %v9536_v57, %v9536_v57 }
 0x123   :  { %5196 = vmatpush2.bf16.msra.mxu0 %v7610_v40  ;;  %v9575_v40 = vcombine.high %v9541_v58, %v9541_v58 }
 0x124   :  { %5237 = vmatpush2.bf16.msra.mxu1 %v7613_v5  ;;  %5197 = vmatprep.subr.bf16.mxu0 %v7618_v8 }
 0x125   :  { %5238 = vmatprep.subr.bf16.mxu1 %v7621_v11 }
 0x127   :  { %5198 = vmatpush2.bf16.msra.mxu0 %v7616_v12 }
 0x128   :  { %5239 = vmatpush2.bf16.msra.mxu1 %v7619_v13  ;;  %5199 = vmatprep.subr.bf16.mxu0 %v7624_v14  ;;  %v7676_v14 = vld [vmem:[%s11144_s1 + $0x14a4] ss:$16 sps:$4 sm:$0xff]  }
 0x129   :  { %5240 = vmatprep.subr.bf16.mxu1 %v7627_v15  ;;  %v7679_v15 = vld [vmem:[%s11144_s1 + $0x16a4] ss:$16 sps:$4 sm:$0xff]  }
 0x12b   :  { %5200 = vmatpush2.bf16.msra.mxu0 %v7622_v18 }
 0x12c   :  { %5241 = vmatpush2.bf16.msra.mxu1 %v7625_v19  ;;  %5201 = vmatprep.subr.bf16.mxu0 %v7630_v20  ;;  %v7677_v20 = vld [vmem:[%s11144_s1 + $0x16a0] ss:$16 sps:$4 sm:$0xff]  }
 0x12d   :  { %5242 = vmatprep.subr.bf16.mxu1 %v7633_v21 }
 0x12f   :  { %5202 = vmatpush2.bf16.msra.mxu0 %v7628_v27 }
 0x130   :  { %5243 = vmatpush2.bf16.msra.mxu1 %v7631_v28  ;;  %5203 = vmatprep.subr.bf16.mxu0 %v7636_v29 }
 0x131   :  { %5244 = vmatprep.subr.bf16.mxu1 %v7639_v30  ;;  %v7682_v30 = vld [vmem:[%s11144_s1 + $0x1484] ss:$16 sps:$4 sm:$0xff]  }
 0x133   :  { %5204 = vmatpush2.bf16.msra.mxu0 %v7634_v32  ;;  %v7685_v32 = vld [vmem:[%s11144_s1 + $0x1684] ss:$16 sps:$4 sm:$0xff]  }
 0x134   :  { %5245 = vmatpush2.bf16.msra.mxu1 %v7637_v33  ;;  %5205 = vmatprep.subr.bf16.mxu0 %v7642_v34  ;;  %v7680_v33 = vld [vmem:[%s11144_s1 + $0x1480] ss:$16 sps:$4 sm:$0xff]  }
 0x135   :  { %5246 = vmatprep.subr.bf16.mxu1 %v7645_v41  ;;  %v7683_v34 = vld [vmem:[%s11144_s1 + $0x1680] ss:$16 sps:$4 sm:$0xff]   ;;  %v7688_v41 = vld [vmem:[%s11144_s1 + $0x1464] ss:$16 sps:$4 sm:$0xff]  }
 0x137   :  { %5206 = vmatpush2.bf16.msra.mxu0 %v7640_v22  ;;  %v7691_v22 = vld [vmem:[%s11144_s1 + $0x1664] ss:$16 sps:$4 sm:$0xff]  }
 0x138   :  { %5247 = vmatpush2.bf16.msra.mxu1 %v7643_v23  ;;  %5207 = vmatprep.subr.bf16.mxu0 %v7648_v44  ;;  %v7686_v23 = vld [vmem:[%s11144_s1 + $0x1460] ss:$16 sps:$4 sm:$0xff]  }
 0x139   :  { %5248 = vmatprep.subr.bf16.mxu1 %v7651_v45  ;;  %v7689_v44 = vld [vmem:[%s11144_s1 + $0x1660] ss:$16 sps:$4 sm:$0xff]   ;;  %v7694_v45 = vld [vmem:[%s11144_s1 + $0x1444] ss:$16 sps:$4 sm:$0xff]  }
 0x13b   :  { %5208 = vmatpush2.bf16.msra.mxu0 %v7646_v46  ;;  %v7697_v46 = vld [vmem:[%s11144_s1 + $0x1644] ss:$16 sps:$4 sm:$0xff]  }
 0x13c   :  { %5249 = vmatpush2.bf16.msra.mxu1 %v7649_v48  ;;  %5209 = vmatprep.subr.bf16.mxu0 %v7654_v49  ;;  %v7692_v48 = vld [vmem:[%s11144_s1 + $0x1440] ss:$16 sps:$4 sm:$0xff]  }
 0x13d   :  { %5250 = vmatprep.subr.bf16.mxu1 %v7657_v50  ;;  %v7695_v49 = vld [vmem:[%s11144_s1 + $0x1640] ss:$16 sps:$4 sm:$0xff]   ;;  %v7700_v50 = vld [vmem:[%s11144_s1 + $0x1424] ss:$16 sps:$4 sm:$0xff]  }
 0x13f   :  { %5210 = vmatpush2.bf16.msra.mxu0 %v7652_v52  ;;  %v7703_v52 = vld [vmem:[%s11144_s1 + $0x1624] ss:$16 sps:$4 sm:$0xff]  }
 0x140   :  { %5251 = vmatpush2.bf16.msra.mxu1 %v7655_v53  ;;  %5261 = vmatprep.subr.bf16.mxu0 %v7664_v55  ;;  %v7698_v53 = vld [vmem:[%s11144_s1 + $0x1420] ss:$16 sps:$4 sm:$0xff]  }
 0x141   :  { %5302 = vmatprep.subr.bf16.mxu1 %v7667_v56  ;;  %v7701_v55 = vld [vmem:[%s11144_s1 + $0x1620] ss:$16 sps:$4 sm:$0xff]   ;;  %v7706_v56 = vld [vmem:[%s11144_s1 + $0x1404] ss:$16 sps:$4 sm:$0xff]  }
 0x142   :  { %v4967_v5 = vpop.f32.mrf.mxu0  ;;  %5212 = vmatmul.mubr.bf16.vlgmr.msra.gmra.mxu0 %v9551_v61 }
 0x143   :  { %v5008_v8 = vpop.f32.mrf.mxu1  ;;  %5253 = vmatmul.mubr.bf16.vlgmr.msra.gmra.mxu1 %v9555_v62  ;;  %v4968_v11 = vadd.f32 %v4967_v5, %v9359_v26  ;;  %5262 = vmatpush1.bf16.msra.mxu0 %v7662_v59  ;;  %v7674_v26 = vld [vmem:[%s11144_s1 + $0x14a0] ss:$16 sps:$4 sm:$0xff]   ;;  %v7709_v59 = vld [vmem:[%s11144_s1 + $0x1604] ss:$16 sps:$4 sm:$0xff]  }
 0x144   :  { %5303 = vmatpush1.bf16.msra.mxu1 %v7665_v60  ;;  %v4969_v12 = vpop.f32.mrf.mxu0  ;;  %5263 = vmatprep.subr.bf16.mxu0 %v7670_v63  ;;  %v7704_v60 = vld [vmem:[%s11144_s1 + $0x1400] ss:$16 sps:$4 sm:$0xff]  }
 0x145   :  { %v5010_v13 = vpop.f32.mrf.mxu1  ;;  %5304 = vmatprep.subr.bf16.mxu1 %v7673_v4  ;;  %v9586_v18 = vadd.f32 %v5008_v8, %v4968_v11  ;;  %v4970_v19 = vadd.f32 %v4969_v12, %v9366_v31  ;;  %5293 = vmatprep.mubr.bf16.mxu0 %v9571_v35  ;;  %v7707_v63 = vld [vmem:[%s11144_s1 + $0x1600] ss:$16 sps:$4 sm:$0xff]   ;;  %v7712_v4 = vld [vmem:[%s11144_s1 + $0x15e4] ss:$16 sps:$4 sm:$0xff]  }
 0x146   :  { %5334 = vmatprep.mubr.bf16.mxu1 %v9575_v40  ;;  %v4971_v21 = vpop.f32.mrf.mxu0  ;;  %v7713_v5 = vld [vmem:[%s11144_s1 + $0x17e0] ss:$16 sps:$4 sm:$0xff]   ;;  %v7718_v8 = vld [vmem:[%s11144_s1 + $0x15c4] ss:$16 sps:$4 sm:$0xff]  }
 0x147   :  { %v5012_v27 = vpop.f32.mrf.mxu1  ;;  %v9597_v28 = vadd.f32 %v5010_v13, %v4970_v19  ;;  %5264 = vmatpush1.bf16.msra.mxu0 %v7668_v2  ;;  %v7715_v2 = vld [vmem:[%s11144_s1 + $0x17e4] ss:$16 sps:$4 sm:$0xff]   ;;  %v7716_v12 = vld [vmem:[%s11144_s1 + $0x15c0] ss:$16 sps:$4 sm:$0xff]  }
 0x148   :  { %5305 = vmatpush1.bf16.msra.mxu1 %v7671_v3  ;;  %v4972_v29 = vpop.f32.mrf.mxu0  ;;  %5265 = vmatprep.subr.bf16.mxu0 %v7676_v14  ;;  %v7710_v3 = vld [vmem:[%s11144_s1 + $0x15e0] ss:$16 sps:$4 sm:$0xff]   ;;  %v7721_v11 = vld [vmem:[%s11144_s1 + $0x17c4] ss:$16 sps:$4 sm:$0xff]  }
 0x149   :  { %v5013_v31 = vpop.f32.mrf.mxu1  ;;  %5306 = vmatprep.subr.bf16.mxu1 %v7679_v15  ;;  %v7719_v13 = vld [vmem:[%s11144_s1 + $0x17c0] ss:$16 sps:$4 sm:$0xff]   ;;  %v7724_v14 = vld [vmem:[%s11144_s1 + $0x15a4] ss:$16 sps:$4 sm:$0xff]  }
 0x14a   :  { %v7727_v15 = vld [vmem:[%s11144_s1 + $0x17a4] ss:$16 sps:$4 sm:$0xff]   ;;  %v7722_v19 = vld [vmem:[%s11144_s1 + $0x15a0] ss:$16 sps:$4 sm:$0xff]  }
 0x14b   :  { %5266 = vmatpush1.bf16.msra.mxu0 %v7674_v26  ;;  %v7725_v26 = vld [vmem:[%s11144_s1 + $0x17a0] ss:$16 sps:$4 sm:$0xff]   ;;  %v7733_v21 = vld [vmem:[%s11144_s1 + $0x1784] ss:$16 sps:$4 sm:$0xff]  }
 0x14c   :  { %5307 = vmatpush1.bf16.msra.mxu1 %v7677_v20  ;;  %5267 = vmatprep.subr.bf16.mxu0 %v7682_v30  ;;  %v7730_v20 = vld [vmem:[%s11144_s1 + $0x1584] ss:$16 sps:$4 sm:$0xff]   ;;  %v7728_v27 = vld [vmem:[%s11144_s1 + $0x1580] ss:$16 sps:$4 sm:$0xff]  }
 0x14d   :  { %5308 = vmatprep.subr.bf16.mxu1 %v7685_v32  ;;  %v7731_v29 = vld [vmem:[%s11144_s1 + $0x1780] ss:$16 sps:$4 sm:$0xff]   ;;  %v7736_v31 = vld [vmem:[%s11144_s1 + $0x1564] ss:$16 sps:$4 sm:$0xff]  }
 0x14e   :  { %v7739_v30 = vld [vmem:[%s11144_s1 + $0x1764] ss:$16 sps:$4 sm:$0xff]   ;;  %v7734_v32 = vld [vmem:[%s11144_s1 + $0x1560] ss:$16 sps:$4 sm:$0xff]  }
 0x14f   :  { %5268 = vmatpush1.bf16.msra.mxu0 %v7680_v33  ;;  %v7737_v33 = vld [vmem:[%s11144_s1 + $0x1760] ss:$16 sps:$4 sm:$0xff]  }
 0x150   :  { %5309 = vmatpush1.bf16.msra.mxu1 %v7683_v34  ;;  %5269 = vmatprep.subr.bf16.mxu0 %v7688_v41  ;;  %v7742_v34 = vld [vmem:[%s11144_s1 + $0x1544] ss:$16 sps:$4 sm:$0xff]  }
 0x151   :  { %5310 = vmatprep.subr.bf16.mxu1 %v7691_v22  ;;  %v7745_v41 = vld [vmem:[%s11144_s1 + $0x1744] ss:$16 sps:$4 sm:$0xff]   ;;  %v7740_v22 = vld [vmem:[%s11144_s1 + $0x1540] ss:$16 sps:$4 sm:$0xff]  }
 0x153   :  { %5270 = vmatpush1.bf16.msra.mxu0 %v7686_v23  ;;  %v7743_v23 = vld [vmem:[%s11144_s1 + $0x1740] ss:$16 sps:$4 sm:$0xff]  }
 0x154   :  { %5311 = vmatpush1.bf16.msra.mxu1 %v7689_v44  ;;  %5271 = vmatprep.subr.bf16.mxu0 %v7694_v45  ;;  %v7748_v44 = vld [vmem:[%s11144_s1 + $0x1524] ss:$16 sps:$4 sm:$0xff]  }
 0x155   :  { %5312 = vmatprep.subr.bf16.mxu1 %v7697_v46  ;;  %v7751_v45 = vld [vmem:[%s11144_s1 + $0x1724] ss:$16 sps:$4 sm:$0xff]   ;;  %v7746_v46 = vld [vmem:[%s11144_s1 + $0x1520] ss:$16 sps:$4 sm:$0xff]  }
 0x157   :  { %5272 = vmatpush1.bf16.msra.mxu0 %v7692_v48  ;;  %v7749_v48 = vld [vmem:[%s11144_s1 + $0x1720] ss:$16 sps:$4 sm:$0xff]  }
 0x158   :  { %5313 = vmatpush1.bf16.msra.mxu1 %v7695_v49  ;;  %5273 = vmatprep.subr.bf16.mxu0 %v7700_v50  ;;  %v7754_v49 = vld [vmem:[%s11144_s1 + $0x1504] ss:$16 sps:$4 sm:$0xff]  }
 0x159   :  { %5314 = vmatprep.subr.bf16.mxu1 %v7703_v52  ;;  %v7757_v50 = vld [vmem:[%s11144_s1 + $0x1704] ss:$16 sps:$4 sm:$0xff]   ;;  %v7752_v52 = vld [vmem:[%s11144_s1 + $0x1500] ss:$16 sps:$4 sm:$0xff]  }
 0x15b   :  { %5274 = vmatpush1.bf16.msra.mxu0 %v7698_v53  ;;  %v7755_v53 = vld [vmem:[%s11144_s1 + $0x1700] ss:$16 sps:$4 sm:$0xff]  }
 0x15c   :  { %5315 = vmatpush1.bf16.msra.mxu1 %v7701_v55  ;;  %5275 = vmatprep.subr.bf16.mxu0 %v7706_v56  ;;  %v7764_v55 = vld [vmem:[%s11144_s1 + $0x1864] ss:$16 sps:$4 sm:$0xff]   ;;  %v7767_v56 = vld [vmem:[%s11144_s1 + $0xec] ss:$16 sps:$4 sm:$0xff]  }
 0x15d   :  { %5316 = vmatprep.subr.bf16.mxu1 %v7709_v59  ;;  %v7762_v59 = vld [vmem:[%s11144_s1 + $0x1860] ss:$16 sps:$4 sm:$0xff]  }
 0x15f   :  { %5276 = vmatpush1.bf16.msra.mxu0 %v7704_v60  ;;  %v7765_v60 = vld [vmem:[%s11144_s1 + $0xe8] ss:$16 sps:$4 sm:$0xff]  }
 0x160   :  { %5317 = vmatpush1.bf16.msra.mxu1 %v7707_v63  ;;  %5277 = vmatprep.subr.bf16.mxu0 %v7712_v4  ;;  %v9769_v63 = vcombine.low %v9536_v57, %v9536_v57  ;;  %v9773_v4 = vcombine.low %v9541_v58, %v9541_v58  ;;  %v7768_v57 = vld [vmem:[%s11144_s1 + $0x1840] ss:$16 sps:$4 sm:$0xff]   ;;  %v7771_v58 = vld [vmem:[%s11144_s1 + $0xc8] ss:$16 sps:$4 sm:$0xff]  }
 0x161   :  { %5318 = vmatprep.subr.bf16.mxu1 %v7715_v2  ;;  %v7770_v2 = vld [vmem:[%s11144_s1 + $0x1844] ss:$16 sps:$4 sm:$0xff]  }
 0x163   :  { %5278 = vmatpush2.bf16.msra.mxu0 %v7710_v3  ;;  %v7773_v3 = vld [vmem:[%s11144_s1 + $0xcc] ss:$16 sps:$4 sm:$0xff]  }
 0x164   :  { %5319 = vmatpush2.bf16.msra.mxu1 %v7713_v5  ;;  %5279 = vmatprep.subr.bf16.mxu0 %v7718_v8 }
 0x165   :  { %5320 = vmatprep.subr.bf16.mxu1 %v7721_v11 }
 0x167   :  { %5280 = vmatpush2.bf16.msra.mxu0 %v7716_v12 }
 0x168   :  { %5321 = vmatpush2.bf16.msra.mxu1 %v7719_v13  ;;  %5281 = vmatprep.subr.bf16.mxu0 %v7724_v14  ;;  %v7776_v14 = vld [vmem:[%s11144_s1 + $0x1824] ss:$16 sps:$4 sm:$0xff]  }
 0x169   :  { %5322 = vmatprep.subr.bf16.mxu1 %v7727_v15  ;;  %v7779_v15 = vld [vmem:[%s11144_s1 + $0xac] ss:$16 sps:$4 sm:$0xff]  }
 0x16b   :  { %5282 = vmatpush2.bf16.msra.mxu0 %v7722_v19 }
 0x16c   :  { %5323 = vmatpush2.bf16.msra.mxu1 %v7725_v26  ;;  %5283 = vmatprep.subr.bf16.mxu0 %v7730_v20  ;;  %v7777_v20 = vld [vmem:[%s11144_s1 + $0xa8] ss:$16 sps:$4 sm:$0xff]  }
 0x16d   :  { %5324 = vmatprep.subr.bf16.mxu1 %v7733_v21  ;;  %v8397_v21 = vmov 0  }
 0x16f   :  { %5284 = vmatpush2.bf16.msra.mxu0 %v7728_v27 }
 0x170   :  { %5325 = vmatpush2.bf16.msra.mxu1 %v7731_v29  ;;  %5285 = vmatprep.subr.bf16.mxu0 %v7736_v31 }
 0x171   :  { %5326 = vmatprep.subr.bf16.mxu1 %v7739_v30 }
 0x173   :  { %5286 = vmatpush2.bf16.msra.mxu0 %v7734_v32  ;;  %v7782_v32 = vld [vmem:[%s11144_s1 + $0x1804] ss:$16 sps:$4 sm:$0xff]  }
 0x174   :  { %5327 = vmatpush2.bf16.msra.mxu1 %v7737_v33  ;;  %5287 = vmatprep.subr.bf16.mxu0 %v7742_v34  ;;  %v7785_v33 = vld [vmem:[%s11144_s1 + $0x8c] ss:$16 sps:$4 sm:$0xff]   ;;  %v7783_v34 = vld [vmem:[%s11144_s1 + $0x88] ss:$16 sps:$4 sm:$0xff]  }
 0x175   :  { %5328 = vmatprep.subr.bf16.mxu1 %v7745_v41  ;;  %v7786_v41 = vld [vmem:[%s11145_s0 + $0x60] ss:$0 sps:$4 sm:$0xff]  }
 0x177   :  { %5288 = vmatpush2.bf16.msra.mxu0 %v7740_v22  ;;  %v7789_v22 = vld [vmem:[%s11144_s1 + $0x6c] ss:$16 sps:$4 sm:$0xff]  }
 0x178   :  { %5329 = vmatpush2.bf16.msra.mxu1 %v7743_v23  ;;  %5289 = vmatprep.subr.bf16.mxu0 %v7748_v44  ;;  %v7792_v23 = vld [vmem:[%s11144_s1 + $0x2ec] ss:$16 sps:$4 sm:$0xff]   ;;  %v7787_v44 = vld [vmem:[%s11144_s1 + $0x68] ss:$16 sps:$4 sm:$0xff]  }
 0x179   :  { %5330 = vmatprep.subr.bf16.mxu1 %v7751_v45  ;;  %v7790_v45 = vld [vmem:[%s11144_s1 + $0x2e8] ss:$16 sps:$4 sm:$0xff]  }
 0x17b   :  { %5290 = vmatpush2.bf16.msra.mxu0 %v7746_v46  ;;  %v7795_v46 = vld [vmem:[%s11144_s1 + $0x4c] ss:$16 sps:$4 sm:$0xff]  }
 0x17c   :  { %5331 = vmatpush2.bf16.msra.mxu1 %v7749_v48  ;;  %5291 = vmatprep.subr.bf16.mxu0 %v7754_v49  ;;  %v7798_v48 = vld [vmem:[%s11144_s1 + $0x2cc] ss:$16 sps:$4 sm:$0xff]   ;;  %v7793_v49 = vld [vmem:[%s11144_s1 + $0x48] ss:$16 sps:$4 sm:$0xff]  }
 0x17d   :  { %5332 = vmatprep.subr.bf16.mxu1 %v7757_v50  ;;  %v7796_v50 = vld [vmem:[%s11144_s1 + $0x2c8] ss:$16 sps:$4 sm:$0xff]  }
 0x17f   :  { %5292 = vmatpush2.bf16.msra.mxu0 %v7752_v52  ;;  %v7801_v52 = vld [vmem:[%s11144_s1 + $0x2c] ss:$16 sps:$4 sm:$0xff]  }
 0x180   :  { %5333 = vmatpush2.bf16.msra.mxu1 %v7755_v53  ;;  %5351 = vmatprep.subr.bf16.mxu0 %v7764_v55  ;;  %v7804_v53 = vld [vmem:[%s11144_s1 + $0x2ac] ss:$16 sps:$4 sm:$0xff]   ;;  %v7799_v55 = vld [vmem:[%s11144_s1 + $0x28] ss:$16 sps:$4 sm:$0xff]  }
 0x181   :  { %5384 = vmatprep.subr.bf16.mxu1 %v7767_v56  ;;  %v7802_v56 = vld [vmem:[%s11144_s1 + $0x2a8] ss:$16 sps:$4 sm:$0xff]  }
 0x182   :  { %v5049_v5 = vpop.f32.mrf.mxu0  ;;  %5294 = vmatmul.mubr.bf16.vlgmr.msra.gmra.mxu0 %v9769_v63 }
 0x183   :  { %v5090_v8 = vpop.f32.mrf.mxu1  ;;  %5335 = vmatmul.mubr.bf16.vlgmr.msra.gmra.mxu1 %v9773_v4  ;;  %v5050_v11 = vadd.f32 %v5049_v5, %v9586_v18  ;;  %5352 = vmatpush1.bf16.msra.mxu0 %v7762_v59  ;;  %v7774_v18 = vld [vmem:[%s11144_s1 + $0x1820] ss:$16 sps:$4 sm:$0xff]   ;;  %v7807_v59 = vld [vmem:[%s11144_s1 + $0xc] ss:$16 sps:$4 sm:$0xff]   ;;  %v7814_v5 = vld [vmem:[%s11144_s1 + $0x268] ss:$16 sps:$4 sm:$0xff]  }
 0x184   :  { %5385 = vmatpush1.bf16.msra.mxu1 %v7765_v60  ;;  %v5051_v12 = vpop.f32.mrf.mxu0  ;;  %5353 = vmatprep.subr.bf16.mxu0 %v7770_v2  ;;  %v7805_v60 = vld [vmem:[%s11144_s1 + $0x8] ss:$16 sps:$4 sm:$0xff]  }
 0x185   :  { %v5092_v13 = vpop.f32.mrf.mxu1  ;;  %5386 = vmatprep.subr.bf16.mxu1 %v7773_v3  ;;  %v9796_v19 = vadd.f32 %v5090_v8, %v5050_v11  ;;  %v5052_v26 = vadd.f32 %v5051_v12, %v9597_v28  ;;  %5375 = vmatprep.mubr.bf16.mxu0 %v8397_v21  ;;  %v7808_v2 = vld [vmem:[%s11144_s1 + $0x288] ss:$16 sps:$4 sm:$0xff]   ;;  %v7813_v3 = vld [vmem:[%s11144_s1 + $0x1ec] ss:$16 sps:$4 sm:$0xff]  }
 0x186   :  { %5416 = vmatprep.mubr.bf16.mxu1 %v8569_v47  ;;  %v5053_v27 = vpop.f32.mrf.mxu0  ;;  %v7780_v47 = vld [vmem:[%s11144_s1 + $0x1800] ss:$16 sps:$4 sm:$0xff]   ;;  %v7819_v8 = vld [vmem:[%s11144_s1 + $0x1cc] ss:$16 sps:$4 sm:$0xff]   ;;  %v7817_v12 = vld [vmem:[%s11144_s1 + $0x1c8] ss:$16 sps:$4 sm:$0xff]  }
 0x187   :  { %v5094_v29 = vpop.f32.mrf.mxu1  ;;  %v9807_v31 = vadd.f32 %v5092_v13, %v5052_v26  ;;  %5354 = vmatpush1.bf16.msra.mxu0 %v7768_v57  ;;  %v7816_v57 = vld [vmem:[%s11144_s1 + $0x26c] ss:$16 sps:$4 sm:$0xff]   ;;  %v7820_v13 = vld [vmem:[%s11144_s1 + $0x248] ss:$16 sps:$4 sm:$0xff]  }
 0x188   :  { %5387 = vmatpush1.bf16.msra.mxu1 %v7771_v58  ;;  %v5054_v28 = vpop.f32.mrf.mxu0  ;;  %5355 = vmatprep.subr.bf16.mxu0 %v7776_v14  ;;  %v7811_v58 = vld [vmem:[%s11144_s1 + $0x1e8] ss:$16 sps:$4 sm:$0xff]   ;;  %v7822_v11 = vld [vmem:[%s11144_s1 + $0x24c] ss:$16 sps:$4 sm:$0xff]  }
 0x189   :  { %v5095_v30 = vpop.f32.mrf.mxu1  ;;  %5388 = vmatprep.subr.bf16.mxu1 %v7779_v15  ;;  %v7825_v14 = vld [vmem:[%s11144_s1 + $0x1ac] ss:$16 sps:$4 sm:$0xff]   ;;  %v7823_v26 = vld [vmem:[%s11144_s1 + $0x1a8] ss:$16 sps:$4 sm:$0xff]  }
 0x18a   :  { %v7828_v15 = vld [vmem:[%s11144_s1 + $0x22c] ss:$16 sps:$4 sm:$0xff]   ;;  %v7829_v29 = vld [vmem:[%s11144_s1 + $0x188] ss:$16 sps:$4 sm:$0xff]  }
 0x18b   :  { %5356 = vmatpush1.bf16.msra.mxu0 %v7774_v18  ;;  %v7826_v18 = vld [vmem:[%s11144_s1 + $0x228] ss:$16 sps:$4 sm:$0xff]   ;;  %v7834_v27 = vld [vmem:[%s11144_s1 + $0x20c] ss:$16 sps:$4 sm:$0xff]  }
 0x18c   :  { %5389 = vmatpush1.bf16.msra.mxu1 %v7777_v20  ;;  %5357 = vmatprep.subr.bf16.mxu0 %v7782_v32  ;;  %v7831_v20 = vld [vmem:[%s11144_s1 + $0x18c] ss:$16 sps:$4 sm:$0xff]   ;;  %v7832_v28 = vld [vmem:[%s11144_s1 + $0x208] ss:$16 sps:$4 sm:$0xff]  }
 0x18d   :  { %5390 = vmatprep.subr.bf16.mxu1 %v7785_v33  ;;  %v7837_v30 = vld [vmem:[%s11144_s1 + $0x16c] ss:$16 sps:$4 sm:$0xff]   ;;  %v7835_v33 = vld [vmem:[%s11144_s1 + $0x168] ss:$16 sps:$4 sm:$0xff]  }
 0x18e   :  { %v7840_v32 = vld [vmem:[%s11144_s1 + $0x3ec] ss:$16 sps:$4 sm:$0xff]  }
 0x18f   :  { %5358 = vmatpush1.bf16.msra.mxu0 %v7780_v47  ;;  %v7838_v47 = vld [vmem:[%s11144_s1 + $0x3e8] ss:$16 sps:$4 sm:$0xff]  }
 0x190   :  { %5391 = vmatpush1.bf16.msra.mxu1 %v7783_v34  ;;  %5425 = vmatprep.subr.bf16.mxu0 %v7792_v23  ;;  %v7843_v34 = vld [vmem:[%s11144_s1 + $0x14c] ss:$16 sps:$4 sm:$0xff]   ;;  %v7844_v23 = vld [vmem:[%s11144_s1 + $0x3c8] ss:$16 sps:$4 sm:$0xff]  }
 0x191   :  { %5392 = vmatprep.subr.bf16.mxu1 %v7789_v22  ;;  %v7841_v22 = vld [vmem:[%s11144_s1 + $0x148] ss:$16 sps:$4 sm:$0xff]  }
 0x192   :  { %7082 = vmatmul.mubr.msk.bf16.vlgmr.msra.gmra.mxu0 %vm4847_vm0, %v7786_v41  ;;  %v7846_v41 = vld [vmem:[%s11144_s1 + $0x3cc] ss:$16 sps:$4 sm:$0xff]  }
 0x193   :  { %5426 = vmatpush1.bf16.msra.mxu0 %v7790_v45  ;;  %5457 = vmatprep.mubr.bf16.mxu0 %v8580_v51  ;;  %v7810_v51 = vld [vmem:[%s11144_s1 + $0x28c] ss:$16 sps:$4 sm:$0xff]  }
 0x194   :  { %5393 = vmatpush1.bf16.msra.mxu1 %v7787_v44  ;;  %5427 = vmatprep.subr.bf16.mxu0 %v7798_v48  ;;  %v7849_v44 = vld [vmem:[%s11144_s1 + $0x12c] ss:$16 sps:$4 sm:$0xff]   ;;  %v7850_v48 = vld [vmem:[%s11144_s1 + $0x3a8] ss:$16 sps:$4 sm:$0xff]  }
 0x195   :  { %5394 = vmatprep.subr.bf16.mxu1 %v7795_v46  ;;  %v7852_v45 = vld [vmem:[%s11144_s1 + $0x3ac] ss:$16 sps:$4 sm:$0xff]   ;;  %v7847_v46 = vld [vmem:[%s11144_s1 + $0x128] ss:$16 sps:$4 sm:$0xff]  }
 0x197   :  { %5428 = vmatpush1.bf16.msra.mxu0 %v7796_v50  ;;  %v7858_v50 = vld [vmem:[%s11144_s1 + $0x38c] ss:$16 sps:$4 sm:$0xff]  }
 0x198   :  { %5395 = vmatpush1.bf16.msra.mxu1 %v7793_v49  ;;  %5429 = vmatprep.subr.bf16.mxu0 %v7804_v53  ;;  %v7855_v49 = vld [vmem:[%s11144_s1 + $0x10c] ss:$16 sps:$4 sm:$0xff]   ;;  %v7856_v53 = vld [vmem:[%s11144_s1 + $0x388] ss:$16 sps:$4 sm:$0xff]  }
 0x199   :  { %5396 = vmatprep.subr.bf16.mxu1 %v7801_v52  ;;  %v7853_v52 = vld [vmem:[%s11144_s1 + $0x108] ss:$16 sps:$4 sm:$0xff]  }
 0x19b   :  { %5430 = vmatpush1.bf16.msra.mxu0 %v7802_v56  ;;  %v7864_v56 = vld [vmem:[%s11144_s1 + $0x4ec] ss:$16 sps:$4 sm:$0xff]  }
 0x19c   :  { %5397 = vmatpush1.bf16.msra.mxu1 %v7799_v55  ;;  %5431 = vmatprep.subr.bf16.mxu0 %v7810_v51  ;;  %v7861_v55 = vld [vmem:[%s11144_s1 + $0x36c] ss:$16 sps:$4 sm:$0xff]   ;;  %v7862_v51 = vld [vmem:[%s11144_s1 + $0x4e8] ss:$16 sps:$4 sm:$0xff]  }
 0x19d   :  { %5398 = vmatprep.subr.bf16.mxu1 %v7807_v59  ;;  %v7859_v59 = vld [vmem:[%s11144_s1 + $0x368] ss:$16 sps:$4 sm:$0xff]  }
 0x19f   :  { %5432 = vmatpush1.bf16.msra.mxu0 %v7808_v2  ;;  %v7870_v2 = vld [vmem:[%s11144_s1 + $0x4cc] ss:$16 sps:$4 sm:$0xff]  }
 0x1a0   :  { %5399 = vmatpush1.bf16.msra.mxu1 %v7805_v60  ;;  %5433 = vmatprep.subr.bf16.mxu0 %v7816_v57  ;;  %v7867_v60 = vld [vmem:[%s11144_s1 + $0x34c] ss:$16 sps:$4 sm:$0xff]   ;;  %v7868_v57 = vld [vmem:[%s11144_s1 + $0x4c8] ss:$16 sps:$4 sm:$0xff]  }
 0x1a1   :  { %5400 = vmatprep.subr.bf16.mxu1 %v7813_v3  ;;  %v7865_v3 = vld [vmem:[%s11144_s1 + $0x348] ss:$16 sps:$4 sm:$0xff]  }
 0x1a3   :  { %5434 = vmatpush1.bf16.msra.mxu0 %v7814_v5 }
 0x1a4   :  { %5401 = vmatpush2.bf16.msra.mxu1 %v7811_v58  ;;  %5435 = vmatprep.subr.bf16.mxu0 %v7822_v11 }
 0x1a5   :  { %5402 = vmatprep.subr.bf16.mxu1 %v7819_v8 }
 0x1a7   :  { %5436 = vmatpush1.bf16.msra.mxu0 %v7820_v13  ;;  %v7873_v13 = vld [vmem:[%s11144_s1 + $0x32c] ss:$16 sps:$4 sm:$0xff]  }
 0x1a8   :  { %5403 = vmatpush2.bf16.msra.mxu1 %v7817_v12  ;;  %5437 = vmatprep.subr.bf16.mxu0 %v7828_v15 }
 0x1a9   :  { %5404 = vmatprep.subr.bf16.mxu1 %v7825_v14  ;;  %v7876_v14 = vld [vmem:[%s11144_s1 + $0x4ac] ss:$16 sps:$4 sm:$0xff]  }
 0x1ab   :  { %5438 = vmatpush1.bf16.msra.mxu0 %v7826_v18 }
 0x1ac   :  { %5405 = vmatpush2.bf16.msra.mxu1 %v7823_v26  ;;  %5439 = vmatprep.subr.bf16.mxu0 %v7834_v27  ;;  %v7874_v26 = vld [vmem:[%s11144_s1 + $0x4a8] ss:$16 sps:$4 sm:$0xff]  }
 0x1ad   :  { %5406 = vmatprep.subr.bf16.mxu1 %v7831_v20 }
 0x1af   :  { %5440 = vmatpush1.bf16.msra.mxu0 %v7832_v28 }
 0x1b0   :  { %5407 = vmatpush2.bf16.msra.mxu1 %v7829_v29  ;;  %5441 = vmatprep.subr.bf16.mxu0 %v7840_v32  ;;  %v7880_v32 = vld [vmem:[%s11144_s1 + $0x488] ss:$16 sps:$4 sm:$0xff]  }
 0x1b1   :  { %5408 = vmatprep.subr.bf16.mxu1 %v7837_v30  ;;  %v7882_v30 = vld [vmem:[%s11144_s1 + $0x48c] ss:$16 sps:$4 sm:$0xff]  }
 0x1b3   :  { %5442 = vmatpush2.bf16.msra.mxu0 %v7838_v47  ;;  %v7888_v47 = vld [vmem:[%s11144_s1 + $0x6ec] ss:$16 sps:$4 sm:$0xff]  }
 0x1b4   :  { %5409 = vmatpush2.bf16.msra.mxu1 %v7835_v33  ;;  %5443 = vmatprep.subr.bf16.mxu0 %v7846_v41  ;;  %v7885_v33 = vld [vmem:[%s11144_s1 + $0x46c] ss:$16 sps:$4 sm:$0xff]   ;;  %v7886_v41 = vld [vmem:[%s11144_s1 + $0x6e8] ss:$16 sps:$4 sm:$0xff]  }
 0x1b5   :  { %5410 = vmatprep.subr.bf16.mxu1 %v7843_v34  ;;  %v7883_v34 = vld [vmem:[%s11144_s1 + $0x468] ss:$16 sps:$4 sm:$0xff]  }
 0x1b7   :  { %5444 = vmatpush2.bf16.msra.mxu0 %v7844_v23  ;;  %v7894_v23 = vld [vmem:[%s11144_s1 + $0x6cc] ss:$16 sps:$4 sm:$0xff]  }
 0x1b8   :  { %5411 = vmatpush2.bf16.msra.mxu1 %v7841_v22  ;;  %5445 = vmatprep.subr.bf16.mxu0 %v7852_v45  ;;  %v7891_v22 = vld [vmem:[%s11144_s1 + $0x44c] ss:$16 sps:$4 sm:$0xff]   ;;  %v7892_v45 = vld [vmem:[%s11144_s1 + $0x6c8] ss:$16 sps:$4 sm:$0xff]  }
 0x1b9   :  { %5412 = vmatprep.subr.bf16.mxu1 %v7849_v44  ;;  %v7889_v44 = vld [vmem:[%s11144_s1 + $0x448] ss:$16 sps:$4 sm:$0xff]  }
 0x1bb   :  { %5446 = vmatpush2.bf16.msra.mxu0 %v7850_v48  ;;  %v7895_v48 = vld [vmem:[%s11144_s1 + $0x428] ss:$16 sps:$4 sm:$0xff]  }
 0x1bc   :  { %5413 = vmatpush2.bf16.msra.mxu1 %v7847_v46  ;;  %5447 = vmatprep.subr.bf16.mxu0 %v7858_v50  ;;  %v7897_v46 = vld [vmem:[%s11144_s1 + $0x42c] ss:$16 sps:$4 sm:$0xff]  }
 0x1bd   :  { %5414 = vmatprep.subr.bf16.mxu1 %v7855_v49  ;;  %v7898_v49 = vld [vmem:[%s11144_s1 + $0x6a8] ss:$16 sps:$4 sm:$0xff]   ;;  %v7903_v50 = vld [vmem:[%s11144_s1 + $0x40c] ss:$16 sps:$4 sm:$0xff]  }
 0x1bf   :  { %5448 = vmatpush2.bf16.msra.mxu0 %v7856_v53  ;;  %v7904_v53 = vld [vmem:[%s11144_s1 + $0x688] ss:$16 sps:$4 sm:$0xff]  }
 0x1c0   :  { %5415 = vmatpush2.bf16.msra.mxu1 %v7853_v52  ;;  %5449 = vmatprep.subr.bf16.mxu0 %v7861_v55  ;;  %v7901_v52 = vld [vmem:[%s11144_s1 + $0x408] ss:$16 sps:$4 sm:$0xff]   ;;  %v7909_v55 = vld [vmem:[%s11144_s1 + $0x5ec] ss:$16 sps:$4 sm:$0xff]  }
 0x1c1   :  { %5466 = vmatprep.subr.bf16.mxu1 %v7864_v56  ;;  %v7912_v56 = vld [vmem:[%s11144_s1 + $0x66c] ss:$16 sps:$4 sm:$0xff]  }
 0x1c2   :  { %v5131_v58 = vpop.f32.mrf.mxu0 }
 0x1c3   :  { %v5172_v5 = vpop.f32.mrf.mxu1  ;;  %5417 = vmatmul.mubr.bf16.vlgmr.msra.gmra.mxu1 %v8638_v6  ;;  %v5132_v8 = vadd.f32 %v5131_v58, %v9796_v19  ;;  %5450 = vmatpush2.bf16.msra.mxu0 %v7859_v59  ;;  %v7871_v19 = vld [vmem:[%s11144_s1 + $0x328] ss:$16 sps:$4 sm:$0xff]   ;;  %v7921_v58 = vld [vmem:[%s11144_s1 + $0x5ac] ss:$16 sps:$4 sm:$0xff]  }
 0x1c4   :  { %5467 = vmatpush1.bf16.msra.mxu1 %v7862_v51  ;;  %v5133_v11 = vpop.f32.mrf.mxu0  ;;  %5451 = vmatprep.subr.bf16.mxu0 %v7867_v60  ;;  %v7907_v59 = vld [vmem:[%s11144_s1 + $0x5e8] ss:$16 sps:$4 sm:$0xff]   ;;  %v7915_v60 = vld [vmem:[%s11144_s1 + $0x5cc] ss:$16 sps:$4 sm:$0xff]  }
 0x1c5   :  { %v5174_v12 = vpop.f32.mrf.mxu1  ;;  %5468 = vmatprep.subr.bf16.mxu1 %v7870_v2  ;;  %v10002_v15 = vadd.f32 %v5172_v5, %v5132_v8  ;;  %v5134_v6 = vadd.f32 %v5133_v11, %v9807_v31  ;;  %5498 = vmatprep.mubr.bf16.mxu1 %v8734_v36  ;;  %v7879_v31 = vld [vmem:[%s11144_s1 + $0x30c] ss:$16 sps:$4 sm:$0xff]   ;;  %v7877_v36 = vld [vmem:[%s11144_s1 + $0x308] ss:$16 sps:$4 sm:$0xff]  }
 0x1c6   :  { %v5135_v18 = vpop.f32.mrf.mxu0  ;;  %v7910_v51 = vld [vmem:[%s11144_s1 + $0x668] ss:$16 sps:$4 sm:$0xff]   ;;  %v7918_v2 = vld [vmem:[%s11144_s1 + $0x64c] ss:$16 sps:$4 sm:$0xff]  }
 0x1c7   :  { %v5176_v20 = vpop.f32.mrf.mxu1  ;;  %v10012_v27 = vadd.f32 %v5174_v12, %v5134_v6  ;;  %5452 = vmatpush2.bf16.msra.mxu0 %v7865_v3  ;;  %v7913_v3 = vld [vmem:[%s11144_s1 + $0x5c8] ss:$16 sps:$4 sm:$0xff]   ;;  %v7924_v5 = vld [vmem:[%s11144_s1 + $0x62c] ss:$16 sps:$4 sm:$0xff]  }
 0x1c8   :  { %5469 = vmatpush1.bf16.msra.mxu1 %v7868_v57  ;;  %v5136_v29 = vpop.f32.mrf.mxu0  ;;  %5453 = vmatprep.subr.bf16.mxu0 %v7873_v13  ;;  %v7916_v57 = vld [vmem:[%s11144_s1 + $0x648] ss:$16 sps:$4 sm:$0xff]   ;;  %v7927_v12 = vld [vmem:[%s11144_s1 + $0x58c] ss:$16 sps:$4 sm:$0xff]  }
 0x1c9   :  { %v5177_v28 = vpop.f32.mrf.mxu1  ;;  %5470 = vmatprep.subr.bf16.mxu1 %v7876_v14  ;;  %v7919_v8 = vld [vmem:[%s11144_s1 + $0x5a8] ss:$16 sps:$4 sm:$0xff]   ;;  %v7930_v13 = vld [vmem:[%s11144_s1 + $0x60c] ss:$16 sps:$4 sm:$0xff]  }
 0x1ca   :  { %v7922_v11 = vld [vmem:[%s11144_s1 + $0x628] ss:$16 sps:$4 sm:$0xff]   ;;  %v7939_v29 = vld [vmem:[%s11144_s1 + $0x54c] ss:$16 sps:$4 sm:$0xff]  }
 0x1cb   :  { %5454 = vmatpush2.bf16.msra.mxu0 %v7871_v19  ;;  %v7925_v14 = vld [vmem:[%s11144_s1 + $0x588] ss:$16 sps:$4 sm:$0xff]   ;;  %v7933_v19 = vld [vmem:[%s11144_s1 + $0x56c] ss:$16 sps:$4 sm:$0xff]  }
 0x1cc   :  { %5471 = vmatpush1.bf16.msra.mxu1 %v7874_v26  ;;  %5455 = vmatprep.subr.bf16.mxu0 %v7879_v31  ;;  %v7928_v6 = vld [vmem:[%s11144_s1 + $0x608] ss:$16 sps:$4 sm:$0xff]   ;;  %v7936_v26 = vld [vmem:[%s11144_s1 + $0x7ec] ss:$16 sps:$4 sm:$0xff]  }
 0x1cd   :  { %5472 = vmatprep.subr.bf16.mxu1 %v7882_v30  ;;  %v7931_v18 = vld [vmem:[%s11144_s1 + $0x568] ss:$16 sps:$4 sm:$0xff]   ;;  %v7942_v28 = vld [vmem:[%s11144_s1 + $0x7cc] ss:$16 sps:$4 sm:$0xff]  }
 0x1ce   :  { %v7934_v20 = vld [vmem:[%s11144_s1 + $0x7e8] ss:$16 sps:$4 sm:$0xff]  }
 0x1cf   :  { %5456 = vmatpush2.bf16.msra.mxu0 %v7877_v36  ;;  %v7937_v31 = vld [vmem:[%s11144_s1 + $0x548] ss:$16 sps:$4 sm:$0xff]   ;;  %v7945_v36 = vld [vmem:[%s11144_s1 + $0x52c] ss:$16 sps:$4 sm:$0xff]  }
 0x1d0   :  { %5473 = vmatpush1.bf16.msra.mxu1 %v7880_v32  ;;  %5507 = vmatprep.subr.bf16.mxu0 %v7888_v47  ;;  %v7940_v30 = vld [vmem:[%s11144_s1 + $0x7c8] ss:$16 sps:$4 sm:$0xff]   ;;  %v7948_v32 = vld [vmem:[%s11144_s1 + $0x7ac] ss:$16 sps:$4 sm:$0xff]  }
 0x1d1   :  { %5474 = vmatprep.subr.bf16.mxu1 %v7885_v33  ;;  %v7943_v33 = vld [vmem:[%s11144_s1 + $0x528] ss:$16 sps:$4 sm:$0xff]  }
 0x1d2   :  { %5458 = vmatmul.mubr.bf16.vlgmr.msra.gmra.mxu0 %v8640_v7  ;;  %v7900_v7 = vld [vmem:[%s11144_s1 + $0x6ac] ss:$16 sps:$4 sm:$0xff]   ;;  %v7946_v47 = vld [vmem:[%s11144_s1 + $0x7a8] ss:$16 sps:$4 sm:$0xff]  }
 0x1d3   :  { %5508 = vmatpush1.bf16.msra.mxu0 %v7886_v41  ;;  %5539 = vmatprep.mubr.bf16.mxu0 %v8738_v37  ;;  %v7906_v37 = vld [vmem:[%s11144_s1 + $0x68c] ss:$16 sps:$4 sm:$0xff]  }
 0x1d4   :  { %5475 = vmatpush1.bf16.msra.mxu1 %v7883_v34  ;;  %5509 = vmatprep.subr.bf16.mxu0 %v7894_v23  ;;  %v7951_v34 = vld [vmem:[%s11144_s1 + $0x50c] ss:$16 sps:$4 sm:$0xff]   ;;  %v7952_v23 = vld [vmem:[%s11144_s1 + $0x788] ss:$16 sps:$4 sm:$0xff]  }
 0x1d5   :  { %5476 = vmatprep.subr.bf16.mxu1 %v7891_v22  ;;  %v7954_v41 = vld [vmem:[%s11144_s1 + $0x78c] ss:$16 sps:$4 sm:$0xff]   ;;  %v7949_v22 = vld [vmem:[%s11144_s1 + $0x508] ss:$16 sps:$4 sm:$0xff]  }
 0x1d7   :  { %5510 = vmatpush1.bf16.msra.mxu0 %v7892_v45  ;;  %v7960_v45 = vld [vmem:[%s11144_s1 + $0x8ec] ss:$16 sps:$4 sm:$0xff]  }
 0x1d8   :  { %5477 = vmatpush1.bf16.msra.mxu1 %v7889_v44  ;;  %5511 = vmatprep.subr.bf16.mxu0 %v7900_v7  ;;  %v7957_v44 = vld [vmem:[%s11144_s1 + $0x76c] ss:$16 sps:$4 sm:$0xff]   ;;  %v7958_v7 = vld [vmem:[%s11144_s1 + $0x8e8] ss:$16 sps:$4 sm:$0xff]  }
 0x1d9   :  { %5478 = vmatprep.subr.bf16.mxu1 %v7897_v46  ;;  %v7955_v46 = vld [vmem:[%s11144_s1 + $0x768] ss:$16 sps:$4 sm:$0xff]  }
 0x1db   :  { %5512 = vmatpush1.bf16.msra.mxu0 %v7898_v49  ;;  %v7966_v49 = vld [vmem:[%s11144_s1 + $0x8cc] ss:$16 sps:$4 sm:$0xff]  }
 0x1dc   :  { %5479 = vmatpush1.bf16.msra.mxu1 %v7895_v48  ;;  %5513 = vmatprep.subr.bf16.mxu0 %v7906_v37  ;;  %v7963_v48 = vld [vmem:[%s11144_s1 + $0x74c] ss:$16 sps:$4 sm:$0xff]  }
 0x1dd   :  { %5480 = vmatprep.subr.bf16.mxu1 %v7903_v50 }
 0x1df   :  { %5514 = vmatpush1.bf16.msra.mxu0 %v7904_v53  ;;  %v7961_v53 = vld [vmem:[%s11144_s1 + $0x748] ss:$16 sps:$4 sm:$0xff]  }
 0x1e0   :  { %5481 = vmatpush1.bf16.msra.mxu1 %v7901_v52  ;;  %5515 = vmatprep.subr.bf16.mxu0 %v7912_v56 }
 0x1e1   :  { %5482 = vmatprep.subr.bf16.mxu1 %v7909_v55  ;;  %v7964_v55 = vld [vmem:[%s11144_s1 + $0x8c8] ss:$16 sps:$4 sm:$0xff]  }
 0x1e3   :  { %5516 = vmatpush1.bf16.msra.mxu0 %v7910_v51 }
 0x1e4   :  { %5483 = vmatpush2.bf16.msra.mxu1 %v7907_v59  ;;  %5517 = vmatprep.subr.bf16.mxu0 %v7918_v2 }
 0x1e5   :  { %5484 = vmatprep.subr.bf16.mxu1 %v7915_v60 }
 0x1e7   :  { %5518 = vmatpush1.bf16.msra.mxu0 %v7916_v57 }
 0x1e8   :  { %5485 = vmatpush2.bf16.msra.mxu1 %v7913_v3  ;;  %5519 = vmatprep.subr.bf16.mxu0 %v7924_v5  ;;  %v7970_v5 = vld [vmem:[%s11144_s1 + $0x8a8] ss:$16 sps:$4 sm:$0xff]  }
 0x1e9   :  { %5486 = vmatprep.subr.bf16.mxu1 %v7921_v58  ;;  %v7967_v58 = vld [vmem:[%s11144_s1 + $0x728] ss:$16 sps:$4 sm:$0xff]  }
 0x1eb   :  { %5520 = vmatpush1.bf16.msra.mxu0 %v7922_v11 }
 0x1ec   :  { %5487 = vmatpush2.bf16.msra.mxu1 %v7919_v8  ;;  %5521 = vmatprep.subr.bf16.mxu0 %v7930_v13  ;;  %v7976_v13 = vld [vmem:[%s11144_s1 + $0x888] ss:$16 sps:$4 sm:$0xff]  }
 0x1ed   :  { %5488 = vmatprep.subr.bf16.mxu1 %v7927_v12  ;;  %v7973_v12 = vld [vmem:[%s11144_s1 + $0x708] ss:$16 sps:$4 sm:$0xff]  }
 0x1ef   :  { %5522 = vmatpush1.bf16.msra.mxu0 %v7928_v6  ;;  %v7984_v6 = vld [vmem:[%s11144_s1 + $0xaec] ss:$16 sps:$4 sm:$0xff]  }
 0x1f0   :  { %5489 = vmatpush2.bf16.msra.mxu1 %v7925_v14  ;;  %5523 = vmatprep.subr.bf16.mxu0 %v7936_v26  ;;  %v7981_v14 = vld [vmem:[%s11144_s1 + $0x86c] ss:$16 sps:$4 sm:$0xff]   ;;  %v7982_v26 = vld [vmem:[%s11144_s1 + $0xae8] ss:$16 sps:$4 sm:$0xff]  }
 0x1f1   :  { %5490 = vmatprep.subr.bf16.mxu1 %v7933_v19  ;;  %v7979_v19 = vld [vmem:[%s11144_s1 + $0x868] ss:$16 sps:$4 sm:$0xff]  }
 0x1f3   :  { %5524 = vmatpush2.bf16.msra.mxu0 %v7934_v20  ;;  %v7990_v20 = vld [vmem:[%s11144_s1 + $0xacc] ss:$16 sps:$4 sm:$0xff]  }
 0x1f4   :  { %5491 = vmatpush2.bf16.msra.mxu1 %v7931_v18  ;;  %5525 = vmatprep.subr.bf16.mxu0 %v7942_v28  ;;  %v7987_v18 = vld [vmem:[%s11144_s1 + $0x84c] ss:$16 sps:$4 sm:$0xff]   ;;  %v7988_v28 = vld [vmem:[%s11144_s1 + $0xac8] ss:$16 sps:$4 sm:$0xff]  }
 0x1f5   :  { %5492 = vmatprep.subr.bf16.mxu1 %v7939_v29  ;;  %v7985_v29 = vld [vmem:[%s11144_s1 + $0x848] ss:$16 sps:$4 sm:$0xff]  }
 0x1f7   :  { %5526 = vmatpush2.bf16.msra.mxu0 %v7940_v30  ;;  %v7991_v30 = vld [vmem:[%s11144_s1 + $0x828] ss:$16 sps:$4 sm:$0xff]  }
 0x1f8   :  { %5493 = vmatpush2.bf16.msra.mxu1 %v7937_v31  ;;  %5527 = vmatprep.subr.bf16.mxu0 %v7948_v32  ;;  %v7993_v31 = vld [vmem:[%s11144_s1 + $0x82c] ss:$16 sps:$4 sm:$0xff]  }
 0x1f9   :  { %5494 = vmatprep.subr.bf16.mxu1 %v7945_v36  ;;  %v7994_v36 = vld [vmem:[%s11144_s1 + $0xaa8] ss:$16 sps:$4 sm:$0xff]   ;;  %v7999_v32 = vld [vmem:[%s11144_s1 + $0x80c] ss:$16 sps:$4 sm:$0xff]  }
 0x1fb   :  { %5528 = vmatpush2.bf16.msra.mxu0 %v7946_v47  ;;  %v8000_v47 = vld [vmem:[%s11144_s1 + $0xa88] ss:$16 sps:$4 sm:$0xff]  }
 0x1fc   :  { %5495 = vmatpush2.bf16.msra.mxu1 %v7943_v33  ;;  %5529 = vmatprep.subr.bf16.mxu0 %v7954_v41  ;;  %v7997_v33 = vld [vmem:[%s11144_s1 + $0x808] ss:$16 sps:$4 sm:$0xff]   ;;  %v8008_v41 = vld [vmem:[%s11144_s1 + $0xa6c] ss:$16 sps:$4 sm:$0xff]  }
 0x1fd   :  { %5496 = vmatprep.subr.bf16.mxu1 %v7951_v34  ;;  %v8005_v34 = vld [vmem:[%s11144_s1 + $0x9ec] ss:$16 sps:$4 sm:$0xff]  }
 0x1ff   :  { %5530 = vmatpush2.bf16.msra.mxu0 %v7952_v23  ;;  %v8006_v23 = vld [vmem:[%s11144_s1 + $0xa68] ss:$16 sps:$4 sm:$0xff]  }
 0x200   :  { %5497 = vmatpush2.bf16.msra.mxu1 %v7949_v22  ;;  %5531 = vmatprep.subr.bf16.mxu0 %v7957_v44  ;;  %v8003_v22 = vld [vmem:[%s11144_s1 + $0x9e8] ss:$16 sps:$4 sm:$0xff]   ;;  %v8011_v44 = vld [vmem:[%s11144_s1 + $0x9cc] ss:$16 sps:$4 sm:$0xff]  }
 0x201   :  { %5548 = vmatprep.subr.bf16.mxu1 %v7960_v45  ;;  %v8014_v45 = vld [vmem:[%s11144_s1 + $0xa4c] ss:$16 sps:$4 sm:$0xff]  }
 0x202   :  { %v5213_v50 = vpop.f32.mrf.mxu0 }
 0x203   :  { %v5254_v37 = vpop.f32.mrf.mxu1  ;;  %5499 = vmatmul.mubr.bf16.vlgmr.msra.gmra.mxu1 %v8858_v16  ;;  %v5214_v52 = vadd.f32 %v5213_v50, %v10002_v15  ;;  %5532 = vmatpush2.bf16.msra.mxu0 %v7955_v46  ;;  %v7969_v16 = vld [vmem:[%s11144_s1 + $0x72c] ss:$16 sps:$4 sm:$0xff]   ;;  %v8009_v46 = vld [vmem:[%s11144_s1 + $0x9c8] ss:$16 sps:$4 sm:$0xff]  }
 0x204   :  { %5549 = vmatpush1.bf16.msra.mxu1 %v7958_v7  ;;  %v5215_v56 = vpop.f32.mrf.mxu0  ;;  %5533 = vmatprep.subr.bf16.mxu0 %v7963_v48  ;;  %v7972_v15 = vld [vmem:[%s11144_s1 + $0x8ac] ss:$16 sps:$4 sm:$0xff]   ;;  %v8012_v7 = vld [vmem:[%s11144_s1 + $0xa48] ss:$16 sps:$4 sm:$0xff]  }
 0x205   :  { %v5256_v59 = vpop.f32.mrf.mxu1  ;;  %5550 = vmatprep.subr.bf16.mxu1 %v7966_v49  ;;  %v10204_v51 = vadd.f32 %v5254_v37, %v5214_v52  ;;  %v5216_v60 = vadd.f32 %v5215_v56, %v10012_v27  ;;  %5580 = vmatprep.mubr.bf16.mxu1 %v8888_v24  ;;  %v7975_v24 = vld [vmem:[%s11144_s1 + $0x70c] ss:$16 sps:$4 sm:$0xff]   ;;  %v8015_v50 = vld [vmem:[%s11144_s1 + $0x9a8] ss:$16 sps:$4 sm:$0xff]  }
 0x206   :  { %v5217_v2 = vpop.f32.mrf.mxu0  ;;  %v7978_v27 = vld [vmem:[%s11144_s1 + $0x88c] ss:$16 sps:$4 sm:$0xff]   ;;  %v8018_v37 = vld [vmem:[%s11144_s1 + $0xa28] ss:$16 sps:$4 sm:$0xff]  }
 0x207   :  { %v5258_v3 = vpop.f32.mrf.mxu1  ;;  %v10208_v57 = vadd.f32 %v5256_v59, %v5216_v60  ;;  %5534 = vmatpush2.bf16.msra.mxu0 %v7961_v53  ;;  %v8017_v48 = vld [vmem:[%s11144_s1 + $0x9ac] ss:$16 sps:$4 sm:$0xff]   ;;  %v8024_v56 = vld [vmem:[%s11144_s1 + $0xa08] ss:$16 sps:$4 sm:$0xff]  }
 0x208   :  { %5551 = vmatpush1.bf16.msra.mxu1 %v7964_v55  ;;  %v5218_v8 = vpop.f32.mrf.mxu0  ;;  %5535 = vmatprep.subr.bf16.mxu0 %v7969_v16  ;;  %v8020_v49 = vld [vmem:[%s11144_s1 + $0xa2c] ss:$16 sps:$4 sm:$0xff]   ;;  %v8021_v55 = vld [vmem:[%s11144_s1 + $0x988] ss:$16 sps:$4 sm:$0xff]  }
 0x209   :  { %v5259_v11 = vpop.f32.mrf.mxu1  ;;  %5552 = vmatprep.subr.bf16.mxu1 %v7972_v15  ;;  %v8023_v52 = vld [vmem:[%s11144_s1 + $0x98c] ss:$16 sps:$4 sm:$0xff]   ;;  %v8027_v15 = vld [vmem:[%s11144_s1 + $0x968] ss:$16 sps:$4 sm:$0xff]  }
 0x20a   :  { %v8026_v53 = vld [vmem:[%s11144_s1 + $0xa0c] ss:$16 sps:$4 sm:$0xff]   ;;  %v8030_v60 = vld [vmem:[%s11144_s1 + $0xbe8] ss:$16 sps:$4 sm:$0xff]  }
 0x20b   :  { %5536 = vmatpush2.bf16.msra.mxu0 %v7967_v58  ;;  %v8029_v59 = vld [vmem:[%s11144_s1 + $0x96c] ss:$16 sps:$4 sm:$0xff]   ;;  %v8033_v58 = vld [vmem:[%s11144_s1 + $0x948] ss:$16 sps:$4 sm:$0xff]  }
 0x20c   :  { %5553 = vmatpush1.bf16.msra.mxu1 %v7970_v5  ;;  %5537 = vmatprep.subr.bf16.mxu0 %v7975_v24  ;;  %v8032_v16 = vld [vmem:[%s11144_s1 + $0xbec] ss:$16 sps:$4 sm:$0xff]   ;;  %v8036_v5 = vld [vmem:[%s11144_s1 + $0xbc8] ss:$16 sps:$4 sm:$0xff]  }
 0x20d   :  { %5554 = vmatprep.subr.bf16.mxu1 %v7978_v27  ;;  %v8035_v2 = vld [vmem:[%s11144_s1 + $0x94c] ss:$16 sps:$4 sm:$0xff]   ;;  %v8039_v24 = vld [vmem:[%s11144_s1 + $0x928] ss:$16 sps:$4 sm:$0xff]  }
 0x20e   :  { %v8038_v3 = vld [vmem:[%s11144_s1 + $0xbcc] ss:$16 sps:$4 sm:$0xff]   ;;  %v8042_v27 = vld [vmem:[%s11144_s1 + $0xba8] ss:$16 sps:$4 sm:$0xff]  }
 0x20f   :  { %5538 = vmatpush2.bf16.msra.mxu0 %v7973_v12  ;;  %v8041_v8 = vld [vmem:[%s11144_s1 + $0x92c] ss:$16 sps:$4 sm:$0xff]  }
 0x210   :  { %5555 = vmatpush1.bf16.msra.mxu1 %v7976_v13  ;;  %5589 = vmatprep.subr.bf16.mxu0 %v7984_v6  ;;  %v8044_v11 = vld [vmem:[%s11144_s1 + $0xbac] ss:$16 sps:$4 sm:$0xff]   ;;  %v8048_v6 = vld [vmem:[%s11144_s1 + $0xb88] ss:$16 sps:$4 sm:$0xff]  }
 0x211   :  { %5556 = vmatprep.subr.bf16.mxu1 %v7981_v14  ;;  %v8047_v12 = vld [vmem:[%s11144_s1 + $0x90c] ss:$16 sps:$4 sm:$0xff]   ;;  %v8045_v14 = vld [vmem:[%s11144_s1 + $0x908] ss:$16 sps:$4 sm:$0xff]  }
 0x212   :  { %5540 = vmatmul.mubr.bf16.vlgmr.msra.gmra.mxu0 %v8862_v17  ;;  %v7996_v17 = vld [vmem:[%s11144_s1 + $0xaac] ss:$16 sps:$4 sm:$0xff]  }
 0x213   :  { %5590 = vmatpush1.bf16.msra.mxu0 %v7982_v26  ;;  %5621 = vmatprep.mubr.bf16.mxu0 %v8892_v25  ;;  %v8002_v25 = vld [vmem:[%s11144_s1 + $0xa8c] ss:$16 sps:$4 sm:$0xff]  }
 0x214   :  { %5557 = vmatpush1.bf16.msra.mxu1 %v7979_v19  ;;  %5591 = vmatprep.subr.bf16.mxu0 %v7990_v20  ;;  %v8050_v13 = vld [vmem:[%s11144_s1 + $0xb8c] ss:$16 sps:$4 sm:$0xff]   ;;  %v8054_v20 = vld [vmem:[%s11144_s1 + $0xce8] ss:$16 sps:$4 sm:$0xff]  }
 0x215   :  { %5558 = vmatprep.subr.bf16.mxu1 %v7987_v18  ;;  %v8053_v19 = vld [vmem:[%s11144_s1 + $0xb6c] ss:$16 sps:$4 sm:$0xff]   ;;  %v8051_v18 = vld [vmem:[%s11144_s1 + $0xb68] ss:$16 sps:$4 sm:$0xff]  }
 0x216   :  { %v8056_v26 = vld [vmem:[%s11144_s1 + $0xcec] ss:$16 sps:$4 sm:$0xff]  }
 0x217   :  { %5592 = vmatpush1.bf16.msra.mxu0 %v7988_v28  ;;  %v8062_v28 = vld [vmem:[%s11144_s1 + $0xccc] ss:$16 sps:$4 sm:$0xff]  }
 0x218   :  { %5559 = vmatpush1.bf16.msra.mxu1 %v7985_v29  ;;  %5593 = vmatprep.subr.bf16.mxu0 %v7996_v17  ;;  %v8059_v29 = vld [vmem:[%s11144_s1 + $0xb4c] ss:$16 sps:$4 sm:$0xff]  }
 0x219   :  { %5560 = vmatprep.subr.bf16.mxu1 %v7993_v31 }
 0x21b   :  { %5594 = vmatpush1.bf16.msra.mxu0 %v7994_v36  ;;  %v8057_v36 = vld [vmem:[%s11144_s1 + $0xb48] ss:$16 sps:$4 sm:$0xff]  }
 0x21c   :  { %5561 = vmatpush1.bf16.msra.mxu1 %v7991_v30  ;;  %5595 = vmatprep.subr.bf16.mxu0 %v8002_v25 }
 0x21d   :  { %5562 = vmatprep.subr.bf16.mxu1 %v7999_v32  ;;  %v8060_v32 = vld [vmem:[%s11144_s1 + $0xcc8] ss:$16 sps:$4 sm:$0xff]  }
 0x21f   :  { %5596 = vmatpush1.bf16.msra.mxu0 %v8000_v47 }
 0x220   :  { %5563 = vmatpush1.bf16.msra.mxu1 %v7997_v33  ;;  %5597 = vmatprep.subr.bf16.mxu0 %v8008_v41 }
 0x221   :  { %5564 = vmatprep.subr.bf16.mxu1 %v8005_v34 }
 0x223   :  { %5598 = vmatpush1.bf16.msra.mxu0 %v8006_v23 }
 0x224   :  { %5565 = vmatpush2.bf16.msra.mxu1 %v8003_v22  ;;  %5599 = vmatprep.subr.bf16.mxu0 %v8014_v45  ;;  %v8066_v45 = vld [vmem:[%s11144_s1 + $0xca8] ss:$16 sps:$4 sm:$0xff]  }
 0x225   :  { %5566 = vmatprep.subr.bf16.mxu1 %v8011_v44  ;;  %v8063_v44 = vld [vmem:[%s11144_s1 + $0xb28] ss:$16 sps:$4 sm:$0xff]  }
 0x227   :  { %5600 = vmatpush1.bf16.msra.mxu0 %v8012_v7 }
 0x228   :  { %5567 = vmatpush2.bf16.msra.mxu1 %v8009_v46  ;;  %5601 = vmatprep.subr.bf16.mxu0 %v8020_v49  ;;  %v8072_v49 = vld [vmem:[%s11144_s1 + $0xc88] ss:$16 sps:$4 sm:$0xff]  }
 0x229   :  { %5568 = vmatprep.subr.bf16.mxu1 %v8017_v48  ;;  %v8069_v48 = vld [vmem:[%s11144_s1 + $0xb08] ss:$16 sps:$4 sm:$0xff]  }
 0x22b   :  { %5602 = vmatpush1.bf16.msra.mxu0 %v8018_v37  ;;  %v8080_v37 = vld [vmem:[%s11144_s1 + $0xeec] ss:$16 sps:$4 sm:$0xff]  }
 0x22c   :  { %5569 = vmatpush2.bf16.msra.mxu1 %v8015_v50  ;;  %5603 = vmatprep.subr.bf16.mxu0 %v8026_v53  ;;  %v8077_v50 = vld [vmem:[%s11144_s1 + $0xc6c] ss:$16 sps:$4 sm:$0xff]   ;;  %v8078_v53 = vld [vmem:[%s11144_s1 + $0xee8] ss:$16 sps:$4 sm:$0xff]  }
 0x22d   :  { %5570 = vmatprep.subr.bf16.mxu1 %v8023_v52  ;;  %v8075_v52 = vld [vmem:[%s11144_s1 + $0xc68] ss:$16 sps:$4 sm:$0xff]  }
 0x22f   :  { %5604 = vmatpush1.bf16.msra.mxu0 %v8024_v56  ;;  %v8086_v56 = vld [vmem:[%s11144_s1 + $0xecc] ss:$16 sps:$4 sm:$0xff]  }
 0x230   :  { %5571 = vmatpush2.bf16.msra.mxu1 %v8021_v55  ;;  %5605 = vmatprep.subr.bf16.mxu0 %v8032_v16  ;;  %v8083_v55 = vld [vmem:[%s11144_s1 + $0xc4c] ss:$16 sps:$4 sm:$0xff]  }
 0x231   :  { %5572 = vmatprep.subr.bf16.mxu1 %v8029_v59 }
 0x233   :  { %5606 = vmatpush2.bf16.msra.mxu0 %v8030_v60  ;;  %v8084_v60 = vld [vmem:[%s11144_s1 + $0xec8] ss:$16 sps:$4 sm:$0xff]  }
 0x234   :  { %5573 = vmatpush2.bf16.msra.mxu1 %v8027_v15  ;;  %5607 = vmatprep.subr.bf16.mxu0 %v8038_v3  ;;  %v8081_v15 = vld [vmem:[%s11144_s1 + $0xc48] ss:$16 sps:$4 sm:$0xff]   ;;  %v8089_v3 = vld [vmem:[%s11144_s1 + $0xc2c] ss:$16 sps:$4 sm:$0xff]  }
 0x235   :  { %5574 = vmatprep.subr.bf16.mxu1 %v8035_v2 }
 0x237   :  { %5608 = vmatpush2.bf16.msra.mxu0 %v8036_v5 }
 0x238   :  { %5575 = vmatpush2.bf16.msra.mxu1 %v8033_v58  ;;  %5609 = vmatprep.subr.bf16.mxu0 %v8044_v11  ;;  %v8090_v11 = vld [vmem:[%s11144_s1 + $0xea8] ss:$16 sps:$4 sm:$0xff]  }
 0x239   :  { %5576 = vmatprep.subr.bf16.mxu1 %v8041_v8  ;;  %v8087_v8 = vld [vmem:[%s11144_s1 + $0xc28] ss:$16 sps:$4 sm:$0xff]  }
 0x23b   :  { %5610 = vmatpush2.bf16.msra.mxu0 %v8042_v27  ;;  %v8095_v27 = vld [vmem:[%s11144_s1 + $0xc0c] ss:$16 sps:$4 sm:$0xff]  }
 0x23c   :  { %5577 = vmatpush2.bf16.msra.mxu1 %v8039_v24  ;;  %5611 = vmatprep.subr.bf16.mxu0 %v8050_v13  ;;  %v8096_v13 = vld [vmem:[%s11144_s1 + $0xe88] ss:$16 sps:$4 sm:$0xff]  }
 0x23d   :  { %5578 = vmatprep.subr.bf16.mxu1 %v8047_v12  ;;  %v8093_v12 = vld [vmem:[%s11144_s1 + $0xc08] ss:$16 sps:$4 sm:$0xff]  }
 0x23f   :  { %5612 = vmatpush2.bf16.msra.mxu0 %v8048_v6  ;;  %v8104_v6 = vld [vmem:[%s11144_s1 + $0xe6c] ss:$16 sps:$4 sm:$0xff]  }
 0x240   :  { %5579 = vmatpush2.bf16.msra.mxu1 %v8045_v14  ;;  %5613 = vmatprep.subr.bf16.mxu0 %v8053_v19  ;;  %v8101_v14 = vld [vmem:[%s11144_s1 + $0xdec] ss:$16 sps:$4 sm:$0xff]   ;;  %v8099_v19 = vld [vmem:[%s11144_s1 + $0xde8] ss:$16 sps:$4 sm:$0xff]  }
 0x241   :  { %5630 = vmatprep.subr.bf16.mxu1 %v8056_v26  ;;  %v8102_v26 = vld [vmem:[%s11144_s1 + $0xe68] ss:$16 sps:$4 sm:$0xff]  }
 0x242   :  { %v5295_v31 = vpop.f32.mrf.mxu0 }
 0x243   :  { %v5336_v17 = vpop.f32.mrf.mxu1  ;;  %5581 = vmatmul.mubr.bf16.vlgmr.msra.gmra.mxu1 %v9088_v38  ;;  %v5296_v30 = vadd.f32 %v5295_v31, %v10204_v51  ;;  %5614 = vmatpush2.bf16.msra.mxu0 %v8051_v18  ;;  %v8065_v38 = vld [vmem:[%s11144_s1 + $0xb2c] ss:$16 sps:$4 sm:$0xff]  }
 0x244   :  { %5631 = vmatpush1.bf16.msra.mxu1 %v8054_v20  ;;  %v5297_v25 = vpop.f32.mrf.mxu0  ;;  %5615 = vmatprep.subr.bf16.mxu0 %v8059_v29  ;;  %v8068_v51 = vld [vmem:[%s11144_s1 + $0xcac] ss:$16 sps:$4 sm:$0xff]   ;;  %v8105_v29 = vld [vmem:[%s11144_s1 + $0xdc8] ss:$16 sps:$4 sm:$0xff]  }
 0x245   :  { %v5338_v33 = vpop.f32.mrf.mxu1  ;;  %5632 = vmatprep.subr.bf16.mxu1 %v8062_v28  ;;  %v5337_v47 = vadd.f32 %v5336_v17, %v5296_v30  ;;  %v5298_v34 = vadd.f32 %v5297_v25, %v10208_v57  ;;  %5662 = vmatprep.mubr.bf16.mxu1 %v9110_v42  ;;  %v8071_v42 = vld [vmem:[%s11144_s1 + $0xb0c] ss:$16 sps:$4 sm:$0xff]   ;;  %v8108_v28 = vld [vmem:[%s11144_s1 + $0xe48] ss:$16 sps:$4 sm:$0xff]  }
 0x246   :  { %v5299_v41 = vpop.f32.mrf.mxu0  ;;  %v8074_v57 = vld [vmem:[%s11144_s1 + $0xc8c] ss:$16 sps:$4 sm:$0xff]   ;;  %v8111_v30 = vld [vmem:[%s11144_s1 + $0xda8] ss:$16 sps:$4 sm:$0xff]  }
 0x247   :  { %v5340_v22 = vpop.f32.mrf.mxu1  ;;  %v5339_v23 = vadd.f32 %v5338_v33, %v5298_v34  ;;  %5616 = vmatpush2.bf16.msra.mxu0 %v8057_v36  ;;  %v8107_v18 = vld [vmem:[%s11144_s1 + $0xdcc] ss:$16 sps:$4 sm:$0xff]   ;;  %v8114_v36 = vld [vmem:[%s11144_s1 + $0xe28] ss:$16 sps:$4 sm:$0xff]  }
 0x248   :  { %5633 = vmatpush1.bf16.msra.mxu1 %v8060_v32  ;;  %v5300_v46 = vpop.f32.mrf.mxu0  ;;  %5617 = vmatprep.subr.bf16.mxu0 %v8065_v38  ;;  %v8110_v20 = vld [vmem:[%s11144_s1 + $0xe4c] ss:$16 sps:$4 sm:$0xff]   ;;  %v8117_v33 = vld [vmem:[%s11144_s1 + $0xd88] ss:$16 sps:$4 sm:$0xff]  }
 0x249   :  { %v5341_v7 = vpop.f32.mrf.mxu1  ;;  %5634 = vmatprep.subr.bf16.mxu1 %v8068_v51  ;;  %v8113_v31 = vld [vmem:[%s11144_s1 + $0xdac] ss:$16 sps:$4 sm:$0xff]   ;;  %v8120_v38 = vld [vmem:[%s11144_s1 + $0xe08] ss:$16 sps:$4 sm:$0xff]  }
 0x24a   :  { %v8116_v17 = vld [vmem:[%s11144_s1 + $0xe2c] ss:$16 sps:$4 sm:$0xff]   ;;  %v8123_v34 = vld [vmem:[%s11144_s1 + $0xd68] ss:$16 sps:$4 sm:$0xff]  }
 0x24b   :  { %5618 = vmatpush2.bf16.msra.mxu0 %v8063_v44  ;;  %v8119_v32 = vld [vmem:[%s11144_s1 + $0xd8c] ss:$16 sps:$4 sm:$0xff]   ;;  %v8126_v41 = vld [vmem:[%s11144_s1 + $0xfe8] ss:$16 sps:$4 sm:$0xff]  }
 0x24c   :  { %5635 = vmatpush1.bf16.msra.mxu1 %v8066_v45  ;;  %5619 = vmatprep.subr.bf16.mxu0 %v8071_v42  ;;  %v8122_v25 = vld [vmem:[%s11144_s1 + $0xe0c] ss:$16 sps:$4 sm:$0xff]   ;;  %v8129_v44 = vld [vmem:[%s11144_s1 + $0xd48] ss:$16 sps:$4 sm:$0xff]  }
 0x24d   :  { %5636 = vmatprep.subr.bf16.mxu1 %v8074_v57  ;;  %v8125_v51 = vld [vmem:[%s11144_s1 + $0xd6c] ss:$16 sps:$4 sm:$0xff]   ;;  %v8132_v45 = vld [vmem:[%s11144_s1 + $0xfc8] ss:$16 sps:$4 sm:$0xff]  }
 0x24e   :  { %v8131_v22 = vld [vmem:[%s11144_s1 + $0xd4c] ss:$16 sps:$4 sm:$0xff]   ;;  %v8135_v42 = vld [vmem:[%s11144_s1 + $0xd28] ss:$16 sps:$4 sm:$0xff]  }
 0x24f   :  { %5620 = vmatpush2.bf16.msra.mxu0 %v8069_v48  ;;  %v8137_v46 = vld [vmem:[%s11144_s1 + $0xd2c] ss:$16 sps:$4 sm:$0xff]   ;;  %v8138_v57 = vld [vmem:[%s11144_s1 + $0xfa8] ss:$16 sps:$4 sm:$0xff]  }
 0x250   :  { %5637 = vmatpush1.bf16.msra.mxu1 %v8072_v49  ;;  %5671 = vmatprep.subr.bf16.mxu0 %v8080_v37  ;;  %v8140_v7 = vld [vmem:[%s11144_s1 + $0xfac] ss:$16 sps:$4 sm:$0xff]   ;;  %v8144_v37 = vld [vmem:[%s11144_s1 + $0xf88] ss:$16 sps:$4 sm:$0xff]  }
 0x251   :  { %5638 = vmatprep.subr.bf16.mxu1 %v8077_v50  ;;  %v8143_v48 = vld [vmem:[%s11144_s1 + $0xd0c] ss:$16 sps:$4 sm:$0xff]   ;;  %v8141_v50 = vld [vmem:[%s11144_s1 + $0xd08] ss:$16 sps:$4 sm:$0xff]  }
 0x252   :  { %v5377_v59 = vpop.f32.mrf.mxu0  ;;  %5622 = vmatmul.mubr.bf16.vlgmr.msra.gmra.mxu0 %v9092_v39  ;;  %v8092_v39 = vld [vmem:[%s11144_s1 + $0xeac] ss:$16 sps:$4 sm:$0xff]  }
 0x253   :  { %v10445_v16 = vadd.f32 %v5377_v59, %v5337_v47  ;;  %5672 = vmatpush1.bf16.msra.mxu0 %v8078_v53  ;;  %5703 = vmatprep.mubr.bf16.mxu0 %v9114_v43  ;;  %v8098_v43 = vld [vmem:[%s11144_s1 + $0xe8c] ss:$16 sps:$4 sm:$0xff]  }
 0x254   :  { %5639 = vmatpush1.bf16.msra.mxu1 %v8075_v52  ;;  %v5379_v2 = vpop.f32.mrf.mxu0  ;;  %5673 = vmatprep.subr.bf16.mxu0 %v8086_v56  ;;  %v8128_v47 = vld [vmem:[%s11144_s1 + $0xfec] ss:$16 sps:$4 sm:$0xff]   ;;  %v8150_v56 = vld [vmem:[%s11144_s1 + $0x10e8] ss:$16 sps:$4 sm:$0xff]  }
 0x255   :  { %5640 = vmatprep.subr.bf16.mxu1 %v8083_v55  ;;  %v10459_v58 = vadd.f32 %v5379_v2, %v5339_v23  ;;  %v8134_v23 = vld [vmem:[%s11144_s1 + $0xfcc] ss:$16 sps:$4 sm:$0xff]   ;;  %v8147_v55 = vld [vmem:[%s11144_s1 + $0xf68] ss:$16 sps:$4 sm:$0xff]  }
 0x256   :  { %v5381_v5 = vpop.f32.mrf.mxu0  ;;  %v8146_v49 = vld [vmem:[%s11144_s1 + $0xf8c] ss:$16 sps:$4 sm:$0xff]   ;;  %v8153_v2 = vld [vmem:[%s11144_s1 + $0xf48] ss:$16 sps:$4 sm:$0xff]  }
 0x257   :  { %5674 = vmatpush1.bf16.msra.mxu0 %v8084_v60  ;;  %v8149_v52 = vld [vmem:[%s11144_s1 + $0xf6c] ss:$16 sps:$4 sm:$0xff]  }
 0x258   :  { %5641 = vmatpush1.bf16.msra.mxu1 %v8081_v15  ;;  %v5382_v24 = vpop.f32.mrf.mxu0  ;;  %5675 = vmatprep.subr.bf16.mxu0 %v8092_v39  ;;  %v8152_v53 = vld [vmem:[%s11144_s1 + $0x10ec] ss:$16 sps:$4 sm:$0xff]  }
 0x259   :  { %5642 = vmatprep.subr.bf16.mxu1 %v8089_v3  ;;  %v8155_v59 = vld [vmem:[%s11144_s1 + $0xf4c] ss:$16 sps:$4 sm:$0xff]   ;;  %v8156_v3 = vld [vmem:[%s11144_s1 + $0x10c8] ss:$16 sps:$4 sm:$0xff]  }
 0x25a   :  { %v8158_v15 = vld [vmem:[%s11144_s1 + $0x10cc] ss:$16 sps:$4 sm:$0xff]   ;;  %v8162_v24 = vld [vmem:[%s11144_s1 + $0x10a8] ss:$16 sps:$4 sm:$0xff]  }
 0x25b   :  { %5676 = vmatpush1.bf16.msra.mxu0 %v8090_v11  ;;  %v8161_v5 = vld [vmem:[%s11144_s1 + $0xf2c] ss:$16 sps:$4 sm:$0xff]   ;;  %v8159_v11 = vld [vmem:[%s11144_s1 + $0xf28] ss:$16 sps:$4 sm:$0xff]  }
 0x25c   :  { %5643 = vmatpush1.bf16.msra.mxu1 %v8087_v8  ;;  %5677 = vmatprep.subr.bf16.mxu0 %v8098_v43  ;;  %v8167_v43 = vld [vmem:[%s11144_s1 + $0xf0c] ss:$16 sps:$4 sm:$0xff]  }
 0x25d   :  { %5644 = vmatprep.subr.bf16.mxu1 %v8095_v27 }
 0x25f   :  { %5678 = vmatpush1.bf16.msra.mxu0 %v8096_v13  ;;  %v834_v13 = vsub.s32 3, %v9285_v54 }
 0x260   :  { %5645 = vmatpush1.bf16.msra.mxu1 %v8093_v12  ;;  %5679 = vmatprep.subr.bf16.mxu0 %v8104_v6  ;;  %v830_v12 = vsub.s32 2, %v9285_v54  ;;  %v8168_v6 = vld [vmem:[%s11144_s1 + $0x1088] ss:$16 sps:$4 sm:$0xff]   ;;  %v8176_v54 = vld [vmem:[%s11144_s1 + $0x12ec] ss:$16 sps:$4 sm:$0xff]  }
 0x261   :  { %5646 = vmatprep.subr.bf16.mxu1 %v8101_v14  ;;  %v8165_v14 = vld [vmem:[%s11144_s1 + $0xf08] ss:$16 sps:$4 sm:$0xff]  }
 0x263   :  { %5680 = vmatpush1.bf16.msra.mxu0 %v8102_v26  ;;  %v8395_v26 = vld [vmem:[%s11146_s2] sm:$0xf] }
 0x264   :  { %5647 = vmatpush2.bf16.msra.mxu1 %v8099_v19  ;;  %5681 = vmatprep.subr.bf16.mxu0 %v8110_v20  ;;  %v8173_v19 = vld [vmem:[%s11144_s1 + $0x106c] ss:$16 sps:$4 sm:$0xff]   ;;  %v835_v20 = vrot.slane %v8395_v26, %v834_v13 }
 0x265   :  { %5648 = vmatprep.subr.bf16.mxu1 %v8107_v18  ;;  %v831_v18 = vrot.slane %v8395_v26, %v830_v12  ;;  %v8233_v12 = vld [vmem:[%s11144_s1 + $0x112c] ss:$16 sps:$4 sm:$0xff]   ;;  %v8237_v26 = vld [vmem:[%s11144_s1 + $0x1108] ss:$16 sps:$4 sm:$0xff]  }
 0x266   :  { %v8236_v13 = vld [vmem:[%s11144_s1 + $0x13ac] ss:$16 sps:$4 sm:$0xff]  }
 0x267   :  { %5682 = vmatpush1.bf16.msra.mxu0 %v8108_v28  ;;  %v8174_v28 = vld [vmem:[%s11144_s1 + $0x12e8] ss:$16 sps:$4 sm:$0xff]  }
 0x268   :  { %5649 = vmatpush2.bf16.msra.mxu1 %v8105_v29  ;;  %5683 = vmatprep.subr.bf16.mxu0 %v8116_v17  ;;  %v8171_v29 = vld [vmem:[%s11144_s1 + $0x1068] ss:$16 sps:$4 sm:$0xff]   ;;  %v8182_v17 = vld [vmem:[%s11144_s1 + $0x12cc] ss:$16 sps:$4 sm:$0xff]  }
 0x269   :  { %5650 = vmatprep.subr.bf16.mxu1 %v8113_v31  ;;  %v8179_v31 = vld [vmem:[%s11144_s1 + $0x104c] ss:$16 sps:$4 sm:$0xff]  }
 0x26b   :  { %5684 = vmatpush1.bf16.msra.mxu0 %v8114_v36  ;;  %v8177_v36 = vld [vmem:[%s11144_s1 + $0x1048] ss:$16 sps:$4 sm:$0xff]  }
 0x26c   :  { %5651 = vmatpush2.bf16.msra.mxu1 %v8111_v30  ;;  %5685 = vmatprep.subr.bf16.mxu0 %v8122_v25 }
 0x26d   :  { %5652 = vmatprep.subr.bf16.mxu1 %v8119_v32  ;;  %v8180_v32 = vld [vmem:[%s11144_s1 + $0x12c8] ss:$16 sps:$4 sm:$0xff]  }
 0x26f   :  { %5686 = vmatpush1.bf16.msra.mxu0 %v8120_v38 }
 0x270   :  { %5653 = vmatpush2.bf16.msra.mxu1 %v8117_v33  ;;  %5687 = vmatprep.subr.bf16.mxu0 %v8128_v47  ;;  %v8185_v33 = vld [vmem:[%s11144_s1 + $0x102c] ss:$16 sps:$4 sm:$0xff]  }
 0x271   :  { %5654 = vmatprep.subr.bf16.mxu1 %v8125_v51 }
 0x273   :  { %5688 = vmatpush2.bf16.msra.mxu0 %v8126_v41 }
 0x274   :  { %5655 = vmatpush2.bf16.msra.mxu1 %v8123_v34  ;;  %5689 = vmatprep.subr.bf16.mxu0 %v8134_v23  ;;  %v8188_v34 = vld [vmem:[%s11144_s1 + $0x12ac] ss:$16 sps:$4 sm:$0xff]  }
 0x275   :  { %5656 = vmatprep.subr.bf16.mxu1 %v8131_v22  ;;  %v8186_v22 = vld [vmem:[%s11144_s1 + $0x12a8] ss:$16 sps:$4 sm:$0xff]  }
 0x277   :  { %5690 = vmatpush2.bf16.msra.mxu0 %v8132_v45  ;;  %v8191_v45 = vld [vmem:[%s11144_s1 + $0x100c] ss:$16 sps:$4 sm:$0xff]  }
 0x278   :  { %5657 = vmatpush2.bf16.msra.mxu1 %v8129_v44  ;;  %5691 = vmatprep.subr.bf16.mxu0 %v8140_v7  ;;  %v8189_v7 = vld [vmem:[%s11144_s1 + $0x1008] ss:$16 sps:$4 sm:$0xff]  }
 0x279   :  { %5658 = vmatprep.subr.bf16.mxu1 %v8137_v46  ;;  %v8194_v46 = vld [vmem:[%s11144_s1 + $0x128c] ss:$16 sps:$4 sm:$0xff]  }
 0x27b   :  { %5692 = vmatpush2.bf16.msra.mxu0 %v8138_v57  ;;  %v8200_v57 = vld [vmem:[%s11144_s1 + $0x126c] ss:$16 sps:$4 sm:$0xff]  }
 0x27c   :  { %5659 = vmatpush2.bf16.msra.mxu1 %v8135_v42  ;;  %5693 = vmatprep.subr.bf16.mxu0 %v8146_v49  ;;  %v8197_v42 = vld [vmem:[%s11144_s1 + $0x11ec] ss:$16 sps:$4 sm:$0xff]   ;;  %v8198_v49 = vld [vmem:[%s11144_s1 + $0x1268] ss:$16 sps:$4 sm:$0xff]  }
 0x27d   :  { %5660 = vmatprep.subr.bf16.mxu1 %v8143_v48  ;;  %v8195_v48 = vld [vmem:[%s11144_s1 + $0x11e8] ss:$16 sps:$4 sm:$0xff]  }
 0x27f   :  { %5694 = vmatpush2.bf16.msra.mxu0 %v8144_v37  ;;  %v8206_v37 = vld [vmem:[%s11144_s1 + $0x124c] ss:$16 sps:$4 sm:$0xff]  }
 0x280   :  { %5661 = vmatpush2.bf16.msra.mxu1 %v8141_v50  ;;  %5695 = vmatprep.subr.bf16.mxu0 %v8149_v52  ;;  %v8203_v50 = vld [vmem:[%s11144_s1 + $0x11cc] ss:$16 sps:$4 sm:$0xff]   ;;  %v8201_v52 = vld [vmem:[%s11144_s1 + $0x11c8] ss:$16 sps:$4 sm:$0xff]  }
 0x281   :  { %5712 = vmatprep.subr.bf16.mxu1 %v8152_v53  ;;  %v8204_v53 = vld [vmem:[%s11144_s1 + $0x1248] ss:$16 sps:$4 sm:$0xff]  }
 0x283   :  { %v5418_v60 = vpop.f32.mrf.mxu1  ;;  %5663 = vmatmul.mubr.bf16.vlgmr.msra.gmra.mxu1 %v9312_v0  ;;  %5696 = vmatpush2.bf16.msra.mxu0 %v8147_v55  ;;  %v8164_v0 = vld [vmem:[%s11144_s1 + $0x10ac] ss:$16 sps:$4 sm:$0xff]  }
 0x284   :  { %5713 = vmatpush1.bf16.msra.mxu1 %v8150_v56  ;;  %5697 = vmatprep.subr.bf16.mxu0 %v8155_v59  ;;  %v5419_v30 = vadd.f32 %v5418_v60, %v831_v18  ;;  %v8209_v55 = vld [vmem:[%s11144_s1 + $0x11ac] ss:$16 sps:$4 sm:$0xff]   ;;  %v8207_v59 = vld [vmem:[%s11144_s1 + $0x11a8] ss:$16 sps:$4 sm:$0xff]  }
 0x285   :  { %v5420_v39 = vpop.f32.mrf.mxu1  ;;  %5714 = vmatprep.subr.bf16.mxu1 %v8158_v15  ;;  %5744 = vmatprep.mubr.bf16.mxu1 %v9339_v9  ;;  %v8170_v9 = vld [vmem:[%s11144_s1 + $0x108c] ss:$16 sps:$4 sm:$0xff]   ;;  %v8210_v15 = vld [vmem:[%s11144_s1 + $0x1228] ss:$16 sps:$4 sm:$0xff]  }
 0x286   :  { %v5421_v38 = vadd.f32 %v5420_v39, %v835_v20  ;;  %v8212_v56 = vld [vmem:[%s11144_s1 + $0x122c] ss:$16 sps:$4 sm:$0xff]   ;;  %v8216_v39 = vld [vmem:[%s11144_s1 + $0x1208] ss:$16 sps:$4 sm:$0xff]  }
 0x287   :  { %v5422_v8 = vpop.f32.mrf.mxu1  ;;  %5698 = vmatpush2.bf16.msra.mxu0 %v8153_v2  ;;  %v8215_v60 = vld [vmem:[%s11144_s1 + $0x118c] ss:$16 sps:$4 sm:$0xff]   ;;  %v8240_v18 = vld [vmem:[%s11144_s1 + $0x1388] ss:$16 sps:$4 sm:$0xff]  }
 0x288   :  { %5715 = vmatpush1.bf16.msra.mxu1 %v8156_v3  ;;  %5699 = vmatprep.subr.bf16.mxu0 %v8161_v5  ;;  %v8218_v2 = vld [vmem:[%s11144_s1 + $0x120c] ss:$16 sps:$4 sm:$0xff]   ;;  %v8213_v3 = vld [vmem:[%s11144_s1 + $0x1188] ss:$16 sps:$4 sm:$0xff]  }
 0x289   :  { %v5423_v27 = vpop.f32.mrf.mxu1  ;;  %5716 = vmatprep.subr.bf16.mxu1 %v8164_v0  ;;  %v8221_v5 = vld [vmem:[%s11144_s1 + $0x116c] ss:$16 sps:$4 sm:$0xff]   ;;  %v8219_v8 = vld [vmem:[%s11144_s1 + $0x1168] ss:$16 sps:$4 sm:$0xff]  }
 0x28a   :  { %v8224_v0 = vld [vmem:[%s11144_s1 + $0x13ec] ss:$16 sps:$4 sm:$0xff]  }
 0x28b   :  { %5700 = vmatpush2.bf16.msra.mxu0 %v8159_v11  ;;  %v8222_v11 = vld [vmem:[%s11144_s1 + $0x13e8] ss:$16 sps:$4 sm:$0xff]   ;;  %v8230_v27 = vld [vmem:[%s11144_s1 + $0x13cc] ss:$16 sps:$4 sm:$0xff]  }
 0x28c   :  { %5717 = vmatpush1.bf16.msra.mxu1 %v8162_v24  ;;  %5701 = vmatprep.subr.bf16.mxu0 %v8167_v43  ;;  %v8227_v24 = vld [vmem:[%s11144_s1 + $0x114c] ss:$16 sps:$4 sm:$0xff]   ;;  %v8225_v43 = vld [vmem:[%s11144_s1 + $0x1148] ss:$16 sps:$4 sm:$0xff]  }
 0x28d   :  { %5718 = vmatprep.subr.bf16.mxu1 %v8170_v9  ;;  %v8228_v9 = vld [vmem:[%s11144_s1 + $0x13c8] ss:$16 sps:$4 sm:$0xff]   ;;  %v8245_v20 = vld [vmem:[%s11144_s1 + $0x136c] ss:$16 sps:$4 sm:$0xff]  }
 0x28f   :  { %5702 = vmatpush2.bf16.msra.mxu0 %v8165_v14  ;;  %v8231_v14 = vld [vmem:[%s11144_s1 + $0x1128] ss:$16 sps:$4 sm:$0xff]  }
 0x290   :  { %5719 = vmatpush1.bf16.msra.mxu1 %v8168_v6  ;;  %5753 = vmatprep.subr.bf16.mxu0 %v8176_v54  ;;  %v8234_v6 = vld [vmem:[%s11144_s1 + $0x13a8] ss:$16 sps:$4 sm:$0xff]   ;;  %v8242_v54 = vld [vmem:[%s11144_s1 + $0x138c] ss:$16 sps:$4 sm:$0xff]  }
 0x291   :  { %5720 = vmatprep.subr.bf16.mxu1 %v8173_v19  ;;  %v8239_v19 = vld [vmem:[%s11144_s1 + $0x110c] ss:$16 sps:$4 sm:$0xff]  }
 0x292   :  { %v5459_v25 = vpop.f32.mrf.mxu0  ;;  %5704 = vmatmul.mubr.bf16.vlgmr.msra.gmra.mxu0 %v9316_v1  ;;  %v8183_v1 = vld [vmem:[%s11144_s1 + $0x1028] ss:$16 sps:$4 sm:$0xff]  }
 0x293   :  { %v10659_v51 = vadd.f32 %v5459_v25, %v5419_v30  ;;  %5754 = vmatpush1.bf16.msra.mxu0 %v8174_v28  ;;  %5785 = vmatprep.mubr.bf16.mxu0 %v9343_v10  ;;  %v8192_v10 = vld [vmem:[%s11144_s1 + $0x1288] ss:$16 sps:$4 sm:$0xff]   ;;  %v8254_v30 = vld [vmem:[%s11144_s1 + $0x14cc] ss:$16 sps:$4 sm:$0xff]  }
 0x294   :  { %5721 = vmatpush1.bf16.msra.mxu1 %v8171_v29  ;;  %v5461_v47 = vpop.f32.mrf.mxu0  ;;  %5755 = vmatprep.subr.bf16.mxu0 %v8182_v17  ;;  %v8248_v29 = vld [vmem:[%s11144_s1 + $0x14ec] ss:$16 sps:$4 sm:$0xff]   ;;  %v8243_v28 = vld [vmem:[%s11144_s1 + $0x1368] ss:$16 sps:$4 sm:$0xff]  }
 0x295   :  { %5722 = vmatprep.subr.bf16.mxu1 %v8179_v31  ;;  %v10664_v41 = vadd.f32 %v5461_v47, %v5421_v38  ;;  %v8246_v31 = vld [vmem:[%s11144_s1 + $0x14e8] ss:$16 sps:$4 sm:$0xff]   ;;  %v8251_v17 = vld [vmem:[%s11144_s1 + $0x134c] ss:$16 sps:$4 sm:$0xff]  }
 0x296   :  { %v5463_v23 = vpop.f32.mrf.mxu0  ;;  %v8249_v25 = vld [vmem:[%s11144_s1 + $0x1348] ss:$16 sps:$4 sm:$0xff]   ;;  %v8257_v47 = vld [vmem:[%s11144_s1 + $0x132c] ss:$16 sps:$4 sm:$0xff]  }
 0x297   :  { %5756 = vmatpush1.bf16.msra.mxu0 %v8180_v32 }
 0x298   :  { %5723 = vmatpush1.bf16.msra.mxu1 %v8177_v36  ;;  %v5464_v44 = vpop.f32.mrf.mxu0  ;;  %5757 = vmatprep.subr.bf16.mxu0 %v8188_v34 }
 0x299   :  { %5724 = vmatprep.subr.bf16.mxu1 %v8185_v33  ;;  %v8252_v33 = vld [vmem:[%s11144_s1 + $0x14c8] ss:$16 sps:$4 sm:$0xff]  }
 0x29a   :  { %v8261_v44 = vld [vmem:[%s11144_s1 + $0x1308] ss:$16 sps:$4 sm:$0xff]  }
 0x29b   :  { %5758 = vmatpush1.bf16.msra.mxu0 %v8186_v22  ;;  %v8258_v22 = vld [vmem:[%s11144_s1 + $0x14a8] ss:$16 sps:$4 sm:$0xff]  }
 0x29c   :  { %5725 = vmatpush1.bf16.msra.mxu1 %v8183_v1  ;;  %5759 = vmatprep.subr.bf16.mxu0 %v8194_v46  ;;  %v8255_v1 = vld [vmem:[%s11144_s1 + $0x1328] ss:$16 sps:$4 sm:$0xff]   ;;  %v8269_v46 = vld [vmem:[%s11144_s1 + $0x146c] ss:$16 sps:$4 sm:$0xff]  }
 0x29d   :  { %5726 = vmatprep.subr.bf16.mxu1 %v8191_v45  ;;  %v8264_v45 = vld [vmem:[%s11144_s1 + $0x1488] ss:$16 sps:$4 sm:$0xff]  }
 0x29f   :  { %5760 = vmatpush1.bf16.msra.mxu0 %v8192_v10  ;;  %v8267_v10 = vld [vmem:[%s11144_s1 + $0x1468] ss:$16 sps:$4 sm:$0xff]  }
 0x2a0   :  { %5727 = vmatpush1.bf16.msra.mxu1 %v8189_v7  ;;  %5761 = vmatprep.subr.bf16.mxu0 %v8200_v57  ;;  %v8272_v7 = vld [vmem:[%s11144_s1 + $0x16ec] ss:$16 sps:$4 sm:$0xff]  }
 0x2a1   :  { %5728 = vmatprep.subr.bf16.mxu1 %v8197_v42  ;;  %v8270_v42 = vld [vmem:[%s11144_s1 + $0x16e8] ss:$16 sps:$4 sm:$0xff]   ;;  %v8275_v57 = vld [vmem:[%s11144_s1 + $0x144c] ss:$16 sps:$4 sm:$0xff]  }
 0x2a3   :  { %5762 = vmatpush1.bf16.msra.mxu0 %v8198_v49 }
 0x2a4   :  { %5729 = vmatpush2.bf16.msra.mxu1 %v8195_v48  ;;  %5763 = vmatprep.subr.bf16.mxu0 %v8206_v37  ;;  %v8278_v48 = vld [vmem:[%s11144_s1 + $0x16cc] ss:$16 sps:$4 sm:$0xff]   ;;  %v8273_v37 = vld [vmem:[%s11144_s1 + $0x1448] ss:$16 sps:$4 sm:$0xff]  }
 0x2a5   :  { %5730 = vmatprep.subr.bf16.mxu1 %v8203_v50 }
 0x2a7   :  { %5764 = vmatpush1.bf16.msra.mxu0 %v8204_v53 }
 0x2a8   :  { %5731 = vmatpush2.bf16.msra.mxu1 %v8201_v52  ;;  %5765 = vmatprep.subr.bf16.mxu0 %v8212_v56  ;;  %v8276_v52 = vld [vmem:[%s11144_s1 + $0x16c8] ss:$16 sps:$4 sm:$0xff]  }
 0x2a9   :  { %5732 = vmatprep.subr.bf16.mxu1 %v8209_v55  ;;  %v8281_v55 = vld [vmem:[%s11144_s1 + $0x142c] ss:$16 sps:$4 sm:$0xff]  }
 0x2ab   :  { %5766 = vmatpush1.bf16.msra.mxu0 %v8210_v15  ;;  %v8279_v15 = vld [vmem:[%s11144_s1 + $0x1428] ss:$16 sps:$4 sm:$0xff]  }
 0x2ac   :  { %5733 = vmatpush2.bf16.msra.mxu1 %v8207_v59  ;;  %5767 = vmatprep.subr.bf16.mxu0 %v8218_v2 }
 0x2ad   :  { %5734 = vmatprep.subr.bf16.mxu1 %v8215_v60  ;;  %v8282_v60 = vld [vmem:[%s11144_s1 + $0x16a8] ss:$16 sps:$4 sm:$0xff]  }
 0x2af   :  { %5768 = vmatpush1.bf16.msra.mxu0 %v8216_v39  ;;  %v8285_v39 = vld [vmem:[%s11144_s1 + $0x1408] ss:$16 sps:$4 sm:$0xff]  }
 0x2b0   :  { %5735 = vmatpush2.bf16.msra.mxu1 %v8213_v3  ;;  %5769 = vmatprep.subr.bf16.mxu0 %v8224_v0  ;;  %v8287_v3 = vld [vmem:[%s11144_s1 + $0x140c] ss:$16 sps:$4 sm:$0xff]  }
 0x2b1   :  { %5736 = vmatprep.subr.bf16.mxu1 %v8221_v5  ;;  %v8288_v5 = vld [vmem:[%s11144_s1 + $0x1688] ss:$16 sps:$4 sm:$0xff]   ;;  %v8293_v0 = vld [vmem:[%s11144_s1 + $0x15ec] ss:$16 sps:$4 sm:$0xff]  }
 0x2b3   :  { %5770 = vmatpush2.bf16.msra.mxu0 %v8222_v11  ;;  %v8291_v11 = vld [vmem:[%s11144_s1 + $0x15e8] ss:$16 sps:$4 sm:$0xff]  }
 0x2b4   :  { %5737 = vmatpush2.bf16.msra.mxu1 %v8219_v8  ;;  %5771 = vmatprep.subr.bf16.mxu0 %v8230_v27  ;;  %v8296_v8 = vld [vmem:[%s11144_s1 + $0x166c] ss:$16 sps:$4 sm:$0xff]  }
 0x2b5   :  { %5738 = vmatprep.subr.bf16.mxu1 %v8227_v24  ;;  %v8294_v24 = vld [vmem:[%s11144_s1 + $0x1668] ss:$16 sps:$4 sm:$0xff]   ;;  %v8299_v27 = vld [vmem:[%s11144_s1 + $0x15cc] ss:$16 sps:$4 sm:$0xff]  }
 0x2b7   :  { %5772 = vmatpush2.bf16.msra.mxu0 %v8228_v9  ;;  %v8297_v9 = vld [vmem:[%s11144_s1 + $0x15c8] ss:$16 sps:$4 sm:$0xff]  }
 0x2b8   :  { %5739 = vmatpush2.bf16.msra.mxu1 %v8225_v43  ;;  %5773 = vmatprep.subr.bf16.mxu0 %v8236_v13  ;;  %v8302_v43 = vld [vmem:[%s11144_s1 + $0x164c] ss:$16 sps:$4 sm:$0xff]  }
 0x2b9   :  { %5740 = vmatprep.subr.bf16.mxu1 %v8233_v12  ;;  %v8300_v12 = vld [vmem:[%s11144_s1 + $0x1648] ss:$16 sps:$4 sm:$0xff]   ;;  %v8305_v13 = vld [vmem:[%s11144_s1 + $0x15ac] ss:$16 sps:$4 sm:$0xff]  }
 0x2bb   :  { %5774 = vmatpush2.bf16.msra.mxu0 %v8234_v6  ;;  %v8303_v6 = vld [vmem:[%s11144_s1 + $0x15a8] ss:$16 sps:$4 sm:$0xff]  }
 0x2bc   :  { %5741 = vmatpush2.bf16.msra.mxu1 %v8231_v14  ;;  %5775 = vmatprep.subr.bf16.mxu0 %v8242_v54  ;;  %v8308_v14 = vld [vmem:[%s11144_s1 + $0x162c] ss:$16 sps:$4 sm:$0xff]  }
 0x2bd   :  { %5742 = vmatprep.subr.bf16.mxu1 %v8239_v19  ;;  %v8306_v19 = vld [vmem:[%s11144_s1 + $0x1628] ss:$16 sps:$4 sm:$0xff]   ;;  %v8311_v54 = vld [vmem:[%s11144_s1 + $0x158c] ss:$16 sps:$4 sm:$0xff]  }
 0x2bf   :  { %5776 = vmatpush2.bf16.msra.mxu0 %v8240_v18  ;;  %v8309_v18 = vld [vmem:[%s11144_s1 + $0x1588] ss:$16 sps:$4 sm:$0xff]  }
 0x2c0   :  { %5743 = vmatpush2.bf16.msra.mxu1 %v8237_v26  ;;  %5777 = vmatprep.subr.bf16.mxu0 %v8245_v20  ;;  %v8314_v26 = vld [vmem:[%s11144_s1 + $0x160c] ss:$16 sps:$4 sm:$0xff]   ;;  %v8312_v20 = vld [vmem:[%s11144_s1 + $0x1608] ss:$16 sps:$4 sm:$0xff]  }
 0x2c1   :  { %5794 = vmatprep.subr.bf16.mxu1 %v8248_v29  ;;  %v8317_v29 = vld [vmem:[%s11144_s1 + $0x156c] ss:$16 sps:$4 sm:$0xff]  }
 0x2c3   :  { %v5500_v36 = vpop.f32.mrf.mxu1  ;;  %5745 = vmatmul.mubr.bf16.vlgmr.msra.gmra.mxu1 %v9551_v61  ;;  %5778 = vmatpush2.bf16.msra.mxu0 %v8243_v28  ;;  %v8260_v61 = vld [vmem:[%s11144_s1 + $0x14ac] ss:$16 sps:$4 sm:$0xff]  }
 0x2c4   :  { %v5501_v32 = vadd.f32 %v5500_v36, %v10659_v51  ;;  %5795 = vmatpush1.bf16.msra.mxu1 %v8246_v31  ;;  %5779 = vmatprep.subr.bf16.mxu0 %v8251_v17  ;;  %v8320_v28 = vld [vmem:[%s11144_s1 + $0x17ec] ss:$16 sps:$4 sm:$0xff]   ;;  %v8315_v31 = vld [vmem:[%s11144_s1 + $0x1568] ss:$16 sps:$4 sm:$0xff]  }
 0x2c5   :  { %v5502_v38 = vpop.f32.mrf.mxu1  ;;  %5796 = vmatprep.subr.bf16.mxu1 %v8254_v30  ;;  %5826 = vmatprep.mubr.bf16.mxu1 %v9571_v35  ;;  %v8266_v35 = vld [vmem:[%s11144_s1 + $0x148c] ss:$16 sps:$4 sm:$0xff]   ;;  %v8318_v17 = vld [vmem:[%s11144_s1 + $0x17e8] ss:$16 sps:$4 sm:$0xff]  }
 0x2c6   :  { %v5503_v51 = vadd.f32 %v5502_v38, %v10664_v41  ;;  %v8263_v41 = vld [vmem:[%s11144_s1 + $0x130c] ss:$16 sps:$4 sm:$0xff]  }
 0x2c7   :  { %v5504_v34 = vpop.f32.mrf.mxu1  ;;  %5780 = vmatpush2.bf16.msra.mxu0 %v8249_v25  ;;  %v8323_v30 = vld [vmem:[%s11144_s1 + $0x154c] ss:$16 sps:$4 sm:$0xff]   ;;  %v8324_v25 = vld [vmem:[%s11144_s1 + $0x17c8] ss:$16 sps:$4 sm:$0xff]  }
 0x2c8   :  { %5797 = vmatpush1.bf16.msra.mxu1 %v8252_v33  ;;  %5781 = vmatprep.subr.bf16.mxu0 %v8257_v47  ;;  %v8326_v36 = vld [vmem:[%s11144_s1 + $0x17cc] ss:$16 sps:$4 sm:$0xff]   ;;  %v8327_v47 = vld [vmem:[%s11144_s1 + $0x1528] ss:$16 sps:$4 sm:$0xff]  }
 0x2c9   :  { %v5505_v23 = vpop.f32.mrf.mxu1  ;;  %5798 = vmatprep.subr.bf16.mxu1 %v8260_v61  ;;  %v8329_v33 = vld [vmem:[%s11144_s1 + $0x152c] ss:$16 sps:$4 sm:$0xff]   ;;  %v8330_v61 = vld [vmem:[%s11144_s1 + $0x17a8] ss:$16 sps:$4 sm:$0xff]  }
 0x2ca   :  { %v8332_v38 = vld [vmem:[%s11144_s1 + $0x17ac] ss:$16 sps:$4 sm:$0xff]  }
 0x2cb   :  { %5782 = vmatpush2.bf16.msra.mxu0 %v8255_v1  ;;  %v8338_v34 = vld [vmem:[%s11144_s1 + $0x178c] ss:$16 sps:$4 sm:$0xff]   ;;  %v8333_v1 = vld [vmem:[%s11144_s1 + $0x1508] ss:$16 sps:$4 sm:$0xff]  }
 0x2cc   :  { %5799 = vmatpush1.bf16.msra.mxu1 %v8258_v22  ;;  %5783 = vmatprep.subr.bf16.mxu0 %v8263_v41  ;;  %v8336_v22 = vld [vmem:[%s11144_s1 + $0x1788] ss:$16 sps:$4 sm:$0xff]   ;;  %v8341_v23 = vld [vmem:[%s11144_s1 + $0x176c] ss:$16 sps:$4 sm:$0xff]  }
 0x2cd   :  { %5800 = vmatprep.subr.bf16.mxu1 %v8266_v35  ;;  %v8344_v41 = vld [vmem:[%s11144_s1 + $0x186c] ss:$16 sps:$4 sm:$0xff]   ;;  %v8339_v35 = vld [vmem:[%s11144_s1 + $0x1768] ss:$16 sps:$4 sm:$0xff]  }
 0x2cf   :  { %5784 = vmatpush2.bf16.msra.mxu0 %v8261_v44  ;;  %v8342_v44 = vld [vmem:[%s11144_s1 + $0x1868] ss:$16 sps:$4 sm:$0xff]  }
 0x2d0   :  { %5801 = vmatpush1.bf16.msra.mxu1 %v8264_v45  ;;  %5835 = vmatprep.subr.bf16.mxu0 %v8272_v7  ;;  %v8347_v45 = vld [vmem:[%s11144_s1 + $0x174c] ss:$16 sps:$4 sm:$0xff]  }
 0x2d1   :  { %5802 = vmatprep.subr.bf16.mxu1 %v8269_v46  ;;  %v8350_v46 = vld [vmem:[%s11144_s1 + $0x184c] ss:$16 sps:$4 sm:$0xff]  }
 0x2d2   :  { %v5541_v49 = vpop.f32.mrf.mxu0  ;;  %5786 = vmatmul.mubr.bf16.vlgmr.msra.gmra.mxu0 %v9555_v62  ;;  %v8284_v62 = vld [vmem:[%s11144_s1 + $0x16ac] ss:$16 sps:$4 sm:$0xff]  }
 0x2d3   :  { %v10852_v50 = vadd.f32 %v5541_v49, %v5501_v32  ;;  %5836 = vmatpush1.bf16.msra.mxu0 %v8270_v42  ;;  %5867 = vmatprep.mubr.bf16.mxu0 %v9575_v40  ;;  %v8290_v40 = vld [vmem:[%s11144_s1 + $0x168c] ss:$16 sps:$4 sm:$0xff]   ;;  %v8321_v32 = vld [vmem:[%s11144_s1 + $0x1548] ss:$16 sps:$4 sm:$0xff]  }
 0x2d4   :  { %5803 = vmatpush1.bf16.msra.mxu1 %v8267_v10  ;;  %v5543_v53 = vpop.f32.mrf.mxu0  ;;  %5837 = vmatprep.subr.bf16.mxu0 %v8278_v48  ;;  %v8345_v42 = vld [vmem:[%s11144_s1 + $0x1748] ss:$16 sps:$4 sm:$0xff]   ;;  %v8353_v49 = vld [vmem:[%s11144_s1 + $0x172c] ss:$16 sps:$4 sm:$0xff]  }
 0x2d5   :  { %5804 = vmatprep.subr.bf16.mxu1 %v8275_v57  ;;  %v10866_v56 = vadd.f32 %v5543_v53, %v5503_v51  ;;  %v8335_v51 = vld [vmem:[%s11144_s1 + $0x150c] ss:$16 sps:$4 sm:$0xff]   ;;  %v8348_v57 = vld [vmem:[%s11144_s1 + $0x1848] ss:$16 sps:$4 sm:$0xff]  }
 0x2d6   :  { %v5545_v59 = vpop.f32.mrf.mxu0  ;;  %v8354_v53 = vld [vmem:[%s11144_s1 + $0x1828] ss:$16 sps:$4 sm:$0xff]  }
 0x2d7   :  { %5838 = vmatpush1.bf16.msra.mxu0 %v8276_v52  ;;  %v8351_v52 = vld [vmem:[%s11144_s1 + $0x1728] ss:$16 sps:$4 sm:$0xff]  }
 0x2d8   :  { %5805 = vmatpush1.bf16.msra.mxu1 %v8273_v37  ;;  %v5546_v2 = vpop.f32.mrf.mxu0  ;;  %5839 = vmatprep.subr.bf16.mxu0 %v8284_v62  ;;  %v8359_v62 = vld [vmem:[%s11144_s1 + $0x170c] ss:$16 sps:$4 sm:$0xff]   ;;  %v8360_v59 = vld [vmem:[%s11144_s1 + $0x1808] ss:$16 sps:$4 sm:$0xff]  }
 0x2d9   :  { %5806 = vmatprep.subr.bf16.mxu1 %v8281_v55  ;;  %v8364_v2 = vld [vmem:[%s11147_s3 + $0x38] sm:$0xff]  }
 0x2db   :  { %5840 = vmatpush1.bf16.msra.mxu0 %v8282_v60  ;;  %v5918_v60 = vmax.f32 %v10459_v58, 0.0 }
 0x2dc   :  { %5807 = vmatpush1.bf16.msra.mxu1 %v8279_v15  ;;  %5841 = vmatprep.subr.bf16.mxu0 %v8290_v40  ;;  %v8363_v15 = vld [vmem:[%s11147_s3 + $0x78] sm:$0xff]  }
 0x2dd   :  { %5808 = vmatprep.subr.bf16.mxu1 %v8287_v3  ;;  %v8365_v3 = vld [vmem:[%s11147_s3 + $0x70] sm:$0xff]   ;;  %v5922_v40 = vpack.c.bf16 %v5918_v60, %v5918_v60 }
 0x2df   :  { %5842 = vmatpush1.bf16.msra.mxu0 %v8288_v5  ;;  %v8396_v5 = vld [vmem:[%s11145_s0 + $0x60] ss:$0 sps:$4 sm:$0xff]  }
 0x2e0   :  { %5809 = vmatpush1.bf16.msra.mxu1 %v8285_v39  ;;  %5843 = vmatprep.subr.bf16.mxu0 %v8296_v8 }
 0x2e1   :  { %5810 = vmatprep.subr.bf16.mxu1 %v8293_v0  ;;  %v8366_v0 = vld [vmem:[%s11147_s3 + $0x30] sm:$0xff]  }
 0x2e3   :  { %5844 = vmatpush1.bf16.msra.mxu0 %v8294_v24 }
 0x2e4   :  { %5811 = vmatpush2.bf16.msra.mxu1 %v8291_v11  ;;  %5845 = vmatprep.subr.bf16.mxu0 %v8302_v43  ;;  %v8367_v11 = vld [vmem:[%s11147_s3 + $0x68] sm:$0xff]  }
 0x2e5   :  { %5812 = vmatprep.subr.bf16.mxu1 %v8299_v27  ;;  %v8368_v27 = vld [vmem:[%s11147_s3 + $0x28] sm:$0xff]  }
 0x2e7   :  { %5846 = vmatpush1.bf16.msra.mxu0 %v8300_v12  ;;  %v8379_v12 = vld [vmem:[%s11147_s3 + $0xf8] sm:$0xff]  }
 0x2e8   :  { %5813 = vmatpush2.bf16.msra.mxu1 %v8297_v9  ;;  %5847 = vmatprep.subr.bf16.mxu0 %v8308_v14  ;;  %v8369_v9 = vld [vmem:[%s11147_s3 + $0x60] sm:$0xff]  }
 0x2e9   :  { %5814 = vmatprep.subr.bf16.mxu1 %v8305_v13  ;;  %v8380_v13 = vld [vmem:[%s11147_s3 + $0xb8] sm:$0xff]   ;;  %v8370_v14 = vld [vmem:[%s11147_s3 + $0x20] sm:$0xff]  }
 0x2eb   :  { %5848 = vmatpush1.bf16.msra.mxu0 %v8306_v19  ;;  %v8372_v19 = vld [vmem:[%s11147_s3 + $0x18] sm:$0xff]  }
 0x2ec   :  { %5815 = vmatpush2.bf16.msra.mxu1 %v8303_v6  ;;  %5849 = vmatprep.subr.bf16.mxu0 %v8314_v26  ;;  %v8371_v6 = vld [vmem:[%s11147_s3 + $0x58] sm:$0xff]   ;;  %v8374_v26 = vld [vmem:[%s11147_s3 + $0x10] sm:$0xff]  }
 0x2ed   :  { %5816 = vmatprep.subr.bf16.mxu1 %v8311_v54  ;;  %v8373_v54 = vld [vmem:[%s11147_s3 + $0x50] sm:$0xff]  }
 0x2ef   :  { %5850 = vmatpush1.bf16.msra.mxu0 %v8312_v20  ;;  %v8376_v20 = vld [vmem:[%s11147_s3 + $0x8] sm:$0xff]  }
 0x2f0   :  { %5817 = vmatpush2.bf16.msra.mxu1 %v8309_v18  ;;  %5851 = vmatprep.subr.bf16.mxu0 %v8320_v28  ;;  %v8375_v18 = vld [vmem:[%s11147_s3 + $0x48] sm:$0xff]   ;;  %v8378_v28 = vld [vmem:[%s11147_s3] sm:$0xff]  }
 0x2f1   :  { %5818 = vmatprep.subr.bf16.mxu1 %v8317_v29  ;;  %v8377_v29 = vld [vmem:[%s11147_s3 + $0x40] sm:$0xff]  }
 0x2f3   :  { %5852 = vmatpush2.bf16.msra.mxu0 %v8318_v17 }
 0x2f4   :  { %5819 = vmatpush2.bf16.msra.mxu1 %v8315_v31  ;;  %5853 = vmatprep.subr.bf16.mxu0 %v8326_v36  ;;  %v5917_v31 = vmax.f32 %v10445_v16, 0.0  ;;  %v8382_v36 = vld [vmem:[%s11147_s3 + $0xb0] sm:$0xff]   ;;  %v8383_v16 = vld [vmem:[%s11147_s3 + $0xe8] sm:$0xff]  }
 0x2f5   :  { %5820 = vmatprep.subr.bf16.mxu1 %v8323_v30  ;;  %v8381_v30 = vld [vmem:[%s11147_s3 + $0xf0] sm:$0xff]  }
 0x2f6   :  { %v5921_v17 = vpack.c.bf16 %v5917_v31, %v5917_v31 }
 0x2f7   :  { %5854 = vmatpush2.bf16.msra.mxu0 %v8324_v25 }
 0x2f8   :  { %5821 = vmatpush2.bf16.msra.mxu1 %v8321_v32  ;;  %5855 = vmatprep.subr.bf16.mxu0 %v8332_v38 }
 0x2f9   :  { %5822 = vmatprep.subr.bf16.mxu1 %v8329_v33 }
 0x2fb   :  { %5856 = vmatpush2.bf16.msra.mxu0 %v8330_v61 }
 0x2fc   :  { %5823 = vmatpush2.bf16.msra.mxu1 %v8327_v47  ;;  %5857 = vmatprep.subr.bf16.mxu0 %v8338_v34  ;;  %v8384_v47 = vld [vmem:[%s11147_s3 + $0xa8] sm:$0xff]   ;;  %v8385_v34 = vld [vmem:[%s11147_s3 + $0xe0] sm:$0xff]  }
 0x2fd   :  { %5824 = vmatprep.subr.bf16.mxu1 %v8335_v51 }
 0x2ff   :  { %5858 = vmatpush2.bf16.msra.mxu0 %v8336_v22  ;;  %v8387_v22 = vld [vmem:[%s11147_s3 + $0xd8] sm:$0xff]  }
 0x300   :  { %5825 = vmatpush2.bf16.msra.mxu1 %v8333_v1  ;;  %5859 = vmatprep.subr.bf16.mxu0 %v8341_v23  ;;  %v8386_v1 = vld [vmem:[%s11147_s3 + $0xa0] sm:$0xff]   ;;  %v8388_v23 = vld [vmem:[%s11147_s3 + $0x98] sm:$0xff]  }
 0x301   :  { %5884 = vmatprep.subr.bf16.mxu1 %v8344_v41  ;;  %v8389_v41 = vld [vmem:[%s11147_s3 + $0xd0] sm:$0xff]  }
 0x303   :  { %v5582_v7 = vpop.f32.mrf.mxu1  ;;  %5827 = vmatmul.mubr.bf16.vlgmr.msra.gmra.mxu1 %v9769_v63  ;;  %5860 = vmatpush2.bf16.msra.mxu0 %v8339_v35  ;;  %v8356_v63 = vld [vmem:[%s11144_s1 + $0x182c] ss:$16 sps:$4 sm:$0xff]   ;;  %v8390_v35 = vld [vmem:[%s11147_s3 + $0x90] sm:$0xff]  }
 0x304   :  { %v5583_v10 = vadd.f32 %v5582_v7, %v10852_v50  ;;  %5885 = vmatpush1.bf16.msra.mxu1 %v8342_v44  ;;  %5861 = vmatprep.subr.bf16.mxu0 %v8347_v45  ;;  %v8391_v7 = vld [vmem:[%s11147_s3 + $0xc8] sm:$0xff]  }
 0x305   :  { %v5584_v48 = vpop.f32.mrf.mxu1  ;;  %5886 = vmatprep.subr.bf16.mxu1 %v8350_v46  ;;  %5908 = vmatprep.mubr.bf16.mxu1 %v8397_v21  ;;  %v8362_v21 = vld [vmem:[%s11144_s1 + $0x180c] ss:$16 sps:$4 sm:$0xff]  }
 0x306   :  { %v5585_v50 = vadd.f32 %v5584_v48, %v10866_v56  ;;  %v8357_v56 = vld [vmem:[%s11144_s1 + $0x1708] ss:$16 sps:$4 sm:$0xff]  }
 0x307   :  { %v5586_v37 = vpop.f32.mrf.mxu1  ;;  %5862 = vmatpush2.bf16.msra.mxu0 %v8345_v42  ;;  %v8392_v42 = vld [vmem:[%s11147_s3 + $0x88] sm:$0xff]  }
 0x308   :  { %5887 = vmatpush1.bf16.msra.mxu1 %v8348_v57  ;;  %5863 = vmatprep.subr.bf16.mxu0 %v8353_v49  ;;  %v8393_v49 = vld [vmem:[%s11147_s3 + $0xc0] sm:$0xff]  }
 0x309   :  { %v5587_v55 = vpop.f32.mrf.mxu1  ;;  %5888 = vmatprep.subr.bf16.mxu1 %v8356_v63  ;;  %v8394_v63 = vld [vmem:[%s11147_s3 + $0x80] sm:$0xff]  }
 0x30b   :  { %5864 = vmatpush2.bf16.msra.mxu0 %v8351_v52 }
 0x30c   :  { %5889 = vmatpush1.bf16.msra.mxu1 %v8354_v53  ;;  %5865 = vmatprep.subr.bf16.mxu0 %v8359_v62 }
 0x30d   :  { %5890 = vmatprep.subr.bf16.mxu1 %v8362_v21 }
 0x30f   :  { %5866 = vmatpush2.bf16.msra.mxu0 %v8357_v56 }
 0x310   :  { %5891 = vmatpush1.bf16.msra.mxu1 %v8360_v59  ;;  %7117 = vmatprep.subr.bf16.mxu0 %v8363_v15 }
 0x311   :  { %7139 = vmatprep.subr.bf16.mxu1 %v8379_v12 }
 0x312   :  { %v5623_v39 = vpop.f32.mrf.mxu0  ;;  %5868 = vmatmul.mubr.bf16.vlgmr.msra.gmra.mxu0 %v9773_v4 }
 0x313   :  { %7083 = vmatmul.mubr.msk.bf16.vlgmr.msra.gmra.mxu1 %vm4847_vm0, %v8396_v5  ;;  %v5624_v58 = vadd.f32 %v5623_v39, %v5583_v10  ;;  %7118 = vmatpush3.bf16.msra.mxu0 %v8364_v2 }
 0x314   :  { %6220 = vmatprep.mubr.bf16.mxu0 %v5922_v40  ;;  %v5625_v8 = vpop.f32.mrf.mxu0  ;;  %7119 = vmatprep.subr.bf16.mxu0 %v8365_v3 }
 0x315   :  { %v5626_v4 = vadd.f32 %v5625_v8, %v5585_v50  ;;  %7140 = vmatpush3.bf16.msra.mxu1 %v8380_v13 }
 0x316   :  { %v5627_v24 = vpop.f32.mrf.mxu0  ;;  %7141 = vmatprep.subr.bf16.mxu1 %v8381_v30 }
 0x317   :  { %7120 = vmatpush3.bf16.msra.mxu0 %v8366_v0 }
 0x318   :  { %v5628_v43 = vpop.f32.mrf.mxu0  ;;  %7121 = vmatprep.subr.bf16.mxu0 %v8367_v11 }
 0x319   :  { %7142 = vmatpush3.bf16.msra.mxu1 %v8382_v36  ;;  %v7084_v36 = vld [vmem:[%s11148_s4] ss:$0 sm:$0xff] }
 0x31a   :  { %7143 = vmatprep.subr.bf16.mxu1 %v8383_v16 }
 0x31b   :  { %7122 = vmatpush3.bf16.msra.mxu0 %v8368_v27 }
 0x31c   :  { %7123 = vmatprep.subr.bf16.mxu0 %v8369_v9 }
 0x31d   :  { %7144 = vmatpush3.bf16.msra.mxu1 %v8384_v47 }
 0x31e   :  { %7145 = vmatprep.subr.bf16.mxu1 %v8385_v34 }
 0x31f   :  { %7124 = vmatpush3.bf16.msra.mxu0 %v8370_v14 }
 0x320   :  { %7125 = vmatprep.subr.bf16.mxu0 %v8371_v6 }
 0x321   :  { %7146 = vmatpush3.bf16.msra.mxu1 %v8386_v1 }
 0x322   :  { %7147 = vmatprep.subr.bf16.mxu1 %v8387_v22 }
 0x323   :  { %7126 = vmatpush3.bf16.msra.mxu0 %v8372_v19 }
 0x324   :  { %7127 = vmatprep.subr.bf16.mxu0 %v8373_v54 }
 0x325   :  { %7148 = vmatpush3.bf16.msra.mxu1 %v8388_v23 }
 0x326   :  { %7149 = vmatprep.subr.bf16.mxu1 %v8389_v41 }
 0x327   :  { %7128 = vmatpush3.bf16.msra.mxu0 %v8374_v26 }
 0x328   :  { %7129 = vmatprep.subr.bf16.mxu0 %v8375_v18 }
 0x329   :  { %7150 = vmatpush3.bf16.msra.mxu1 %v8390_v35 }
 0x32a   :  { %7151 = vmatprep.subr.bf16.mxu1 %v8391_v7 }
 0x32b   :  { %7130 = vmatpush3.bf16.msra.mxu0 %v8376_v20 }
 0x32c   :  { %7131 = vmatprep.subr.bf16.mxu0 %v8377_v29 }
 0x32d   :  { %7152 = vmatpush3.bf16.msra.mxu1 %v8392_v42 }
 0x32e   :  { %7153 = vmatprep.subr.bf16.mxu1 %v8393_v49 }
 0x32f   :  { %7132 = vmatpush3.bf16.msra.mxu0 %v8378_v28 }
 0x331   :  { %7154 = vmatpush3.bf16.msra.mxu1 %v8394_v63 }
 0x332   :  { %6221 = vmatmul.mubr.bf16.vlgmr.msra.gmra.mxu0 %v5921_v17 }
 0x343   :  { %v5664_v32 = vpop.f32.mrf.mxu1 }
 0x344   :  { %v5665_v25 = vadd.f32 %v5664_v32, %v5624_v58 }
 0x345   :  { %v5666_v33 = vpop.f32.mrf.mxu1 }
 0x346   :  { %v5667_v38 = vadd.f32 %v5666_v33, %v5626_v4 }
 0x347   :  { %v5668_v61 = vpop.f32.mrf.mxu1 }
 0x349   :  { %v5669_v51 = vpop.f32.mrf.mxu1 }
 0x352   :  { %v5705_v44 = vpop.f32.mrf.mxu0 }
 0x353   :  { %v5706_v45 = vadd.f32 %v5705_v44, %v5665_v25 }
 0x354   :  { %v5707_v46 = vpop.f32.mrf.mxu0 }
 0x355   :  { %v5708_v10 = vadd.f32 %v5707_v46, %v5667_v38 }
 0x356   :  { %v5709_v57 = vpop.f32.mrf.mxu0 }
 0x358   :  { %v5710_v48 = vpop.f32.mrf.mxu0 }
 0x383   :  { %v5746_v50 = vpop.f32.mrf.mxu1 }
 0x384   :  { %v5747_v37 = vadd.f32 %v5746_v50, %v5706_v45 }
 0x385   :  { %v5748_v52 = vpop.f32.mrf.mxu1 }
 0x386   :  { %v5749_v53 = vadd.f32 %v5748_v52, %v5708_v10 }
 0x387   :  { %v5750_v55 = vpop.f32.mrf.mxu1 }
 0x389   :  { %v5751_v62 = vpop.f32.mrf.mxu1 }
 0x392   :  { %v5787_v21 = vpop.f32.mrf.mxu0 }
 0x393   :  { %v5788_v39 = vadd.f32 %v5787_v21, %v5747_v37 }
 0x394   :  { %v5789_v56 = vpop.f32.mrf.mxu0 }
 0x395   :  { %v5790_v5 = vadd.f32 %v5789_v56, %v5749_v53 }
 0x396   :  { %v5791_v59 = vpop.f32.mrf.mxu0 }
 0x398   :  { %v5792_v15 = vpop.f32.mrf.mxu0 }
 0x3c3   :  { %v5828_v60 = vpop.f32.mrf.mxu1 }
 0x3c4   :  { %v5829_v58 = vadd.f32 %v5828_v60, %v5788_v39 }
 0x3c5   :  { %v5830_v2 = vpop.f32.mrf.mxu1 }
 0x3c6   :  { %v5831_v11 = vadd.f32 %v5830_v2, %v5790_v5 }
 0x3c7   :  { %v5832_v3 = vpop.f32.mrf.mxu1 }
 0x3c9   :  { %v5833_v40 = vpop.f32.mrf.mxu1 }
 0x3d2   :  { %v5869_v0 = vpop.f32.mrf.mxu0 }
 0x3d3   :  { %v5910_v8 = vpop.f32.mrf.mxu1  ;;  %v5870_v4 = vadd.f32 %v5869_v0, %v5829_v58 }
 0x3d4   :  { %v5871_v24 = vpop.f32.mrf.mxu0 }
 0x3d5   :  { %v5912_v27 = vpop.f32.mrf.mxu1  ;;  %v5911_v43 = vadd.f32 %v5910_v8, %v5870_v4  ;;  %v5872_v9 = vadd.f32 %v5871_v24, %v5831_v11 }
 0x3d6   :  { %v5873_v12 = vpop.f32.mrf.mxu0 }
 0x3d7   :  { %v5914_v13 = vpop.f32.mrf.mxu1  ;;  %v5913_v14 = vadd.f32 %v5912_v27, %v5872_v9  ;;  %v5919_v6 = vmax.f32 %v5911_v43, 0.0 }
 0x3d8   :  { %v5874_v19 = vpop.f32.mrf.mxu0 }
 0x3d9   :  { %v5915_v54 = vpop.f32.mrf.mxu1  ;;  %v5920_v26 = vmax.f32 %v5913_v14, 0.0  ;;  %v5923_v20 = vpack.c.bf16 %v5919_v6, %v5919_v6 }
 0x3db   :  { %v5924_v18 = vpack.c.bf16 %v5920_v26, %v5920_v26 }
 0x3dd   :  { %6260 = vmatprep.mubr.bf16.mxu1 %v5924_v18 }
 0x3de   :  { %6261 = vmatmul.mubr.bf16.vlgmr.msra.gmra.mxu1 %v5923_v20 }
 0x3f2   :  { %v7133_v29 = vpop.f32.mrf.mxu0 }
 0x3f4   :  { %v7134_v28 = vpop.f32.mrf.mxu0 }
 0x3f5   :  { %v7135_v31 = vadd.f32 %v7134_v28, %v7133_v29 }
 0x3f6   :  { %v7136_v17 = vpop.f32.mrf.mxu0 }
 0x3f7   :  { %v6223_v33 = vadd.f32 %v7135_v31, %v7084_v36 }
 0x3f8   :  { %v7137_v30 = vpop.f32.mrf.mxu0 }
 0x49e   :  { %v7155_v32 = vpop.f32.mrf.mxu1 }
 0x4a0   :  { %v7156_v25 = vpop.f32.mrf.mxu1 }
 0x4a1   :  { %v7157_v16 = vadd.f32 %v7156_v25, %v7155_v32 }
 0x4a2   :  { %v7158_v38 = vpop.f32.mrf.mxu1 }
 0x4a3   :  { %v6263_v47 = vadd.f32 %v7157_v16, %v6223_v33 }
 0x4a4   :  { %v7159_v61 = vpop.f32.mrf.mxu1 }
 0x4a5   :  { %6268 = vst [vmem:[%s11149_s5] sm:$0xff] %v6263_v47 }

</bundles_post_ra>
